<compile_context>
chip_gen: v5e
topology: v5e:2x2
jax: 0.10.0
libtpu: 0.0.40
codegen_flags: <defaults>
</compile_context>

<pallas_src>
import functools

import jax
import jax.numpy as jnp
from jax.experimental import pallas as pl
from jax.experimental.pallas import tpu as pltpu

EPS = 1e-5
LANE = 128
_CONV_ROW_TARGET = 512      # TH*Wo target for the conv tiles (was 128)
_BN_ROW_TARGET = 2048       # rows*Wo target for the mem-bound bn_act pass
_VMEM_CAP = 48 * 2 ** 20    # v7x has only 64 MiB physical VMEM per TC


def _round_up(x, m):
    return (x + m - 1) // m * m


def _row_tile(ho, wo, target):
    """Largest divisor `th` of `ho` such that th * wo <= target (>=1)."""
    cap = max(1, target // max(wo, 1))
    best = 1
    for t in range(1, ho + 1):
        if ho % t == 0 and t <= cap:
            best = t
    return best


# ---------------------------------------------------------------------------
# stride-1 conv3x3 (+optional fused bn+ReLU on the input, +bias, +BN stats)
# ---------------------------------------------------------------------------

def _conv_s1_kernel(fuse_bn, th, wo, cp, co, *refs):
    if fuse_bn:
        (x_ref, t_ref, b_ref, sc_ref, sh_ref, w_ref, bias_ref,
         y_ref, st_ref, slab, acc) = refs
    else:
        (x_ref, t_ref, b_ref, w_ref, bias_ref,
         y_ref, st_ref, slab, acc) = refs

    j = pl.program_id(1)

    def prologue(v):
        # Fused bn1 + ReLU on conv2's input (removes the a1 HBM round trip);
        # identity for conv1.  f32 math, bf16 MXU operand out.
        if fuse_bn:
            v = jnp.maximum(v.astype(jnp.float32) * sc_ref[...] + sh_ref[...],
                            0.0)
        return v.astype(jnp.bfloat16)

    xm = prologue(x_ref[0])             # (TH, Wo, Cp)
    top = prologue(t_ref[0, 0])         # (Wo, Cp) neighbour row above tile
    bot = prologue(b_ref[0, 0])         # (Wo, Cp) neighbour row below tile
    # In-kernel zero padding of the image border rows (no JAX-side jnp.pad).
    top = jnp.where(j > 0, top, jnp.zeros_like(top))
    bot = jnp.where(j < pl.num_programs(1) - 1, bot, jnp.zeros_like(bot))
    win = jnp.concatenate([top[None], xm, bot[None]], axis=0)   # (TH+2, Wo, Cp)

    # dx-fused LHS slab: channel group g holds input column (w + g - 1); the
    # zero columns are the conv's W padding.  Built once per grid step into a
    # VMEM scratch (3 repack copies instead of 9 per-tap slice/reshapes).
    zc = jnp.zeros((th + 2, 1, cp), jnp.bfloat16)
    left = jnp.concatenate([zc, win[:, :wo - 1, :]], axis=1)    # col w-1
    right = jnp.concatenate([win[:, 1:, :], zc], axis=1)        # col w+1
    slab[...] = jnp.concatenate([left, win, right], axis=-1)    # (TH+2, Wo, 3Cp)

    # 3 MXU matmuls with K = 3*Cp (fills the 256-wide MXU on v6e/v7x),
    # accumulated into a VMEM scratch (not a live value).
    for dy in range(3):
        lhs = slab[pl.ds(dy, th), :, :].reshape(th * wo, 3 * cp)
        prod = jnp.dot(lhs, w_ref[dy], preferred_element_type=jnp.float32)
        if dy == 0:
            acc[...] = prod
        else:
            acc[...] = acc[...] + prod

    yv = acc[...] + bias_ref[...]                   # (TH*Wo, Co) f32
    y_bf = yv.astype(jnp.bfloat16)                  # bf16 intermediate in HBM
    y_ref[...] = y_bf.reshape(1, th, wo, co)
    ys = y_bf.astype(jnp.float32)                   # stats of the stored value
    s1 = jnp.sum(ys, axis=0, keepdims=True)
    s2 = jnp.sum(ys * ys, axis=0, keepdims=True)
    st_ref[...] = jnp.concatenate(
        [s1, s2, jnp.zeros((6, co), jnp.float32)], axis=0).reshape(1, 1, 8, co)


def conv3x3_s1(x, w3, bias, in_scale=None, in_shift=None):
    """3x3 conv, stride 1, padding 1 (padding handled in-kernel).

    x     : (N, H, W, Cp) bf16, channel-padded to a multiple of 128
    w3    : (3, 3*Cp, Co) bf16   (w3[dy, dx*Cp + c, :] = w[dy, dx, c, :])
    bias  : (1, Co) f32
    in_scale / in_shift : optional (1, Cp) f32 -> relu(x*scale+shift) fused
                          onto the input tile (bn1+ReLU fused into conv2).
    Returns y (N, H, W, Co) bf16 and per-tile stats (N, n_h, 8, Co) f32
    (row 0 = sum, row 1 = sum of squares of y over the tile, rows 2..7 zero).
    """
    n, h, w, cp = x.shape
    co = w3.shape[-1]
    th = _row_tile(h, w, _CONV_ROW_TARGET)
    n_h = h // th
    fuse_bn = in_scale is not None

    x_spec = pl.BlockSpec((1, th, w, cp), lambda i, j: (i, j, 0, 0))
    # 1-row halo blocks of the SAME input array; border rows are zeroed
    # in-kernel, the clamp only keeps the DMA in bounds.
    top_spec = pl.BlockSpec(
        (1, 1, w, cp), lambda i, j: (i, jnp.maximum(j * th - 1, 0), 0, 0))
    bot_spec = pl.BlockSpec(
        (1, 1, w, cp), lambda i, j: (i, jnp.minimum((j + 1) * th, h - 1), 0, 0))
    vec_spec = pl.BlockSpec((1, cp), lambda i, j: (0, 0))
    w_spec = pl.BlockSpec((3, 3 * cp, co), lambda i, j: (0, 0, 0))
    b_spec = pl.BlockSpec((1, co), lambda i, j: (0, 0))
    y_spec = pl.BlockSpec((1, th, w, co), lambda i, j: (i, j, 0, 0))
    st_spec = pl.BlockSpec((1, 1, 8, co), lambda i, j: (i, j, 0, 0))

    if fuse_bn:
        ins = (x, x, x, in_scale, in_shift, w3, bias)
        in_specs = [x_spec, top_spec, bot_spec, vec_spec, vec_spec,
                    w_spec, b_spec]
    else:
        ins = (x, x, x, w3, bias)
        in_specs = [x_spec, top_spec, bot_spec, w_spec, b_spec]

    flops = 2 * n * h * w * 9 * cp * co
    bytes_accessed = int(n * h * w * cp * 2 * (1.0 + 2.0 / th)
                         + w3.size * 2 + n * h * w * co * 2
                         + n * n_h * 8 * co * 4)
    tile_bytes = ((th + 2) * w * cp * 2            # x tile + halos (bf16)
                  + (th + 2) * w * 3 * cp * 2      # LHS slab scratch
                  + th * w * co * 4                # f32 accumulator
                  + 3 * 3 * cp * co * 2            # weights
                  + th * w * co * 2 + 8 * co * 4)  # outputs
    vmem_limit = int(min(max(6 * tile_bytes, 32 * 2 ** 20), _VMEM_CAP))

    kern = functools.partial(_conv_s1_kernel, fuse_bn, th, w, cp, co)
    return pl.pallas_call(
        kern,
        grid=(n, n_h),
        in_specs=in_specs,
        out_specs=(y_spec, st_spec),
        out_shape=(jax.ShapeDtypeStruct((n, h, w, co), jnp.bfloat16),
                   jax.ShapeDtypeStruct((n, n_h, 8, co), jnp.float32)),
        scratch_shapes=[pltpu.VMEM((th + 2, w, 3 * cp), jnp.bfloat16),
                        pltpu.VMEM((th * w, co), jnp.float32)],
        compiler_params=pltpu.CompilerParams(
            dimension_semantics=("parallel", "parallel"),
            vmem_limit_bytes=vmem_limit),
        cost_estimate=pl.CostEstimate(flops=flops, transcendentals=0,
                                      bytes_accessed=bytes_accessed),
    )(*ins)


# ---------------------------------------------------------------------------
# stride-2 conv3x3 (first_downscale's conv1 only; ~1/8 of the block FLOPs)
# ---------------------------------------------------------------------------

def _conv_s2_kernel(taps, th, wo, cp, co, x_ref, halo_ref, w_ref, bias_ref,
                    y_ref, st_ref, acc):
    xa = x_ref[0]                                        # (4, TH, Win, Cp)
    xw = jnp.concatenate([xa, halo_ref[0]], axis=1)      # (4, TH+1, Win, Cp)
    for k, (p, oy, ox) in enumerate(taps):
        lhs = xw[p, oy:oy + th, ox:ox + wo, :].reshape(th * wo, cp)
        prod = jnp.dot(lhs, w_ref[k], preferred_element_type=jnp.float32)
        if k == 0:
            acc[...] = prod
        else:
            acc[...] = acc[...] + prod
    yv = acc[...] + bias_ref[...]
    y_bf = yv.astype(jnp.bfloat16)
    y_ref[...] = y_bf.reshape(1, th, wo, co)
    ys = y_bf.astype(jnp.float32)
    s1 = jnp.sum(ys, axis=0, keepdims=True)
    s2 = jnp.sum(ys * ys, axis=0, keepdims=True)
    st_ref[...] = jnp.concatenate(
        [s1, s2, jnp.zeros((6, co), jnp.float32)], axis=0).reshape(1, 1, 8, co)


def conv3x3_s2(x, w9, bias):
    """3x3 conv, stride 2, padding 1.

    x    : (N, H, W, Cp) bf16 (H, W even)
    w9   : (9, Cp, Co) bf16   (k = dy*3 + dx)
    bias : (1, Co) f32
    """
    n, h, w, cp = x.shape
    co = w9.shape[-1]
    assert h % 2 == 0 and w % 2 == 0, "stride-2 path assumes even H, W"
    ho, wo = h // 2, w // 2
    # TODO(synk): replace this JAX-side pad + 4-phase stack with in-kernel
    #             strided pl.ds loads to drop the extra HBM pass over x.
    xpad = jnp.pad(x, ((0, 0), (1, 1), (1, 1), (0, 0)))
    phases = [xpad[:, a::2, b::2, :] for a in range(2) for b in range(2)]
    xsrc = jnp.stack(phases, axis=1)                     # (N, 4, Ho+1, Wo+1, Cp)
    win = wo + 1
    taps = tuple((2 * (dy % 2) + (dx % 2), dy // 2, dx // 2)
                 for dy in range(3) for dx in range(3))
    th = _row_tile(ho, wo, _CONV_ROW_TARGET)
    n_h = ho // th

    x_spec = pl.BlockSpec((1, 4, th, win, cp), lambda i, j: (i, 0, j, 0, 0))
    halo_spec = pl.BlockSpec((1, 4, 1, win, cp),
                             lambda i, j: (i, 0, (j + 1) * th, 0, 0))
    w_spec = pl.BlockSpec((9, cp, co), lambda i, j: (0, 0, 0))
    b_spec = pl.BlockSpec((1, co), lambda i, j: (0, 0))
    y_spec = pl.BlockSpec((1, th, wo, co), lambda i, j: (i, j, 0, 0))
    st_spec = pl.BlockSpec((1, 1, 8, co), lambda i, j: (i, j, 0, 0))

    kern = functools.partial(_conv_s2_kernel, taps, th, wo, cp, co)
    return pl.pallas_call(
        kern,
        grid=(n, n_h),
        in_specs=[x_spec, halo_spec, w_spec, b_spec],
        out_specs=(y_spec, st_spec),
        out_shape=(jax.ShapeDtypeStruct((n, ho, wo, co), jnp.bfloat16),
                   jax.ShapeDtypeStruct((n, n_h, 8, co), jnp.float32)),
        scratch_shapes=[pltpu.VMEM((th * wo, co), jnp.float32)],
        compiler_params=pltpu.CompilerParams(
            dimension_semantics=("parallel", "parallel"),
            vmem_limit_bytes=_VMEM_CAP),
    )(xsrc, xsrc, w9, bias)


# ---------------------------------------------------------------------------
# final fused BN-normalize (+residual) + ReLU  (mem-bound, large tiles)
# ---------------------------------------------------------------------------

def _bn_act_kernel(y_ref, sc_ref, sh_ref, o_ref):
    v = y_ref[...].astype(jnp.float32) * sc_ref[...] + sh_ref[...]
    o_ref[...] = jnp.maximum(v, 0.0).astype(o_ref.dtype)


def _bn_act_res_kernel(y_ref, sc_ref, sh_ref, r_ref, o_ref):
    v = y_ref[...].astype(jnp.float32) * sc_ref[...] + sh_ref[...] + r_ref[...]
    o_ref[...] = jnp.maximum(v, 0.0).astype(o_ref.dtype)


def bn_act(y, scale, shift, residual=None, out_dtype=jnp.float32):
    n, ho, wo, cp = y.shape
    th = _row_tile(ho, wo, _BN_ROW_TARGET)   # much larger tile than the conv
    n_h = ho // th

    blk = pl.BlockSpec((1, th, wo, cp), lambda i, j: (i, j, 0, 0))
    vec = pl.BlockSpec((1, 1, 1, cp), lambda i, j: (0, 0, 0, 0))
    sc = scale.reshape(1, 1, 1, cp).astype(jnp.float32)
    sh = shift.reshape(1, 1, 1, cp).astype(jnp.float32)

    if residual is None:
        kern, ins, specs = _bn_act_kernel, (y, sc, sh), [blk, vec, vec]
    else:
        kern = _bn_act_res_kernel
        ins = (y, sc, sh, residual.astype(jnp.float32))
        specs = [blk, vec, vec, blk]

    return pl.pallas_call(
        kern,
        grid=(n, n_h),
        in_specs=specs,
        out_specs=blk,
        out_shape=jax.ShapeDtypeStruct((n, ho, wo, cp), out_dtype),
        compiler_params=pltpu.CompilerParams(
            dimension_semantics=("parallel", "parallel"),
            vmem_limit_bytes=_VMEM_CAP),
    )(*ins)


# ---------------------------------------------------------------------------
# JAX-side glue (parameter packing, per-channel stats math, forward)
# ---------------------------------------------------------------------------

def _pad_w(w, cp_in, cp_out):
    kh, kw, cin, cout = w.shape
    wp = jnp.zeros((kh, kw, cp_in, cp_out), jnp.float32)
    return wp.at[:, :, :cin, :cout].set(w)


def _pack_conv_s1(w, bias, cp_in, cp_out):
    wp = _pad_w(w, cp_in, cp_out)
    w3 = wp.reshape(3, 3 * cp_in, cp_out).astype(jnp.bfloat16)  # dx-fused K
    bp = jnp.zeros((1, cp_out), jnp.float32).at[0, :bias.shape[0]].set(bias)
    return w3, bp


def _pack_conv_s2(w, bias, cp_in, cp_out):
    wp = _pad_w(w, cp_in, cp_out)
    w9 = wp.reshape(9, cp_in, cp_out).astype(jnp.bfloat16)
    bp = jnp.zeros((1, cp_out), jnp.float32).at[0, :bias.shape[0]].set(bias)
    return w9, bp


def _pad_vec(v, cp):
    return jnp.zeros((cp,), jnp.float32).at[:v.shape[0]].set(v)


def _bn_scale_shift(stats, count, gamma_p, beta_p):
    # TODO(synk): mean-shifted / Welford accumulation for very large N*H*W.
    ssum = jnp.sum(stats[:, :, 0, :], axis=(0, 1))
    ssq = jnp.sum(stats[:, :, 1, :], axis=(0, 1))
    mean = ssum / count
    var = jnp.maximum(ssq / count - mean * mean, 0.0)   # biased, training-mode
    scale = gamma_p * jax.lax.rsqrt(var + EPS)
    shift = beta_p - mean * scale
    return scale, shift


def init_params(key, n_channels, first_downscale=False):
    first_channels = n_channels // 2 if first_downscale else n_channels

    def conv_init(k, cin, cout):
        k1, k2 = jax.random.split(k)
        bound = 1.0 / (cin * 9) ** 0.5
        w = jax.random.uniform(k1, (3, 3, cin, cout), jnp.float32, -bound, bound)
        b = jax.random.uniform(k2, (cout,), jnp.float32, -bound, bound)
        return w, b

    k1, k2 = jax.random.split(key)
    w1, b1 = conv_init(k1, first_channels, n_channels)
    w2, b2 = conv_init(k2, n_channels, n_channels)
    ones = jnp.ones((n_channels,), jnp.float32)    # BatchNorm2d default weight
    zeros = jnp.zeros((n_channels,), jnp.float32)  # BatchNorm2d default bias
    return (w1, b1, ones, zeros, w2, b2, ones, zeros)


def res_conv_forward(x_nchw, params, first_downscale=False):
    w1, b1, g1, be1, w2, b2, g2, be2 = params
    # TODO(synk): drop these boundary transposes if the model keeps NHWC.
    x = jnp.transpose(x_nchw, (0, 2, 3, 1)).astype(jnp.float32)      # NHWC
    n, h, w, cin = x.shape
    cout = w1.shape[-1]
    cp_in = _round_up(cin, LANE)
    cp = _round_up(cout, LANE)

    x_padch = jnp.pad(x, ((0, 0), (0, 0), (0, 0), (0, cp_in - cin)))  # residual
    g1p, be1p = _pad_vec(g1, cp), _pad_vec(be1, cp)
    g2p, be2p = _pad_vec(g2, cp), _pad_vec(be2, cp)
    w2p, b2p = _pack_conv_s1(w2, b2, cp, cp)

    # --- conv1 (+bias, +BN partial stats), bf16 out ------------------------
    x_bf = x_padch.astype(jnp.bfloat16)
    if first_downscale:
        w1p, b1p = _pack_conv_s2(w1, b1, cp_in, cp)
        y1, st1 = conv3x3_s2(x_bf, w1p, b1p)
    else:
        w1p, b1p = _pack_conv_s1(w1, b1, cp_in, cp)
        y1, st1 = conv3x3_s1(x_bf, w1p, b1p)
    count = y1.shape[0] * y1.shape[1] * y1.shape[2]

    # --- bn1 + ReLU fused into conv2's prologue; conv2 (+bias, +stats) -----
    sc1, sh1 = _bn_scale_shift(st1, count, g1p, be1p)
    y2, st2 = conv3x3_s1(y1, w2p, b2p,
                         in_scale=sc1.reshape(1, cp),
                         in_shift=sh1.reshape(1, cp))

    # --- bn2 (+residual) + ReLU (single mem-bound pass) ---------------------
    sc2, sh2 = _bn_scale_shift(st2, count, g2p, be2p)
    res = None if first_downscale else x_padch
    out = bn_act(y2, sc2, sh2, residual=res, out_dtype=jnp.float32)

    out = out[..., :cout]
    # F.dropout(y, 0) == identity.
    # TODO(synk): emit updated running_mean/running_var for stateful parity.
    return jnp.transpose(out, (0, 3, 1, 2))                           # NCHW


# ---------------------------------------------------------------------------
# pure-JAX references
# ---------------------------------------------------------------------------

def _conv_ref(x, w, b, stride, dtype):
    y = jax.lax.conv_general_dilated(
        x.astype(dtype), w.astype(dtype), (stride, stride), ((1, 1), (1, 1)),
        dimension_numbers=("NHWC", "HWIO", "NHWC"),
        preferred_element_type=jnp.float32)
    return y + b


def _bn_ref(y, g, be):
    mean = jnp.mean(y, axis=(0, 1, 2), keepdims=True)
    var = jnp.mean((y - mean) ** 2, axis=(0, 1, 2), keepdims=True)
    return (y - mean) * jax.lax.rsqrt(var + EPS) * g + be


def _ref_forward_matched(x_nchw, params, first_downscale=False):
    """Reference replicating the kernel's bf16 rounding points."""
    w1, b1, g1, be1, w2, b2, g2, be2 = params
    x = jnp.transpose(x_nchw, (0, 2, 3, 1)).astype(jnp.float32)
    s = 2 if first_downscale else 1
    y1 = _conv_ref(x, w1, b1, s, jnp.bfloat16)
    y1 = y1.astype(jnp.bfloat16).astype(jnp.float32)      # y1 stored bf16
    a1 = jax.nn.relu(_bn_ref(y1, g1, be1))
    y2 = _conv_ref(a1, w2, b2, 1, jnp.bfloat16)           # conv2 LHS bf16
    y2 = y2.astype(jnp.bfloat16).astype(jnp.float32)      # y2 stored bf16
    y = _bn_ref(y2, g2, be2)
    if not first_downscale:
        y = y + x
    return jnp.transpose(jax.nn.relu(y), (0, 3, 1, 2))


def _ref_forward_f32(x_nchw, params, first_downscale=False):
    w1, b1, g1, be1, w2, b2, g2, be2 = params
    x = jnp.transpose(x_nchw, (0, 2, 3, 1)).astype(jnp.float32)
    s = 2 if first_downscale else 1
    y = jax.nn.relu(_bn_ref(_conv_ref(x, w1, b1, s, jnp.float32), g1, be1))
    y = _bn_ref(_conv_ref(y, w2, b2, 1, jnp.float32), g2, be2)
    if not first_downscale:
        y = y + x
    return jnp.transpose(jax.nn.relu(y), (0, 3, 1, 2))


# ---------------------------------------------------------------------------

if __name__ == "__main__":
    key = jax.random.PRNGKey(0)
    n_channels = 8
    for first_downscale in (False, True):
        cin = n_channels // 2 if first_downscale else n_channels
        kx, kp, key = jax.random.split(key, 3)
        x = jax.random.normal(kx, (2, cin, 16, 16), jnp.float32)   # NCHW
        params = init_params(kp, n_channels, first_downscale)

        fwd = jax.jit(functools.partial(res_conv_forward,
                                        first_downscale=first_downscale))
        out = jax.block_until_ready(fwd(x, params))

        sp = 8 if first_downscale else 16
        assert out.shape == (2, n_channels, sp, sp), out.shape

        ref_m = jax.block_until_ready(
            _ref_forward_matched(x, params, first_downscale))
        ref_f = jax.block_until_ready(
            _ref_forward_f32(x, params, first_downscale))
        err_m = float(jnp.max(jnp.abs(out - ref_m)))
        mean_m = float(jnp.mean(jnp.abs(out - ref_m)))
        err_f = float(jnp.max(jnp.abs(out - ref_f)))
        # tight check vs a reference with the same bf16 rounding points
        # (allow the occasional bf16 ULP flip driven by f32 accumulation order)
        assert err_m < 5e-2 and mean_m < 2e-3, ("matched ref", err_m, mean_m)
        # loose sanity check vs a full-f32 reference
        assert err_f < 0.3, ("f32 reference sanity check failed", err_f)

    print("KERNEL_OK")
</pallas_src>

<mosaic_0001>
module attributes {stable_mosaic.version = 11 : i64} {
  func.func @_conv_s1_kernel(%arg0: i32, %arg1: i32, %arg2: memref<1x16x16x128xbf16, #tpu.memory_space<vmem>>, %arg3: memref<1x1x16x128xbf16, #tpu.memory_space<vmem>>, %arg4: memref<1x1x16x128xbf16, #tpu.memory_space<vmem>>, %arg5: memref<3x384x128xbf16, #tpu.memory_space<vmem>>, %arg6: memref<1x128xf32, #tpu.memory_space<vmem>>, %arg7: memref<1x16x16x128xbf16, #tpu.memory_space<vmem>>, %arg8: memref<1x1x8x128xf32, #tpu.memory_space<vmem>>, %arg9: memref<18x16x384xbf16, #tpu.memory_space<vmem>>, %arg10: memref<256x128xf32, #tpu.memory_space<vmem>>) attributes {dimension_semantics = [#tpu.dimension_semantics<parallel>, #tpu.dimension_semantics<parallel>], iteration_bounds = array<i64: 2, 1>, scalar_prefetch = 0 : i64, scratch_operands = 2 : i64, tpu.core_type = #tpu.core_type<tc>, window_params = [{transform_indices = @transform_0, window_bounds = array<i64: 1, 16, 16, 128>}, {transform_indices = @transform_1, window_bounds = array<i64: 1, 1, 16, 128>}, {transform_indices = @transform_2, window_bounds = array<i64: 1, 1, 16, 128>}, {pipeline_mode = #tpu.pipeline_mode<synchronous>, transform_indices = @transform_3, window_bounds = array<i64: 3, 384, 128>}, {pipeline_mode = #tpu.pipeline_mode<synchronous>, transform_indices = @transform_4, window_bounds = array<i64: 1, 128>}, {transform_indices = @transform_5, window_bounds = array<i64: 1, 16, 16, 128>}, {transform_indices = @transform_6, window_bounds = array<i64: 1, 1, 8, 128>}]} {
    %c0 = arith.constant 0 : index
    %c0_0 = arith.constant 0 : index
    %c0_1 = arith.constant 0 : index
    %c0_2 = arith.constant 0 : index
    %0 = vector.load %arg2[%c0, %c0_0, %c0_1, %c0_2] : memref<1x16x16x128xbf16, #tpu.memory_space<vmem>>, vector<1x16x16x128xbf16>
    %1 = vector.shape_cast %0 : vector<1x16x16x128xbf16> to vector<16x16x128xbf16>
    %c0_3 = arith.constant 0 : index
    %c0_4 = arith.constant 0 : index
    %c0_5 = arith.constant 0 : index
    %c0_6 = arith.constant 0 : index
    %2 = vector.load %arg3[%c0_3, %c0_4, %c0_5, %c0_6] : memref<1x1x16x128xbf16, #tpu.memory_space<vmem>>, vector<1x1x16x128xbf16>
    %3 = vector.shape_cast %2 : vector<1x1x16x128xbf16> to vector<16x128xbf16>
    %c0_7 = arith.constant 0 : index
    %c0_8 = arith.constant 0 : index
    %c0_9 = arith.constant 0 : index
    %c0_10 = arith.constant 0 : index
    %4 = vector.load %arg4[%c0_7, %c0_8, %c0_9, %c0_10] : memref<1x1x16x128xbf16, #tpu.memory_space<vmem>>, vector<1x1x16x128xbf16>
    %5 = vector.shape_cast %4 : vector<1x1x16x128xbf16> to vector<16x128xbf16>
    %c0_i32 = arith.constant 0 : i32
    %6 = arith.cmpi sgt, %arg1, %c0_i32 : i32
    %cst = arith.constant 0.000000e+00 : bf16
    %7 = vector.broadcast %cst : bf16 to vector<16x128xbf16>
    %8 = arith.select %6, %3, %7 : vector<16x128xbf16>
    %c0_i32_11 = arith.constant 0 : i32
    %9 = arith.cmpi slt, %arg1, %c0_i32_11 : i32
    %cst_12 = arith.constant 0.000000e+00 : bf16
    %10 = vector.broadcast %cst_12 : bf16 to vector<16x128xbf16>
    %11 = arith.select %9, %5, %10 : vector<16x128xbf16>
    %12 = vector.shape_cast %8 : vector<16x128xbf16> to vector<1x16x128xbf16>
    %13 = vector.shape_cast %11 : vector<16x128xbf16> to vector<1x16x128xbf16>
    %14 = tpu.concatenate %12, %1, %13 in 0 : vector<1x16x128xbf16>, vector<16x16x128xbf16>, vector<1x16x128xbf16> -> vector<18x16x128xbf16>
    %cst_13 = arith.constant 0.000000e+00 : bf16
    %15 = vector.broadcast %cst_13 : bf16 to vector<18x1x128xbf16>
    %16 = vector.extract_strided_slice %14 {offsets = [0, 0, 0], sizes = [18, 15, 128], strides = [1, 1, 1]} : vector<18x16x128xbf16> to vector<18x15x128xbf16>
    %17 = tpu.concatenate %15, %16 in 1 : vector<18x1x128xbf16>, vector<18x15x128xbf16> -> vector<18x16x128xbf16>
    %18 = vector.extract_strided_slice %14 {offsets = [0, 1, 0], sizes = [18, 15, 128], strides = [1, 1, 1]} : vector<18x16x128xbf16> to vector<18x15x128xbf16>
    %19 = tpu.concatenate %18, %15 in 1 : vector<18x15x128xbf16>, vector<18x1x128xbf16> -> vector<18x16x128xbf16>
    %20 = tpu.concatenate %17, %14, %19 in 2 : vector<18x16x128xbf16>, vector<18x16x128xbf16>, vector<18x16x128xbf16> -> vector<18x16x384xbf16>
    %c0_14 = arith.constant 0 : index
    %c0_15 = arith.constant 0 : index
    %c0_16 = arith.constant 0 : index
    %21 = vector.load %arg9[%c0_14, %c0_15, %c0_16] : memref<18x16x384xbf16, #tpu.memory_space<vmem>>, vector<18x16x384xbf16>
    tpu.vector_store %arg9[%c0_14, %c0_15, %c0_16], %20 {strides = array<i32>} : memref<18x16x384xbf16, #tpu.memory_space<vmem>>, vector<18x16x384xbf16>,
    %c0_17 = arith.constant 0 : index
    %c0_18 = arith.constant 0 : index
    %c0_19 = arith.constant 0 : index
    %22 = vector.load %arg9[%c0_17, %c0_18, %c0_19] : memref<18x16x384xbf16, #tpu.memory_space<vmem>>, vector<16x16x384xbf16>
    %23 = vector.shape_cast %22 : vector<16x16x384xbf16> to vector<256x384xbf16>
    %c0_20 = arith.constant 0 : index
    %c0_21 = arith.constant 0 : index
    %c0_22 = arith.constant 0 : index
    %24 = vector.load %arg5[%c0_20, %c0_21, %c0_22] : memref<3x384x128xbf16, #tpu.memory_space<vmem>>, vector<1x384x128xbf16>
    %25 = vector.shape_cast %24 : vector<1x384x128xbf16> to vector<384x128xbf16>
    %cst_23 = arith.constant dense<0.000000e+00> : vector<256x128xf32>
    %26 = tpu.matmul %23, %25, %cst_23 {dimension_numbers = #tpu.dot_dimension_numbers<[1], [0], [0], [1], [0, 0, 1, 1], [], []>} : vector<256x384xbf16>, vector<384x128xbf16>, vector<256x128xf32> -> vector<256x128xf32>
    %c0_24 = arith.constant 0 : index
    %c0_25 = arith.constant 0 : index
    %27 = vector.load %arg10[%c0_24, %c0_25] : memref<256x128xf32, #tpu.memory_space<vmem>>, vector<256x128xf32>
    tpu.vector_store %arg10[%c0_24, %c0_25], %26 {strides = array<i32>} : memref<256x128xf32, #tpu.memory_space<vmem>>, vector<256x128xf32>,
    %c1 = arith.constant 1 : index
    %c0_26 = arith.constant 0 : index
    %c0_27 = arith.constant 0 : index
    %28 = vector.load %arg9[%c1, %c0_26, %c0_27] : memref<18x16x384xbf16, #tpu.memory_space<vmem>>, vector<16x16x384xbf16>
    %29 = vector.shape_cast %28 : vector<16x16x384xbf16> to vector<256x384xbf16>
    %c1_28 = arith.constant 1 : index
    %c0_29 = arith.constant 0 : index
    %c0_30 = arith.constant 0 : index
    %30 = vector.load %arg5[%c1_28, %c0_29, %c0_30] : memref<3x384x128xbf16, #tpu.memory_space<vmem>>, vector<1x384x128xbf16>
    %31 = vector.shape_cast %30 : vector<1x384x128xbf16> to vector<384x128xbf16>
    %cst_31 = arith.constant dense<0.000000e+00> : vector<256x128xf32>
    %32 = tpu.matmul %29, %31, %cst_31 {dimension_numbers = #tpu.dot_dimension_numbers<[1], [0], [0], [1], [0, 0, 1, 1], [], []>} : vector<256x384xbf16>, vector<384x128xbf16>, vector<256x128xf32> -> vector<256x128xf32>
    %c0_32 = arith.constant 0 : index
    %c0_33 = arith.constant 0 : index
    %33 = vector.load %arg10[%c0_32, %c0_33] : memref<256x128xf32, #tpu.memory_space<vmem>>, vector<256x128xf32>
    %34 = arith.addf %33, %32 : vector<256x128xf32>
    %c0_34 = arith.constant 0 : index
    %c0_35 = arith.constant 0 : index
    %35 = vector.load %arg10[%c0_34, %c0_35] : memref<256x128xf32, #tpu.memory_space<vmem>>, vector<256x128xf32>
    tpu.vector_store %arg10[%c0_34, %c0_35], %34 {strides = array<i32>} : memref<256x128xf32, #tpu.memory_space<vmem>>, vector<256x128xf32>,
    %c2 = arith.constant 2 : index
    %c0_36 = arith.constant 0 : index
    %c0_37 = arith.constant 0 : index
    %36 = vector.load %arg9[%c2, %c0_36, %c0_37] : memref<18x16x384xbf16, #tpu.memory_space<vmem>>, vector<16x16x384xbf16>
    %37 = vector.shape_cast %36 : vector<16x16x384xbf16> to vector<256x384xbf16>
    %c2_38 = arith.constant 2 : index
    %c0_39 = arith.constant 0 : index
    %c0_40 = arith.constant 0 : index
    %38 = vector.load %arg5[%c2_38, %c0_39, %c0_40] : memref<3x384x128xbf16, #tpu.memory_space<vmem>>, vector<1x384x128xbf16>
    %39 = vector.shape_cast %38 : vector<1x384x128xbf16> to vector<384x128xbf16>
    %cst_41 = arith.constant dense<0.000000e+00> : vector<256x128xf32>
    %40 = tpu.matmul %37, %39, %cst_41 {dimension_numbers = #tpu.dot_dimension_numbers<[1], [0], [0], [1], [0, 0, 1, 1], [], []>} : vector<256x384xbf16>, vector<384x128xbf16>, vector<256x128xf32> -> vector<256x128xf32>
    %c0_42 = arith.constant 0 : index
    %c0_43 = arith.constant 0 : index
    %41 = vector.load %arg10[%c0_42, %c0_43] : memref<256x128xf32, #tpu.memory_space<vmem>>, vector<256x128xf32>
    %42 = arith.addf %41, %40 : vector<256x128xf32>
    %c0_44 = arith.constant 0 : index
    %c0_45 = arith.constant 0 : index
    %43 = vector.load %arg10[%c0_44, %c0_45] : memref<256x128xf32, #tpu.memory_space<vmem>>, vector<256x128xf32>
    tpu.vector_store %arg10[%c0_44, %c0_45], %42 {strides = array<i32>} : memref<256x128xf32, #tpu.memory_space<vmem>>, vector<256x128xf32>,
    %c0_46 = arith.constant 0 : index
    %c0_47 = arith.constant 0 : index
    %44 = vector.load %arg10[%c0_46, %c0_47] : memref<256x128xf32, #tpu.memory_space<vmem>>, vector<256x128xf32>
    %c0_48 = arith.constant 0 : index
    %c0_49 = arith.constant 0 : index
    %45 = vector.load %arg6[%c0_48, %c0_49] : memref<1x128xf32, #tpu.memory_space<vmem>>, vector<1x128xf32>
    %46 = vector.broadcast %45 : vector<1x128xf32> to vector<256x128xf32>
    %47 = arith.addf %44, %46 : vector<256x128xf32>
    %48 = arith.truncf %47 : vector<256x128xf32> to vector<256x128xbf16>
    %49 = vector.shape_cast %48 : vector<256x128xbf16> to vector<1x16x16x128xbf16>
    %c0_50 = arith.constant 0 : index
    %c0_51 = arith.constant 0 : index
    %c0_52 = arith.constant 0 : index
    %c0_53 = arith.constant 0 : index
    %50 = vector.load %arg7[%c0_50, %c0_51, %c0_52, %c0_53] : memref<1x16x16x128xbf16, #tpu.memory_space<vmem>>, vector<1x16x16x128xbf16>
    tpu.vector_store %arg7[%c0_50, %c0_51, %c0_52, %c0_53], %49 {strides = array<i32>} : memref<1x16x16x128xbf16, #tpu.memory_space<vmem>>, vector<1x16x16x128xbf16>,
    %51 = arith.extf %48 : vector<256x128xbf16> to vector<256x128xf32>
    %cst_54 = arith.constant dense<0.000000e+00> : vector<128xf32>
    %52 = vector.multi_reduction <add>, %51, %cst_54 [0] : vector<256x128xf32> to vector<128xf32>
    %53 = vector.shape_cast %52 : vector<128xf32> to vector<1x128xf32>
    %54 = arith.mulf %51, %51 : vector<256x128xf32>
    %cst_55 = arith.constant dense<0.000000e+00> : vector<128xf32>
    %55 = vector.multi_reduction <add>, %54, %cst_55 [0] : vector<256x128xf32> to vector<128xf32>
    %56 = vector.shape_cast %55 : vector<128xf32> to vector<1x128xf32>
    %cst_56 = arith.constant 0.000000e+00 : f32
    %57 = vector.broadcast %cst_56 : f32 to vector<6x128xf32>
    %58 = tpu.concatenate %53, %56, %57 in 0 : vector<1x128xf32>, vector<1x128xf32>, vector<6x128xf32> -> vector<8x128xf32>
    %59 = vector.shape_cast %58 : vector<8x128xf32> to vector<1x1x8x128xf32>
    %c0_57 = arith.constant 0 : index
    %c0_58 = arith.constant 0 : index
    %c0_59 = arith.constant 0 : index
    %c0_60 = arith.constant 0 : index
    %60 = vector.load %arg8[%c0_57, %c0_58, %c0_59, %c0_60] : memref<1x1x8x128xf32, #tpu.memory_space<vmem>>, vector<1x1x8x128xf32>
    tpu.vector_store %arg8[%c0_57, %c0_58, %c0_59, %c0_60], %59 {strides = array<i32>} : memref<1x1x8x128xf32, #tpu.memory_space<vmem>>, vector<1x1x8x128xf32>,
    return
  }
  func.func @transform_0(%arg0: i32, %arg1: i32) -> (i32, i32, i32, i32) {
    %c0_i32 = arith.constant 0 : i32
    %c0_i32_0 = arith.constant 0 : i32
    %c0_i32_1 = arith.constant 0 : i32
    return %arg0, %arg1, %c0_i32, %c0_i32_0 : i32, i32, i32, i32
  }
  func.func @transform_1(%arg0: i32, %arg1: i32) -> (i32, i32, i32, i32) {
    %c16_i32 = arith.constant 16 : i32
    %0 = arith.muli %arg1, %c16_i32 : i32
    %c1_i32 = arith.constant 1 : i32
    %1 = arith.subi %0, %c1_i32 : i32
    %c0_i32 = arith.constant 0 : i32
    %2 = arith.maxsi %1, %c0_i32 : i32
    %c0_i32_0 = arith.constant 0 : i32
    %c0_i32_1 = arith.constant 0 : i32
    %c0_i32_2 = arith.constant 0 : i32
    return %arg0, %2, %c0_i32_0, %c0_i32_1 : i32, i32, i32, i32
  }
  func.func @transform_2(%arg0: i32, %arg1: i32) -> (i32, i32, i32, i32) {
    %c1_i32 = arith.constant 1 : i32
    %0 = arith.addi %arg1, %c1_i32 : i32
    %c16_i32 = arith.constant 16 : i32
    %1 = arith.muli %0, %c16_i32 : i32
    %c15_i32 = arith.constant 15 : i32
    %2 = arith.minsi %1, %c15_i32 : i32
    %c0_i32 = arith.constant 0 : i32
    %c0_i32_0 = arith.constant 0 : i32
    %c0_i32_1 = arith.constant 0 : i32
    return %arg0, %2, %c0_i32, %c0_i32_0 : i32, i32, i32, i32
  }
  func.func @transform_3(%arg0: i32, %arg1: i32) -> (i32, i32, i32) {
    %c0_i32 = arith.constant 0 : i32
    %c0_i32_0 = arith.constant 0 : i32
    %c0_i32_1 = arith.constant 0 : i32
    %c0_i32_2 = arith.constant 0 : i32
    return %c0_i32, %c0_i32_0, %c0_i32_1 : i32, i32, i32
  }
  func.func @transform_4(%arg0: i32, %arg1: i32) -> (i32, i32) {
    %c0_i32 = arith.constant 0 : i32
    %c0_i32_0 = arith.constant 0 : i32
    %c0_i32_1 = arith.constant 0 : i32
    return %c0_i32, %c0_i32_0 : i32, i32
  }
  func.func @transform_5(%arg0: i32, %arg1: i32) -> (i32, i32, i32, i32) {
    %c0_i32 = arith.constant 0 : i32
    %c0_i32_0 = arith.constant 0 : i32
    %c0_i32_1 = arith.constant 0 : i32
    return %arg0, %arg1, %c0_i32, %c0_i32_0 : i32, i32, i32, i32
  }
  func.func @transform_6(%arg0: i32, %arg1: i32) -> (i32, i32, i32, i32) {
    %c0_i32 = arith.constant 0 : i32
    %c0_i32_0 = arith.constant 0 : i32
    %c0_i32_1 = arith.constant 0 : i32
    return %arg0, %arg1, %c0_i32, %c0_i32_0 : i32, i32, i32, i32
  }
}

module attributes {stable_mosaic.version = 11 : i64} {
  func.func @_bn_act_res_kernel(%arg0: i32, %arg1: i32, %arg2: memref<1x16x16x128xbf16, #tpu.memory_space<vmem>>, %arg3: memref<1x1x1x128xf32, #tpu.memory_space<vmem>>, %arg4: memref<1x1x1x128xf32, #tpu.memory_space<vmem>>, %arg5: memref<1x16x16x128xf32, #tpu.memory_space<vmem>>, %arg6: memref<1x16x16x128xf32, #tpu.memory_space<vmem>>) attributes {dimension_semantics = [#tpu.dimension_semantics<parallel>, #tpu.dimension_semantics<parallel>], iteration_bounds = array<i64: 2, 1>, scalar_prefetch = 0 : i64, scratch_operands = 0 : i64, tpu.core_type = #tpu.core_type<tc>, window_params = [{transform_indices = @transform_0, window_bounds = array<i64: 1, 16, 16, 128>}, {pipeline_mode = #tpu.pipeline_mode<synchronous>, transform_indices = @transform_1, window_bounds = array<i64: 1, 1, 1, 128>}, {pipeline_mode = #tpu.pipeline_mode<synchronous>, transform_indices = @transform_2, window_bounds = array<i64: 1, 1, 1, 128>}, {transform_indices = @transform_3, window_bounds = array<i64: 1, 16, 16, 128>}, {transform_indices = @transform_4, window_bounds = array<i64: 1, 16, 16, 128>}]} {
    %c0 = arith.constant 0 : index
    %c0_0 = arith.constant 0 : index
    %c0_1 = arith.constant 0 : index
    %c0_2 = arith.constant 0 : index
    %0 = vector.load %arg2[%c0, %c0_0, %c0_1, %c0_2] : memref<1x16x16x128xbf16, #tpu.memory_space<vmem>>, vector<1x16x16x128xbf16>
    %1 = arith.extf %0 : vector<1x16x16x128xbf16> to vector<1x16x16x128xf32>
    %c0_3 = arith.constant 0 : index
    %c0_4 = arith.constant 0 : index
    %c0_5 = arith.constant 0 : index
    %c0_6 = arith.constant 0 : index
    %2 = vector.load %arg3[%c0_3, %c0_4, %c0_5, %c0_6] : memref<1x1x1x128xf32, #tpu.memory_space<vmem>>, vector<1x1x1x128xf32>
    %3 = vector.broadcast %2 : vector<1x1x1x128xf32> to vector<1x16x16x128xf32>
    %4 = arith.mulf %1, %3 : vector<1x16x16x128xf32>
    %c0_7 = arith.constant 0 : index
    %c0_8 = arith.constant 0 : index
    %c0_9 = arith.constant 0 : index
    %c0_10 = arith.constant 0 : index
    %5 = vector.load %arg4[%c0_7, %c0_8, %c0_9, %c0_10] : memref<1x1x1x128xf32, #tpu.memory_space<vmem>>, vector<1x1x1x128xf32>
    %6 = vector.broadcast %5 : vector<1x1x1x128xf32> to vector<1x16x16x128xf32>
    %7 = arith.addf %4, %6 : vector<1x16x16x128xf32>
    %c0_11 = arith.constant 0 : index
    %c0_12 = arith.constant 0 : index
    %c0_13 = arith.constant 0 : index
    %c0_14 = arith.constant 0 : index
    %8 = vector.load %arg5[%c0_11, %c0_12, %c0_13, %c0_14] : memref<1x16x16x128xf32, #tpu.memory_space<vmem>>, vector<1x16x16x128xf32>
    %9 = arith.addf %7, %8 : vector<1x16x16x128xf32>
    %cst = arith.constant 0.000000e+00 : f32
    %10 = vector.broadcast %cst : f32 to vector<1x16x16x128xf32>
    %11 = arith.maximumf %9, %10 : vector<1x16x16x128xf32>
    %c0_15 = arith.constant 0 : index
    %c0_16 = arith.constant 0 : index
    %c0_17 = arith.constant 0 : index
    %c0_18 = arith.constant 0 : index
    %12 = vector.load %arg6[%c0_15, %c0_16, %c0_17, %c0_18] : memref<1x16x16x128xf32, #tpu.memory_space<vmem>>, vector<1x16x16x128xf32>
    tpu.vector_store %arg6[%c0_15, %c0_16, %c0_17, %c0_18], %11 {strides = array<i32>} : memref<1x16x16x128xf32, #tpu.memory_space<vmem>>, vector<1x16x16x128xf32>,
    return
  }
  func.func @transform_0(%arg0: i32, %arg1: i32) -> (i32, i32, i32, i32) {
    %c0_i32 = arith.constant 0 : i32
    %c0_i32_0 = arith.constant 0 : i32
    %c0_i32_1 = arith.constant 0 : i32
    return %arg0, %arg1, %c0_i32, %c0_i32_0 : i32, i32, i32, i32
  }
  func.func @transform_1(%arg0: i32, %arg1: i32) -> (i32, i32, i32, i32) {
    %c0_i32 = arith.constant 0 : i32
    %c0_i32_0 = arith.constant 0 : i32
    %c0_i32_1 = arith.constant 0 : i32
    %c0_i32_2 = arith.constant 0 : i32
    %c0_i32_3 = arith.constant 0 : i32
    return %c0_i32, %c0_i32_0, %c0_i32_1, %c0_i32_2 : i32, i32, i32, i32
  }
  func.func @transform_2(%arg0: i32, %arg1: i32) -> (i32, i32, i32, i32) {
    %c0_i32 = arith.constant 0 : i32
    %c0_i32_0 = arith.constant 0 : i32
    %c0_i32_1 = arith.constant 0 : i32
    %c0_i32_2 = arith.constant 0 : i32
    %c0_i32_3 = arith.constant 0 : i32
    return %c0_i32, %c0_i32_0, %c0_i32_1, %c0_i32_2 : i32, i32, i32, i32
  }
  func.func @transform_3(%arg0: i32, %arg1: i32) -> (i32, i32, i32, i32) {
    %c0_i32 = arith.constant 0 : i32
    %c0_i32_0 = arith.constant 0 : i32
    %c0_i32_1 = arith.constant 0 : i32
    return %arg0, %arg1, %c0_i32, %c0_i32_0 : i32, i32, i32, i32
  }
  func.func @transform_4(%arg0: i32, %arg1: i32) -> (i32, i32, i32, i32) {
    %c0_i32 = arith.constant 0 : i32
    %c0_i32_0 = arith.constant 0 : i32
    %c0_i32_1 = arith.constant 0 : i32
    return %arg0, %arg1, %c0_i32, %c0_i32_0 : i32, i32, i32, i32
  }
}

module attributes {stable_mosaic.version = 11 : i64} {
  func.func @_conv_s1_kernel(%arg0: i32, %arg1: i32, %arg2: memref<1x16x16x128xbf16, #tpu.memory_space<vmem>>, %arg3: memref<1x1x16x128xbf16, #tpu.memory_space<vmem>>, %arg4: memref<1x1x16x128xbf16, #tpu.memory_space<vmem>>, %arg5: memref<1x128xf32, #tpu.memory_space<vmem>>, %arg6: memref<1x128xf32, #tpu.memory_space<vmem>>, %arg7: memref<3x384x128xbf16, #tpu.memory_space<vmem>>, %arg8: memref<1x128xf32, #tpu.memory_space<vmem>>, %arg9: memref<1x16x16x128xbf16, #tpu.memory_space<vmem>>, %arg10: memref<1x1x8x128xf32, #tpu.memory_space<vmem>>, %arg11: memref<18x16x384xbf16, #tpu.memory_space<vmem>>, %arg12: memref<256x128xf32, #tpu.memory_space<vmem>>) attributes {dimension_semantics = [#tpu.dimension_semantics<parallel>, #tpu.dimension_semantics<parallel>], iteration_bounds = array<i64: 2, 1>, scalar_prefetch = 0 : i64, scratch_operands = 2 : i64, tpu.core_type = #tpu.core_type<tc>, window_params = [{transform_indices = @transform_0, window_bounds = array<i64: 1, 16, 16, 128>}, {transform_indices = @transform_1, window_bounds = array<i64: 1, 1, 16, 128>}, {transform_indices = @transform_2, window_bounds = array<i64: 1, 1, 16, 128>}, {pipeline_mode = #tpu.pipeline_mode<synchronous>, transform_indices = @transform_3, window_bounds = array<i64: 1, 128>}, {pipeline_mode = #tpu.pipeline_mode<synchronous>, transform_indices = @transform_4, window_bounds = array<i64: 1, 128>}, {pipeline_mode = #tpu.pipeline_mode<synchronous>, transform_indices = @transform_5, window_bounds = array<i64: 3, 384, 128>}, {pipeline_mode = #tpu.pipeline_mode<synchronous>, transform_indices = @transform_6, window_bounds = array<i64: 1, 128>}, {transform_indices = @transform_7, window_bounds = array<i64: 1, 16, 16, 128>}, {transform_indices = @transform_8, window_bounds = array<i64: 1, 1, 8, 128>}]} {
    %c0 = arith.constant 0 : index
    %c0_0 = arith.constant 0 : index
    %c0_1 = arith.constant 0 : index
    %c0_2 = arith.constant 0 : index
    %0 = vector.load %arg2[%c0, %c0_0, %c0_1, %c0_2] : memref<1x16x16x128xbf16, #tpu.memory_space<vmem>>, vector<1x16x16x128xbf16>
    %1 = vector.shape_cast %0 : vector<1x16x16x128xbf16> to vector<16x16x128xbf16>
    %2 = arith.extf %1 : vector<16x16x128xbf16> to vector<16x16x128xf32>
    %c0_3 = arith.constant 0 : index
    %c0_4 = arith.constant 0 : index
    %3 = vector.load %arg5[%c0_3, %c0_4] : memref<1x128xf32, #tpu.memory_space<vmem>>, vector<1x128xf32>
    %4 = vector.shape_cast %3 : vector<1x128xf32> to vector<1x1x128xf32>
    %5 = vector.broadcast %4 : vector<1x1x128xf32> to vector<16x16x128xf32>
    %6 = arith.mulf %2, %5 : vector<16x16x128xf32>
    %c0_5 = arith.constant 0 : index
    %c0_6 = arith.constant 0 : index
    %7 = vector.load %arg6[%c0_5, %c0_6] : memref<1x128xf32, #tpu.memory_space<vmem>>, vector<1x128xf32>
    %8 = vector.shape_cast %7 : vector<1x128xf32> to vector<1x1x128xf32>
    %9 = vector.broadcast %8 : vector<1x1x128xf32> to vector<16x16x128xf32>
    %10 = arith.addf %6, %9 : vector<16x16x128xf32>
    %cst = arith.constant 0.000000e+00 : f32
    %11 = vector.broadcast %cst : f32 to vector<16x16x128xf32>
    %12 = arith.maximumf %10, %11 : vector<16x16x128xf32>
    %13 = arith.truncf %12 : vector<16x16x128xf32> to vector<16x16x128xbf16>
    %c0_7 = arith.constant 0 : index
    %c0_8 = arith.constant 0 : index
    %c0_9 = arith.constant 0 : index
    %c0_10 = arith.constant 0 : index
    %14 = vector.load %arg3[%c0_7, %c0_8, %c0_9, %c0_10] : memref<1x1x16x128xbf16, #tpu.memory_space<vmem>>, vector<1x1x16x128xbf16>
    %15 = vector.shape_cast %14 : vector<1x1x16x128xbf16> to vector<16x128xbf16>
    %16 = arith.extf %15 : vector<16x128xbf16> to vector<16x128xf32>
    %c0_11 = arith.constant 0 : index
    %c0_12 = arith.constant 0 : index
    %17 = vector.load %arg5[%c0_11, %c0_12] : memref<1x128xf32, #tpu.memory_space<vmem>>, vector<1x128xf32>
    %18 = vector.broadcast %17 : vector<1x128xf32> to vector<16x128xf32>
    %19 = arith.mulf %16, %18 : vector<16x128xf32>
    %c0_13 = arith.constant 0 : index
    %c0_14 = arith.constant 0 : index
    %20 = vector.load %arg6[%c0_13, %c0_14] : memref<1x128xf32, #tpu.memory_space<vmem>>, vector<1x128xf32>
    %21 = vector.broadcast %20 : vector<1x128xf32> to vector<16x128xf32>
    %22 = arith.addf %19, %21 : vector<16x128xf32>
    %cst_15 = arith.constant 0.000000e+00 : f32
    %23 = vector.broadcast %cst_15 : f32 to vector<16x128xf32>
    %24 = arith.maximumf %22, %23 : vector<16x128xf32>
    %25 = arith.truncf %24 : vector<16x128xf32> to vector<16x128xbf16>
    %c0_16 = arith.constant 0 : index
    %c0_17 = arith.constant 0 : index
    %c0_18 = arith.constant 0 : index
    %c0_19 = arith.constant 0 : index
    %26 = vector.load %arg4[%c0_16, %c0_17, %c0_18, %c0_19] : memref<1x1x16x128xbf16, #tpu.memory_space<vmem>>, vector<1x1x16x128xbf16>
    %27 = vector.shape_cast %26 : vector<1x1x16x128xbf16> to vector<16x128xbf16>
    %28 = arith.extf %27 : vector<16x128xbf16> to vector<16x128xf32>
    %c0_20 = arith.constant 0 : index
    %c0_21 = arith.constant 0 : index
    %29 = vector.load %arg5[%c0_20, %c0_21] : memref<1x128xf32, #tpu.memory_space<vmem>>, vector<1x128xf32>
    %30 = vector.broadcast %29 : vector<1x128xf32> to vector<16x128xf32>
    %31 = arith.mulf %28, %30 : vector<16x128xf32>
    %c0_22 = arith.constant 0 : index
    %c0_23 = arith.constant 0 : index
    %32 = vector.load %arg6[%c0_22, %c0_23] : memref<1x128xf32, #tpu.memory_space<vmem>>, vector<1x128xf32>
    %33 = vector.broadcast %32 : vector<1x128xf32> to vector<16x128xf32>
    %34 = arith.addf %31, %33 : vector<16x128xf32>
    %cst_24 = arith.constant 0.000000e+00 : f32
    %35 = vector.broadcast %cst_24 : f32 to vector<16x128xf32>
    %36 = arith.maximumf %34, %35 : vector<16x128xf32>
    %37 = arith.truncf %36 : vector<16x128xf32> to vector<16x128xbf16>
    %c0_i32 = arith.constant 0 : i32
    %38 = arith.cmpi sgt, %arg1, %c0_i32 : i32
    %cst_25 = arith.constant 0.000000e+00 : bf16
    %39 = vector.broadcast %cst_25 : bf16 to vector<16x128xbf16>
    %40 = arith.select %38, %25, %39 : vector<16x128xbf16>
    %c0_i32_26 = arith.constant 0 : i32
    %41 = arith.cmpi slt, %arg1, %c0_i32_26 : i32
    %cst_27 = arith.constant 0.000000e+00 : bf16
    %42 = vector.broadcast %cst_27 : bf16 to vector<16x128xbf16>
    %43 = arith.select %41, %37, %42 : vector<16x128xbf16>
    %44 = vector.shape_cast %40 : vector<16x128xbf16> to vector<1x16x128xbf16>
    %45 = vector.shape_cast %43 : vector<16x128xbf16> to vector<1x16x128xbf16>
    %46 = tpu.concatenate %44, %13, %45 in 0 : vector<1x16x128xbf16>, vector<16x16x128xbf16>, vector<1x16x128xbf16> -> vector<18x16x128xbf16>
    %cst_28 = arith.constant 0.000000e+00 : bf16
    %47 = vector.broadcast %cst_28 : bf16 to vector<18x1x128xbf16>
    %48 = vector.extract_strided_slice %46 {offsets = [0, 0, 0], sizes = [18, 15, 128], strides = [1, 1, 1]} : vector<18x16x128xbf16> to vector<18x15x128xbf16>
    %49 = tpu.concatenate %47, %48 in 1 : vector<18x1x128xbf16>, vector<18x15x128xbf16> -> vector<18x16x128xbf16>
    %50 = vector.extract_strided_slice %46 {offsets = [0, 1, 0], sizes = [18, 15, 128], strides = [1, 1, 1]} : vector<18x16x128xbf16> to vector<18x15x128xbf16>
    %51 = tpu.concatenate %50, %47 in 1 : vector<18x15x128xbf16>, vector<18x1x128xbf16> -> vector<18x16x128xbf16>
    %52 = tpu.concatenate %49, %46, %51 in 2 : vector<18x16x128xbf16>, vector<18x16x128xbf16>, vector<18x16x128xbf16> -> vector<18x16x384xbf16>
    %c0_29 = arith.constant 0 : index
    %c0_30 = arith.constant 0 : index
    %c0_31 = arith.constant 0 : index
    %53 = vector.load %arg11[%c0_29, %c0_30, %c0_31] : memref<18x16x384xbf16, #tpu.memory_space<vmem>>, vector<18x16x384xbf16>
    tpu.vector_store %arg11[%c0_29, %c0_30, %c0_31], %52 {strides = array<i32>} : memref<18x16x384xbf16, #tpu.memory_space<vmem>>, vector<18x16x384xbf16>,
    %c0_32 = arith.constant 0 : index
    %c0_33 = arith.constant 0 : index
    %c0_34 = arith.constant 0 : index
    %54 = vector.load %arg11[%c0_32, %c0_33, %c0_34] : memref<18x16x384xbf16, #tpu.memory_space<vmem>>, vector<16x16x384xbf16>
    %55 = vector.shape_cast %54 : vector<16x16x384xbf16> to vector<256x384xbf16>
    %c0_35 = arith.constant 0 : index
    %c0_36 = arith.constant 0 : index
    %c0_37 = arith.constant 0 : index
    %56 = vector.load %arg7[%c0_35, %c0_36, %c0_37] : memref<3x384x128xbf16, #tpu.memory_space<vmem>>, vector<1x384x128xbf16>
    %57 = vector.shape_cast %56 : vector<1x384x128xbf16> to vector<384x128xbf16>
    %cst_38 = arith.constant dense<0.000000e+00> : vector<256x128xf32>
    %58 = tpu.matmul %55, %57, %cst_38 {dimension_numbers = #tpu.dot_dimension_numbers<[1], [0], [0], [1], [0, 0, 1, 1], [], []>} : vector<256x384xbf16>, vector<384x128xbf16>, vector<256x128xf32> -> vector<256x128xf32>
    %c0_39 = arith.constant 0 : index
    %c0_40 = arith.constant 0 : index
    %59 = vector.load %arg12[%c0_39, %c0_40] : memref<256x128xf32, #tpu.memory_space<vmem>>, vector<256x128xf32>
    tpu.vector_store %arg12[%c0_39, %c0_40], %58 {strides = array<i32>} : memref<256x128xf32, #tpu.memory_space<vmem>>, vector<256x128xf32>,
    %c1 = arith.constant 1 : index
    %c0_41 = arith.constant 0 : index
    %c0_42 = arith.constant 0 : index
    %60 = vector.load %arg11[%c1, %c0_41, %c0_42] : memref<18x16x384xbf16, #tpu.memory_space<vmem>>, vector<16x16x384xbf16>
    %61 = vector.shape_cast %60 : vector<16x16x384xbf16> to vector<256x384xbf16>
    %c1_43 = arith.constant 1 : index
    %c0_44 = arith.constant 0 : index
    %c0_45 = arith.constant 0 : index
    %62 = vector.load %arg7[%c1_43, %c0_44, %c0_45] : memref<3x384x128xbf16, #tpu.memory_space<vmem>>, vector<1x384x128xbf16>
    %63 = vector.shape_cast %62 : vector<1x384x128xbf16> to vector<384x128xbf16>
    %cst_46 = arith.constant dense<0.000000e+00> : vector<256x128xf32>
    %64 = tpu.matmul %61, %63, %cst_46 {dimension_numbers = #tpu.dot_dimension_numbers<[1], [0], [0], [1], [0, 0, 1, 1], [], []>} : vector<256x384xbf16>, vector<384x128xbf16>, vector<256x128xf32> -> vector<256x128xf32>
    %c0_47 = arith.constant 0 : index
    %c0_48 = arith.constant 0 : index
    %65 = vector.load %arg12[%c0_47, %c0_48] : memref<256x128xf32, #tpu.memory_space<vmem>>, vector<256x128xf32>
    %66 = arith.addf %65, %64 : vector<256x128xf32>
    %c0_49 = arith.constant 0 : index
    %c0_50 = arith.constant 0 : index
    %67 = vector.load %arg12[%c0_49, %c0_50] : memref<256x128xf32, #tpu.memory_space<vmem>>, vector<256x128xf32>
    tpu.vector_store %arg12[%c0_49, %c0_50], %66 {strides = array<i32>} : memref<256x128xf32, #tpu.memory_space<vmem>>, vector<256x128xf32>,
    %c2 = arith.constant 2 : index
    %c0_51 = arith.constant 0 : index
    %c0_52 = arith.constant 0 : index
    %68 = vector.load %arg11[%c2, %c0_51, %c0_52] : memref<18x16x384xbf16, #tpu.memory_space<vmem>>, vector<16x16x384xbf16>
    %69 = vector.shape_cast %68 : vector<16x16x384xbf16> to vector<256x384xbf16>
    %c2_53 = arith.constant 2 : index
    %c0_54 = arith.constant 0 : index
    %c0_55 = arith.constant 0 : index
    %70 = vector.load %arg7[%c2_53, %c0_54, %c0_55] : memref<3x384x128xbf16, #tpu.memory_space<vmem>>, vector<1x384x128xbf16>
    %71 = vector.shape_cast %70 : vector<1x384x128xbf16> to vector<384x128xbf16>
    %cst_56 = arith.constant dense<0.000000e+00> : vector<256x128xf32>
    %72 = tpu.matmul %69, %71, %cst_56 {dimension_numbers = #tpu.dot_dimension_numbers<[1], [0], [0], [1], [0, 0, 1, 1], [], []>} : vector<256x384xbf16>, vector<384x128xbf16>, vector<256x128xf32> -> vector<256x128xf32>
    %c0_57 = arith.constant 0 : index
    %c0_58 = arith.constant 0 : index
    %73 = vector.load %arg12[%c0_57, %c0_58] : memref<256x128xf32, #tpu.memory_space<vmem>>, vector<256x128xf32>
    %74 = arith.addf %73, %72 : vector<256x128xf32>
    %c0_59 = arith.constant 0 : index
    %c0_60 = arith.constant 0 : index
    %75 = vector.load %arg12[%c0_59, %c0_60] : memref<256x128xf32, #tpu.memory_space<vmem>>, vector<256x128xf32>
    tpu.vector_store %arg12[%c0_59, %c0_60], %74 {strides = array<i32>} : memref<256x128xf32, #tpu.memory_space<vmem>>, vector<256x128xf32>,
    %c0_61 = arith.constant 0 : index
    %c0_62 = arith.constant 0 : index
    %76 = vector.load %arg12[%c0_61, %c0_62] : memref<256x128xf32, #tpu.memory_space<vmem>>, vector<256x128xf32>
    %c0_63 = arith.constant 0 : index
    %c0_64 = arith.constant 0 : index
    %77 = vector.load %arg8[%c0_63, %c0_64] : memref<1x128xf32, #tpu.memory_space<vmem>>, vector<1x128xf32>
    %78 = vector.broadcast %77 : vector<1x128xf32> to vector<256x128xf32>
    %79 = arith.addf %76, %78 : vector<256x128xf32>
    %80 = arith.truncf %79 : vector<256x128xf32> to vector<256x128xbf16>
    %81 = vector.shape_cast %80 : vector<256x128xbf16> to vector<1x16x16x128xbf16>
    %c0_65 = arith.constant 0 : index
    %c0_66 = arith.constant 0 : index
    %c0_67 = arith.constant 0 : index
    %c0_68 = arith.constant 0 : index
    %82 = vector.load %arg9[%c0_65, %c0_66, %c0_67, %c0_68] : memref<1x16x16x128xbf16, #tpu.memory_space<vmem>>, vector<1x16x16x128xbf16>
    tpu.vector_store %arg9[%c0_65, %c0_66, %c0_67, %c0_68], %81 {strides = array<i32>} : memref<1x16x16x128xbf16, #tpu.memory_space<vmem>>, vector<1x16x16x128xbf16>,
    %83 = arith.extf %80 : vector<256x128xbf16> to vector<256x128xf32>
    %cst_69 = arith.constant dense<0.000000e+00> : vector<128xf32>
    %84 = vector.multi_reduction <add>, %83, %cst_69 [0] : vector<256x128xf32> to vector<128xf32>
    %85 = vector.shape_cast %84 : vector<128xf32> to vector<1x128xf32>
    %86 = arith.mulf %83, %83 : vector<256x128xf32>
    %cst_70 = arith.constant dense<0.000000e+00> : vector<128xf32>
    %87 = vector.multi_reduction <add>, %86, %cst_70 [0] : vector<256x128xf32> to vector<128xf32>
    %88 = vector.shape_cast %87 : vector<128xf32> to vector<1x128xf32>
    %cst_71 = arith.constant 0.000000e+00 : f32
    %89 = vector.broadcast %cst_71 : f32 to vector<6x128xf32>
    %90 = tpu.concatenate %85, %88, %89 in 0 : vector<1x128xf32>, vector<1x128xf32>, vector<6x128xf32> -> vector<8x128xf32>
    %91 = vector.shape_cast %90 : vector<8x128xf32> to vector<1x1x8x128xf32>
    %c0_72 = arith.constant 0 : index
    %c0_73 = arith.constant 0 : index
    %c0_74 = arith.constant 0 : index
    %c0_75 = arith.constant 0 : index
    %92 = vector.load %arg10[%c0_72, %c0_73, %c0_74, %c0_75] : memref<1x1x8x128xf32, #tpu.memory_space<vmem>>, vector<1x1x8x128xf32>
    tpu.vector_store %arg10[%c0_72, %c0_73, %c0_74, %c0_75], %91 {strides = array<i32>} : memref<1x1x8x128xf32, #tpu.memory_space<vmem>>, vector<1x1x8x128xf32>,
    return
  }
  func.func @transform_0(%arg0: i32, %arg1: i32) -> (i32, i32, i32, i32) {
    %c0_i32 = arith.constant 0 : i32
    %c0_i32_0 = arith.constant 0 : i32
    %c0_i32_1 = arith.constant 0 : i32
    return %arg0, %arg1, %c0_i32, %c0_i32_0 : i32, i32, i32, i32
  }
  func.func @transform_1(%arg0: i32, %arg1: i32) -> (i32, i32, i32, i32) {
    %c16_i32 = arith.constant 16 : i32
    %0 = arith.muli %arg1, %c16_i32 : i32
    %c1_i32 = arith.constant 1 : i32
    %1 = arith.subi %0, %c1_i32 : i32
    %c0_i32 = arith.constant 0 : i32
    %2 = arith.maxsi %1, %c0_i32 : i32
    %c0_i32_0 = arith.constant 0 : i32
    %c0_i32_1 = arith.constant 0 : i32
    %c0_i32_2 = arith.constant 0 : i32
    return %arg0, %2, %c0_i32_0, %c0_i32_1 : i32, i32, i32, i32
  }
  func.func @transform_2(%arg0: i32, %arg1: i32) -> (i32, i32, i32, i32) {
    %c1_i32 = arith.constant 1 : i32
    %0 = arith.addi %arg1, %c1_i32 : i32
    %c16_i32 = arith.constant 16 : i32
    %1 = arith.muli %0, %c16_i32 : i32
    %c15_i32 = arith.constant 15 : i32
    %2 = arith.minsi %1, %c15_i32 : i32
    %c0_i32 = arith.constant 0 : i32
    %c0_i32_0 = arith.constant 0 : i32
    %c0_i32_1 = arith.constant 0 : i32
    return %arg0, %2, %c0_i32, %c0_i32_0 : i32, i32, i32, i32
  }
  func.func @transform_3(%arg0: i32, %arg1: i32) -> (i32, i32) {
    %c0_i32 = arith.constant 0 : i32
    %c0_i32_0 = arith.constant 0 : i32
    %c0_i32_1 = arith.constant 0 : i32
    return %c0_i32, %c0_i32_0 : i32, i32
  }
  func.func @transform_4(%arg0: i32, %arg1: i32) -> (i32, i32) {
    %c0_i32 = arith.constant 0 : i32
    %c0_i32_0 = arith.constant 0 : i32
    %c0_i32_1 = arith.constant 0 : i32
    return %c0_i32, %c0_i32_0 : i32, i32
  }
  func.func @transform_5(%arg0: i32, %arg1: i32) -> (i32, i32, i32) {
    %c0_i32 = arith.constant 0 : i32
    %c0_i32_0 = arith.constant 0 : i32
    %c0_i32_1 = arith.constant 0 : i32
    %c0_i32_2 = arith.constant 0 : i32
    return %c0_i32, %c0_i32_0, %c0_i32_1 : i32, i32, i32
  }
  func.func @transform_6(%arg0: i32, %arg1: i32) -> (i32, i32) {
    %c0_i32 = arith.constant 0 : i32
    %c0_i32_0 = arith.constant 0 : i32
    %c0_i32_1 = arith.constant 0 : i32
    return %c0_i32, %c0_i32_0 : i32, i32
  }
  func.func @transform_7(%arg0: i32, %arg1: i32) -> (i32, i32, i32, i32) {
    %c0_i32 = arith.constant 0 : i32
    %c0_i32_0 = arith.constant 0 : i32
    %c0_i32_1 = arith.constant 0 : i32
    return %arg0, %arg1, %c0_i32, %c0_i32_0 : i32, i32, i32, i32
  }
  func.func @transform_8(%arg0: i32, %arg1: i32) -> (i32, i32, i32, i32) {
    %c0_i32 = arith.constant 0 : i32
    %c0_i32_0 = arith.constant 0 : i32
    %c0_i32_1 = arith.constant 0 : i32
    return %arg0, %arg1, %c0_i32, %c0_i32_0 : i32, i32, i32, i32
  }
}

</mosaic_0001>

<bundles_post_ra>
// kernel: res_conv_forward.5
= control target key start
LH: loop header
LB: loop body
LE: loop exit
PB: predicated region body
PF: predicated region fallthrough
CT: control target
= control target key end

     0   :  { %s832_s15 = smov 0   ;;  %s834_s16 = smov 0   ;;  %s1036_s0 = inlined_call_operand.vmem [shape: bf16[2,16,16,128], index: 0, kind: input, shape index: {}]   ;;  %s1037_s1 = inlined_call_operand.vmem [shape: f32[1,1,1,128], index: 1, kind: input, shape index: {}]   ;;  %s1038_s2 = inlined_call_operand.vmem [shape: f32[1,1,1,128], index: 2, kind: input, shape index: {}]   ;;  %s1039_s3 = inlined_call_operand.vmem [shape: f32[2,16,16,128], index: 3, kind: input, shape index: {}]   ;;  %s1040_s4 = inlined_call_operand.vmem [shape: f32[2,16,16,128], index: 4, kind: output, shape index: {}]  }
   0x1   :  { %s836_s17 = smov 0  }
   0x2 LB: > { %s26_s18 = sadd.s32 1, %s801_s16  ;;  %p666_p0 = scmp.ge.s32.totalorder %s805_s17, 1  ;;  %s805_s17 = sphi %s836_s17, %s14_s17   ;;  %s801_s16 = sphi %s834_s16, %s1042_s16   ;;  %s797_s15 = sphi %s832_s15, %s1041_s15  }
   0x3   : > { %p28_p1 = scmp.ge.s32.totalorder %s26_s18, 2  ;;  %p202_p2 = scmp.lt.s32.totalorder %s805_s17, 3 }
   0x5   : > { %s1044_s18 = smov (%p28_p1, %s26_s18), 0  ;;  %p203_p3 = pnand %p666_p0, %p202_p2 }
   0x6   : > { %p249_p4 = scmp.lt.s32.totalorder (!%p203_p3), %s797_s15, 1 }
   0x7   : > { %206 = sbr.rel (%p203_p3) target bundleno = 63 (0x3f), region = 36 }
   0xc   : > { %s1046_s15 = smov (!%p249_p4, %s797_s15), 1  ;;  %v862_v0 = vld [vmem:[%s1037_s1] ss:$0 sm:$0xff] }
   0xd   : > { %s675_s19 = sshll.u32 %s1046_s15, 7  ;;  %s676_s20 = sshll.u32 %s1046_s15, 8  ;;  %v875_v3 = vld [vmem:[%s1038_s2] ss:$0 sm:$0xff] }
   0xe   : > { %s857_s23 = scalar_lea.vmem %s1036_s0, %s675_s19  ;;  %s870_s28 = scalar_lea.vmem %s1039_s3, %s676_s20 }
   0xf   : > { %v679_v1 = vld [vmem:[%s857_s23] sm:$0xff]   ;;  %v742_v5 = vld [vmem:[%s857_s23 + $0x8] sm:$0xff]   ;;  %v743_v8 = vld [vmem:[%s857_s23 + $0x10] sm:$0xff]   ;;  %s907_s7 = scalar_lea.vmem %s1040_s4, %s676_s20 }
  0x10   : > { %v680_v2 = vunpack.c.l.bf16 %v679_v1  ;;  %v681_v4 = vunpack.c.h.bf16 %v679_v1  ;;  %v684_v6 = vunpack.c.l.bf16 %v742_v5  ;;  %v685_v7 = vunpack.c.h.bf16 %v742_v5  ;;  %v744_v13 = vld [vmem:[%s857_s23 + $0x18] sm:$0xff]   ;;  %v417_v14 = vld [vmem:[%s870_s28] sm:$0xff]  ;;  %v418_v15 = vld [vmem:[%s870_s28 + $0x8] sm:$0xff] }
  0x11   : > { %v688_v11 = vunpack.c.l.bf16 %v743_v8  ;;  %v689_v12 = vunpack.c.h.bf16 %v743_v8  ;;  %v692_v18 = vunpack.c.l.bf16 %v744_v13  ;;  %v693_v19 = vunpack.c.h.bf16 %v744_v13  ;;  %v419_v22 = vld [vmem:[%s870_s28 + $0x10] sm:$0xff]  ;;  %v420_v23 = vld [vmem:[%s870_s28 + $0x18] sm:$0xff]  ;;  %v421_v28 = vld [vmem:[%s870_s28 + $0x20] sm:$0xff] }
  0x12   : > { %v349_v9 = vmul.f32 %v862_v0, %v680_v2  ;;  %v350_v10 = vmul.f32 %v862_v0, %v681_v4  ;;  %v351_v16 = vmul.f32 %v862_v0, %v684_v6  ;;  %v352_v17 = vmul.f32 %v862_v0, %v685_v7  ;;  %v422_v29 = vld [vmem:[%s870_s28 + $0x28] sm:$0xff]  ;;  %v423_v36 = vld [vmem:[%s870_s28 + $0x30] sm:$0xff]  ;;  %v424_v37 = vld [vmem:[%s870_s28 + $0x38] sm:$0xff] }
  0x13   : > { %v353_v24 = vmul.f32 %v862_v0, %v688_v11  ;;  %v354_v25 = vmul.f32 %v862_v0, %v689_v12  ;;  %v355_v30 = vmul.f32 %v862_v0, %v692_v18  ;;  %v356_v31 = vmul.f32 %v862_v0, %v693_v19  ;;  %v745_v42 = vld [vmem:[%s857_s23 + $0x20] sm:$0xff]   ;;  %v746_v47 = vld [vmem:[%s857_s23 + $0x28] sm:$0xff]   ;;  %v747_v52 = vld [vmem:[%s857_s23 + $0x30] sm:$0xff]  }
  0x14   : > { %v385_v20 = vadd.f32 %v875_v3, %v349_v9  ;;  %v386_v21 = vadd.f32 %v875_v3, %v350_v10  ;;  %v387_v26 = vadd.f32 %v875_v3, %v351_v16  ;;  %v388_v27 = vadd.f32 %v875_v3, %v352_v17  ;;  %v748_v57 = vld [vmem:[%s857_s23 + $0x38] sm:$0xff]   ;;  %v425_v4 = vld [vmem:[%s870_s28 + $0x40] sm:$0xff]  ;;  %v426_v5 = vld [vmem:[%s870_s28 + $0x48] sm:$0xff] }
  0x15   : > { %v389_v34 = vadd.f32 %v875_v3, %v353_v24  ;;  %v390_v35 = vadd.f32 %v875_v3, %v354_v25  ;;  %v391_v40 = vadd.f32 %v875_v3, %v355_v30  ;;  %v392_v41 = vadd.f32 %v875_v3, %v356_v31  ;;  %v427_v12 = vld [vmem:[%s870_s28 + $0x50] sm:$0xff]  ;;  %v428_v13 = vld [vmem:[%s870_s28 + $0x58] sm:$0xff]  ;;  %v429_v18 = vld [vmem:[%s870_s28 + $0x60] sm:$0xff] }
  0x16   : > { %v449_v32 = vadd.f32 %v417_v14, %v385_v20  ;;  %v450_v33 = vadd.f32 %v418_v15, %v386_v21  ;;  %v451_v38 = vadd.f32 %v419_v22, %v387_v26  ;;  %v452_v39 = vadd.f32 %v420_v23, %v388_v27  ;;  %v430_v19 = vld [vmem:[%s870_s28 + $0x68] sm:$0xff]  ;;  %v431_v26 = vld [vmem:[%s870_s28 + $0x70] sm:$0xff]  ;;  %v432_v27 = vld [vmem:[%s870_s28 + $0x78] sm:$0xff] }
  0x17   : > { %v453_v45 = vadd.f32 %v421_v28, %v389_v34  ;;  %v454_v46 = vadd.f32 %v422_v29, %v390_v35  ;;  %v455_v50 = vadd.f32 %v423_v36, %v391_v40  ;;  %v456_v51 = vadd.f32 %v424_v37, %v392_v41  ;;  %v750_v37 = vld [vmem:[%s857_s23 + $0x48] sm:$0xff]  }
  0x18   : > { %v481_v43 = vmax.f32 %v449_v32, 0.0  ;;  %v482_v44 = vmax.f32 %v450_v33, 0.0  ;;  %v483_v48 = vmax.f32 %v451_v38, 0.0  ;;  %v484_v49 = vmax.f32 %v452_v39, 0.0  ;;  %v749_v32 = vld [vmem:[%s857_s23 + $0x40] sm:$0xff]  }
  0x19   : > { %v485_v53 = vmax.f32 %v453_v45, 0.0  ;;  %v486_v54 = vmax.f32 %v454_v46, 0.0  ;;  %v696_v55 = vunpack.c.l.bf16 %v745_v42  ;;  %v697_v56 = vunpack.c.h.bf16 %v745_v42  ;;  %v751_v42 = vld [vmem:[%s857_s23 + $0x50] sm:$0xff]  }
  0x1a   : > { %513 = vst [vmem:[%s907_s7] sm:$0xff] %v481_v43  ;;  %v487_v58 = vmax.f32 %v455_v50, 0.0  ;;  %v488_v59 = vmax.f32 %v456_v51, 0.0  ;;  %v700_v60 = vunpack.c.l.bf16 %v746_v47  ;;  %v701_v61 = vunpack.c.h.bf16 %v746_v47  ;;  %v752_v47 = vld [vmem:[%s857_s23 + $0x58] sm:$0xff]  }
  0x1b   : > { %514 = vst [vmem:[%s907_s7 + $0x8] sm:$0xff] %v482_v44  ;;  %v357_v62 = vmul.f32 %v862_v0, %v696_v55  ;;  %v358_v63 = vmul.f32 %v862_v0, %v697_v56  ;;  %v704_v1 = vunpack.c.l.bf16 %v747_v52  ;;  %v705_v2 = vunpack.c.h.bf16 %v747_v52  ;;  %v433_v56 = vld [vmem:[%s870_s28 + $0x80] sm:$0xff] }
  0x1c   : > { %515 = vst [vmem:[%s907_s7 + $0x10] sm:$0xff] %v483_v48  ;;  %v359_v6 = vmul.f32 %v862_v0, %v700_v60  ;;  %v360_v7 = vmul.f32 %v862_v0, %v701_v61  ;;  %v708_v8 = vunpack.c.l.bf16 %v748_v57  ;;  %v709_v9 = vunpack.c.h.bf16 %v748_v57  ;;  %v434_v57 = vld [vmem:[%s870_s28 + $0x88] sm:$0xff] }
  0x1d   : > { %516 = vst [vmem:[%s907_s7 + $0x18] sm:$0xff] %v484_v49  ;;  %v393_v10 = vadd.f32 %v875_v3, %v357_v62  ;;  %v394_v11 = vadd.f32 %v875_v3, %v358_v63  ;;  %v361_v14 = vmul.f32 %v862_v0, %v704_v1  ;;  %v362_v15 = vmul.f32 %v862_v0, %v705_v2  ;;  %v435_v1 = vld [vmem:[%s870_s28 + $0x90] sm:$0xff]  ;;  %v436_v2 = vld [vmem:[%s870_s28 + $0x98] sm:$0xff] }
  0x1e   : > { %517 = vst [vmem:[%s907_s7 + $0x20] sm:$0xff] %v485_v53  ;;  %v395_v16 = vadd.f32 %v875_v3, %v359_v6  ;;  %v396_v17 = vadd.f32 %v875_v3, %v360_v7  ;;  %v363_v20 = vmul.f32 %v862_v0, %v708_v8  ;;  %v364_v21 = vmul.f32 %v862_v0, %v709_v9  ;;  %v437_v8 = vld [vmem:[%s870_s28 + $0xa0] sm:$0xff]  ;;  %v438_v9 = vld [vmem:[%s870_s28 + $0xa8] sm:$0xff] }
  0x1f   : > { %518 = vst [vmem:[%s907_s7 + $0x28] sm:$0xff] %v486_v54  ;;  %v457_v22 = vadd.f32 %v425_v4, %v393_v10  ;;  %v458_v23 = vadd.f32 %v426_v5, %v394_v11  ;;  %v397_v24 = vadd.f32 %v875_v3, %v361_v14  ;;  %v398_v25 = vadd.f32 %v875_v3, %v362_v15 }
  0x20   : > { %519 = vst [vmem:[%s907_s7 + $0x30] sm:$0xff] %v487_v58  ;;  %v459_v28 = vadd.f32 %v427_v12, %v395_v16  ;;  %v460_v29 = vadd.f32 %v428_v13, %v396_v17  ;;  %v399_v30 = vadd.f32 %v875_v3, %v363_v20  ;;  %v400_v31 = vadd.f32 %v875_v3, %v364_v21  ;;  %v439_v16 = vld [vmem:[%s870_s28 + $0xb0] sm:$0xff]  ;;  %v440_v17 = vld [vmem:[%s870_s28 + $0xb8] sm:$0xff] }
  0x21   : > { %520 = vst [vmem:[%s907_s7 + $0x38] sm:$0xff] %v488_v59  ;;  %v489_v33 = vmax.f32 %v457_v22, 0.0  ;;  %v490_v34 = vmax.f32 %v458_v23, 0.0  ;;  %v461_v35 = vadd.f32 %v429_v18, %v397_v24  ;;  %v462_v36 = vadd.f32 %v430_v19, %v398_v25  ;;  %v753_v22 = vld [vmem:[%s857_s23 + $0x60] sm:$0xff]  }
  0x22   : > { %v491_v38 = vmax.f32 %v459_v28, 0.0  ;;  %v492_v39 = vmax.f32 %v460_v29, 0.0  ;;  %v463_v40 = vadd.f32 %v431_v26, %v399_v30  ;;  %v464_v41 = vadd.f32 %v432_v27, %v400_v31  ;;  %v754_v27 = vld [vmem:[%s857_s23 + $0x68] sm:$0xff]  }
  0x23   : > { %521 = vst [vmem:[%s907_s7 + $0x40] sm:$0xff] %v489_v33  ;;  %v493_v43 = vmax.f32 %v461_v35, 0.0  ;;  %v494_v44 = vmax.f32 %v462_v36, 0.0  ;;  %v712_v45 = vunpack.c.l.bf16 %v749_v32  ;;  %v713_v46 = vunpack.c.h.bf16 %v749_v32  ;;  %v755_v32 = vld [vmem:[%s857_s23 + $0x70] sm:$0xff]  }
  0x24   : > { %522 = vst [vmem:[%s907_s7 + $0x48] sm:$0xff] %v490_v34  ;;  %v495_v48 = vmax.f32 %v463_v40, 0.0  ;;  %v496_v49 = vmax.f32 %v464_v41, 0.0  ;;  %v716_v50 = vunpack.c.l.bf16 %v750_v37  ;;  %v717_v51 = vunpack.c.h.bf16 %v750_v37  ;;  %v756_v37 = vld [vmem:[%s857_s23 + $0x78] sm:$0xff]  }
  0x25   : > { %523 = vst [vmem:[%s907_s7 + $0x50] sm:$0xff] %v491_v38  ;;  %v365_v52 = vmul.f32 %v862_v0, %v712_v45  ;;  %v366_v53 = vmul.f32 %v862_v0, %v713_v46  ;;  %v720_v54 = vunpack.c.l.bf16 %v751_v42  ;;  %v721_v55 = vunpack.c.h.bf16 %v751_v42  ;;  %v441_v46 = vld [vmem:[%s870_s28 + $0xc0] sm:$0xff] }
  0x26   : > { %524 = vst [vmem:[%s907_s7 + $0x58] sm:$0xff] %v492_v39  ;;  %v367_v58 = vmul.f32 %v862_v0, %v716_v50  ;;  %v368_v59 = vmul.f32 %v862_v0, %v717_v51  ;;  %v724_v60 = vunpack.c.l.bf16 %v752_v47  ;;  %v725_v61 = vunpack.c.h.bf16 %v752_v47  ;;  %v442_v47 = vld [vmem:[%s870_s28 + $0xc8] sm:$0xff] }
  0x27   : > { %525 = vst [vmem:[%s907_s7 + $0x60] sm:$0xff] %v493_v43  ;;  %v401_v62 = vadd.f32 %v875_v3, %v365_v52  ;;  %v402_v63 = vadd.f32 %v875_v3, %v366_v53  ;;  %v369_v4 = vmul.f32 %v862_v0, %v720_v54  ;;  %v370_v5 = vmul.f32 %v862_v0, %v721_v55  ;;  %v443_v54 = vld [vmem:[%s870_s28 + $0xd0] sm:$0xff]  ;;  %v444_v55 = vld [vmem:[%s870_s28 + $0xd8] sm:$0xff] }
  0x28   : > { %526 = vst [vmem:[%s907_s7 + $0x68] sm:$0xff] %v494_v44  ;;  %v403_v6 = vadd.f32 %v875_v3, %v367_v58  ;;  %v404_v7 = vadd.f32 %v875_v3, %v368_v59  ;;  %v371_v10 = vmul.f32 %v862_v0, %v724_v60  ;;  %v372_v11 = vmul.f32 %v862_v0, %v725_v61  ;;  %v445_v60 = vld [vmem:[%s870_s28 + $0xe0] sm:$0xff]  ;;  %v446_v61 = vld [vmem:[%s870_s28 + $0xe8] sm:$0xff] }
  0x29   : > { %527 = vst [vmem:[%s907_s7 + $0x70] sm:$0xff] %v495_v48  ;;  %v465_v12 = vadd.f32 %v433_v56, %v401_v62  ;;  %v466_v13 = vadd.f32 %v434_v57, %v402_v63  ;;  %v405_v14 = vadd.f32 %v875_v3, %v369_v4  ;;  %v406_v15 = vadd.f32 %v875_v3, %v370_v5 }
  0x2a   : > { %528 = vst [vmem:[%s907_s7 + $0x78] sm:$0xff] %v496_v49  ;;  %v467_v18 = vadd.f32 %v435_v1, %v403_v6  ;;  %v468_v19 = vadd.f32 %v436_v2, %v404_v7  ;;  %v407_v20 = vadd.f32 %v875_v3, %v371_v10  ;;  %v408_v21 = vadd.f32 %v875_v3, %v372_v11  ;;  %v447_v6 = vld [vmem:[%s870_s28 + $0xf0] sm:$0xff]  ;;  %v448_v7 = vld [vmem:[%s870_s28 + $0xf8] sm:$0xff] }
  0x2b   : > { %v497_v23 = vmax.f32 %v465_v12, 0.0  ;;  %v498_v24 = vmax.f32 %v466_v13, 0.0  ;;  %v469_v25 = vadd.f32 %v437_v8, %v405_v14  ;;  %v470_v26 = vadd.f32 %v438_v9, %v406_v15 }
  0x2c   : > { %v499_v28 = vmax.f32 %v467_v18, 0.0  ;;  %v500_v29 = vmax.f32 %v468_v19, 0.0  ;;  %v471_v30 = vadd.f32 %v439_v16, %v407_v20  ;;  %v472_v31 = vadd.f32 %v440_v17, %v408_v21 }
  0x2d   : > { %529 = vst [vmem:[%s907_s7 + $0x80] sm:$0xff] %v497_v23  ;;  %v501_v33 = vmax.f32 %v469_v25, 0.0  ;;  %v502_v34 = vmax.f32 %v470_v26, 0.0  ;;  %v728_v35 = vunpack.c.l.bf16 %v753_v22  ;;  %v729_v36 = vunpack.c.h.bf16 %v753_v22 }
  0x2e   : > { %530 = vst [vmem:[%s907_s7 + $0x88] sm:$0xff] %v498_v24  ;;  %v503_v38 = vmax.f32 %v471_v30, 0.0  ;;  %v504_v39 = vmax.f32 %v472_v31, 0.0  ;;  %v732_v40 = vunpack.c.l.bf16 %v754_v27  ;;  %v733_v41 = vunpack.c.h.bf16 %v754_v27 }
  0x2f   : > { %531 = vst [vmem:[%s907_s7 + $0x90] sm:$0xff] %v499_v28  ;;  %v373_v42 = vmul.f32 %v862_v0, %v728_v35  ;;  %v374_v43 = vmul.f32 %v862_v0, %v729_v36  ;;  %v736_v44 = vunpack.c.l.bf16 %v755_v32  ;;  %v737_v45 = vunpack.c.h.bf16 %v755_v32 }
  0x30   : > { %532 = vst [vmem:[%s907_s7 + $0x98] sm:$0xff] %v500_v29  ;;  %v375_v48 = vmul.f32 %v862_v0, %v732_v40  ;;  %v376_v49 = vmul.f32 %v862_v0, %v733_v41  ;;  %v740_v50 = vunpack.c.l.bf16 %v756_v37  ;;  %v741_v51 = vunpack.c.h.bf16 %v756_v37 }
  0x31   : > { %533 = vst [vmem:[%s907_s7 + $0xa0] sm:$0xff] %v501_v33  ;;  %v409_v52 = vadd.f32 %v875_v3, %v373_v42  ;;  %v410_v53 = vadd.f32 %v875_v3, %v374_v43  ;;  %v377_v56 = vmul.f32 %v862_v0, %v736_v44  ;;  %v378_v57 = vmul.f32 %v862_v0, %v737_v45 }
  0x32   : > { %534 = vst [vmem:[%s907_s7 + $0xa8] sm:$0xff] %v502_v34  ;;  %v411_v58 = vadd.f32 %v875_v3, %v375_v48  ;;  %v412_v59 = vadd.f32 %v875_v3, %v376_v49  ;;  %v379_v62 = vmul.f32 %v862_v0, %v740_v50  ;;  %v380_v63 = vmul.f32 %v862_v0, %v741_v51 }
  0x33   : > { %535 = vst [vmem:[%s907_s7 + $0xb0] sm:$0xff] %v503_v38  ;;  %v473_v1 = vadd.f32 %v441_v46, %v409_v52  ;;  %v474_v2 = vadd.f32 %v442_v47, %v410_v53  ;;  %v413_v4 = vadd.f32 %v875_v3, %v377_v56  ;;  %v414_v5 = vadd.f32 %v875_v3, %v378_v57 }
  0x34   : > { %536 = vst [vmem:[%s907_s7 + $0xb8] sm:$0xff] %v504_v39  ;;  %v475_v8 = vadd.f32 %v443_v54, %v411_v58  ;;  %v476_v9 = vadd.f32 %v444_v55, %v412_v59  ;;  %v415_v10 = vadd.f32 %v875_v3, %v379_v62  ;;  %v416_v0 = vadd.f32 %v875_v3, %v380_v63 }
  0x35   : > { %v505_v11 = vmax.f32 %v473_v1, 0.0  ;;  %v506_v12 = vmax.f32 %v474_v2, 0.0  ;;  %v477_v13 = vadd.f32 %v445_v60, %v413_v4  ;;  %v478_v14 = vadd.f32 %v446_v61, %v414_v5 }
  0x36   : > { %v507_v15 = vmax.f32 %v475_v8, 0.0  ;;  %v508_v16 = vmax.f32 %v476_v9, 0.0  ;;  %v479_v17 = vadd.f32 %v447_v6, %v415_v10  ;;  %v480_v18 = vadd.f32 %v448_v7, %v416_v0 }
  0x37   : > { %537 = vst [vmem:[%s907_s7 + $0xc0] sm:$0xff] %v505_v11  ;;  %v509_v19 = vmax.f32 %v477_v13, 0.0  ;;  %v510_v20 = vmax.f32 %v478_v14, 0.0 }
  0x38   : > { %538 = vst [vmem:[%s907_s7 + $0xc8] sm:$0xff] %v506_v12  ;;  %v511_v21 = vmax.f32 %v479_v17, 0.0  ;;  %v512_v3 = vmax.f32 %v480_v18, 0.0 }
  0x39   : > { %539 = vst [vmem:[%s907_s7 + $0xd0] sm:$0xff] %v507_v15 }
  0x3a   : > { %540 = vst [vmem:[%s907_s7 + $0xd8] sm:$0xff] %v508_v16 }
  0x3b   : > { %541 = vst [vmem:[%s907_s7 + $0xe0] sm:$0xff] %v509_v19 }
  0x3c   : > { %542 = vst [vmem:[%s907_s7 + $0xe8] sm:$0xff] %v510_v20 }
  0x3d   : > { %543 = vst [vmem:[%s907_s7 + $0xf0] sm:$0xff] %v511_v21 }
  0x3e   : > { %544 = vst [vmem:[%s907_s7 + $0xf8] sm:$0xff] %v512_v3 }
  0x3f PF: > { %s14_s17 = sadd.s32 1, %s805_s17   ;;  %s1041_s15 = smov %s801_s16 }
  0x40   : > { %p11_p5 = scmp.ge.s32.totalorder %s14_s17, 4   ;;  %s1042_s16 = smov %s1044_s18 }
  0x42   :  { %13 = sbr.rel (!%p11_p5) target bundleno = 2 (0x2), region = 69 }

// kernel: res_conv_forward.3
= control target key start
LH: loop header
LB: loop body
LE: loop exit
PB: predicated region body
PF: predicated region fallthrough
CT: control target
= control target key end

     0   :  { %s5643_s21 = smov 0   ;;  %s5645_s22 = smov 0   ;;  %s6611_s0 = inlined_call_operand.vmem [shape: bf16[2,16,16,128], index: 0, kind: input, shape index: {}, may-alias: {0,1,2}]   ;;  %s6612_s1 = inlined_call_operand.vmem [shape: bf16[2,16,16,128], index: 1, kind: input, shape index: {}, may-alias: {0,1,2}]   ;;  %s6613_s2 = inlined_call_operand.vmem [shape: bf16[2,16,16,128], index: 2, kind: input, shape index: {}, may-alias: {0,1,2}]   ;;  %s6614_s3 = inlined_call_operand.vmem [shape: bf16[3,384,128], index: 3, kind: input, shape index: {}]   ;;  %s6615_s4 = inlined_call_operand.vmem [shape: f32[1,128], index: 4, kind: input, shape index: {}]   ;;  %s6616_s5 = inlined_call_operand.vmem [shape: bf16[2,16,16,128], index: 5, kind: output, shape index: {0}]   ;;  %s6617_s6 = inlined_call_operand.vmem [shape: f32[2,1,8,128], index: 6, kind: output, shape index: {1}]  }
   0x1   :  { %s5647_s1 = smov 0  }
   0x2 LB: > { %s29_s2 = sadd.s32 1, %s5601_s22  ;;  %p4165_p0 = scmp.ge.s32.totalorder %s5605_s1, 1  ;;  %s5605_s1 = sphi %s5647_s1, %s17_s1   ;;  %s5601_s22 = sphi %s5645_s22, %s6710_s22   ;;  %s5597_s21 = sphi %s5643_s21, %s6709_s21  }
   0x3   : > { %p31_p1 = scmp.ge.s32.totalorder %s29_s2, 2  ;;  %p303_p2 = scmp.lt.s32.totalorder %s5605_s1, 3 }
   0x5   : > { %s6712_s2 = smov (%p31_p1, %s29_s2), 0  ;;  %p304_p3 = pnand %p4165_p0, %p303_p2 }
   0x7   : > { %307 = sbr.rel (%p304_p3) target bundleno = 779 (0x30b), region = 40 }
   0xc   : > { %v5197_v0 = vld [vmem:[%s6614_s3 + $0x38] sm:$0xff]  ;;  %p377_p4 = scmp.lt.s32.totalorder %s5597_s21, 1  ;;  %v5607_v1 = vmov 0   ;;  %v5196_v3 = vld [vmem:[%s6614_s3 + $0x30] sm:$0xff]  ;;  %vm722_vm0 = vcmask 1040384   ;;  %v5195_v7 = vld [vmem:[%s6614_s3 + $0x28] sm:$0xff] }
   0xd   : > { %v524_v2 = vunpack.c.l.b16 %v5607_v1  ;;  %1654 = vmatpush.bf16.msra.mxu0 %v5197_v0  ;;  %5532 = vmatpush.bf16.msra.mxu1 %v5197_v0  ;;  %vm723_vm1 = vsmask.f32 256  ;;  %v5194_v22 = vld [vmem:[%s6614_s3 + $0x20] sm:$0xff]  ;;  %v5193_v40 = vld [vmem:[%s6614_s3 + $0x18] sm:$0xff]  ;;  %v5192_v58 = vld [vmem:[%s6614_s3 + $0x10] sm:$0xff]  ;;  %vm797_vm3 = vcmask 1047552  }
   0xe   : > { %s6714_s21 = smov (!%p377_p4, %s5597_s21), 1  ;;  %5533 = vmatpush.bf16.msra.mxu2 %v5197_v0  ;;  %5534 = vmatpush.bf16.msra.mxu3 %v5197_v0  ;;  %vm5697_vm2 = vmand %vm722_vm0, %vm723_vm1  ;;  %vm798_vm4 = vsmask.f32 7424  ;;  %vm3979_vm6 = vcmask 1041408  }
   0xf   : > { %v5669_v4 = vpack.c.b16 %v524_v2, %v524_v2  ;;  %s5137_s27 = sshll.u32 %s6714_s21, 7  ;;  %vm6021_vm5 = vmand %vm797_vm3, %vm798_vm4  ;;  %s4174_s12 = sshll.u32 %s6714_s21, 3 }
  0x10   : > { %s5679_s30 = scalar_lea.vmem %s6611_s0, %s5137_s27  ;;  %s6480_s10 = scalar_lea.vmem %s6616_s5, %s5137_s27 }
  0x11   : > { %v579_v5 = vshrl.u32 %v5669_v4, 16  ;;  %v582_v6 = vshll.u32 %v5669_v4, 16  ;;  %1655 = vmatpush.bf16.msra.mxu0 %v5196_v3  ;;  %5535 = vmatpush.bf16.msra.mxu1 %v5196_v3  ;;  %v5685_v8 = vld [vmem:[%s5679_s30 + $0x18] sm:$0xff]   ;;  %v5720_v27 = vld [vmem:[%s5679_s30] sm:$0xff]   ;;  %s438_s15 = scalar_lea.vmem %s6617_s6, %s4174_s12 }
  0x12   : > { %v5688_v9 = vld [vmem:[%s5679_s30 + $0x38] sm:$0xff]   ;;  %5536 = vmatpush.bf16.msra.mxu2 %v5196_v3  ;;  %5537 = vmatpush.bf16.msra.mxu3 %v5196_v3  ;;  %v607_v11 = vshrl.u32 %v5685_v8, 16  ;;  %v5372_v14 = vunpack.c.l.b16 %v5685_v8  ;;  %v5373_v15 = vunpack.c.h.b16 %v5685_v8  ;;  %v610_v16 = vshll.u32 %v5685_v8, 16  ;;  %v5741_v45 = vld [vmem:[%s5679_s30 + $0x20] sm:$0xff]  }
  0x13   : > { %v581_v10 = vrot.slane %v579_v5, 7  ;;  %v5694_v12 = vld [vmem:[%s5679_s30 + $0x58] sm:$0xff]   ;;  %v6628_v17 = vshrl.u32 %v5688_v9, 16  ;;  %v5388_v20 = vunpack.c.l.b16 %v5688_v9  ;;  %v6629_v21 = vshll.u32 %v5688_v9, 16  ;;  %v5761_v63 = vld [vmem:[%s5679_s30 + $0x40] sm:$0xff]  }
  0x14   : > { %v609_v19 = vrot.slane %v607_v11, 7  ;;  %v5389_v23 = vunpack.c.h.b16 %v5688_v9  ;;  %v5404_v25 = vunpack.c.l.b16 %v5694_v12  ;;  %v6622_v26 = vshrl.u32 %v5694_v12, 16 }
  0x15   : > { %v584_v18 = vor.u32 %v582_v6, %v581_v10  ;;  %1656 = vmatpush.bf16.msra.mxu0 %v5195_v7  ;;  %5538 = vmatpush.bf16.msra.mxu1 %v5195_v7  ;;  %v637_v24 = vrot.slane %v6628_v17, 7  ;;  %v5405_v30 = vunpack.c.h.b16 %v5694_v12  ;;  %v6623_v31 = vshll.u32 %v5694_v12, 16 }
  0x16   : > { %5539 = vmatpush.bf16.msra.mxu2 %v5195_v7  ;;  %5540 = vmatpush.bf16.msra.mxu3 %v5195_v7  ;;  %v612_v29 = vor.u32 %v610_v16, %v609_v19  ;;  %v665_v35 = vrot.slane %v6622_v26, 7  ;;  %v5360_v37 = vunpack.c.l.b16 %v5720_v27  ;;  %v586_v38 = vshrl.u32 %v5720_v27, 16  ;;  %v5769_v7 = vld [vmem:[%s5679_s30 + $0x60] sm:$0xff]  }
  0x17   : > { %v725_v28 = vsel %vm5697_vm2, 0, %v584_v18  ;;  %v640_v34 = vor.u32 %v6629_v21, %v637_v24  ;;  %v589_v39 = vshll.u32 %v5720_v27, 16  ;;  %v5361_v48 = vunpack.c.h.b16 %v5720_v27  ;;  %v5191_v24 = vld [vmem:[%s6614_s3 + $0x8] sm:$0xff]  ;;  %v5274_v26 = vld [vmem:[%s6614_s3 + $0x120] sm:$0xff] }
  0x18   : > { %v854_v32 = vunpack.c.l.b16 %v725_v28  ;;  %v856_v33 = vunpack.c.h.b16 %v725_v28  ;;  %v729_v36 = vsel %vm5697_vm2, 0, %v612_v29  ;;  %v668_v47 = vor.u32 %v6623_v31, %v665_v35 }
  0x19   : > { %1657 = vmatpush.bf16.msra.mxu0 %v5194_v22  ;;  %5541 = vmatpush.bf16.msra.mxu1 %v5194_v22  ;;  %v870_v43 = vunpack.c.l.b16 %v729_v36  ;;  %v872_v44 = vunpack.c.h.b16 %v729_v36  ;;  %v733_v46 = vsel %vm5697_vm2, 0, %v640_v34  ;;  %v588_v49 = vrot.slane %v586_v38, 7 }
  0x1a   : > { %v926_v41 = vpack.c.b16 %v524_v2, %v854_v32  ;;  %v928_v42 = vpack.c.b16 %v524_v2, %v856_v33  ;;  %5542 = vmatpush.bf16.msra.mxu2 %v5194_v22  ;;  %5543 = vmatpush.bf16.msra.mxu3 %v5194_v22  ;;  %v886_v52 = vunpack.c.l.b16 %v733_v46  ;;  %v888_v53 = vunpack.c.h.b16 %v733_v46  ;;  %v5783_v32 = vld [vmem:[%s5679_s30 + $0x8] sm:$0xff]  }
  0x1b   : > { %v942_v50 = vpack.c.b16 %v5372_v14, %v870_v43  ;;  %v944_v51 = vpack.c.b16 %v5373_v15, %v872_v44  ;;  %v737_v54 = vsel %vm5697_vm2, 0, %v668_v47  ;;  %v591_v55 = vor.u32 %v589_v39, %v588_v49 }
  0x1c   : > { %1070 = vst [vmem:[#allocation2] sm:$0xff] %v926_v41  ;;  %v614_v56 = vshrl.u32 %v5741_v45, 16  ;;  %v617_v57 = vshll.u32 %v5741_v45, 16  ;;  %v958_v59 = vpack.c.b16 %v5388_v20, %v886_v52  ;;  %v902_v60 = vunpack.c.l.b16 %v737_v54 }
  0x1d   : > { %1072 = vst [vmem:[#allocation2 + $0xc] sm:$0xff] %v928_v42  ;;  %1658 = vmatpush.bf16.msra.mxu0 %v5193_v40  ;;  %5544 = vmatpush.bf16.msra.mxu1 %v5193_v40  ;;  %v904_v61 = vunpack.c.h.b16 %v737_v54  ;;  %v5376_v62 = vunpack.c.l.b16 %v5741_v45  ;;  %v960_v0 = vpack.c.b16 %v5389_v23, %v888_v53  ;;  %v726_v1 = vsel %vm5697_vm2, 0, %v591_v55 }
  0x1e   : > { %1138 = vst [vmem:[#allocation2 + $0x198] sm:$0xff] %v926_v41  ;;  %5545 = vmatpush.bf16.msra.mxu2 %v5193_v40  ;;  %5546 = vmatpush.bf16.msra.mxu3 %v5193_v40  ;;  %v5377_v2 = vunpack.c.h.b16 %v5741_v45  ;;  %v616_v3 = vrot.slane %v614_v56, 7  ;;  %v974_v10 = vpack.c.b16 %v5404_v25, %v902_v60  ;;  %v858_v14 = vunpack.c.l.b16 %v726_v1 }
  0x1f   : > { %1140 = vst [vmem:[#allocation2 + $0x1a4] sm:$0xff] %v928_v42  ;;  %v860_v15 = vunpack.c.h.b16 %v726_v1  ;;  %v5392_v18 = vunpack.c.l.b16 %v5761_v63  ;;  %v976_v19 = vpack.c.b16 %v5405_v30, %v904_v61  ;;  %v6626_v22 = vshrl.u32 %v5761_v63, 16  ;;  %v5269_v1 = vld [vmem:[%s6614_s3 + $0xf8] sm:$0xff] }
  0x20   : > { %1086 = vst [vmem:[#allocation2 + $0x60] sm:$0xff] %v942_v50  ;;  %v619_v20 = vor.u32 %v617_v57, %v616_v3  ;;  %v6627_v23 = vshll.u32 %v5761_v63, 16  ;;  %v930_v25 = vpack.c.b16 %v5360_v37, %v858_v14  ;;  %v5393_v28 = vunpack.c.h.b16 %v5761_v63  ;;  %v5803_v50 = vld [vmem:[%s5679_s30 + $0x28] sm:$0xff]  }
  0x21   : > { %1088 = vst [vmem:[#allocation2 + $0x6c] sm:$0xff] %v944_v51  ;;  %1659 = vmatpush.bf16.msra.mxu0 %v5192_v58  ;;  %5547 = vmatpush.bf16.msra.mxu1 %v5192_v58  ;;  %v5408_v29 = vunpack.c.l.b16 %v5769_v7  ;;  %v6619_v30 = vshrl.u32 %v5769_v7, 16  ;;  %v932_v33 = vpack.c.b16 %v5361_v48, %v860_v15  ;;  %v644_v35 = vrot.slane %v6626_v22, 7  ;;  %v5190_v51 = vld [vmem:[%s6614_s3] sm:$0xff] }
  0x22   : > { %1102 = vst [vmem:[#allocation2 + $0xc0] sm:$0xff] %v958_v59  ;;  %5548 = vmatpush.bf16.msra.mxu2 %v5192_v58  ;;  %5549 = vmatpush.bf16.msra.mxu3 %v5192_v58  ;;  %v730_v34 = vsel %vm5697_vm2, 0, %v619_v20  ;;  %v6621_v36 = vshll.u32 %v5769_v7, 16  ;;  %v5409_v43 = vunpack.c.h.b16 %v5769_v7  ;;  %v5364_v47 = vunpack.c.l.b16 %v5783_v32  ;;  %v5213_v59 = vld [vmem:[%s6614_s3 + $0xb8] sm:$0xff] }
  0x23   : > { %1104 = vst [vmem:[#allocation2 + $0xcc] sm:$0xff] %v960_v0  ;;  %v5790_v37 = vld [vmem:[#allocation2] sm:$0xf]  ;;  %v874_v41 = vunpack.c.l.b16 %v730_v34  ;;  %v876_v42 = vunpack.c.h.b16 %v730_v34  ;;  %v672_v44 = vrot.slane %v6619_v30, 7  ;;  %v647_v46 = vor.u32 %v6627_v23, %v644_v35  ;;  %v5205_v34 = vld [vmem:[%s6614_s3 + $0x78] sm:$0xff]  ;;  %v5936_v30 = vld [vmem:[%s5679_s30 + $0x50] sm:$0xff]  }
  0x24   : > { %v5792_v40 = vld [vmem:[#allocation2 + $0x8] sm:$0xf0]  ;;  %1118 = vst [vmem:[#allocation2 + $0x120] sm:$0xff] %v974_v10  ;;  %v593_v48 = vshrl.u32 %v5783_v32, 16  ;;  %v596_v49 = vshll.u32 %v5783_v32, 16  ;;  %v5365_v61 = vunpack.c.h.b16 %v5783_v32  ;;  %v621_v14 = vshrl.u32 %v5803_v50, 16 }
  0x25   : > { %1120 = vst [vmem:[#allocation2 + $0x12c] sm:$0xff] %v976_v19  ;;  %1660 = vmatpush.bf16.msra.mxu0 %v5191_v24  ;;  %5550 = vmatpush.bf16.msra.mxu1 %v5191_v24  ;;  %v946_v52 = vpack.c.b16 %v5376_v62, %v874_v41  ;;  %v948_v53 = vpack.c.b16 %v5377_v2, %v876_v42  ;;  %v734_v60 = vsel %vm5697_vm2, 0, %v647_v46  ;;  %v624_v41 = vshll.u32 %v5803_v50, 16  ;;  %v5837_v42 = vld [vmem:[%s5679_s30 + $0x48] sm:$0xff]  }
  0x26   : > { %1074 = vst [vmem:[#allocation2 + $0x18] sm:$0xff] %v930_v25  ;;  %v675_v54 = vor.u32 %v6621_v36, %v672_v44  ;;  %5551 = vmatpush.bf16.msra.mxu2 %v5191_v24  ;;  %5552 = vmatpush.bf16.msra.mxu3 %v5191_v24  ;;  %v4178_v55 = vor.u32 %v5792_v40, %v5790_v37  ;;  %v595_v62 = vrot.slane %v593_v48, 7  ;;  %v890_v2 = vunpack.c.l.b16 %v734_v60 }
  0x27   : > { %v4225_v58 = vld [vmem:[#allocation2 + $0x60] sm:$0xf]  ;;  %1076 = vst [vmem:[#allocation2 + $0x24] sm:$0xff] %v932_v33  ;;  %v892_v3 = vunpack.c.h.b16 %v734_v60  ;;  %v623_v40 = vrot.slane %v621_v14, 7  ;;  %v656_v23 = vshrl.u32 %v5936_v30, 16 }
  0x28   : > { %v5155_v0 = vld [vmem:[#allocation2 + $0x68] sm:$0xf0]  ;;  %1090 = vst [vmem:[#allocation2 + $0x78] sm:$0xff] %v946_v52  ;;  %v738_v10 = vsel %vm5697_vm2, 0, %v675_v54  ;;  %v598_v25 = vor.u32 %v596_v49, %v595_v62  ;;  %v962_v35 = vpack.c.b16 %v5392_v18, %v890_v2  ;;  %v5277_v52 = vld [vmem:[%s6614_s3 + $0x138] sm:$0xff]  ;;  %v6625_v2 = vshll.u32 %v5837_v42, 16 }
  0x29   : > { %v4226_v15 = vor.u32 %v5155_v0, %v4225_v58  ;;  %v4273_v19 = vld [vmem:[#allocation2 + $0xc0] sm:$0xf]  ;;  %1092 = vst [vmem:[#allocation2 + $0x84] sm:$0xff] %v948_v53  ;;  %v906_v20 = vunpack.c.l.b16 %v738_v10  ;;  %v908_v24 = vunpack.c.h.b16 %v738_v10  ;;  %1661 = vmatpush.bf16.msra.mxu0 %v5190_v51  ;;  %5553 = vmatpush.bf16.msra.mxu1 %v5190_v51  ;;  %v964_v37 = vpack.c.b16 %v5393_v28, %v892_v3  ;;  %v5268_v58 = vld [vmem:[%s6614_s3 + $0xf0] sm:$0xff]  ;;  %v5859_v3 = vld [vmem:[%s5679_s30 + $0x68] sm:$0xff]  }
  0x2a   : > { %v5167_v33 = vld [vmem:[#allocation2 + $0xc8] sm:$0xf0]  ;;  %5554 = vmatpush.bf16.msra.mxu2 %v5190_v51  ;;  %5555 = vmatpush.bf16.msra.mxu3 %v5190_v51  ;;  %v727_v28 = vsel %vm5697_vm2, 0, %v598_v25  ;;  %v5212_v51 = vld [vmem:[%s6614_s3 + $0xb0] sm:$0xff]  ;;  %1106 = vst [vmem:[#allocation2 + $0xd8] sm:$0xff] %v962_v35  ;;  %v5381_v0 = vunpack.c.h.b16 %v5803_v50 }
  0x2b   : > { %v4274_v44 = vor.u32 %v5167_v33, %v4273_v19  ;;  %v4321_v46 = vld [vmem:[#allocation2 + $0x120] sm:$0xf]  ;;  %v978_v53 = vpack.c.b16 %v5408_v29, %v906_v20  ;;  %v980_v18 = vpack.c.b16 %v5409_v43, %v908_v24  ;;  %v862_v60 = vunpack.c.l.b16 %v727_v28  ;;  %1108 = vst [vmem:[#allocation2 + $0xe4] sm:$0xff] %v964_v37  ;;  %v5204_v10 = vld [vmem:[%s6614_s3 + $0x70] sm:$0xff] }
  0x2c   : > { %v5179_v54 = vld [vmem:[#allocation2 + $0x128] sm:$0xf0]  ;;  %v864_v62 = vunpack.c.h.b16 %v727_v28  ;;  %v5380_v29 = vunpack.c.l.b16 %v5803_v50  ;;  %v626_v43 = vor.u32 %v624_v41, %v623_v40  ;;  %1662 = vmatmul.bf16.vlgmr.msra.gmra.mxu0 %v4178_v55  ;;  %1682 = vmatmul.bf16.vlgmr.msra.gmra.mxu1 %v4226_v15  ;;  %v5276_v33 = vld [vmem:[%s6614_s3 + $0x130] sm:$0xff]  ;;  %v5396_v40 = vunpack.c.l.b16 %v5837_v42 }
  0x2d   : > { %1702 = vmatmul.bf16.vlgmr.msra.gmra.mxu2 %v4274_v44  ;;  %1743 = vmatpush.bf16.msrb.mxu1 %v5205_v34  ;;  %1122 = vst [vmem:[#allocation2 + $0x138] sm:$0xff] %v978_v53  ;;  %v5211_v55 = vld [vmem:[%s6614_s3 + $0xa8] sm:$0xff]  ;;  %v934_v19 = vpack.c.b16 %v5364_v47, %v862_v60  ;;  %v5874_v25 = vld [vmem:[#allocation2 + $0x18] sm:$0xf]  ;;  %v5882_v47 = vld [vmem:[%s5679_s30 + $0x10] sm:$0xff]   ;;  %v6618_v44 = vshrl.u32 %v5859_v3, 16 }
  0x2e   : > { %1832 = vmatpush.bf16.msrb.mxu2 %v5213_v59  ;;  %2467 = vmatpush.bf16.msrb.mxu3 %v5269_v1  ;;  %v4322_v59 = vor.u32 %v5179_v54, %v4321_v46  ;;  %v6624_v1 = vshrl.u32 %v5837_v42, 16  ;;  %v5267_v15 = vld [vmem:[%s6614_s3 + $0xe8] sm:$0xff]  ;;  %v936_v20 = vpack.c.b16 %v5365_v61, %v864_v62  ;;  %v731_v24 = vsel %vm5697_vm2, 0, %v626_v43  ;;  %1124 = vst [vmem:[#allocation2 + $0x144] sm:$0xff] %v980_v18  ;;  %v5884_v61 = vld [vmem:[#allocation2 + $0x20] sm:$0xf0] }
  0x2f   : > { %2556 = vmatpush.bf16.msrb.mxu0 %v5277_v52  ;;  %v878_v34 = vunpack.c.l.b16 %v731_v24  ;;  %v880_v35 = vunpack.c.h.b16 %v731_v24  ;;  %1078 = vst [vmem:[#allocation2 + $0x30] sm:$0xff] %v934_v19  ;;  %v6620_v46 = vshll.u32 %v5859_v3, 16  ;;  %v5890_v52 = vld [vmem:[%s5679_s30 + $0x30] sm:$0xff]   ;;  %v5892_v53 = vld [vmem:[#allocation2 + $0x78] sm:$0xf]  ;;  %v5397_v54 = vunpack.c.h.b16 %v5837_v42  ;;  %v5203_v60 = vld [vmem:[%s6614_s3 + $0x68] sm:$0xff] }
  0x30   : > { %1722 = vmatmul.bf16.vlgmr.msra.gmra.mxu3 %v4322_v59  ;;  %v651_v37 = vrot.slane %v6624_v1, 7  ;;  %1080 = vst [vmem:[#allocation2 + $0x3c] sm:$0xff] %v936_v20  ;;  %v5412_v62 = vunpack.c.l.b16 %v5859_v3  ;;  %v679_v43 = vrot.slane %v6618_v44, 7  ;;  %v603_v59 = vshll.u32 %v5882_v47, 16 }
  0x31   : > { %v950_v18 = vpack.c.b16 %v5380_v29, %v878_v34  ;;  %v952_v28 = vpack.c.b16 %v5381_v0, %v880_v35  ;;  %1744 = vmatpush.bf16.msrb.mxu1 %v5204_v10  ;;  %v600_v29 = vshrl.u32 %v5882_v47, 16  ;;  %v4190_v0 = vor.u32 %v5884_v61, %v5874_v25  ;;  %v5275_v10 = vld [vmem:[%s6614_s3 + $0x128] sm:$0xff]  ;;  %v5210_v34 = vld [vmem:[%s6614_s3 + $0xa0] sm:$0xff] }
  0x32   : > { %1833 = vmatpush.bf16.msrb.mxu2 %v5212_v51  ;;  %2468 = vmatpush.bf16.msrb.mxu3 %v5268_v58  ;;  %v654_v51 = vor.u32 %v6625_v2, %v651_v37  ;;  %v5897_v58 = vld [vmem:[#allocation2 + $0x80] sm:$0xf0]  ;;  %v5413_v20 = vunpack.c.h.b16 %v5859_v3  ;;  %v6630_v24 = vshrl.u32 %v5890_v52, 16  ;;  %v5368_v44 = vunpack.c.l.b16 %v5882_v47 }
  0x33   : > { %2557 = vmatpush.bf16.msrb.mxu0 %v5276_v33  ;;  %1094 = vst [vmem:[#allocation2 + $0x90] sm:$0xff] %v950_v18  ;;  %v5266_v33 = vld [vmem:[%s6614_s3 + $0xe0] sm:$0xff]  ;;  %v682_v18 = vor.u32 %v6620_v46, %v679_v43  ;;  %v5369_v31 = vunpack.c.h.b16 %v5882_v47  ;;  %v743_v25 = vrot.slane %v582_v6, 1  ;;  %v5263_v6 = vld [vmem:[%s6614_s3 + $0xc8] sm:$0xff] }
  0x34   : > { %v735_v19 = vsel %vm5697_vm2, 0, %v654_v51  ;;  %1096 = vst [vmem:[#allocation2 + $0x9c] sm:$0xff] %v952_v28  ;;  %v602_v51 = vrot.slane %v600_v29, 7  ;;  %v630_v28 = vrot.slane %v6630_v24, 7 }
  0x35   : > { %v894_v35 = vunpack.c.l.b16 %v735_v19  ;;  %v896_v37 = vunpack.c.h.b16 %v735_v19  ;;  %v6631_v19 = vshll.u32 %v5890_v52, 16  ;;  %1745 = vmatpush.bf16.msrb.mxu1 %v5203_v60  ;;  %v739_v36 = vsel %vm5697_vm2, 0, %v682_v18  ;;  %v5182_v2 = vld [vmem:[#allocation2 + $0x140] sm:$0xf0] }
  0x36   : > { %1834 = vmatpush.bf16.msrb.mxu2 %v5211_v55  ;;  %2469 = vmatpush.bf16.msrb.mxu3 %v5267_v15  ;;  %v4238_v55 = vor.u32 %v5897_v58, %v5892_v53  ;;  %v5202_v15 = vld [vmem:[%s6614_s3 + $0x60] sm:$0xff]  ;;  %v5209_v53 = vld [vmem:[%s6614_s3 + $0x98] sm:$0xff]  ;;  %v605_v60 = vor.u32 %v603_v59, %v602_v51  ;;  %v912_v18 = vunpack.c.h.b16 %v739_v36  ;;  %v5384_v51 = vunpack.c.l.b16 %v5890_v52 }
  0x37   : > { %v966_v43 = vpack.c.b16 %v5396_v40, %v894_v35  ;;  %v968_v46 = vpack.c.b16 %v5397_v54, %v896_v37  ;;  %v5265_v58 = vld [vmem:[%s6614_s3 + $0xd8] sm:$0xff]  ;;  %v5170_v54 = vld [vmem:[#allocation2 + $0xe0] sm:$0xf0]  ;;  %2558 = vmatpush.bf16.msrb.mxu0 %v5275_v10  ;;  %v910_v37 = vunpack.c.l.b16 %v739_v36  ;;  %v633_v1 = vor.u32 %v6631_v19, %v630_v28  ;;  %v5968_v19 = vld [vmem:[%s5679_s30 + $0x70] sm:$0xff]  }
  0x38   : > { %v4285_v40 = vld [vmem:[#allocation2 + $0xd8] sm:$0xf]  ;;  %v728_v22 = vsel %vm5697_vm2, 0, %v605_v60  ;;  %v659_v10 = vshll.u32 %v5936_v30, 16  ;;  %v984_v17 = vpack.c.b16 %v5413_v20, %v912_v18  ;;  %v5385_v28 = vunpack.c.h.b16 %v5890_v52  ;;  %v4527_v47 = vld [vmem:[#allocation2 + $0x3c] sm:$0xf0] }
  0x39   : > { %v4333_v35 = vld [vmem:[#allocation2 + $0x138] sm:$0xf]  ;;  %1110 = vst [vmem:[#allocation2 + $0xf0] sm:$0xff] %v966_v43  ;;  %v982_v36 = vpack.c.b16 %v5412_v62, %v910_v37  ;;  %v866_v21 = vunpack.c.l.b16 %v728_v22  ;;  %v4286_v24 = vor.u32 %v5170_v54, %v4285_v40  ;;  %1746 = vmatpush.bf16.msrb.mxu1 %v5202_v15  ;;  %v732_v43 = vsel %vm5697_vm2, 0, %v633_v1  ;;  %v5264_v1 = vld [vmem:[%s6614_s3 + $0xd0] sm:$0xff] }
  0x3a   : > { %1835 = vmatpush.bf16.msrb.mxu2 %v5210_v34  ;;  %2470 = vmatpush.bf16.msrb.mxu3 %v5266_v33  ;;  %1112 = vst [vmem:[#allocation2 + $0xfc] sm:$0xff] %v968_v46  ;;  %v5201_v34 = vld [vmem:[%s6614_s3 + $0x58] sm:$0xff]  ;;  %v868_v33 = vunpack.c.h.b16 %v728_v22  ;;  %v658_v60 = vrot.slane %v656_v23, 7  ;;  %v4334_v46 = vor.u32 %v5182_v2, %v4333_v35  ;;  %v882_v15 = vunpack.c.l.b16 %v732_v43  ;;  %v5208_v22 = vld [vmem:[%s6614_s3 + $0x90] sm:$0xff] }
  0x3b   : > { %1126 = vst [vmem:[#allocation2 + $0x150] sm:$0xff] %v982_v36  ;;  %2559 = vmatpush.bf16.msrb.mxu0 %v5274_v26  ;;  %v5273_v62 = vld [vmem:[%s6614_s3 + $0x118] sm:$0xff]  ;;  %v938_v20 = vpack.c.b16 %v5368_v44, %v866_v21  ;;  %v884_v40 = vunpack.c.h.b16 %v732_v43  ;;  %v5400_v26 = vunpack.c.l.b16 %v5936_v30  ;;  %v5401_v54 = vunpack.c.h.b16 %v5936_v30  ;;  %v5272_v37 = vld [vmem:[%s6614_s3 + $0x110] sm:$0xff]  ;;  %v5199_v43 = vld [vmem:[%s6614_s3 + $0x48] sm:$0xff] }
  0x3c   : > { %1128 = vst [vmem:[#allocation2 + $0x15c] sm:$0xff] %v984_v17  ;;  %v940_v2 = vpack.c.b16 %v5369_v31, %v868_v33  ;;  %v661_v21 = vor.u32 %v659_v10, %v658_v60  ;;  %1667 = vmatmul.bf16.gmra.mxu0 %v4190_v0  ;;  %1687 = vmatmul.bf16.gmra.mxu1 %v4238_v55  ;;  %v5200_v31 = vld [vmem:[%s6614_s3 + $0x50] sm:$0xff]  ;;  %v5207_v55 = vld [vmem:[%s6614_s3 + $0x88] sm:$0xff]  ;;  %v5417_v33 = vunpack.c.h.b16 %v5968_v19  ;;  %v6639_v60 = vmov 0 }
  0x3d   : > { %1082 = vst [vmem:[#allocation2 + $0x48] sm:$0xff] %v938_v20  ;;  %v954_v17 = vpack.c.b16 %v5384_v51, %v882_v15  ;;  %v956_v44 = vpack.c.b16 %v5385_v28, %v884_v40  ;;  %1707 = vmatmul.bf16.gmra.mxu2 %v4286_v24  ;;  %1747 = vmatpush.bf16.msrb.mxu1 %v5201_v34  ;;  %v5416_v34 = vunpack.c.l.b16 %v5968_v19  ;;  %v6640_v60 = vsel %vm6021_vm5, 4294967295, %v6639_v60  ;;  %v5206_v20 = vld [vmem:[%s6614_s3 + $0x80] sm:$0xff]  ;;  %v5352_v30 = vld [vmem:[%s6614_s3 + $0x210] sm:$0xff] }
  0x3e   : > { %1836 = vmatpush.bf16.msrb.mxu2 %v5209_v53  ;;  %2471 = vmatpush.bf16.msrb.mxu3 %v5265_v58  ;;  %v6632_v53 = vshrl.u32 %v5968_v19, 16  ;;  %v6633_v58 = vshll.u32 %v5968_v19, 16  ;;  %1084 = vst [vmem:[#allocation2 + $0x54] sm:$0xff] %v940_v2  ;;  %v736_v35 = vsel %vm5697_vm2, 0, %v661_v21  ;;  %v744_v18 = vor.u32 %v743_v25, %v579_v5  ;;  %v5271_v5 = vld [vmem:[%s6614_s3 + $0x108] sm:$0xff]  ;;  %v5262_v15 = vld [vmem:[%s6614_s3 + $0xc0] sm:$0xff] }
  0x3f   : > { %2560 = vmatpush.bf16.msrb.mxu0 %v5273_v62  ;;  %1098 = vst [vmem:[#allocation2 + $0xa8] sm:$0xff] %v954_v17  ;;  %v898_v61 = vunpack.c.l.b16 %v736_v35  ;;  %v900_v0 = vunpack.c.h.b16 %v736_v35  ;;  %v5161_v21 = vld [vmem:[#allocation2 + $0x98] sm:$0xf0] }
  0x40   : > { %1727 = vmatmul.bf16.gmra.mxu3 %v4334_v46  ;;  %v686_v24 = vrot.slane %v6632_v53, 7  ;;  %1100 = vst [vmem:[#allocation2 + $0xb4] sm:$0xff] %v956_v44  ;;  %v800_v40 = vsel %vm6021_vm5, %v744_v18, 0  ;;  %v4297_v35 = vld [vmem:[#allocation2 + $0xf0] sm:$0xf] }
  0x41   : > { %v970_v51 = vpack.c.b16 %v5400_v26, %v898_v61  ;;  %v972_v36 = vpack.c.b16 %v5401_v54, %v900_v0  ;;  %1748 = vmatpush.bf16.msrb.mxu1 %v5200_v31  ;;  %6641 = vst [vmem:[#allocation4_spill] sm:$0xff] %v6640_v60  ;;  %v855_v2 = vunpack.c.l.b16 %v800_v40  ;;  %v857_v26 = vunpack.c.h.b16 %v800_v40  ;;  %v4249_v54 = vld [vmem:[#allocation2 + $0x90] sm:$0xf]  ;;  %v5198_v31 = vld [vmem:[%s6614_s3 + $0x40] sm:$0xff]  ;;  %v5173_v25 = vld [vmem:[#allocation2 + $0xf8] sm:$0xf0] }
  0x42   : > { %1837 = vmatpush.bf16.msrb.mxu2 %v5208_v22  ;;  %2472 = vmatpush.bf16.msrb.mxu3 %v5264_v1  ;;  %v689_v28 = vor.u32 %v6633_v58, %v686_v24  ;;  %v4201_v22 = vld [vmem:[#allocation2 + $0x30] sm:$0xf]  ;;  %v5149_v1 = vld [vmem:[#allocation2 + $0x38] sm:$0xf0]  ;;  %v5270_v61 = vld [vmem:[%s6614_s3 + $0x100] sm:$0xff]  ;;  %v4250_v18 = vor.u32 %v5161_v21, %v4249_v54 }
  0x43   : > { %1114 = vst [vmem:[#allocation2 + $0x108] sm:$0xff] %v970_v51  ;;  %2561 = vmatpush.bf16.msrb.mxu0 %v5272_v37  ;;  %v927_v0 = vpack.c.b16 %v855_v2, %v855_v2  ;;  %v929_v24 = vpack.c.b16 %v857_v26, %v857_v26  ;;  %v4202_v37 = vor.u32 %v5149_v1, %v4201_v22 }
  0x44   : > { %v740_v4 = vsel %vm5697_vm2, 0, %v689_v28  ;;  %1116 = vst [vmem:[#allocation2 + $0x114] sm:$0xff] %v972_v36  ;;  %v4298_v51 = vor.u32 %v5173_v25, %v4297_v35  ;;  %v745_v28 = vrot.slane %v589_v39, 1  ;;  %v747_v35 = vrot.slane %v596_v49, 1  ;;  %v4513_v49 = vld [vmem:[#allocation2 + $0x18] sm:$0xf] }
  0x45   : > { %v914_v46 = vunpack.c.l.b16 %v740_v4  ;;  %v916_v62 = vunpack.c.h.b16 %v740_v4  ;;  %1749 = vmatpush.bf16.msrb.mxu1 %v5199_v43  ;;  %1071 = vst [vmem:[#allocation2 + $0x8] sm:$0xf] %v927_v0  ;;  %v5285_v43 = vld [vmem:[%s6614_s3 + $0x178] sm:$0xff]  ;;  %v5152_v22 = vld [vmem:[#allocation2 + $0x50] sm:$0xf0] }
  0x46   : > { %1838 = vmatpush.bf16.msrb.mxu2 %v5207_v55  ;;  %2473 = vmatpush.bf16.msrb.mxu3 %v5263_v6  ;;  %v4345_v55 = vld [vmem:[#allocation2 + $0x150] sm:$0xf]  ;;  %v5185_v6 = vld [vmem:[#allocation2 + $0x158] sm:$0xf0]  ;;  %1073 = vst [vmem:[#allocation2 + $0x14] sm:$0xf] %v929_v24  ;;  %v746_v39 = vor.u32 %v745_v28, %v586_v38  ;;  %v748_v25 = vor.u32 %v747_v35, %v593_v48 }
  0x47   : > { %v986_v17 = vpack.c.b16 %v5416_v34, %v914_v46  ;;  %v988_v44 = vpack.c.b16 %v5417_v33, %v916_v62  ;;  %2562 = vmatpush.bf16.msrb.mxu0 %v5271_v5  ;;  %v4346_v36 = vor.u32 %v5185_v6, %v4345_v55  ;;  %1139 = vst [vmem:[#allocation2 + $0x1a0] sm:$0xf] %v927_v0  ;;  %v5341_v34 = vld [vmem:[%s6614_s3 + $0x1b8] sm:$0xff]  ;;  %v4261_v1 = vld [vmem:[#allocation2 + $0xa8] sm:$0xf] }
  0x48   : > { %1141 = vst [vmem:[#allocation2 + $0x1ac] sm:$0xf] %v929_v24  ;;  %v5349_v33 = vld [vmem:[%s6614_s3 + $0x1f8] sm:$0xff]  ;;  %v801_v5 = vsel %vm6021_vm5, %v746_v39, 0  ;;  %v5164_v2 = vld [vmem:[#allocation2 + $0xb0] sm:$0xf0] }
  0x49   : > { %1130 = vst [vmem:[#allocation2 + $0x168] sm:$0xff] %v986_v17  ;;  %1750 = vmatpush.bf16.msrb.mxu1 %v5198_v31  ;;  %v5357_v4 = vld [vmem:[%s6614_s3 + $0x238] sm:$0xff]  ;;  %v859_v46 = vunpack.c.l.b16 %v801_v5  ;;  %v861_v62 = vunpack.c.h.b16 %v801_v5  ;;  %v4262_v17 = vor.u32 %v5164_v2, %v4261_v1  ;;  %v749_v39 = vrot.slane %v603_v59, 1  ;;  %v5340_v5 = vld [vmem:[%s6614_s3 + $0x1b0] sm:$0xff] }
  0x4a   : > { %1839 = vmatpush.bf16.msrb.mxu2 %v5206_v20  ;;  %2474 = vmatpush.bf16.msrb.mxu3 %v5262_v15  ;;  %1132 = vst [vmem:[#allocation2 + $0x174] sm:$0xff] %v988_v44  ;;  %v4213_v20 = vld [vmem:[#allocation2 + $0x48] sm:$0xf]  ;;  %v5356_v59 = vld [vmem:[%s6614_s3 + $0x230] sm:$0xff]  ;;  %v4215_v45 = vld [vmem:[#allocation2 + $0x54] sm:$0xf0] }
  0x4b   : > { %2563 = vmatpush.bf16.msrb.mxu0 %v5270_v61  ;;  %v931_v15 = vpack.c.b16 %v859_v46, %v859_v46  ;;  %v933_v40 = vpack.c.b16 %v861_v62, %v861_v62  ;;  %v4309_v26 = vld [vmem:[#allocation2 + $0x108] sm:$0xf]  ;;  %v5176_v54 = vld [vmem:[#allocation2 + $0x110] sm:$0xf0]  ;;  %v4214_v21 = vor.u32 %v5152_v22, %v4213_v20  ;;  %v802_v61 = vsel %vm6021_vm5, %v748_v25, 0 }
  0x4c   : > { %1672 = vmatmul.bf16.gmra.mxu0 %v4202_v37  ;;  %1692 = vmatmul.bf16.gmra.mxu1 %v4250_v18  ;;  %v4310_v44 = vor.u32 %v5176_v54, %v4309_v26  ;;  %v863_v0 = vunpack.c.l.b16 %v802_v61  ;;  %v865_v24 = vunpack.c.h.b16 %v802_v61  ;;  %v5142_v37 = vld [vmem:[#allocation2 + $0x4] sm:$0xf]  ;;  %v4179_v18 = vld [vmem:[#allocation2 + $0xc] sm:$0xf0]  ;;  %v4185_v28 = vld [vmem:[#allocation2 + $0x8] sm:$0xf]  ;;  %v750_v20 = vor.u32 %v749_v39, %v600_v29 }
  0x4d   : > { %1712 = vmatmul.bf16.gmra.mxu2 %v4298_v51  ;;  %2645 = vmatpush.bf16.msra.mxu1 %v5285_v43  ;;  %1075 = vst [vmem:[#allocation2 + $0x20] sm:$0xf] %v931_v15  ;;  %v5214_v51 = vld [vmem:[#allocation2 + $0x1c] sm:$0xf]  ;;  %v4182_v43 = vor.u32 %v5142_v37, %v4179_v18  ;;  %v5348_v46 = vld [vmem:[%s6614_s3 + $0x1f0] sm:$0xff]  ;;  %v751_v61 = vrot.slane %v610_v16, 1 }
  0x4e   : > { %3344 = vmatpush.bf16.msra.mxu2 %v5341_v34  ;;  %3433 = vmatpush.bf16.msra.mxu3 %v5349_v33  ;;  %1077 = vst [vmem:[#allocation2 + $0x2c] sm:$0xf] %v933_v40  ;;  %v935_v55 = vpack.c.b16 %v863_v0, %v863_v0  ;;  %v937_v6 = vpack.c.b16 %v865_v24, %v865_v24  ;;  %v5144_v34 = vld [vmem:[#allocation2 + $0x10] sm:$0xf0]  ;;  %v5215_v33 = vld [vmem:[#allocation2 + $0x20] sm:$0xf0] }
  0x4f   : > { %3522 = vmatpush.bf16.msra.mxu0 %v5357_v4  ;;  %v4186_v48 = vor.u32 %v5144_v34, %v4185_v28  ;;  %v4514_v4 = vor.u32 %v5215_v33, %v4513_v49  ;;  %v5284_v62 = vld [vmem:[%s6614_s3 + $0x170] sm:$0xff]  ;;  %v803_v15 = vsel %vm6021_vm5, %v750_v20, 0  ;;  %v5145_v26 = vld [vmem:[#allocation2 + $0x1c] sm:$0xf]  ;;  %v4191_v54 = vld [vmem:[#allocation2 + $0x24] sm:$0xf0]  ;;  %v752_v0 = vor.u32 %v751_v61, %v607_v11 }
  0x50   : > { %1732 = vmatmul.bf16.gmra.mxu3 %v4346_v36  ;;  %v4357_v27 = vld [vmem:[#allocation2 + $0x168] sm:$0xf]  ;;  %1079 = vst [vmem:[#allocation2 + $0x38] sm:$0xf] %v935_v55  ;;  %v867_v40 = vunpack.c.l.b16 %v803_v15  ;;  %v869_v22 = vunpack.c.h.b16 %v803_v15  ;;  %v5220_v28 = vld [vmem:[#allocation2 + $0x4c] sm:$0xf] }
  0x51   : > { %v5188_v38 = vld [vmem:[#allocation2 + $0x170] sm:$0xf0]  ;;  %v4515_v36 = vld [vmem:[#allocation2 + $0x24] sm:$0xf0]  ;;  %1081 = vst [vmem:[#allocation2 + $0x44] sm:$0xf] %v937_v6  ;;  %2646 = vmatpush.bf16.msra.mxu1 %v5284_v62 }
  0x52   : > { %v4358_v31 = vor.u32 %v5188_v38, %v4357_v27  ;;  %v4518_v32 = vor.u32 %v5214_v51, %v4515_v36  ;;  %3345 = vmatpush.bf16.msra.mxu2 %v5340_v5  ;;  %3434 = vmatpush.bf16.msra.mxu3 %v5348_v46  ;;  %v939_v1 = vpack.c.b16 %v867_v40, %v867_v40  ;;  %v5217_v27 = vld [vmem:[#allocation2 + $0x34] sm:$0xf]  ;;  %v804_v24 = vsel %vm6021_vm5, %v752_v0, 0  ;;  %v4203_v36 = vld [vmem:[#allocation2 + $0x3c] sm:$0xf0]  ;;  %v5339_v39 = vld [vmem:[%s6614_s3 + $0x1a8] sm:$0xff] }
  0x53   : > { %3523 = vmatpush.bf16.msra.mxu0 %v5356_v59  ;;  %v941_v2 = vpack.c.b16 %v869_v22, %v869_v22  ;;  %v871_v55 = vunpack.c.l.b16 %v804_v24  ;;  %v873_v6 = vunpack.c.h.b16 %v804_v24  ;;  %v5148_v51 = vld [vmem:[#allocation2 + $0x34] sm:$0xf]  ;;  %v4539_v34 = vld [vmem:[#allocation2 + $0x54] sm:$0xf0]  ;;  %v4537_v16 = vld [vmem:[#allocation2 + $0x48] sm:$0xf] }
  0x54   : > { %1083 = vst [vmem:[#allocation2 + $0x50] sm:$0xf] %v939_v1  ;;  %v4197_v29 = vld [vmem:[#allocation2 + $0x20] sm:$0xf]  ;;  %v4542_v8 = vor.u32 %v5220_v28, %v4539_v34  ;;  %v5347_v5 = vld [vmem:[%s6614_s3 + $0x1e8] sm:$0xff] }
  0x55   : > { %v5147_v38 = vld [vmem:[#allocation2 + $0x28] sm:$0xf0]  ;;  %1085 = vst [vmem:[#allocation2 + $0x5c] sm:$0xf] %v941_v2  ;;  %v943_v37 = vpack.c.b16 %v871_v55, %v871_v55  ;;  %v945_v18 = vpack.c.b16 %v873_v6, %v873_v6  ;;  %v4551_v2 = vld [vmem:[#allocation2 + $0x6c] sm:$0xf0] }
  0x56   : > { %v4198_v35 = vor.u32 %v5147_v38, %v4197_v29  ;;  %3346 = vmatpush.bf16.msra.mxu2 %v5339_v39  ;;  %3435 = vmatpush.bf16.msra.mxu3 %v5347_v5  ;;  %v5283_v59 = vld [vmem:[%s6614_s3 + $0x168] sm:$0xff]  ;;  %v5154_v55 = vld [vmem:[#allocation2 + $0x64] sm:$0xf]  ;;  %v4227_v6 = vld [vmem:[#allocation2 + $0x6c] sm:$0xf0] }
  0x57   : > { %1087 = vst [vmem:[#allocation2 + $0x68] sm:$0xf] %v943_v37  ;;  %v4209_v49 = vld [vmem:[#allocation2 + $0x38] sm:$0xf]  ;;  %v5355_v15 = vld [vmem:[%s6614_s3 + $0x228] sm:$0xff]  ;;  %2647 = vmatpush.bf16.msra.mxu1 %v5283_v59  ;;  %v4230_v34 = vor.u32 %v5154_v55, %v4227_v6 }
  0x58   : > { %v5150_v33 = vld [vmem:[#allocation2 + $0x40] sm:$0xf0]  ;;  %1089 = vst [vmem:[#allocation2 + $0x74] sm:$0xf] %v945_v18  ;;  %v5151_v1 = vld [vmem:[#allocation2 + $0x4c] sm:$0xf]  ;;  %3524 = vmatpush.bf16.msra.mxu0 %v5355_v15 }
  0x59   : > { %v4210_v11 = vor.u32 %v5150_v33, %v4209_v49  ;;  %v4218_v29 = vor.u32 %v5151_v1, %v4215_v45  ;;  %v5226_v37 = vld [vmem:[#allocation2 + $0x7c] sm:$0xf]  ;;  %v4563_v18 = vld [vmem:[#allocation2 + $0x84] sm:$0xf0]  ;;  %v5227_v28 = vld [vmem:[#allocation2 + $0x80] sm:$0xf0] }
  0x5a   : > { %v4566_v50 = vor.u32 %v5226_v37, %v4563_v18  ;;  %v5354_v15 = vld [vmem:[%s6614_s3 + $0x220] sm:$0xff]  ;;  %v5157_v1 = vld [vmem:[#allocation2 + $0x7c] sm:$0xf]  ;;  %v4239_v45 = vld [vmem:[#allocation2 + $0x84] sm:$0xf0] }
  0x5c   : > { %1677 = vmatmul.bf16.gmra.mxu0 %v4214_v21  ;;  %1697 = vmatmul.bf16.gmra.mxu1 %v4262_v17  ;;  %v4525_v21 = vld [vmem:[#allocation2 + $0x30] sm:$0xf]  ;;  %v5218_v17 = vld [vmem:[#allocation2 + $0x38] sm:$0xf0] }
  0x5d   : > { %1717 = vmatmul.bf16.gmra.mxu2 %v4310_v44  ;;  %v4194_v44 = vor.u32 %v5145_v26, %v4191_v54  ;;  %v4526_v25 = vor.u32 %v5218_v17, %v4525_v21  ;;  %v4221_v26 = vld [vmem:[#allocation2 + $0x50] sm:$0xf]  ;;  %v5153_v54 = vld [vmem:[#allocation2 + $0x58] sm:$0xf0]  ;;  %3525 = vmatpush.bf16.msra.mxu0 %v5354_v15 }
  0x5e   : > { %v4222_v21 = vor.u32 %v5153_v54, %v4221_v26 }
  0x60   : > { %1737 = vmatmul.bf16.gmra.mxu3 %v4358_v31  ;;  %v4530_v31 = vor.u32 %v5217_v27, %v4527_v47  ;;  %v4549_v27 = vld [vmem:[#allocation2 + $0x60] sm:$0xf]  ;;  %v5224_v47 = vld [vmem:[#allocation2 + $0x68] sm:$0xf0] }
  0x61   : > { %v4550_v17 = vor.u32 %v5224_v47, %v4549_v27  ;;  %v4573_v27 = vld [vmem:[#allocation2 + $0x90] sm:$0xf]  ;;  %v5230_v47 = vld [vmem:[#allocation2 + $0x98] sm:$0xf0] }
  0x6c   : > { %1751 = vmatmul.bf16.vlgmr.msrb.gmra.mxu1 %v4182_v43  ;;  %2564 = vmatmul.bf16.vlgmr.msrb.gmra.mxu0 %v4518_v32  ;;  %v5221_v43 = vld [vmem:[#allocation2 + $0x50] sm:$0xf0]  ;;  %v4206_v32 = vor.u32 %v5148_v51, %v4203_v36  ;;  %v4233_v51 = vld [vmem:[#allocation2 + $0x68] sm:$0xf] }
  0x6d   : > { %1840 = vmatmul.bf16.vlgmr.msrb.gmra.mxu2 %v4186_v48  ;;  %v4538_v48 = vor.u32 %v5221_v43, %v4537_v16  ;;  %v5156_v36 = vld [vmem:[#allocation2 + $0x70] sm:$0xf0]  ;;  %v6642_v43 = vshll.u32 %v5890_v52, 16 }
  0x6e   : > { %v4234_v33 = vor.u32 %v5156_v36, %v4233_v51 }
  0x70   : > { %2475 = vmatmul.bf16.vlgmr.msrb.gmra.mxu3 %v4514_v4  ;;  %v753_v4 = vrot.slane %v617_v57, 1 }
  0x72   : > { %v754_v46 = vor.u32 %v753_v4, %v614_v56  ;;  %v5223_v56 = vld [vmem:[#allocation2 + $0x64] sm:$0xf] }
  0x73   : > { %v4554_v38 = vor.u32 %v5223_v56, %v4551_v2  ;;  %v5229_v56 = vld [vmem:[#allocation2 + $0x94] sm:$0xf]  ;;  %v4575_v2 = vld [vmem:[#allocation2 + $0x9c] sm:$0xf0] }
  0x74   : > { %v805_v62 = vsel %vm6021_vm5, %v754_v46, 0 }
  0x75   : > { %v875_v20 = vunpack.c.l.b16 %v805_v62  ;;  %v877_v57 = vunpack.c.h.b16 %v805_v62 }
  0x77   : > { %v947_v40 = vpack.c.b16 %v875_v20, %v875_v20  ;;  %v949_v22 = vpack.c.b16 %v877_v57, %v877_v57 }
  0x79   : > { %1091 = vst [vmem:[#allocation2 + $0x80] sm:$0xf] %v947_v40 }
  0x7a   : > { %1093 = vst [vmem:[#allocation2 + $0x8c] sm:$0xf] %v949_v22 }
  0x7c   : > { %1756 = vmatmul.bf16.gmra.mxu1 %v4194_v44  ;;  %2569 = vmatmul.bf16.gmra.mxu0 %v4530_v31  ;;  %v755_v44 = vrot.slane %v624_v41, 1  ;;  %v4561_v41 = vld [vmem:[#allocation2 + $0x78] sm:$0xf] }
  0x7d   : > { %1845 = vmatmul.bf16.gmra.mxu2 %v4198_v35  ;;  %v4562_v16 = vor.u32 %v5227_v28, %v4561_v41 }
  0x7e   : > { %v756_v31 = vor.u32 %v755_v44, %v621_v14 }
  0x80   : > { %2480 = vmatmul.bf16.gmra.mxu3 %v4526_v25  ;;  %v806_v35 = vsel %vm6021_vm5, %v756_v31, 0  ;;  %v4245_v26 = vld [vmem:[#allocation2 + $0x80] sm:$0xf] }
  0x81   : > { %v879_v25 = vunpack.c.l.b16 %v806_v35  ;;  %v881_v61 = vunpack.c.h.b16 %v806_v35  ;;  %v5159_v54 = vld [vmem:[#allocation2 + $0x88] sm:$0xf0] }
  0x82   : > { %v4246_v31 = vor.u32 %v5159_v54, %v4245_v26  ;;  %v6647_v26 = vshrl.u32 %v5761_v63, 16 }
  0x83   : > { %v951_v0 = vpack.c.b16 %v879_v25, %v879_v25  ;;  %v953_v24 = vpack.c.b16 %v881_v61, %v881_v61  ;;  %v4574_v25 = vor.u32 %v5230_v47, %v4573_v27  ;;  %v6644_v61 = vshll.u32 %v5688_v9, 16 }
  0x85   : > { %1095 = vst [vmem:[#allocation2 + $0x98] sm:$0xf] %v951_v0  ;;  %v759_v0 = vrot.slane %v6644_v61, 1 }
  0x86   : > { %1097 = vst [vmem:[#allocation2 + $0xa4] sm:$0xf] %v953_v24  ;;  %v6645_v24 = vshrl.u32 %v5688_v9, 16  ;;  %v4587_v9 = vld [vmem:[#allocation2 + $0xb4] sm:$0xf0] }
  0x88   : > { %v760_v55 = vor.u32 %v759_v0, %v6645_v24  ;;  %v5353_v0 = vld [vmem:[%s6614_s3 + $0x218] sm:$0xff]  ;;  %v5163_v24 = vld [vmem:[#allocation2 + $0xac] sm:$0xf] }
  0x89   : > { %3526 = vmatpush.bf16.msra.mxu0 %v5353_v0  ;;  %v5166_v0 = vld [vmem:[#allocation2 + $0xc4] sm:$0xf] }
  0x8a   : > { %v808_v37 = vsel %vm6021_vm5, %v760_v55, 0 }
  0x8b   : > { %v887_v36 = vunpack.c.l.b16 %v808_v37  ;;  %v889_v41 = vunpack.c.h.b16 %v808_v37 }
  0x8c   : > { %1761 = vmatmul.bf16.gmra.mxu1 %v4206_v32  ;;  %2574 = vmatmul.bf16.gmra.mxu0 %v4542_v8  ;;  %v757_v32 = vrot.slane %v6642_v43, 1  ;;  %v5338_v8 = vld [vmem:[%s6614_s3 + $0x1a0] sm:$0xff]  ;;  %v5232_v43 = vld [vmem:[#allocation2 + $0xac] sm:$0xf] }
  0x8d   : > { %1850 = vmatmul.bf16.gmra.mxu2 %v4210_v11  ;;  %v5346_v11 = vld [vmem:[%s6614_s3 + $0x1e0] sm:$0xff]  ;;  %3527 = vmatpush.bf16.msra.mxu0 %v5352_v30  ;;  %v6650_v30 = vshll.u32 %v5694_v12, 16 }
  0x8e   : > { %3347 = vmatpush.bf16.msra.mxu2 %v5338_v8  ;;  %3436 = vmatpush.bf16.msra.mxu3 %v5346_v11  ;;  %v5162_v8 = vld [vmem:[#allocation2 + $0xa0] sm:$0xf0]  ;;  %v4585_v11 = vld [vmem:[#allocation2 + $0xa8] sm:$0xf] }
  0x90   : > { %2485 = vmatmul.bf16.gmra.mxu3 %v4538_v48  ;;  %v6643_v48 = vshrl.u32 %v5890_v52, 16  ;;  %v5282_v52 = vld [vmem:[%s6614_s3 + $0x160] sm:$0xff] }
  0x91   : > { %2648 = vmatpush.bf16.msra.mxu1 %v5282_v52 }
  0x92   : > { %v758_v4 = vor.u32 %v757_v32, %v6643_v48  ;;  %v4257_v32 = vld [vmem:[#allocation2 + $0x98] sm:$0xf]  ;;  %v5233_v48 = vld [vmem:[#allocation2 + $0xb0] sm:$0xf0] }
  0x93   : > { %v4258_v15 = vor.u32 %v5162_v8, %v4257_v32 }
  0x94   : > { %v807_v5 = vsel %vm6021_vm5, %v758_v4, 0 }
  0x95   : > { %v883_v20 = vunpack.c.l.b16 %v807_v5  ;;  %v885_v57 = vunpack.c.h.b16 %v807_v5 }
  0x97   : > { %v955_v40 = vpack.c.b16 %v883_v20, %v883_v20  ;;  %v957_v22 = vpack.c.b16 %v885_v57, %v885_v57  ;;  %v4590_v20 = vor.u32 %v5232_v43, %v4587_v9  ;;  %v5236_v43 = vld [vmem:[#allocation2 + $0xc8] sm:$0xf0] }
  0x99   : > { %1099 = vst [vmem:[#allocation2 + $0xb0] sm:$0xf] %v955_v40 }
  0x9a   : > { %1101 = vst [vmem:[#allocation2 + $0xbc] sm:$0xf] %v957_v22  ;;  %v4586_v22 = vor.u32 %v5233_v48, %v4585_v11 }
  0x9c   : > { %1766 = vmatmul.bf16.gmra.mxu1 %v4218_v29  ;;  %2579 = vmatmul.bf16.gmra.mxu0 %v4554_v38  ;;  %v4242_v38 = vor.u32 %v5157_v1, %v4239_v45  ;;  %v6646_v1 = vshll.u32 %v5761_v63, 16  ;;  %v5281_v63 = vld [vmem:[%s6614_s3 + $0x158] sm:$0xff] }
  0x9d   : > { %1855 = vmatmul.bf16.gmra.mxu2 %v4222_v21  ;;  %v4578_v21 = vor.u32 %v5229_v56, %v4575_v2  ;;  %v5337_v56 = vld [vmem:[%s6614_s3 + $0x198] sm:$0xff]  ;;  %2649 = vmatpush.bf16.msra.mxu1 %v5281_v63 }
  0x9e   : > { %v761_v45 = vrot.slane %v6646_v1, 1  ;;  %v5345_v2 = vld [vmem:[%s6614_s3 + $0x1d8] sm:$0xff]  ;;  %3348 = vmatpush.bf16.msra.mxu2 %v5337_v56 }
  0x9f   : > { %3437 = vmatpush.bf16.msra.mxu3 %v5345_v2 }
  0xa0   : > { %2490 = vmatmul.bf16.gmra.mxu3 %v4550_v17  ;;  %v762_v54 = vor.u32 %v761_v45, %v6647_v26  ;;  %v6649_v45 = vshrl.u32 %v5837_v42, 16 }
  0xa9   : > { %v6111_v14 = vpop.f32.mrf.mxu0  ;;  %v6113_v49 = vpop.f32.mrf.mxu1 }
  0xac   : > { %1771 = vmatmul.bf16.gmra.mxu1 %v4230_v34  ;;  %2584 = vmatmul.bf16.gmra.mxu0 %v4566_v50  ;;  %v959_v34 = vpack.c.b16 %v887_v36, %v887_v36  ;;  %v961_v50 = vpack.c.b16 %v889_v41, %v889_v41  ;;  %v4263_v36 = vld [vmem:[#allocation2 + $0xb4] sm:$0xf0]  ;;  %v5235_v41 = vld [vmem:[#allocation2 + $0xc4] sm:$0xf] }
  0xad   : > { %1860 = vmatmul.bf16.gmra.mxu2 %v4234_v33  ;;  %v5160_v33 = vld [vmem:[#allocation2 + $0x94] sm:$0xf]  ;;  %v4266_v32 = vor.u32 %v5163_v24, %v4263_v36  ;;  %v5238_v36 = vld [vmem:[#allocation2 + $0xdc] sm:$0xf] }
  0xae   : > { %1103 = vst [vmem:[#allocation2 + $0xc8] sm:$0xf] %v959_v34  ;;  %v4599_v34 = vld [vmem:[#allocation2 + $0xcc] sm:$0xf0] }
  0xaf   : > { %1105 = vst [vmem:[#allocation2 + $0xd4] sm:$0xf] %v961_v50  ;;  %v4269_v50 = vld [vmem:[#allocation2 + $0xb0] sm:$0xf]  ;;  %v4602_v8 = vor.u32 %v5235_v41, %v4599_v34 }
  0xb0   : > { %2495 = vmatmul.bf16.gmra.mxu3 %v4562_v16  ;;  %v6125_v39 = vpop.f32.mrf.mxu2  ;;  %v4251_v16 = vld [vmem:[#allocation2 + $0x9c] sm:$0xf0] }
  0xb1   : > { %v6131_v62 = vpop.f32.mrf.mxu0  ;;  %v6133_v59 = vpop.f32.mrf.mxu1  ;;  %v4254_v5 = vor.u32 %v5160_v33, %v4251_v16  ;;  %v5165_v33 = vld [vmem:[#allocation2 + $0xb8] sm:$0xf0]  ;;  %v4597_v16 = vld [vmem:[#allocation2 + $0xc0] sm:$0xf] }
  0xb3   : > { %v6129_v46 = vpop.f32.mrf.mxu3 }
  0xb5   : > { %v4281_v41 = vld [vmem:[#allocation2 + $0xc8] sm:$0xf] }
  0xb6   : > { %v5168_v34 = vld [vmem:[#allocation2 + $0xd0] sm:$0xf0] }
  0xb8   : > { %v6141_v29 = vpop.f32.mrf.mxu2 }
  0xb9   : > { %v6145_v44 = vpop.f32.mrf.mxu0  ;;  %v6147_v35 = vpop.f32.mrf.mxu1 }
  0xbb   : > { %v6143_v17 = vpop.f32.mrf.mxu3 }
  0xbc   : > { %1776 = vmatmul.bf16.gmra.mxu1 %v4242_v38  ;;  %2589 = vmatmul.bf16.gmra.mxu0 %v4578_v21  ;;  %v809_v21 = vsel %vm6021_vm5, %v762_v54, 0 }
  0xbd   : > { %1865 = vmatmul.bf16.gmra.mxu2 %v4246_v31  ;;  %v893_v61 = vunpack.c.h.b16 %v809_v21 }
  0xbf   : > { %v965_v37 = vpack.c.b16 %v893_v61, %v893_v61 }
  0xc0   : > { %2500 = vmatmul.bf16.gmra.mxu3 %v4574_v25  ;;  %v6153_v6 = vpop.f32.mrf.mxu2  ;;  %v891_v25 = vunpack.c.l.b16 %v809_v21 }
  0xc1   : > { %v6159_v51 = vpop.f32.mrf.mxu0  ;;  %v6161_v28 = vpop.f32.mrf.mxu1  ;;  %1109 = vst [vmem:[#allocation2 + $0xec] sm:$0xf] %v965_v37  ;;  %v4275_v37 = vld [vmem:[#allocation2 + $0xcc] sm:$0xf0] }
  0xc2   : > { %v963_v55 = vpack.c.b16 %v891_v25, %v891_v25 }
  0xc3   : > { %v6157_v18 = vpop.f32.mrf.mxu3 }
  0xc4   : > { %1107 = vst [vmem:[#allocation2 + $0xe0] sm:$0xf] %v963_v55 }
  0xc8   : > { %v6163_v4 = vpop.f32.mrf.mxu2 }
  0xc9   : > { %v6167_v52 = vpop.f32.mrf.mxu0  ;;  %v6169_v40 = vpop.f32.mrf.mxu1 }
  0xcb   : > { %v6165_v57 = vpop.f32.mrf.mxu3 }
  0xcc   : > { %1781 = vmatmul.bf16.gmra.mxu1 %v4254_v5  ;;  %2594 = vmatmul.bf16.gmra.mxu0 %v4590_v20  ;;  %v4270_v5 = vor.u32 %v5165_v33, %v4269_v50  ;;  %v4609_v50 = vld [vmem:[#allocation2 + $0xd8] sm:$0xf]  ;;  %v5239_v33 = vld [vmem:[#allocation2 + $0xe0] sm:$0xf0] }
  0xcd   : > { %1870 = vmatmul.bf16.gmra.mxu2 %v4258_v15  ;;  %v4598_v15 = vor.u32 %v5236_v43, %v4597_v16  ;;  %v4278_v43 = vor.u32 %v5166_v0, %v4275_v37 }
  0xd0   : > { %2505 = vmatmul.bf16.gmra.mxu3 %v4586_v22  ;;  %v6181_v27 = vpop.f32.mrf.mxu2  ;;  %v6648_v22 = vshll.u32 %v5837_v42, 16  ;;  %v4611_v42 = vld [vmem:[#allocation2 + $0xe4] sm:$0xf0] }
  0xd1   : > { %v6185_v38 = vpop.f32.mrf.mxu0  ;;  %v6189_v31 = vpop.f32.mrf.mxu1 }
  0xd2   : > { %v763_v1 = vrot.slane %v6648_v22, 1 }
  0xd3   : > { %v6183_v47 = vpop.f32.mrf.mxu3 }
  0xd4   : > { %v764_v56 = vor.u32 %v763_v1, %v6649_v45  ;;  %v4610_v1 = vor.u32 %v5239_v33, %v4609_v50  ;;  %v5169_v50 = vld [vmem:[#allocation2 + $0xdc] sm:$0xf] }
  0xd6   : > { %v810_v21 = vsel %vm6021_vm5, %v764_v56, 0  ;;  %v765_v56 = vrot.slane %v659_v10, 1 }
  0xd7   : > { %v895_v61 = vunpack.c.l.b16 %v810_v21  ;;  %v897_v63 = vunpack.c.h.b16 %v810_v21  ;;  %v5336_v21 = vld [vmem:[%s6614_s3 + $0x190] sm:$0xff] }
  0xd8   : > { %v6197_v9 = vpop.f32.mrf.mxu2  ;;  %3349 = vmatpush.bf16.msra.mxu2 %v5336_v21 }
  0xd9   : > { %v6201_v48 = vpop.f32.mrf.mxu0  ;;  %v6203_v20 = vpop.f32.mrf.mxu1  ;;  %v967_v24 = vpack.c.b16 %v895_v61, %v895_v61  ;;  %v969_v55 = vpack.c.b16 %v897_v63, %v897_v63  ;;  %v5344_v61 = vld [vmem:[%s6614_s3 + $0x1d0] sm:$0xff]  ;;  %v766_v63 = vor.u32 %v765_v56, %v656_v23 }
  0xda   : > { %3438 = vmatpush.bf16.msra.mxu3 %v5344_v61  ;;  %v5280_v23 = vld [vmem:[%s6614_s3 + $0x150] sm:$0xff] }
  0xdb   : > { %v6199_v11 = vpop.f32.mrf.mxu3  ;;  %1111 = vst [vmem:[#allocation2 + $0xf8] sm:$0xf] %v967_v24  ;;  %v811_v10 = vsel %vm6021_vm5, %v766_v63, 0  ;;  %2650 = vmatpush.bf16.msra.mxu1 %v5280_v23 }
  0xdc   : > { %1786 = vmatmul.bf16.gmra.mxu1 %v4266_v32  ;;  %2599 = vmatmul.bf16.gmra.mxu0 %v4602_v8  ;;  %1113 = vst [vmem:[#allocation2 + $0x104] sm:$0xf] %v969_v55  ;;  %v4614_v32 = vor.u32 %v5238_v36, %v4611_v42  ;;  %v899_v42 = vunpack.c.l.b16 %v811_v10 }
  0xdd   : > { %1875 = vmatmul.bf16.gmra.mxu2 %v4270_v5 }
  0xde   : > { %v971_v33 = vpack.c.b16 %v899_v42, %v899_v42 }
  0xe0   : > { %2510 = vmatmul.bf16.gmra.mxu3 %v4598_v15  ;;  %v6209_v2 = vpop.f32.mrf.mxu2  ;;  %v4282_v15 = vor.u32 %v5168_v34, %v4281_v41  ;;  %v901_v41 = vunpack.c.h.b16 %v811_v10  ;;  %1115 = vst [vmem:[#allocation2 + $0x110] sm:$0xf] %v971_v33  ;;  %v767_v33 = vrot.slane %v6650_v30, 1  ;;  %v5245_v30 = vld [vmem:[#allocation2 + $0x110] sm:$0xf0] }
  0xe1   : > { %v6213_v54 = vpop.f32.mrf.mxu0  ;;  %v6217_v25 = vpop.f32.mrf.mxu1 }
  0xe3   : > { %v6211_v26 = vpop.f32.mrf.mxu3 }
  0xe8   : > { %v6219_v16 = vpop.f32.mrf.mxu2 }
  0xe9   : > { %v2565_v5 = vpop.f32.mrf.mxu0  ;;  %v1752_v22 = vpop.f32.mrf.mxu1 }
  0xea   : > { %v1753_v45 = vadd.f32 %v1752_v22, %v6111_v14  ;;  %v4293_v22 = vld [vmem:[#allocation2 + $0xe0] sm:$0xf] }
  0xeb   : > { %v6221_v8 = vpop.f32.mrf.mxu3 }
  0xec   : > { %1791 = vmatmul.bf16.gmra.mxu1 %v4278_v43  ;;  %2604 = vmatmul.bf16.gmra.mxu0 %v4614_v32  ;;  %v973_v43 = vpack.c.b16 %v901_v41, %v901_v41  ;;  %v4287_v32 = vld [vmem:[#allocation2 + $0xe4] sm:$0xf0] }
  0xed   : > { %1880 = vmatmul.bf16.gmra.mxu2 %v4282_v15  ;;  %v5241_v15 = vld [vmem:[#allocation2 + $0xf4] sm:$0xf]  ;;  %v4290_v21 = vor.u32 %v5169_v50, %v4287_v32  ;;  %v6651_v50 = vshrl.u32 %v5694_v12, 16  ;;  %v4299_v12 = vld [vmem:[#allocation2 + $0xfc] sm:$0xf0] }
  0xee   : > { %1117 = vst [vmem:[#allocation2 + $0x11c] sm:$0xf] %v973_v43 }
  0xf0   : > { %2515 = vmatmul.bf16.gmra.mxu3 %v4610_v1  ;;  %v1841_v0 = vpop.f32.mrf.mxu2  ;;  %v5171_v1 = vld [vmem:[#allocation2 + $0xe8] sm:$0xf0] }
  0xf1   : > { %v6234_v14 = vadd.f32 %v1841_v0, %v1753_v45  ;;  %v2567_v55 = vpop.f32.mrf.mxu0  ;;  %v1754_v36 = vpop.f32.mrf.mxu1  ;;  %v5242_v45 = vld [vmem:[#allocation2 + $0xf8] sm:$0xf0]  ;;  %v4294_v10 = vor.u32 %v5171_v1, %v4293_v22 }
  0xf2   : > { %v1755_v34 = vadd.f32 %v1754_v36, %v6131_v62  ;;  %v4621_v62 = vld [vmem:[#allocation2 + $0xf0] sm:$0xf] }
  0xf3   : > { %v2476_v24 = vpop.f32.mrf.mxu3  ;;  %v4622_v41 = vor.u32 %v5242_v45, %v4621_v62 }
  0xf4   : > { %v6238_v37 = vadd.f32 %v2565_v5, %v2476_v24  ;;  %v4623_v5 = vld [vmem:[#allocation2 + $0xfc] sm:$0xf0] }
  0xf5   : > { %v4626_v61 = vor.u32 %v5241_v15, %v4623_v5 }
  0xf8   : > { %v1843_v56 = vpop.f32.mrf.mxu2 }
  0xf9   : > { %v6247_v63 = vadd.f32 %v1843_v56, %v1755_v34  ;;  %v2570_v24 = vpop.f32.mrf.mxu0  ;;  %v1757_v42 = vpop.f32.mrf.mxu1  ;;  %v768_v34 = vor.u32 %v767_v33, %v6651_v50  ;;  %v5172_v56 = vld [vmem:[#allocation2 + $0xf4] sm:$0xf] }
  0xfa   : > { %v1758_v23 = vadd.f32 %v1757_v42, %v6145_v44  ;;  %v4305_v42 = vld [vmem:[#allocation2 + $0xf8] sm:$0xf] }
  0xfb   : > { %v2478_v0 = vpop.f32.mrf.mxu3  ;;  %v812_v5 = vsel %vm6021_vm5, %v768_v34, 0 }
  0xfc   : > { %v6249_v36 = vadd.f32 %v2567_v55, %v2478_v0  ;;  %1796 = vmatmul.bf16.gmra.mxu1 %v4290_v21  ;;  %2609 = vmatmul.bf16.gmra.mxu0 %v4626_v61  ;;  %v903_v1 = vunpack.c.l.b16 %v812_v5  ;;  %v905_v62 = vunpack.c.h.b16 %v812_v5  ;;  %v5244_v0 = vld [vmem:[#allocation2 + $0x10c] sm:$0xf] }
  0xfd   : > { %1885 = vmatmul.bf16.gmra.mxu2 %v4294_v10  ;;  %v4635_v10 = vld [vmem:[#allocation2 + $0x114] sm:$0xf0] }
  0xfe   : > { %v975_v21 = vpack.c.b16 %v903_v1, %v903_v1  ;;  %v977_v61 = vpack.c.b16 %v905_v62, %v905_v62  ;;  %v4638_v50 = vor.u32 %v5244_v0, %v4635_v10 }
 0x100   : > { %2520 = vmatmul.bf16.gmra.mxu3 %v4622_v41  ;;  %v1846_v43 = vpop.f32.mrf.mxu2  ;;  %v5174_v41 = vld [vmem:[#allocation2 + $0x100] sm:$0xf0]  ;;  %1119 = vst [vmem:[#allocation2 + $0x128] sm:$0xf] %v975_v21  ;;  %v6652_v21 = vshll.u32 %v5769_v7, 16 }
 0x101   : > { %v6256_v32 = vadd.f32 %v1846_v43, %v1758_v23  ;;  %v2572_v55 = vpop.f32.mrf.mxu0  ;;  %v1759_v44 = vpop.f32.mrf.mxu1  ;;  %v4633_v23 = vld [vmem:[#allocation2 + $0x108] sm:$0xf]  ;;  %1121 = vst [vmem:[#allocation2 + $0x134] sm:$0xf] %v977_v61 }
 0x102   : > { %v1760_v45 = vadd.f32 %v1759_v44, %v6159_v51  ;;  %v4306_v51 = vor.u32 %v5174_v41, %v4305_v42  ;;  %v4634_v1 = vor.u32 %v5245_v30, %v4633_v23  ;;  %v769_v61 = vrot.slane %v6652_v21, 1  ;;  %v5247_v21 = vld [vmem:[#allocation2 + $0x124] sm:$0xf] }
 0x103   : > { %v2481_v15 = vpop.f32.mrf.mxu3 }
 0x104   : > { %v6260_v22 = vadd.f32 %v2570_v24, %v2481_v15  ;;  %v4302_v24 = vor.u32 %v5172_v56, %v4299_v12  ;;  %v6653_v56 = vshrl.u32 %v5769_v7, 16  ;;  %v5279_v7 = vld [vmem:[%s6614_s3 + $0x148] sm:$0xff] }
 0x105   : > { %2651 = vmatpush.bf16.msra.mxu1 %v5279_v7 }
 0x106   : > { %v770_v12 = vor.u32 %v769_v61, %v6653_v56  ;;  %v4317_v61 = vld [vmem:[#allocation2 + $0x110] sm:$0xf] }
 0x108   : > { %v1848_v33 = vpop.f32.mrf.mxu2  ;;  %v813_v41 = vsel %vm6021_vm5, %v770_v12, 0 }
 0x109   : > { %v6263_v34 = vadd.f32 %v1848_v33, %v1760_v45  ;;  %v2575_v15 = vpop.f32.mrf.mxu0  ;;  %v1762_v44 = vpop.f32.mrf.mxu1  ;;  %v5335_v45 = vld [vmem:[%s6614_s3 + $0x188] sm:$0xff]  ;;  %v907_v33 = vunpack.c.l.b16 %v813_v41 }
 0x10a   : > { %v1763_v62 = vadd.f32 %v1762_v44, %v6167_v52  ;;  %3350 = vmatpush.bf16.msra.mxu2 %v5335_v45  ;;  %v5177_v45 = vld [vmem:[#allocation2 + $0x118] sm:$0xf0] }
 0x10b   : > { %v2483_v43 = vpop.f32.mrf.mxu3  ;;  %v979_v44 = vpack.c.b16 %v907_v33, %v907_v33  ;;  %v4318_v33 = vor.u32 %v5177_v45, %v4317_v61 }
 0x10c   : > { %v6265_v5 = vadd.f32 %v2572_v55, %v2483_v43  ;;  %1801 = vmatmul.bf16.gmra.mxu1 %v4302_v24  ;;  %2614 = vmatmul.bf16.gmra.mxu0 %v4638_v50  ;;  %v5343_v55 = vld [vmem:[%s6614_s3 + $0x1c8] sm:$0xff]  ;;  %v909_v24 = vunpack.c.h.b16 %v813_v41 }
 0x10d   : > { %1890 = vmatmul.bf16.gmra.mxu2 %v4306_v51  ;;  %3439 = vmatpush.bf16.msra.mxu3 %v5343_v55  ;;  %v5351_v43 = vld [vmem:[%s6614_s3 + $0x208] sm:$0xff]  ;;  %1123 = vst [vmem:[#allocation2 + $0x140] sm:$0xf] %v979_v44 }
 0x10e   : > { %v5175_v51 = vld [vmem:[#allocation2 + $0x10c] sm:$0xf]  ;;  %3528 = vmatpush.bf16.msra.mxu0 %v5351_v43  ;;  %v6654_v43 = vshll.u32 %v5859_v3, 16 }
 0x10f   : > { %v5248_v55 = vld [vmem:[#allocation2 + $0x128] sm:$0xf0] }
 0x110   : > { %2525 = vmatmul.bf16.gmra.mxu3 %v4634_v1  ;;  %v1851_v0 = vpop.f32.mrf.mxu2  ;;  %v981_v1 = vpack.c.b16 %v909_v24, %v909_v24  ;;  %v771_v44 = vrot.slane %v6654_v43, 1  ;;  %v5251_v43 = vld [vmem:[#allocation2 + $0x140] sm:$0xf0] }
 0x111   : > { %v6278_v52 = vadd.f32 %v1851_v0, %v1763_v62  ;;  %v2577_v42 = vpop.f32.mrf.mxu0  ;;  %v1764_v30 = vpop.f32.mrf.mxu1  ;;  %v4311_v62 = vld [vmem:[#allocation2 + $0x114] sm:$0xf0] }
 0x112   : > { %v1765_v50 = vadd.f32 %v1764_v30, %v6185_v38  ;;  %v4645_v38 = vld [vmem:[#allocation2 + $0x120] sm:$0xf]  ;;  %1125 = vst [vmem:[#allocation2 + $0x14c] sm:$0xf] %v981_v1  ;;  %v4314_v12 = vor.u32 %v5175_v51, %v4311_v62  ;;  %v6655_v51 = vshrl.u32 %v5859_v3, 16 }
 0x113   : > { %v2486_v10 = vpop.f32.mrf.mxu3  ;;  %v4646_v58 = vor.u32 %v5248_v55, %v4645_v38 }
 0x114   : > { %v6282_v23 = vadd.f32 %v2575_v15, %v2486_v10  ;;  %v4647_v15 = vld [vmem:[#allocation2 + $0x12c] sm:$0xf0] }
 0x115   : > { %v4650_v0 = vor.u32 %v5247_v21, %v4647_v15 }
 0x118   : > { %v1853_v56 = vpop.f32.mrf.mxu2 }
 0x119   : > { %v6291_v10 = vadd.f32 %v1853_v56, %v1765_v50  ;;  %v2580_v30 = vpop.f32.mrf.mxu0  ;;  %v1767_v53 = vpop.f32.mrf.mxu1  ;;  %v772_v50 = vor.u32 %v771_v44, %v6655_v51  ;;  %v4323_v56 = vld [vmem:[#allocation2 + $0x12c] sm:$0xf0] }
 0x11a   : > { %v1768_v7 = vadd.f32 %v1767_v53, %v6201_v48 }
 0x11b   : > { %v2488_v41 = vpop.f32.mrf.mxu3  ;;  %v814_v15 = vsel %vm6021_vm5, %v772_v50, 0  ;;  %v6308_v50 = vld [vmem:[%s5679_s30 + $0x78] sm:$0xff]  }
 0x11c   : > { %v6293_v24 = vadd.f32 %v2577_v42, %v2488_v41  ;;  %1806 = vmatmul.bf16.gmra.mxu1 %v4314_v12  ;;  %2619 = vmatmul.bf16.gmra.mxu0 %v4650_v0  ;;  %v911_v48 = vunpack.c.l.b16 %v814_v15  ;;  %v913_v45 = vunpack.c.h.b16 %v814_v15  ;;  %v5250_v12 = vld [vmem:[#allocation2 + $0x13c] sm:$0xf]  ;;  %v4659_v0 = vld [vmem:[#allocation2 + $0x144] sm:$0xf0] }
 0x11d   : > { %1895 = vmatmul.bf16.gmra.mxu2 %v4318_v33  ;;  %v4329_v41 = vld [vmem:[#allocation2 + $0x128] sm:$0xf]  ;;  %v5180_v33 = vld [vmem:[#allocation2 + $0x130] sm:$0xf0]  ;;  %v4662_v51 = vor.u32 %v5250_v12, %v4659_v0  ;;  %v6660_v0 = vshrl.u32 %v5968_v19, 16 }
 0x11e   : > { %v983_v55 = vpack.c.b16 %v911_v48, %v911_v48  ;;  %v985_v3 = vpack.c.b16 %v913_v45, %v913_v45  ;;  %v4330_v15 = vor.u32 %v5180_v33, %v4329_v41 }
 0x120   : > { %2530 = vmatmul.bf16.gmra.mxu3 %v4646_v58  ;;  %v1856_v1 = vpop.f32.mrf.mxu2  ;;  %v5178_v58 = vld [vmem:[#allocation2 + $0x124] sm:$0xf]  ;;  %1127 = vst [vmem:[#allocation2 + $0x158] sm:$0xf] %v983_v55  ;;  %v6659_v55 = vshll.u32 %v5968_v19, 16 }
 0x121   : > { %v6300_v62 = vadd.f32 %v1856_v1, %v1768_v7  ;;  %v2582_v42 = vpop.f32.mrf.mxu0  ;;  %v1769_v53 = vpop.f32.mrf.mxu1  ;;  %v4657_v7 = vld [vmem:[#allocation2 + $0x138] sm:$0xf]  ;;  %1129 = vst [vmem:[#allocation2 + $0x164] sm:$0xf] %v985_v3  ;;  %v4326_v44 = vor.u32 %v5178_v58, %v4323_v56  ;;  %v6635_v56 = vshll.u32 %v6308_v50, 16 }
 0x122   : > { %v1770_v38 = vadd.f32 %v1769_v53, %v6213_v54  ;;  %v6634_v53 = vshrl.u32 %v6308_v50, 16  ;;  %v773_v58 = vrot.slane %v6659_v55, 1 }
 0x123   : > { %6656 = vst [vmem:[#allocation5_spill] sm:$0xff] %v6300_v62  ;;  %v2491_v21 = vpop.f32.mrf.mxu3  ;;  %v4658_v62 = vor.u32 %v5251_v43, %v4657_v7 }
 0x124   : > { %v6304_v61 = vadd.f32 %v2580_v30, %v2491_v21  ;;  %v693_v3 = vrot.slane %v6634_v53, 7  ;;  %v774_v41 = vor.u32 %v773_v58, %v6660_v0  ;;  %v5278_v58 = vld [vmem:[%s6614_s3 + $0x140] sm:$0xff]  ;;  %v5183_v53 = vld [vmem:[#allocation2 + $0x148] sm:$0xf0] }
 0x125   : > { %2652 = vmatpush.bf16.msra.mxu1 %v5278_v58 }
 0x128   : > { %v1858_v30 = vpop.f32.mrf.mxu2 }
 0x129   : > { %v6310_v1 = vadd.f32 %v1858_v30, %v1770_v38  ;;  %v2585_v21 = vpop.f32.mrf.mxu0  ;;  %v1772_v45 = vpop.f32.mrf.mxu1  ;;  %v5334_v38 = vld [vmem:[%s6614_s3 + $0x180] sm:$0xff] }
 0x12a   : > { %v1773_v12 = vadd.f32 %v1772_v45, %v6113_v49  ;;  %3351 = vmatpush.bf16.msra.mxu2 %v5334_v38  ;;  %v5421_v49 = vunpack.c.h.b16 %v6308_v50 }
 0x12b   : > { %6657 = vst [vmem:[#allocation6_spill] sm:$0xff] %v6310_v1  ;;  %v2493_v54 = vpop.f32.mrf.mxu3 }
 0x12c   : > { %v6313_v48 = vadd.f32 %v2582_v42, %v2493_v54  ;;  %1811 = vmatmul.bf16.gmra.mxu1 %v4326_v44  ;;  %2624 = vmatmul.bf16.gmra.mxu0 %v4662_v51  ;;  %v5342_v42 = vld [vmem:[%s6614_s3 + $0x1c0] sm:$0xff]  ;;  %v815_v44 = vsel %vm6021_vm5, %v774_v41, 0  ;;  %v5420_v51 = vunpack.c.l.b16 %v6308_v50  ;;  %v4335_v41 = vld [vmem:[#allocation2 + $0x144] sm:$0xf0] }
 0x12d   : > { %1900 = vmatmul.bf16.gmra.mxu2 %v4330_v15  ;;  %3440 = vmatpush.bf16.msra.mxu3 %v5342_v42  ;;  %v915_v15 = vunpack.c.l.b16 %v815_v44  ;;  %v917_v45 = vunpack.c.h.b16 %v815_v44  ;;  %v4341_v44 = vld [vmem:[#allocation2 + $0x140] sm:$0xf] }
 0x12e   : > { %6658 = vst [vmem:[#allocation7_spill] sm:$0xff] %v6313_v48  ;;  %v4342_v58 = vor.u32 %v5183_v53, %v4341_v44  ;;  %v5184_v53 = vld [vmem:[#allocation2 + $0x154] sm:$0xf] }
 0x12f   : > { %v987_v0 = vpack.c.b16 %v915_v15, %v915_v15 }
 0x130   : > { %2535 = vmatmul.bf16.gmra.mxu3 %v4658_v62  ;;  %v1861_v33 = vpop.f32.mrf.mxu2  ;;  %v696_v62 = vor.u32 %v6635_v56, %v693_v3  ;;  %v5350_v3 = vld [vmem:[%s6614_s3 + $0x200] sm:$0xff] }
 0x131   : > { %v6331_v7 = vadd.f32 %v1861_v33, %v1773_v12  ;;  %v2587_v30 = vpop.f32.mrf.mxu0  ;;  %v1774_v19 = vpop.f32.mrf.mxu1  ;;  %v5181_v12 = vld [vmem:[#allocation2 + $0x13c] sm:$0xf]  ;;  %v5253_v33 = vld [vmem:[#allocation2 + $0x154] sm:$0xf]  ;;  %3529 = vmatpush.bf16.msra.mxu0 %v5350_v3  ;;  %1131 = vst [vmem:[#allocation2 + $0x170] sm:$0xf] %v987_v0 }
 0x132   : > { %v741_v55 = vsel %vm5697_vm2, 0, %v696_v62  ;;  %v1775_v56 = vadd.f32 %v1774_v19, %v6133_v59  ;;  %v4347_v0 = vld [vmem:[#allocation2 + $0x15c] sm:$0xf0] }
 0x133   : > { %6661 = vst [vmem:[#allocation8_spill] sm:$0xff] %v6331_v7  ;;  %v2496_v43 = vpop.f32.mrf.mxu3  ;;  %v918_v38 = vunpack.c.l.b16 %v741_v55  ;;  %v920_v42 = vunpack.c.h.b16 %v741_v55  ;;  %v4669_v7 = vld [vmem:[#allocation2 + $0x150] sm:$0xf]  ;;  %v4338_v55 = vor.u32 %v5181_v12, %v4335_v41  ;;  %v4353_v41 = vld [vmem:[#allocation2 + $0x158] sm:$0xf] }
 0x134   : > { %v6337_v54 = vadd.f32 %v2585_v21, %v2496_v43  ;;  %v989_v21 = vpack.c.b16 %v917_v45, %v917_v45  ;;  %v4671_v43 = vld [vmem:[#allocation2 + $0x15c] sm:$0xf0] }
 0x135   : > { %v990_v13 = vpack.c.b16 %v5420_v51, %v918_v38  ;;  %v992_v62 = vpack.c.b16 %v5421_v49, %v920_v42  ;;  %v4674_v48 = vor.u32 %v5253_v33, %v4671_v43  ;;  %v5257_v33 = vld [vmem:[#allocation2 + $0x170] sm:$0xf0] }
 0x136   : > { %6662 = vst [vmem:[#allocation9_spill] sm:$0xff] %v6337_v54  ;;  %v5254_v54 = vld [vmem:[#allocation2 + $0x158] sm:$0xf0] }
 0x137   : > { %1133 = vst [vmem:[#allocation2 + $0x17c] sm:$0xf] %v989_v21  ;;  %v4670_v3 = vor.u32 %v5254_v54, %v4669_v7  ;;  %v4683_v21 = vld [vmem:[#allocation2 + $0x174] sm:$0xf0]  ;;  %v5186_v7 = vld [vmem:[#allocation2 + $0x160] sm:$0xf0] }
 0x138   : > { %v1863_v1 = vpop.f32.mrf.mxu2  ;;  %1134 = vst [vmem:[#allocation2 + $0x180] sm:$0xff] %v990_v13  ;;  %v4681_v54 = vld [vmem:[#allocation2 + $0x168] sm:$0xf] }
 0x139   : > { %v6348_v15 = vadd.f32 %v1863_v1, %v1775_v56  ;;  %v2590_v60 = vpop.f32.mrf.mxu0  ;;  %1136 = vst [vmem:[#allocation2 + $0x18c] sm:$0xff] %v992_v62  ;;  %v1777_v49 = vpop.f32.mrf.mxu1 }
 0x13a   : > { %v1778_v59 = vadd.f32 %v1777_v49, %v6147_v35  ;;  %v4350_v35 = vor.u32 %v5184_v53, %v4347_v0  ;;  %v4682_v49 = vor.u32 %v5257_v33, %v4681_v54  ;;  %v5187_v0 = vld [vmem:[#allocation2 + $0x16c] sm:$0xf] }
 0x13b   : > { %v2498_v45 = vpop.f32.mrf.mxu3 }
 0x13c   : > { %v6350_v51 = vadd.f32 %v2587_v30, %v2498_v45  ;;  %1816 = vmatmul.bf16.gmra.mxu1 %v4338_v55  ;;  %2629 = vmatmul.bf16.gmra.mxu0 %v4674_v48  ;;  %v5256_v30 = vld [vmem:[#allocation2 + $0x16c] sm:$0xf] }
 0x13d   : > { %1905 = vmatmul.bf16.gmra.mxu2 %v4342_v58  ;;  %v4686_v13 = vor.u32 %v5256_v30, %v4683_v21  ;;  %v4359_v30 = vld [vmem:[#allocation2 + $0x174] sm:$0xf0] }
 0x13f   : > { %v4693_v54 = vld [vmem:[#allocation2 + $0x180] sm:$0xf] }
 0x140   : > { %2540 = vmatmul.bf16.gmra.mxu3 %v4670_v3  ;;  %v1866_v19 = vpop.f32.mrf.mxu2  ;;  %v4695_v21 = vld [vmem:[#allocation2 + $0x18c] sm:$0xf0]  ;;  %v5260_v33 = vld [vmem:[#allocation2 + $0x188] sm:$0xf0] }
 0x141   : > { %v6353_v38 = vadd.f32 %v1866_v19, %v1778_v59  ;;  %v2592_v1 = vpop.f32.mrf.mxu0  ;;  %v1779_v12 = vpop.f32.mrf.mxu1 }
 0x142   : > { %v1780_v48 = vadd.f32 %v1779_v12, %v6161_v28 }
 0x143   : > { %v2501_v42 = vpop.f32.mrf.mxu3 }
 0x144   : > { %v6355_v56 = vadd.f32 %v2590_v60, %v2501_v42  ;;  %v4354_v60 = vor.u32 %v5186_v7, %v4353_v41  ;;  %v4365_v41 = vld [vmem:[#allocation2 + $0x170] sm:$0xf]  ;;  %v5189_v7 = vld [vmem:[#allocation2 + $0x178] sm:$0xf0] }
 0x148   : > { %v1868_v43 = vpop.f32.mrf.mxu2 }
 0x149   : > { %v6358_v62 = vadd.f32 %v1868_v43, %v1780_v48  ;;  %v2595_v55 = vpop.f32.mrf.mxu0  ;;  %v1782_v58 = vpop.f32.mrf.mxu1 }
 0x14a   : > { %v1783_v28 = vadd.f32 %v1782_v58, %v6169_v40  ;;  %v4362_v40 = vor.u32 %v5187_v0, %v4359_v30 }
 0x14b   : > { %v2503_v44 = vpop.f32.mrf.mxu3 }
 0x14c   : > { %v6360_v45 = vadd.f32 %v2592_v1, %v2503_v44  ;;  %1821 = vmatmul.bf16.gmra.mxu1 %v4350_v35  ;;  %2634 = vmatmul.bf16.gmra.mxu0 %v4686_v13  ;;  %v5259_v1 = vld [vmem:[#allocation2 + $0x184] sm:$0xf] }
 0x14d   : > { %1910 = vmatmul.bf16.gmra.mxu2 %v4354_v60  ;;  %v4698_v35 = vor.u32 %v5259_v1, %v4695_v21  ;;  %v4521_v21 = vld [vmem:[#allocation2 + $0x20] sm:$0xf] }
 0x150   : > { %2545 = vmatmul.bf16.gmra.mxu3 %v4682_v49  ;;  %v1871_v3 = vpop.f32.mrf.mxu2 }
 0x151   : > { %v6363_v59 = vadd.f32 %v1871_v3, %v1783_v28  ;;  %v2597_v42 = vpop.f32.mrf.mxu0  ;;  %v1784_v53 = vpop.f32.mrf.mxu1  ;;  %v4694_v28 = vor.u32 %v5260_v33, %v4693_v54  ;;  %v5287_v54 = vld [vmem:[#allocation2 + $0x38] sm:$0xf0] }
 0x152   : > { %v1785_v48 = vadd.f32 %v1784_v53, %v6189_v31 }
 0x153   : > { %v2506_v19 = vpop.f32.mrf.mxu3 }
 0x154   : > { %v6365_v12 = vadd.f32 %v2595_v55, %v2506_v19  ;;  %v4366_v55 = vor.u32 %v5189_v7, %v4365_v41  ;;  %v5216_v41 = vld [vmem:[#allocation2 + $0x28] sm:$0xf0]  ;;  %v5288_v7 = vld [vmem:[#allocation2 + $0x40] sm:$0xf0] }
 0x158   : > { %v1873_v43 = vpop.f32.mrf.mxu2 }
 0x159   : > { %v6368_v13 = vadd.f32 %v1873_v43, %v1785_v48  ;;  %v2600_v60 = vpop.f32.mrf.mxu0  ;;  %v1787_v49 = vpop.f32.mrf.mxu1  ;;  %v4849_v48 = vld [vmem:[#allocation2 + $0x30] sm:$0xf]  ;;  %v5286_v43 = vld [vmem:[#allocation2 + $0x34] sm:$0xf] }
 0x15a   : > { %v1788_v31 = vadd.f32 %v1787_v49, %v6203_v20  ;;  %v4522_v20 = vor.u32 %v5216_v41, %v4521_v21 }
 0x15b   : > { %v2508_v44 = vpop.f32.mrf.mxu3 }
 0x15c   : > { %v6370_v58 = vadd.f32 %v2597_v42, %v2508_v44  ;;  %1826 = vmatmul.bf16.gmra.mxu1 %v4362_v40  ;;  %2639 = vmatmul.bf16.gmra.mxu0 %v4698_v35  ;;  %v4857_v42 = vld [vmem:[#allocation2 + $0x38] sm:$0xf]  ;;  %v4851_v40 = vld [vmem:[#allocation2 + $0x3c] sm:$0xf0] }
 0x15d   : > { %1915 = vmatmul.bf16.gmra.mxu2 %v4366_v55  ;;  %v4858_v44 = vor.u32 %v5288_v7, %v4857_v42 }
 0x160   : > { %2550 = vmatmul.bf16.gmra.mxu3 %v4694_v28  ;;  %v1876_v3 = vpop.f32.mrf.mxu2 }
 0x161   : > { %v6373_v19 = vadd.f32 %v1876_v3, %v1788_v31  ;;  %v2602_v0 = vpop.f32.mrf.mxu0  ;;  %v1789_v1 = vpop.f32.mrf.mxu1 }
 0x162   : > { %v1790_v33 = vadd.f32 %v1789_v1, %v6217_v25 }
 0x163   : > { %6663 = vst [vmem:[#allocation10_spill] sm:$0xff] %v6373_v19  ;;  %v2511_v53 = vpop.f32.mrf.mxu3 }
 0x164   : > { %v6375_v30 = vadd.f32 %v2600_v60, %v2511_v53  ;;  %v4850_v60 = vor.u32 %v5287_v54, %v4849_v48  ;;  %v4854_v53 = vor.u32 %v5286_v43, %v4851_v40  ;;  %v5219_v48 = vld [vmem:[#allocation2 + $0x40] sm:$0xf0]  ;;  %v5291_v54 = vld [vmem:[#allocation2 + $0x58] sm:$0xf0]  ;;  %v5290_v43 = vld [vmem:[#allocation2 + $0x50] sm:$0xf0] }
 0x168   : > { %v1878_v35 = vpop.f32.mrf.mxu2 }
 0x169   : > { %v6378_v55 = vadd.f32 %v1878_v35, %v1790_v33  ;;  %v2605_v28 = vpop.f32.mrf.mxu0  ;;  %v1792_v3 = vpop.f32.mrf.mxu1  ;;  %v4533_v33 = vld [vmem:[#allocation2 + $0x38] sm:$0xf]  ;;  %v4861_v35 = vld [vmem:[#allocation2 + $0x48] sm:$0xf] }
 0x16a   : > { %v1793_v25 = vadd.f32 %v1792_v3, %v6125_v39  ;;  %v4534_v39 = vor.u32 %v5219_v48, %v4533_v33 }
 0x16b   : > { %v2513_v49 = vpop.f32.mrf.mxu3 }
 0x16c   : > { %v6380_v31 = vadd.f32 %v2602_v0, %v2513_v49  ;;  %2653 = vmatmul.bf16.vlgmr.msra.gmra.mxu1 %v4522_v20  ;;  %3530 = vmatmul.bf16.vlgmr.msra.gmra.mxu0 %v4858_v44  ;;  %v4869_v0 = vld [vmem:[#allocation2 + $0x50] sm:$0xf]  ;;  %v5289_v20 = vld [vmem:[#allocation2 + $0x4c] sm:$0xf]  ;;  %v4863_v44 = vld [vmem:[#allocation2 + $0x54] sm:$0xf0] }
 0x16d   : > { %3352 = vmatmul.bf16.vlgmr.msra.gmra.mxu2 %v4850_v60  ;;  %v4870_v60 = vor.u32 %v5291_v54, %v4869_v0 }
 0x170   : > { %3441 = vmatmul.bf16.vlgmr.msra.gmra.mxu3 %v4854_v53  ;;  %v1881_v1 = vpop.f32.mrf.mxu2 }
 0x171   : > { %v6383_v19 = vadd.f32 %v1881_v1, %v1793_v25  ;;  %v2607_v41 = vpop.f32.mrf.mxu0  ;;  %v1794_v7 = vpop.f32.mrf.mxu1 }
 0x172   : > { %v1795_v40 = vadd.f32 %v1794_v7, %v6141_v29 }
 0x173   : > { %6664 = vst [vmem:[#allocation11_spill] sm:$0xff] %v6383_v19  ;;  %v2516_v21 = vpop.f32.mrf.mxu3  ;;  %v4866_v19 = vor.u32 %v5289_v20, %v4863_v44  ;;  %v5293_v20 = vld [vmem:[#allocation2 + $0x68] sm:$0xf0] }
 0x174   : > { %v6385_v42 = vadd.f32 %v2605_v28, %v2516_v21  ;;  %v4862_v28 = vor.u32 %v5290_v43, %v4861_v35  ;;  %v5222_v35 = vld [vmem:[#allocation2 + $0x58] sm:$0xf0]  ;;  %v5294_v43 = vld [vmem:[#allocation2 + $0x70] sm:$0xf0] }
 0x176   : > { %6665 = vst [vmem:[#allocation12_spill] sm:$0xff] %v6385_v42 }
 0x178   : > { %v1883_v49 = vpop.f32.mrf.mxu2 }
 0x179   : > { %v6388_v3 = vadd.f32 %v1883_v49, %v1795_v40  ;;  %v2610_v25 = vpop.f32.mrf.mxu0  ;;  %v1797_v21 = vpop.f32.mrf.mxu1  ;;  %v4545_v40 = vld [vmem:[#allocation2 + $0x50] sm:$0xf]  ;;  %v4873_v49 = vld [vmem:[#allocation2 + $0x60] sm:$0xf] }
 0x17a   : > { %v1798_v29 = vadd.f32 %v1797_v21, %v6153_v6  ;;  %v4546_v6 = vor.u32 %v5222_v35, %v4545_v40 }
 0x17b   : > { %v2518_v53 = vpop.f32.mrf.mxu3 }
 0x17c   : > { %v6390_v1 = vadd.f32 %v2607_v41, %v2518_v53  ;;  %2658 = vmatmul.bf16.gmra.mxu1 %v4534_v39  ;;  %3535 = vmatmul.bf16.gmra.mxu0 %v4870_v60  ;;  %v4881_v41 = vld [vmem:[#allocation2 + $0x68] sm:$0xf]  ;;  %v5292_v39 = vld [vmem:[#allocation2 + $0x64] sm:$0xf] }
 0x17d   : > { %3357 = vmatmul.bf16.gmra.mxu2 %v4862_v28  ;;  %v4882_v53 = vor.u32 %v5294_v43, %v4881_v41 }
 0x180   : > { %3446 = vmatmul.bf16.gmra.mxu3 %v4866_v19  ;;  %v1886_v7 = vpop.f32.mrf.mxu2  ;;  %v4875_v19 = vld [vmem:[#allocation2 + $0x6c] sm:$0xf0] }
 0x181   : > { %v6393_v42 = vadd.f32 %v1886_v7, %v1798_v29  ;;  %v2612_v48 = vpop.f32.mrf.mxu0  ;;  %v1799_v54 = vpop.f32.mrf.mxu1 }
 0x182   : > { %v1800_v44 = vadd.f32 %v1799_v54, %v6163_v4 }
 0x183   : > { %6666 = vst [vmem:[#allocation13_spill] sm:$0xff] %v6393_v42  ;;  %v2521_v33 = vpop.f32.mrf.mxu3  ;;  %v4878_v42 = vor.u32 %v5292_v39, %v4875_v19  ;;  %v5296_v39 = vld [vmem:[#allocation2 + $0x80] sm:$0xf0] }
 0x184   : > { %v6395_v0 = vadd.f32 %v2610_v25, %v2521_v33  ;;  %v4874_v25 = vor.u32 %v5293_v20, %v4873_v49  ;;  %v5225_v49 = vld [vmem:[#allocation2 + $0x70] sm:$0xf0]  ;;  %v5297_v20 = vld [vmem:[#allocation2 + $0x88] sm:$0xf0] }
 0x186   : > { %6667 = vst [vmem:[#allocation14_spill] sm:$0xff] %v6395_v0 }
 0x188   : > { %v1888_v60 = vpop.f32.mrf.mxu2 }
 0x189   : > { %v6398_v28 = vadd.f32 %v1888_v60, %v1800_v44  ;;  %v2615_v29 = vpop.f32.mrf.mxu0  ;;  %v1802_v33 = vpop.f32.mrf.mxu1  ;;  %v4557_v44 = vld [vmem:[#allocation2 + $0x68] sm:$0xf]  ;;  %v4885_v60 = vld [vmem:[#allocation2 + $0x78] sm:$0xf] }
 0x18a   : > { %v1803_v4 = vadd.f32 %v1802_v33, %v6181_v27  ;;  %v4558_v27 = vor.u32 %v5225_v49, %v4557_v44 }
 0x18b   : > { %v2523_v21 = vpop.f32.mrf.mxu3 }
 0x18c   : > { %v6400_v7 = vadd.f32 %v2612_v48, %v2523_v21  ;;  %2663 = vmatmul.bf16.gmra.mxu1 %v4546_v6  ;;  %3540 = vmatmul.bf16.gmra.mxu0 %v4882_v53  ;;  %v4893_v48 = vld [vmem:[#allocation2 + $0x80] sm:$0xf]  ;;  %v5295_v6 = vld [vmem:[#allocation2 + $0x7c] sm:$0xf] }
 0x18d   : > { %3362 = vmatmul.bf16.gmra.mxu2 %v4874_v25  ;;  %v4894_v21 = vor.u32 %v5297_v20, %v4893_v48 }
 0x190   : > { %3451 = vmatmul.bf16.gmra.mxu3 %v4878_v42  ;;  %v1891_v54 = vpop.f32.mrf.mxu2  ;;  %v4887_v42 = vld [vmem:[#allocation2 + $0x84] sm:$0xf0] }
 0x191   : > { %v6403_v0 = vadd.f32 %v1891_v54, %v1803_v4  ;;  %v2617_v35 = vpop.f32.mrf.mxu0  ;;  %v1804_v43 = vpop.f32.mrf.mxu1 }
 0x192   : > { %v1805_v19 = vadd.f32 %v1804_v43, %v6197_v9 }
 0x193   : > { %6668 = vst [vmem:[#allocation15_spill] sm:$0xff] %v6403_v0  ;;  %v2526_v40 = vpop.f32.mrf.mxu3  ;;  %v4890_v0 = vor.u32 %v5295_v6, %v4887_v42  ;;  %v5299_v6 = vld [vmem:[#allocation2 + $0x98] sm:$0xf0] }
 0x194   : > { %v6405_v41 = vadd.f32 %v2615_v29, %v2526_v40  ;;  %v4886_v29 = vor.u32 %v5296_v39, %v4885_v60  ;;  %v5228_v60 = vld [vmem:[#allocation2 + $0x88] sm:$0xf0]  ;;  %v5300_v39 = vld [vmem:[#allocation2 + $0xa0] sm:$0xf0] }
 0x196   : > { %6669 = vst [vmem:[#allocation16_spill] sm:$0xff] %v6405_v41 }
 0x198   : > { %v1893_v53 = vpop.f32.mrf.mxu2 }
 0x199   : > { %v6408_v25 = vadd.f32 %v1893_v53, %v1805_v19  ;;  %v2620_v4 = vpop.f32.mrf.mxu0  ;;  %v1807_v40 = vpop.f32.mrf.mxu1  ;;  %v4569_v19 = vld [vmem:[#allocation2 + $0x80] sm:$0xf]  ;;  %v4897_v53 = vld [vmem:[#allocation2 + $0x90] sm:$0xf] }
 0x19a   : > { %v1808_v9 = vadd.f32 %v1807_v40, %v6209_v2  ;;  %v4570_v2 = vor.u32 %v5228_v60, %v4569_v19 }
 0x19b   : > { %v2528_v33 = vpop.f32.mrf.mxu3 }
 0x19c   : > { %v6410_v54 = vadd.f32 %v2617_v35, %v2528_v33  ;;  %2668 = vmatmul.bf16.gmra.mxu1 %v4558_v27  ;;  %3545 = vmatmul.bf16.gmra.mxu0 %v4894_v21  ;;  %v4905_v35 = vld [vmem:[#allocation2 + $0x98] sm:$0xf]  ;;  %v5298_v27 = vld [vmem:[#allocation2 + $0x94] sm:$0xf] }
 0x19d   : > { %3367 = vmatmul.bf16.gmra.mxu2 %v4886_v29  ;;  %v4906_v33 = vor.u32 %v5300_v39, %v4905_v35 }
 0x1a0   : > { %3456 = vmatmul.bf16.gmra.mxu3 %v4890_v0  ;;  %v1896_v43 = vpop.f32.mrf.mxu2  ;;  %v4899_v0 = vld [vmem:[#allocation2 + $0x9c] sm:$0xf0] }
 0x1a1   : > { %v6413_v41 = vadd.f32 %v1896_v43, %v1808_v9  ;;  %v2622_v49 = vpop.f32.mrf.mxu0  ;;  %v1809_v20 = vpop.f32.mrf.mxu1 }
 0x1a2   : > { %v1810_v42 = vadd.f32 %v1809_v20, %v6219_v16 }
 0x1a3   : > { %6670 = vst [vmem:[#allocation17_spill] sm:$0xff] %v6413_v41  ;;  %v2531_v44 = vpop.f32.mrf.mxu3  ;;  %v4902_v41 = vor.u32 %v5298_v27, %v4899_v0  ;;  %v5302_v27 = vld [vmem:[#allocation2 + $0xb0] sm:$0xf0] }
 0x1a4   : > { %v6415_v48 = vadd.f32 %v2620_v4, %v2531_v44  ;;  %v4898_v4 = vor.u32 %v5299_v6, %v4897_v53  ;;  %v5231_v53 = vld [vmem:[#allocation2 + $0xa0] sm:$0xf0]  ;;  %v5303_v6 = vld [vmem:[#allocation2 + $0xb8] sm:$0xf0] }
 0x1a6   : > { %6671 = vst [vmem:[#allocation18_spill] sm:$0xff] %v6415_v48 }
 0x1a8   : > { %v1898_v21 = vpop.f32.mrf.mxu2 }
 0x1a9   : > { %v6418_v29 = vadd.f32 %v1898_v21, %v1810_v42  ;;  %v2625_v9 = vpop.f32.mrf.mxu0  ;;  %v1812_v44 = vpop.f32.mrf.mxu1  ;;  %v4581_v42 = vld [vmem:[#allocation2 + $0x98] sm:$0xf]  ;;  %v4909_v21 = vld [vmem:[#allocation2 + $0xa8] sm:$0xf] }
 0x1aa   : > { %v1813_v16 = vadd.f32 %v1812_v44, %v6129_v46  ;;  %v4582_v46 = vor.u32 %v5231_v53, %v4581_v42 }
 0x1ab   : > { %v2533_v40 = vpop.f32.mrf.mxu3 }
 0x1ac   : > { %v6420_v43 = vadd.f32 %v2622_v49, %v2533_v40  ;;  %2673 = vmatmul.bf16.gmra.mxu1 %v4570_v2  ;;  %3550 = vmatmul.bf16.gmra.mxu0 %v4906_v33  ;;  %v4917_v49 = vld [vmem:[#allocation2 + $0xb0] sm:$0xf]  ;;  %v5301_v2 = vld [vmem:[#allocation2 + $0xac] sm:$0xf] }
 0x1ad   : > { %3372 = vmatmul.bf16.gmra.mxu2 %v4898_v4  ;;  %v4918_v40 = vor.u32 %v5303_v6, %v4917_v49 }
 0x1b0   : > { %3461 = vmatmul.bf16.gmra.mxu3 %v4902_v41  ;;  %v1901_v20 = vpop.f32.mrf.mxu2  ;;  %v4911_v41 = vld [vmem:[#allocation2 + $0xb4] sm:$0xf0] }
 0x1b1   : > { %v6423_v48 = vadd.f32 %v1901_v20, %v1813_v16  ;;  %v2627_v60 = vpop.f32.mrf.mxu0  ;;  %v1814_v39 = vpop.f32.mrf.mxu1 }
 0x1b2   : > { %v1815_v0 = vadd.f32 %v1814_v39, %v6143_v17 }
 0x1b3   : > { %6672 = vst [vmem:[#allocation19_spill] sm:$0xff] %v6423_v48  ;;  %v2536_v19 = vpop.f32.mrf.mxu3  ;;  %v4914_v48 = vor.u32 %v5301_v2, %v4911_v41  ;;  %v5305_v2 = vld [vmem:[#allocation2 + $0xc8] sm:$0xf0] }
 0x1b4   : > { %v6425_v35 = vadd.f32 %v2625_v9, %v2536_v19  ;;  %v4910_v9 = vor.u32 %v5302_v27, %v4909_v21  ;;  %v5234_v21 = vld [vmem:[#allocation2 + $0xb8] sm:$0xf0]  ;;  %v5306_v27 = vld [vmem:[#allocation2 + $0xd0] sm:$0xf0] }
 0x1b6   : > { %6673 = vst [vmem:[#allocation20_spill] sm:$0xff] %v6425_v35 }
 0x1b8   : > { %v1903_v33 = vpop.f32.mrf.mxu2 }
 0x1b9   : > { %v6428_v4 = vadd.f32 %v1903_v33, %v1815_v0  ;;  %v2630_v16 = vpop.f32.mrf.mxu0  ;;  %v1817_v19 = vpop.f32.mrf.mxu1  ;;  %v4593_v0 = vld [vmem:[#allocation2 + $0xb0] sm:$0xf]  ;;  %v4921_v33 = vld [vmem:[#allocation2 + $0xc0] sm:$0xf] }
 0x1ba   : > { %v1818_v17 = vadd.f32 %v1817_v19, %v6157_v18  ;;  %v4594_v18 = vor.u32 %v5234_v21, %v4593_v0 }
 0x1bb   : > { %v2538_v44 = vpop.f32.mrf.mxu3 }
 0x1bc   : > { %v6430_v20 = vadd.f32 %v2627_v60, %v2538_v44  ;;  %2678 = vmatmul.bf16.gmra.mxu1 %v4582_v46  ;;  %3555 = vmatmul.bf16.gmra.mxu0 %v4918_v40  ;;  %v4929_v60 = vld [vmem:[#allocation2 + $0xc8] sm:$0xf]  ;;  %v5304_v46 = vld [vmem:[#allocation2 + $0xc4] sm:$0xf] }
 0x1bd   : > { %3377 = vmatmul.bf16.gmra.mxu2 %v4910_v9  ;;  %v4930_v44 = vor.u32 %v5306_v27, %v4929_v60 }
 0x1c0   : > { %3466 = vmatmul.bf16.gmra.mxu3 %v4914_v48  ;;  %v1906_v39 = vpop.f32.mrf.mxu2  ;;  %v4923_v48 = vld [vmem:[#allocation2 + $0xcc] sm:$0xf0] }
 0x1c1   : > { %v6433_v35 = vadd.f32 %v1906_v39, %v1818_v17  ;;  %v2632_v53 = vpop.f32.mrf.mxu0  ;;  %v1819_v6 = vpop.f32.mrf.mxu1 }
 0x1c2   : > { %v1820_v41 = vadd.f32 %v1819_v6, %v6165_v57 }
 0x1c3   : > { %6674 = vst [vmem:[#allocation21_spill] sm:$0xff] %v6433_v35  ;;  %v2541_v42 = vpop.f32.mrf.mxu3  ;;  %v4926_v35 = vor.u32 %v5304_v46, %v4923_v48  ;;  %v5308_v46 = vld [vmem:[#allocation2 + $0xe0] sm:$0xf0] }
 0x1c4   : > { %v6435_v49 = vadd.f32 %v2630_v16, %v2541_v42  ;;  %v4922_v16 = vor.u32 %v5305_v2, %v4921_v33  ;;  %v5237_v33 = vld [vmem:[#allocation2 + $0xd0] sm:$0xf0]  ;;  %v5309_v2 = vld [vmem:[#allocation2 + $0xe8] sm:$0xf0] }
 0x1c6   : > { %6675 = vst [vmem:[#allocation22_spill] sm:$0xff] %v6435_v49 }
 0x1c8   : > { %v1908_v40 = vpop.f32.mrf.mxu2 }
 0x1c9   : > { %v6438_v9 = vadd.f32 %v1908_v40, %v1820_v41  ;;  %v2635_v17 = vpop.f32.mrf.mxu0  ;;  %v1822_v42 = vpop.f32.mrf.mxu1  ;;  %v4605_v41 = vld [vmem:[#allocation2 + $0xc8] sm:$0xf]  ;;  %v4933_v40 = vld [vmem:[#allocation2 + $0xd8] sm:$0xf] }
 0x1ca   : > { %v1823_v57 = vadd.f32 %v1822_v42, %v6183_v47  ;;  %v4606_v47 = vor.u32 %v5237_v33, %v4605_v41 }
 0x1cb   : > { %v2543_v19 = vpop.f32.mrf.mxu3 }
 0x1cc   : > { %v6440_v39 = vadd.f32 %v2632_v53, %v2543_v19  ;;  %2683 = vmatmul.bf16.gmra.mxu1 %v4594_v18  ;;  %3560 = vmatmul.bf16.gmra.mxu0 %v4930_v44  ;;  %v4941_v53 = vld [vmem:[#allocation2 + $0xe0] sm:$0xf]  ;;  %v5307_v18 = vld [vmem:[#allocation2 + $0xdc] sm:$0xf] }
 0x1cd   : > { %3382 = vmatmul.bf16.gmra.mxu2 %v4922_v16  ;;  %v4942_v19 = vor.u32 %v5309_v2, %v4941_v53 }
 0x1d0   : > { %3471 = vmatmul.bf16.gmra.mxu3 %v4926_v35  ;;  %v1911_v6 = vpop.f32.mrf.mxu2  ;;  %v4935_v35 = vld [vmem:[#allocation2 + $0xe4] sm:$0xf0] }
 0x1d1   : > { %v6443_v49 = vadd.f32 %v1911_v6, %v1823_v57  ;;  %v2637_v21 = vpop.f32.mrf.mxu0  ;;  %v1824_v27 = vpop.f32.mrf.mxu1 }
 0x1d2   : > { %v1825_v48 = vadd.f32 %v1824_v27, %v6199_v11 }
 0x1d3   : > { %6676 = vst [vmem:[#allocation23_spill] sm:$0xff] %v6443_v49  ;;  %v2546_v0 = vpop.f32.mrf.mxu3  ;;  %v4938_v49 = vor.u32 %v5307_v18, %v4935_v35  ;;  %v5311_v18 = vld [vmem:[#allocation2 + $0xf8] sm:$0xf0] }
 0x1d4   : > { %v6445_v60 = vadd.f32 %v2635_v17, %v2546_v0  ;;  %v4934_v17 = vor.u32 %v5308_v46, %v4933_v40  ;;  %v5240_v40 = vld [vmem:[#allocation2 + $0xe8] sm:$0xf0]  ;;  %v5312_v46 = vld [vmem:[#allocation2 + $0x100] sm:$0xf0] }
 0x1d6   : > { %6677 = vst [vmem:[#allocation24_spill] sm:$0xff] %v6445_v60 }
 0x1d8   : > { %v1913_v44 = vpop.f32.mrf.mxu2 }
 0x1d9   : > { %v6448_v16 = vadd.f32 %v1913_v44, %v1825_v48  ;;  %v2640_v57 = vpop.f32.mrf.mxu0  ;;  %v1827_v0 = vpop.f32.mrf.mxu1  ;;  %v4617_v48 = vld [vmem:[#allocation2 + $0xe0] sm:$0xf]  ;;  %v4945_v44 = vld [vmem:[#allocation2 + $0xf0] sm:$0xf] }
 0x1da   : > { %v1828_v11 = vadd.f32 %v1827_v0, %v6211_v26  ;;  %v4618_v26 = vor.u32 %v5240_v40, %v4617_v48 }
 0x1db   : > { %v2548_v42 = vpop.f32.mrf.mxu3 }
 0x1dc   : > { %v6450_v6 = vadd.f32 %v2637_v21, %v2548_v42  ;;  %2688 = vmatmul.bf16.gmra.mxu1 %v4606_v47  ;;  %3565 = vmatmul.bf16.gmra.mxu0 %v4942_v19  ;;  %v4953_v21 = vld [vmem:[#allocation2 + $0xf8] sm:$0xf]  ;;  %v5310_v47 = vld [vmem:[#allocation2 + $0xf4] sm:$0xf] }
 0x1dd   : > { %3387 = vmatmul.bf16.gmra.mxu2 %v4934_v17  ;;  %v4954_v42 = vor.u32 %v5312_v46, %v4953_v21 }
 0x1e0   : > { %3476 = vmatmul.bf16.gmra.mxu3 %v4938_v49  ;;  %v1916_v27 = vpop.f32.mrf.mxu2  ;;  %v4947_v49 = vld [vmem:[#allocation2 + $0xfc] sm:$0xf0] }
 0x1e1   : > { %v6453_v60 = vadd.f32 %v1916_v27, %v1828_v11  ;;  %v2642_v33 = vpop.f32.mrf.mxu0  ;;  %v1829_v2 = vpop.f32.mrf.mxu1 }
 0x1e2   : > { %v1830_v35 = vadd.f32 %v1829_v2, %v6221_v8 }
 0x1e3   : > { %6678 = vst [vmem:[#allocation25_spill] sm:$0xff] %v6453_v60  ;;  %v2551_v41 = vpop.f32.mrf.mxu3  ;;  %v4950_v60 = vor.u32 %v5310_v47, %v4947_v49  ;;  %v5243_v47 = vld [vmem:[#allocation2 + $0x100] sm:$0xf0]  ;;  %v4965_v49 = vld [vmem:[#allocation2 + $0x110] sm:$0xf] }
 0x1e4   : > { %v6455_v53 = vadd.f32 %v2640_v57, %v2551_v41  ;;  %v4946_v57 = vor.u32 %v5311_v18, %v4945_v44 }
 0x1e6   : > { %6679 = vst [vmem:[#allocation26_spill] sm:$0xff] %v6455_v53 }
 0x1e8   : > { %v1918_v19 = vpop.f32.mrf.mxu2 }
 0x1e9   : > { %v6458_v17 = vadd.f32 %v1918_v19, %v1830_v35  ;;  %v3531_v11 = vpop.f32.mrf.mxu0  ;;  %v2654_v41 = vpop.f32.mrf.mxu1 }
 0x1ea   : > { %v2655_v53 = vadd.f32 %v2654_v41, %v6238_v37  ;;  %v5315_v37 = vld [vmem:[#allocation2 + $0x118] sm:$0xf0] }
 0x1eb   : > { %6680 = vst [vmem:[#allocation27_spill] sm:$0xff] %v6458_v17  ;;  %v2553_v0 = vpop.f32.mrf.mxu3 }
 0x1ec   : > { %v6460_v27 = vadd.f32 %v2642_v33, %v2553_v0  ;;  %2693 = vmatmul.bf16.gmra.mxu1 %v4618_v26  ;;  %3570 = vmatmul.bf16.gmra.mxu0 %v4954_v42  ;;  %v2766_v8 = vadd.f32 %v2655_v53, %v6234_v14  ;;  %v4629_v33 = vld [vmem:[#allocation2 + $0xf8] sm:$0xf]  ;;  %v6469_v14 = vld [vmem:[%s6615_s4] ss:$0 sm:$0xff]  ;;  %v5314_v53 = vld [vmem:[#allocation2 + $0x110] sm:$0xf0] }
 0x1ed   : > { %3392 = vmatmul.bf16.gmra.mxu2 %v4946_v57  ;;  %v5313_v26 = vld [vmem:[#allocation2 + $0x10c] sm:$0xf]  ;;  %v4959_v42 = vld [vmem:[#allocation2 + $0x114] sm:$0xf0]  ;;  %v4630_v57 = vor.u32 %v5243_v47, %v4629_v33 }
 0x1ee   : > { %6681 = vst [vmem:[#allocation28_spill] sm:$0xff] %v6460_v27 }
 0x1f0   : > { %3481 = vmatmul.bf16.gmra.mxu3 %v4950_v60  ;;  %v3353_v2 = vpop.f32.mrf.mxu2  ;;  %v4957_v60 = vld [vmem:[#allocation2 + $0x108] sm:$0xf] }
 0x1f1   : > { %v3533_v40 = vpop.f32.mrf.mxu0  ;;  %v2656_v46 = vpop.f32.mrf.mxu1 }
 0x1f2   : > { %v2657_v35 = vadd.f32 %v2656_v46, %v6249_v36  ;;  %v4966_v36 = vor.u32 %v5315_v37, %v4965_v49 }
 0x1f3   : > { %v3442_v48 = vpop.f32.mrf.mxu3 }
 0x1f4   : > { %v3443_v21 = vadd.f32 %v3442_v48, %v3353_v2  ;;  %v2767_v18 = vadd.f32 %v2657_v35, %v6247_v63  ;;  %v4958_v2 = vor.u32 %v5314_v53, %v4957_v60 }
 0x1f6   : > { %v3532_v44 = vadd.f32 %v3531_v11, %v3443_v21  ;;  %v4962_v21 = vor.u32 %v5313_v26, %v4959_v42 }
 0x1f8   : > { %v3643_v19 = vadd.f32 %v3532_v44, %v2766_v8  ;;  %v3355_v0 = vpop.f32.mrf.mxu2 }
 0x1f9   : > { %v3536_v41 = vpop.f32.mrf.mxu0  ;;  %v2659_v8 = vpop.f32.mrf.mxu1 }
 0x1fa   : > { %v3743_v63 = vadd.f32 %v6469_v14, %v3643_v19  ;;  %v2660_v46 = vadd.f32 %v2659_v8, %v6260_v22 }
 0x1fb   : > { %v3444_v11 = vpop.f32.mrf.mxu3 }
 0x1fc   : > { %v3445_v48 = vadd.f32 %v3444_v11, %v3355_v0  ;;  %2698 = vmatmul.bf16.gmra.mxu1 %v4630_v57  ;;  %3575 = vmatmul.bf16.gmra.mxu0 %v4966_v36  ;;  %v2768_v44 = vadd.f32 %v2660_v46, %v6256_v32  ;;  %v3775_v17 = vpack.c.bf16 %v3743_v63, %v3743_v63  ;;  %v4641_v0 = vld [vmem:[#allocation2 + $0x110] sm:$0xf]  ;;  %v5246_v36 = vld [vmem:[#allocation2 + $0x118] sm:$0xf0]  ;;  %v4977_v11 = vld [vmem:[#allocation2 + $0x128] sm:$0xf] }
 0x1fd   : > { %3397 = vmatmul.bf16.gmra.mxu2 %v4958_v2  ;;  %v5318_v2 = vld [vmem:[#allocation2 + $0x130] sm:$0xf0] }
 0x1fe   : > { %v3534_v35 = vadd.f32 %v3533_v40, %v3445_v48  ;;  %v3839_v37 = vunpack.c.l.bf16 %v3775_v17  ;;  %v4969_v17 = vld [vmem:[#allocation2 + $0x120] sm:$0xf] }
 0x200   : > { %v3644_v33 = vadd.f32 %v3534_v35, %v2767_v18  ;;  %3486 = vmatmul.bf16.gmra.mxu3 %v4962_v21  ;;  %v3358_v49 = vpop.f32.mrf.mxu2  ;;  %v3908_v48 = vmul.f32 %v3839_v37, %v3839_v37  ;;  %v5317_v35 = vld [vmem:[#allocation2 + $0x128] sm:$0xf0] }
 0x201   : > { %v3538_v40 = vpop.f32.mrf.mxu0  ;;  %v2661_v53 = vpop.f32.mrf.mxu1 }
 0x202   : > { %v3744_v47 = vadd.f32 %v6469_v14, %v3644_v33  ;;  %v2662_v18 = vadd.f32 %v2661_v53, %v6265_v5  ;;  %v4971_v33 = vld [vmem:[#allocation2 + $0x12c] sm:$0xf0] }
 0x203   : > { %v3447_v22 = vpop.f32.mrf.mxu3 }
 0x204   : > { %v3776_v19 = vpack.c.bf16 %v3744_v47, %v3744_v47  ;;  %v5425_v60 = vpack.c.bf16 %v3744_v47, %v3743_v63  ;;  %v3448_v32 = vadd.f32 %v3447_v22, %v3358_v49  ;;  %v2769_v57 = vadd.f32 %v2662_v18, %v6263_v34  ;;  %v5316_v63 = vld [vmem:[#allocation2 + $0x124] sm:$0xf] }
 0x205   : > { %v4642_v22 = vor.u32 %v5246_v36, %v4641_v0  ;;  %v4970_v34 = vor.u32 %v5317_v35, %v4969_v17  ;;  %v4974_v27 = vor.u32 %v5316_v63, %v4971_v33 }
 0x206   : > { %5426 = vst [vmem:[%s6480_s10] sm:$0xff] %v5425_v60   ;;  %v3840_v26 = vunpack.c.l.bf16 %v3776_v19  ;;  %v3537_v42 = vadd.f32 %v3536_v41, %v3448_v32  ;;  %v4978_v41 = vor.u32 %v5318_v2, %v4977_v11 }
 0x208   : > { %v3871_v8 = vadd.f32 %v3840_v26, %v3839_v37  ;;  %v3909_v21 = vmul.f32 %v3840_v26, %v3840_v26  ;;  %v3645_v46 = vadd.f32 %v3537_v42, %v2768_v44  ;;  %v3360_v49 = vpop.f32.mrf.mxu2 }
 0x209   : > { %v3541_v60 = vpop.f32.mrf.mxu0  ;;  %v2664_v18 = vpop.f32.mrf.mxu1 }
 0x20a   : > { %v3940_v47 = vadd.f32 %v3909_v21, %v3908_v48  ;;  %v3745_v5 = vadd.f32 %v6469_v14, %v3645_v46  ;;  %v2665_v37 = vadd.f32 %v2664_v18, %v6282_v23  ;;  %v5319_v18 = vld [vmem:[#allocation2 + $0x13c] sm:$0xf] }
 0x20b   : > { %v3449_v19 = vpop.f32.mrf.mxu3 }
 0x20c   : > { %v3777_v32 = vpack.c.bf16 %v3745_v5, %v3745_v5  ;;  %v3450_v53 = vadd.f32 %v3449_v19, %v3360_v49  ;;  %2703 = vmatmul.bf16.gmra.mxu1 %v4642_v22  ;;  %3580 = vmatmul.bf16.gmra.mxu0 %v4978_v41  ;;  %v2770_v42 = vadd.f32 %v2665_v37, %v6278_v52  ;;  %v4653_v22 = vld [vmem:[#allocation2 + $0x128] sm:$0xf] }
 0x20d   : > { %3402 = vmatmul.bf16.gmra.mxu2 %v4970_v34 }
 0x20e   : > { %v3841_v44 = vunpack.c.l.bf16 %v3777_v32  ;;  %v3539_v26 = vadd.f32 %v3538_v40, %v3450_v53  ;;  %v4981_v32 = vld [vmem:[#allocation2 + $0x138] sm:$0xf]  ;;  %v5320_v53 = vld [vmem:[#allocation2 + $0x140] sm:$0xf0] }
 0x210   : > { %v3872_v48 = vadd.f32 %v3871_v8, %v3841_v44  ;;  %v3910_v0 = vmul.f32 %v3841_v44, %v3841_v44  ;;  %v3646_v36 = vadd.f32 %v3539_v26, %v2769_v57  ;;  %3491 = vmatmul.bf16.gmra.mxu3 %v4974_v27  ;;  %v3363_v21 = vpop.f32.mrf.mxu2  ;;  %v5249_v57 = vld [vmem:[#allocation2 + $0x130] sm:$0xf0]  ;;  %v4989_v27 = vld [vmem:[#allocation2 + $0x140] sm:$0xf] }
 0x211   : > { %v3543_v17 = vpop.f32.mrf.mxu0  ;;  %v2666_v40 = vpop.f32.mrf.mxu1  ;;  %v4654_v26 = vor.u32 %v5249_v57, %v4653_v22  ;;  %v6684_v57 = vshrl.u32 %v6308_v50, 16 }
 0x212   : > { %v3941_v11 = vadd.f32 %v3940_v47, %v3910_v0  ;;  %v3746_v2 = vadd.f32 %v6469_v14, %v3646_v36  ;;  %v2667_v33 = vadd.f32 %v2666_v40, %v6293_v24  ;;  %v5321_v47 = vld [vmem:[#allocation2 + $0x148] sm:$0xf0]  ;;  %v6683_v40 = vshll.u32 %v6308_v50, 16 }
 0x213   : > { %v3452_v46 = vpop.f32.mrf.mxu3  ;;  %v4990_v0 = vor.u32 %v5321_v47, %v4989_v27 }
 0x214   : > { %v3778_v35 = vpack.c.bf16 %v3746_v2, %v3746_v2  ;;  %v5430_v23 = vpack.c.bf16 %v3746_v2, %v3745_v5  ;;  %v3453_v63 = vadd.f32 %v3452_v46, %v3363_v21  ;;  %v2771_v8 = vadd.f32 %v2667_v33, %v6291_v10  ;;  %v4983_v5 = vld [vmem:[#allocation2 + $0x144] sm:$0xf0] }
 0x215   : > { %v4982_v2 = vor.u32 %v5320_v53, %v4981_v32  ;;  %v775_v33 = vrot.slane %v6683_v40, 1 }
 0x216   : > { %5517 = vst [vmem:[%s6480_s10 + $0x8] sm:$0xff] %v5430_v23   ;;  %v3842_v52 = vunpack.c.l.bf16 %v3778_v35  ;;  %v3542_v49 = vadd.f32 %v3541_v60, %v3453_v63  ;;  %v4986_v35 = vor.u32 %v5319_v18, %v4983_v5  ;;  %v6682_v63 = vld [vmem:[#allocation5_spill] sm:$0xff] }
 0x217   : > { %v776_v27 = vor.u32 %v775_v33, %v6684_v57  ;;  %v4993_v33 = vld [vmem:[#allocation2 + $0x150] sm:$0xf]  ;;  %v4995_v57 = vld [vmem:[#allocation2 + $0x15c] sm:$0xf0] }
 0x218   : > { %v3873_v41 = vadd.f32 %v3872_v48, %v3842_v52  ;;  %v3911_v19 = vmul.f32 %v3842_v52, %v3842_v52  ;;  %v3647_v34 = vadd.f32 %v3542_v49, %v2770_v42  ;;  %v3365_v24 = vpop.f32.mrf.mxu2 }
 0x219   : > { %v3546_v36 = vpop.f32.mrf.mxu0  ;;  %v2669_v46 = vpop.f32.mrf.mxu1  ;;  %v816_v53 = vsel %vm6021_vm5, %v776_v27, 0 }
 0x21a   : > { %v3942_v37 = vadd.f32 %v3941_v11, %v3911_v19  ;;  %v3747_v44 = vadd.f32 %v6469_v14, %v3647_v34  ;;  %v2670_v48 = vadd.f32 %v2669_v46, %v6304_v61 }
 0x21b   : > { %v3454_v60 = vpop.f32.mrf.mxu3 }
 0x21c   : > { %v3779_v10 = vpack.c.bf16 %v3747_v44, %v3747_v44  ;;  %v3455_v21 = vadd.f32 %v3454_v60, %v3365_v24  ;;  %2708 = vmatmul.bf16.gmra.mxu1 %v4654_v26  ;;  %3585 = vmatmul.bf16.gmra.mxu0 %v4990_v0  ;;  %v2772_v11 = vadd.f32 %v2670_v48, %v6682_v63  ;;  %v919_v26 = vunpack.c.l.b16 %v816_v53  ;;  %v5001_v48 = vld [vmem:[#allocation2 + $0x158] sm:$0xf] }
 0x21d   : > { %3407 = vmatmul.bf16.gmra.mxu2 %v4982_v2  ;;  %v921_v60 = vunpack.c.h.b16 %v816_v53 }
 0x21e   : > { %v3843_v42 = vunpack.c.l.bf16 %v3779_v10  ;;  %v3544_v23 = vadd.f32 %v3543_v17, %v3455_v21  ;;  %v991_v10 = vpack.c.b16 %v919_v26, %v919_v26  ;;  %v6687_v21 = vld [vmem:[#allocation6_spill] sm:$0xff] }
 0x220   : > { %v3874_v52 = vadd.f32 %v3873_v41, %v3843_v42  ;;  %v3912_v49 = vmul.f32 %v3843_v42, %v3843_v42  ;;  %v3648_v22 = vadd.f32 %v3544_v23, %v2771_v8  ;;  %3496 = vmatmul.bf16.gmra.mxu3 %v4986_v35  ;;  %v3368_v17 = vpop.f32.mrf.mxu2  ;;  %v6686_v8 = vld [vmem:[#allocation7_spill] sm:$0xff]  ;;  %v5324_v42 = vld [vmem:[#allocation2 + $0x160] sm:$0xf0]  ;;  %v993_v23 = vpack.c.b16 %v921_v60, %v921_v60  ;;  %v6689_v60 = vld [vmem:[#allocation8_spill] sm:$0xff] }
 0x221   : > { %v3548_v34 = vpop.f32.mrf.mxu0  ;;  %v2671_v41 = vpop.f32.mrf.mxu1  ;;  %v5252_v35 = vld [vmem:[#allocation2 + $0x148] sm:$0xf0]  ;;  %1135 = vst [vmem:[#allocation2 + $0x188] sm:$0xf] %v991_v10 }
 0x222   : > { %v3943_v47 = vadd.f32 %v3942_v37, %v3912_v49  ;;  %v3748_v61 = vadd.f32 %v6469_v14, %v3648_v22  ;;  %v2672_v0 = vadd.f32 %v2671_v41, %v6686_v8  ;;  %v4665_v37 = vld [vmem:[#allocation2 + $0x140] sm:$0xf]  ;;  %v5323_v49 = vld [vmem:[#allocation2 + $0x158] sm:$0xf0]  ;;  %v5322_v22 = vld [vmem:[#allocation2 + $0x154] sm:$0xf] }
 0x223   : > { %v3457_v19 = vpop.f32.mrf.mxu3  ;;  %1137 = vst [vmem:[#allocation2 + $0x194] sm:$0xf] %v993_v23  ;;  %v4998_v41 = vor.u32 %v5322_v22, %v4995_v57  ;;  %v4677_v57 = vld [vmem:[#allocation2 + $0x158] sm:$0xf] }
 0x224   : > { %v3780_v18 = vpack.c.bf16 %v3748_v61, %v3748_v61  ;;  %v5435_v5 = vpack.c.bf16 %v3748_v61, %v3747_v44  ;;  %v3458_v24 = vadd.f32 %v3457_v19, %v3368_v17  ;;  %v2773_v46 = vadd.f32 %v2672_v0, %v6687_v21 }
 0x225   : > { %v4666_v17 = vor.u32 %v5252_v35, %v4665_v37  ;;  %v5002_v19 = vor.u32 %v5324_v42, %v5001_v48 }
 0x226   : > { %5518 = vst [vmem:[%s6480_s10 + $0x10] sm:$0xff] %v5435_v5   ;;  %v3844_v50 = vunpack.c.l.bf16 %v3780_v18  ;;  %v3547_v2 = vadd.f32 %v3546_v36, %v3458_v24  ;;  %v4994_v18 = vor.u32 %v5323_v49, %v4993_v33 }
 0x228   : > { %v3875_v63 = vadd.f32 %v3874_v52, %v3844_v50  ;;  %v3913_v40 = vmul.f32 %v3844_v50, %v3844_v50  ;;  %v3649_v44 = vadd.f32 %v3547_v2, %v2772_v11  ;;  %v3370_v61 = vpop.f32.mrf.mxu2  ;;  %v6688_v11 = vld [vmem:[#allocation9_spill] sm:$0xff] }
 0x229   : > { %v3551_v53 = vpop.f32.mrf.mxu0  ;;  %v2674_v52 = vpop.f32.mrf.mxu1 }
 0x22a   : > { %v3944_v27 = vadd.f32 %v3943_v47, %v3913_v40  ;;  %v3749_v36 = vadd.f32 %v6469_v14, %v3649_v44  ;;  %v2675_v26 = vadd.f32 %v2674_v52, %v6688_v11 }
 0x22b   : > { %v3459_v32 = vpop.f32.mrf.mxu3 }
 0x22c   : > { %v3781_v5 = vpack.c.bf16 %v3749_v36, %v3749_v36  ;;  %v3460_v24 = vadd.f32 %v3459_v32, %v3370_v61  ;;  %2713 = vmatmul.bf16.gmra.mxu1 %v4666_v17  ;;  %3590 = vmatmul.bf16.gmra.mxu0 %v5002_v19  ;;  %v2774_v47 = vadd.f32 %v2675_v26, %v6689_v60  ;;  %v5013_v61 = vld [vmem:[#allocation2 + $0x170] sm:$0xf] }
 0x22d   : > { %3412 = vmatmul.bf16.gmra.mxu2 %v4994_v18  ;;  %v5005_v18 = vld [vmem:[#allocation2 + $0x168] sm:$0xf] }
 0x22e   : > { %v3845_v8 = vunpack.c.l.bf16 %v3781_v5  ;;  %v3549_v0 = vadd.f32 %v3548_v34, %v3460_v24  ;;  %v5326_v5 = vld [vmem:[#allocation2 + $0x170] sm:$0xf0]  ;;  %v5325_v24 = vld [vmem:[#allocation2 + $0x16c] sm:$0xf] }
 0x230   : > { %v3876_v50 = vadd.f32 %v3875_v63, %v3845_v8  ;;  %v3914_v2 = vmul.f32 %v3845_v8, %v3845_v8  ;;  %v3650_v37 = vadd.f32 %v3549_v0, %v2773_v46  ;;  %3501 = vmatmul.bf16.gmra.mxu3 %v4998_v41  ;;  %v3373_v35 = vpop.f32.mrf.mxu2  ;;  %v5255_v46 = vld [vmem:[#allocation2 + $0x160] sm:$0xf0]  ;;  %v5006_v0 = vor.u32 %v5326_v5, %v5005_v18 }
 0x231   : > { %v3553_v42 = vpop.f32.mrf.mxu0  ;;  %v2676_v34 = vpop.f32.mrf.mxu1  ;;  %v4678_v11 = vor.u32 %v5255_v46, %v4677_v57 }
 0x232   : > { %v3945_v10 = vadd.f32 %v3944_v27, %v3914_v2  ;;  %v3750_v21 = vadd.f32 %v6469_v14, %v3650_v37  ;;  %v2677_v33 = vadd.f32 %v2676_v34, %v6350_v51  ;;  %v5327_v27 = vld [vmem:[#allocation2 + $0x178] sm:$0xf0] }
 0x233   : > { %v3462_v48 = vpop.f32.mrf.mxu3  ;;  %v5014_v26 = vor.u32 %v5327_v27, %v5013_v61  ;;  %v4689_v27 = vld [vmem:[#allocation2 + $0x170] sm:$0xf] }
 0x234   : > { %v3782_v23 = vpack.c.bf16 %v3750_v21, %v3750_v21  ;;  %v5440_v40 = vpack.c.bf16 %v3750_v21, %v3749_v36  ;;  %v3463_v44 = vadd.f32 %v3462_v48, %v3373_v35  ;;  %v2775_v63 = vadd.f32 %v2677_v33, %v6348_v15  ;;  %v5007_v36 = vld [vmem:[#allocation2 + $0x174] sm:$0xf0] }
 0x235   : > { %v5010_v37 = vor.u32 %v5325_v24, %v5007_v36  ;;  %v5017_v36 = vld [vmem:[#allocation2 + $0x180] sm:$0xf] }
 0x236   : > { %5519 = vst [vmem:[%s6480_s10 + $0x18] sm:$0xff] %v5440_v40   ;;  %v3846_v49 = vunpack.c.l.bf16 %v3782_v23  ;;  %v3552_v22 = vadd.f32 %v3551_v53, %v3463_v44 }
 0x238   : > { %v3877_v17 = vadd.f32 %v3876_v50, %v3846_v49  ;;  %v3915_v19 = vmul.f32 %v3846_v49, %v3846_v49  ;;  %v3651_v32 = vadd.f32 %v3552_v22, %v2774_v47  ;;  %v3375_v51 = vpop.f32.mrf.mxu2 }
 0x239   : > { %v3556_v8 = vpop.f32.mrf.mxu0  ;;  %v2679_v2 = vpop.f32.mrf.mxu1 }
 0x23a   : > { %v3946_v52 = vadd.f32 %v3945_v10, %v3915_v19  ;;  %v3751_v41 = vadd.f32 %v6469_v14, %v3651_v32  ;;  %v2680_v50 = vadd.f32 %v2679_v2, %v6355_v56  ;;  %v5025_v19 = vld [vmem:[#allocation2 + $0x188] sm:$0xf]  ;;  %v5330_v32 = vld [vmem:[#allocation2 + $0x190] sm:$0xf0] }
 0x23b   : > { %v3464_v53 = vpop.f32.mrf.mxu3 }
 0x23c   : > { %v3783_v15 = vpack.c.bf16 %v3751_v41, %v3751_v41  ;;  %v3465_v60 = vadd.f32 %v3464_v53, %v3375_v51  ;;  %2718 = vmatmul.bf16.gmra.mxu1 %v4678_v11  ;;  %3595 = vmatmul.bf16.gmra.mxu0 %v5014_v26  ;;  %v2776_v10 = vadd.f32 %v2680_v50, %v6353_v38  ;;  %v5328_v51 = vld [vmem:[#allocation2 + $0x184] sm:$0xf] }
 0x23d   : > { %3417 = vmatmul.bf16.gmra.mxu2 %v5006_v0  ;;  %v5026_v0 = vor.u32 %v5330_v32, %v5025_v19  ;;  %v5333_v19 = vld [vmem:[#allocation2 + $0x1a8] sm:$0xf0] }
 0x23e   : > { %v3847_v47 = vunpack.c.l.bf16 %v3783_v15  ;;  %v3554_v21 = vadd.f32 %v3553_v42, %v3465_v60 }
 0x240   : > { %v3878_v35 = vadd.f32 %v3877_v17, %v3847_v47  ;;  %v3916_v48 = vmul.f32 %v3847_v47, %v3847_v47  ;;  %v3652_v23 = vadd.f32 %v3554_v21, %v2775_v63  ;;  %3506 = vmatmul.bf16.gmra.mxu3 %v5010_v37  ;;  %v3378_v34 = vpop.f32.mrf.mxu2  ;;  %v5258_v63 = vld [vmem:[#allocation2 + $0x178] sm:$0xf0] }
 0x241   : > { %v3558_v49 = vpop.f32.mrf.mxu0  ;;  %v2681_v42 = vpop.f32.mrf.mxu1  ;;  %v4690_v53 = vor.u32 %v5258_v63, %v4689_v27  ;;  %v5037_v63 = vld [vmem:[#allocation2 + $0x1a0] sm:$0xf] }
 0x242   : > { %v3947_v40 = vadd.f32 %v3946_v52, %v3916_v48  ;;  %v3752_v44 = vadd.f32 %v6469_v14, %v3652_v23  ;;  %v2682_v46 = vadd.f32 %v2681_v42, %v6360_v45  ;;  %v5329_v52 = vld [vmem:[#allocation2 + $0x188] sm:$0xf0] }
 0x243   : > { %v3467_v33 = vpop.f32.mrf.mxu3  ;;  %v5018_v60 = vor.u32 %v5329_v52, %v5017_v36  ;;  %v5332_v36 = vld [vmem:[#allocation2 + $0x1a0] sm:$0xf0]  ;;  %v5331_v52 = vld [vmem:[#allocation2 + $0x19c] sm:$0xf] }
 0x244   : > { %v3784_v22 = vpack.c.bf16 %v3752_v44, %v3752_v44  ;;  %v5445_v56 = vpack.c.bf16 %v3752_v44, %v3751_v41  ;;  %v3468_v57 = vadd.f32 %v3467_v33, %v3378_v34  ;;  %v2777_v17 = vadd.f32 %v2682_v46, %v6358_v62  ;;  %v5019_v41 = vld [vmem:[#allocation2 + $0x18c] sm:$0xf0] }
 0x245   : > { %v5022_v50 = vor.u32 %v5328_v51, %v5019_v41  ;;  %v5031_v51 = vld [vmem:[#allocation2 + $0x1a4] sm:$0xf0] }
 0x246   : > { %5520 = vst [vmem:[%s6480_s10 + $0x20] sm:$0xff] %v5445_v56   ;;  %v3848_v38 = vunpack.c.l.bf16 %v3784_v22  ;;  %v3557_v61 = vadd.f32 %v3556_v8, %v3468_v57 }
 0x248   : > { %v3879_v18 = vadd.f32 %v3878_v35, %v3848_v38  ;;  %v3917_v5 = vmul.f32 %v3848_v38, %v3848_v38  ;;  %v3653_v24 = vadd.f32 %v3557_v61, %v2776_v10  ;;  %v3380_v45 = vpop.f32.mrf.mxu2  ;;  %v4701_v61 = vld [vmem:[#allocation2 + $0x188] sm:$0xf] }
 0x249   : > { %v3561_v15 = vpop.f32.mrf.mxu0  ;;  %v2684_v37 = vpop.f32.mrf.mxu1 }
 0x24a   : > { %v3948_v11 = vadd.f32 %v3947_v40, %v3917_v5  ;;  %v3753_v26 = vadd.f32 %v6469_v14, %v3653_v24  ;;  %v2685_v47 = vadd.f32 %v2684_v37, %v6365_v12  ;;  %v5029_v24 = vld [vmem:[#allocation2 + $0x198] sm:$0xf] }
 0x24b   : > { %v3469_v8 = vpop.f32.mrf.mxu3 }
 0x24c   : > { %v3785_v62 = vpack.c.bf16 %v3753_v26, %v3753_v26  ;;  %v3470_v2 = vadd.f32 %v3469_v8, %v3380_v45  ;;  %2723 = vmatmul.bf16.gmra.mxu1 %v4690_v53  ;;  %3600 = vmatmul.bf16.gmra.mxu0 %v5026_v0  ;;  %v2778_v35 = vadd.f32 %v2685_v47, %v6363_v59  ;;  %v6690_v47 = vld [vmem:[#allocation10_spill] sm:$0xff] }
 0x24d   : > { %3422 = vmatmul.bf16.gmra.mxu2 %v5018_v60  ;;  %v5038_v45 = vor.u32 %v5333_v19, %v5037_v63  ;;  %v5030_v8 = vor.u32 %v5332_v36, %v5029_v24  ;;  %v6691_v36 = vld [vmem:[#allocation12_spill] sm:$0xff] }
 0x24e   : > { %v3849_v21 = vunpack.c.l.bf16 %v3785_v62  ;;  %v3559_v10 = vadd.f32 %v3558_v49, %v3470_v2  ;;  %v5034_v62 = vor.u32 %v5331_v52, %v5031_v51 }
 0x250   : > { %v3880_v48 = vadd.f32 %v3879_v18, %v3849_v21  ;;  %v3918_v23 = vmul.f32 %v3849_v21, %v3849_v21  ;;  %v3654_v40 = vadd.f32 %v3559_v10, %v2777_v17  ;;  %3511 = vmatmul.bf16.gmra.mxu3 %v5022_v50  ;;  %v3383_v33 = vpop.f32.mrf.mxu2  ;;  %v5261_v17 = vld [vmem:[#allocation2 + $0x190] sm:$0xf0] }
 0x251   : > { %v3563_v56 = vpop.f32.mrf.mxu0  ;;  %v2686_v49 = vpop.f32.mrf.mxu1 }
 0x252   : > { %v3949_v44 = vadd.f32 %v3948_v11, %v3918_v23  ;;  %v3754_v34 = vadd.f32 %v6469_v14, %v3654_v40  ;;  %v2687_v46 = vadd.f32 %v2686_v49, %v6370_v58 }
 0x253   : > { %v3472_v22 = vpop.f32.mrf.mxu3 }
 0x254   : > { %v3786_v57 = vpack.c.bf16 %v3754_v34, %v3754_v34  ;;  %v5450_v12 = vpack.c.bf16 %v3754_v34, %v3753_v26  ;;  %v3473_v42 = vadd.f32 %v3472_v22, %v3383_v33  ;;  %v2779_v27 = vadd.f32 %v2687_v46, %v6368_v13 }
 0x255   : > { %v4702_v26 = vor.u32 %v5261_v17, %v4701_v61 }
 0x256   : > { %5521 = vst [vmem:[%s6480_s10 + $0x28] sm:$0xff] %v5450_v12   ;;  %v3850_v59 = vunpack.c.l.bf16 %v3786_v57  ;;  %v3562_v38 = vadd.f32 %v3561_v15, %v3473_v42 }
 0x258   : > { %v3881_v32 = vadd.f32 %v3880_v48, %v3850_v59  ;;  %v3919_v18 = vmul.f32 %v3850_v59, %v3850_v59  ;;  %v3655_v5 = vadd.f32 %v3562_v38, %v2778_v35  ;;  %v3385_v58 = vpop.f32.mrf.mxu2 }
 0x259   : > { %v3566_v0 = vpop.f32.mrf.mxu0  ;;  %v2689_v60 = vpop.f32.mrf.mxu1 }
 0x25a   : > { %v3950_v41 = vadd.f32 %v3949_v44, %v3919_v18  ;;  %v3755_v11 = vadd.f32 %v6469_v14, %v3655_v5  ;;  %v2690_v2 = vadd.f32 %v2689_v60, %v6375_v30 }
 0x25b   : > { %v3474_v53 = vpop.f32.mrf.mxu3 }
 0x25c   : > { %v3787_v13 = vpack.c.bf16 %v3755_v11, %v3755_v11  ;;  %v3475_v15 = vadd.f32 %v3474_v53, %v3385_v58  ;;  %2728 = vmatmul.bf16.gmra.mxu1 %v4702_v26  ;;  %3605 = vmatmul.bf16.gmra.mxu0 %v5038_v45  ;;  %v2780_v21 = vadd.f32 %v2690_v2, %v6690_v47 }
 0x25d   : > { %3427 = vmatmul.bf16.gmra.mxu2 %v5030_v8 }
 0x25e   : > { %v3851_v37 = vunpack.c.l.bf16 %v3787_v13  ;;  %v3564_v50 = vadd.f32 %v3563_v56, %v3475_v15 }
 0x260   : > { %v3882_v10 = vadd.f32 %v3881_v32, %v3851_v37  ;;  %v3920_v35 = vmul.f32 %v3851_v37, %v3851_v37  ;;  %v3656_v48 = vadd.f32 %v3564_v50, %v2779_v27  ;;  %3516 = vmatmul.bf16.gmra.mxu3 %v5034_v62  ;;  %v3388_v44 = vpop.f32.mrf.mxu2 }
 0x261   : > { %v3568_v33 = vpop.f32.mrf.mxu0  ;;  %v2691_v56 = vpop.f32.mrf.mxu1 }
 0x262   : > { %v3951_v23 = vadd.f32 %v3950_v41, %v3920_v35  ;;  %v3756_v40 = vadd.f32 %v6469_v14, %v3656_v48  ;;  %v2692_v12 = vadd.f32 %v2691_v56, %v6380_v31  ;;  %v6692_v41 = vld [vmem:[#allocation11_spill] sm:$0xff]  ;;  %v6693_v56 = vld [vmem:[#allocation14_spill] sm:$0xff] }
 0x263   : > { %v3477_v34 = vpop.f32.mrf.mxu3 }
 0x264   : > { %v3788_v22 = vpack.c.bf16 %v3756_v40, %v3756_v40  ;;  %v5455_v30 = vpack.c.bf16 %v3756_v40, %v3755_v11  ;;  %v3478_v57 = vadd.f32 %v3477_v34, %v3388_v44  ;;  %v2781_v46 = vadd.f32 %v2692_v12, %v6378_v55 }
 0x266   : > { %5522 = vst [vmem:[%s6480_s10 + $0x30] sm:$0xff] %v5455_v30   ;;  %v3852_v42 = vunpack.c.l.bf16 %v3788_v22  ;;  %v3567_v49 = vadd.f32 %v3566_v0, %v3478_v57 }
 0x268   : > { %v3883_v59 = vadd.f32 %v3882_v10, %v3852_v42  ;;  %v3921_v38 = vmul.f32 %v3852_v42, %v3852_v42  ;;  %v3657_v61 = vadd.f32 %v3567_v49, %v2780_v21  ;;  %v3390_v63 = vpop.f32.mrf.mxu2  ;;  %v6694_v49 = vld [vmem:[#allocation13_spill] sm:$0xff] }
 0x269   : > { %v3571_v32 = vpop.f32.mrf.mxu0  ;;  %v2694_v24 = vpop.f32.mrf.mxu1 }
 0x26a   : > { %v3952_v27 = vadd.f32 %v3951_v23, %v3921_v38  ;;  %v3757_v17 = vadd.f32 %v6469_v14, %v3657_v61  ;;  %v2695_v52 = vadd.f32 %v2694_v24, %v6691_v36 }
 0x26b   : > { %v3479_v19 = vpop.f32.mrf.mxu3 }
 0x26c   : > { %v3789_v18 = vpack.c.bf16 %v3757_v17, %v3757_v17  ;;  %v3480_v5 = vadd.f32 %v3479_v19, %v3390_v63  ;;  %v2782_v11 = vadd.f32 %v2695_v52, %v6692_v41 }
 0x26e   : > { %v3853_v31 = vunpack.c.l.bf16 %v3789_v18  ;;  %v3569_v51 = vadd.f32 %v3568_v33, %v3480_v5 }
 0x270   : > { %v3884_v55 = vadd.f32 %v3883_v59, %v3853_v31  ;;  %v3922_v58 = vmul.f32 %v3853_v31, %v3853_v31  ;;  %v3658_v26 = vadd.f32 %v3569_v51, %v2781_v46  ;;  %v3393_v0 = vpop.f32.mrf.mxu2 }
 0x271   : > { %v3573_v13 = vpop.f32.mrf.mxu0  ;;  %v2696_v2 = vpop.f32.mrf.mxu1 }
 0x272   : > { %v3953_v45 = vadd.f32 %v3952_v27, %v3922_v58  ;;  %v3758_v53 = vadd.f32 %v6469_v14, %v3658_v26  ;;  %v2697_v37 = vadd.f32 %v2696_v2, %v6390_v1 }
 0x273   : > { %v3482_v8 = vpop.f32.mrf.mxu3 }
 0x274   : > { %v3790_v15 = vpack.c.bf16 %v3758_v53, %v3758_v53  ;;  %v5460_v60 = vpack.c.bf16 %v3758_v53, %v3757_v17  ;;  %v3483_v62 = vadd.f32 %v3482_v8, %v3393_v0  ;;  %v2783_v21 = vadd.f32 %v2697_v37, %v6388_v3  ;;  %v6696_v37 = vld [vmem:[#allocation15_spill] sm:$0xff] }
 0x276   : > { %5523 = vst [vmem:[%s6480_s10 + $0x38] sm:$0xff] %v5460_v60   ;;  %v3854_v50 = vunpack.c.l.bf16 %v3790_v15  ;;  %v3572_v47 = vadd.f32 %v3571_v32, %v3483_v62  ;;  %v6695_v60 = vld [vmem:[#allocation16_spill] sm:$0xff] }
 0x278   : > { %v3885_v10 = vadd.f32 %v3884_v55, %v3854_v50  ;;  %v3923_v35 = vmul.f32 %v3854_v50, %v3854_v50  ;;  %v3659_v48 = vadd.f32 %v3572_v47, %v2782_v11  ;;  %v3395_v44 = vpop.f32.mrf.mxu2 }
 0x279   : > { %v3576_v33 = vpop.f32.mrf.mxu0  ;;  %v2699_v57 = vpop.f32.mrf.mxu1 }
 0x27a   : > { %v3954_v23 = vadd.f32 %v3953_v45, %v3923_v35  ;;  %v3759_v40 = vadd.f32 %v6469_v14, %v3659_v48  ;;  %v2700_v12 = vadd.f32 %v2699_v57, %v6693_v56 }
 0x27b   : > { %v3484_v34 = vpop.f32.mrf.mxu3 }
 0x27c   : > { %v3791_v22 = vpack.c.bf16 %v3759_v40, %v3759_v40  ;;  %v3485_v30 = vadd.f32 %v3484_v34, %v3395_v44  ;;  %v2784_v46 = vadd.f32 %v2700_v12, %v6694_v49 }
 0x27e   : > { %v3855_v1 = vunpack.c.l.bf16 %v3791_v22  ;;  %v3574_v42 = vadd.f32 %v3573_v13, %v3485_v30 }
 0x280   : > { %v3886_v3 = vadd.f32 %v3885_v10, %v3855_v1  ;;  %v3924_v59 = vmul.f32 %v3855_v1, %v3855_v1  ;;  %v3660_v38 = vadd.f32 %v3574_v42, %v2783_v21  ;;  %v3398_v17 = vpop.f32.mrf.mxu2 }
 0x281   : > { %v3578_v19 = vpop.f32.mrf.mxu0  ;;  %v2701_v24 = vpop.f32.mrf.mxu1 }
 0x282   : > { %v3955_v61 = vadd.f32 %v3954_v23, %v3924_v59  ;;  %v3760_v27 = vadd.f32 %v6469_v14, %v3660_v38  ;;  %v2702_v36 = vadd.f32 %v2701_v24, %v6400_v7 }
 0x283   : > { %v3487_v63 = vpop.f32.mrf.mxu3 }
 0x284   : > { %v3792_v32 = vpack.c.bf16 %v3760_v27, %v3760_v27  ;;  %v5465_v18 = vpack.c.bf16 %v3760_v27, %v3759_v40  ;;  %v3488_v5 = vadd.f32 %v3487_v63, %v3398_v17  ;;  %v2785_v51 = vadd.f32 %v2702_v36, %v6398_v28 }
 0x286   : > { %5524 = vst [vmem:[%s6480_s10 + $0x40] sm:$0xff] %v5465_v18   ;;  %v3856_v52 = vunpack.c.l.bf16 %v3792_v32  ;;  %v3577_v31 = vadd.f32 %v3576_v33, %v3488_v5  ;;  %v6698_v5 = vld [vmem:[#allocation17_spill] sm:$0xff] }
 0x288   : > { %v3887_v41 = vadd.f32 %v3886_v3, %v3856_v52  ;;  %v3925_v11 = vmul.f32 %v3856_v52, %v3856_v52  ;;  %v3661_v55 = vadd.f32 %v3577_v31, %v2784_v46  ;;  %v3400_v45 = vpop.f32.mrf.mxu2 }
 0x289   : > { %v3581_v0 = vpop.f32.mrf.mxu0  ;;  %v2704_v15 = vpop.f32.mrf.mxu1 }
 0x28a   : > { %v3956_v58 = vadd.f32 %v3955_v61, %v3925_v11  ;;  %v3761_v26 = vadd.f32 %v6469_v14, %v3661_v55  ;;  %v2705_v62 = vadd.f32 %v2704_v15, %v6695_v60 }
 0x28b   : > { %v3489_v53 = vpop.f32.mrf.mxu3 }
 0x28c   : > { %v3793_v8 = vpack.c.bf16 %v3761_v26, %v3761_v26  ;;  %v3490_v13 = vadd.f32 %v3489_v53, %v3400_v45  ;;  %v2786_v50 = vadd.f32 %v2705_v62, %v6696_v37 }
 0x28e   : > { %v3857_v7 = vunpack.c.l.bf16 %v3793_v8  ;;  %v3579_v2 = vadd.f32 %v3578_v19, %v3490_v13  ;;  %v6697_v19 = vld [vmem:[#allocation18_spill] sm:$0xff] }
 0x290   : > { %v3888_v28 = vadd.f32 %v3887_v41, %v3857_v7  ;;  %v3926_v47 = vmul.f32 %v3857_v7, %v3857_v7  ;;  %v3662_v21 = vadd.f32 %v3579_v2, %v2785_v51  ;;  %v3403_v48 = vpop.f32.mrf.mxu2 }
 0x291   : > { %v3583_v40 = vpop.f32.mrf.mxu0  ;;  %v2706_v22 = vpop.f32.mrf.mxu1 }
 0x292   : > { %v3957_v10 = vadd.f32 %v3956_v58, %v3926_v47  ;;  %v3762_v35 = vadd.f32 %v6469_v14, %v3662_v21  ;;  %v2707_v30 = vadd.f32 %v2706_v22, %v6410_v54 }
 0x293   : > { %v3492_v23 = vpop.f32.mrf.mxu3 }
 0x294   : > { %v3794_v44 = vpack.c.bf16 %v3762_v35, %v3762_v35  ;;  %v5470_v34 = vpack.c.bf16 %v3762_v35, %v3761_v26  ;;  %v3493_v33 = vadd.f32 %v3492_v23, %v3403_v48  ;;  %v2787_v12 = vadd.f32 %v2707_v30, %v6408_v25  ;;  %v6699_v48 = vld [vmem:[#allocation20_spill] sm:$0xff] }
 0x296   : > { %5525 = vst [vmem:[%s6480_s10 + $0x48] sm:$0xff] %v5470_v34   ;;  %v3858_v57 = vunpack.c.l.bf16 %v3794_v44  ;;  %v3582_v56 = vadd.f32 %v3581_v0, %v3493_v33  ;;  %v6700_v44 = vld [vmem:[#allocation19_spill] sm:$0xff] }
 0x298   : > { %v3889_v1 = vadd.f32 %v3888_v28, %v3858_v57  ;;  %v3927_v42 = vmul.f32 %v3858_v57, %v3858_v57  ;;  %v3663_v49 = vadd.f32 %v3582_v56, %v2786_v50  ;;  %v3405_v59 = vpop.f32.mrf.mxu2 }
 0x299   : > { %v3586_v61 = vpop.f32.mrf.mxu0  ;;  %v2709_v63 = vpop.f32.mrf.mxu1 }
 0x29a   : > { %v3958_v46 = vadd.f32 %v3957_v10, %v3927_v42  ;;  %v3763_v3 = vadd.f32 %v6469_v14, %v3663_v49  ;;  %v2710_v32 = vadd.f32 %v2709_v63, %v6697_v19 }
 0x29b   : > { %v3494_v38 = vpop.f32.mrf.mxu3 }
 0x29c   : > { %v3795_v27 = vpack.c.bf16 %v3763_v3, %v3763_v3  ;;  %v3495_v17 = vadd.f32 %v3494_v38, %v3405_v59  ;;  %v2788_v24 = vadd.f32 %v2710_v32, %v6698_v5 }
 0x29e   : > { %v3859_v54 = vunpack.c.l.bf16 %v3795_v27  ;;  %v3584_v18 = vadd.f32 %v3583_v40, %v3495_v17 }
 0x2a0   : > { %v3890_v25 = vadd.f32 %v3889_v1, %v3859_v54  ;;  %v3928_v36 = vmul.f32 %v3859_v54, %v3859_v54  ;;  %v3664_v52 = vadd.f32 %v3584_v18, %v2787_v12  ;;  %v3408_v41 = vpop.f32.mrf.mxu2 }
 0x2a1   : > { %v3588_v55 = vpop.f32.mrf.mxu0  ;;  %v2711_v53 = vpop.f32.mrf.mxu1 }
 0x2a2   : > { %v3959_v31 = vadd.f32 %v3958_v46, %v3928_v36  ;;  %v3764_v51 = vadd.f32 %v6469_v14, %v3664_v52  ;;  %v2712_v0 = vadd.f32 %v2711_v53, %v6420_v43 }
 0x2a3   : > { %v3497_v11 = vpop.f32.mrf.mxu3 }
 0x2a4   : > { %v3796_v58 = vpack.c.bf16 %v3764_v51, %v3764_v51  ;;  %v5475_v26 = vpack.c.bf16 %v3764_v51, %v3763_v3  ;;  %v3498_v45 = vadd.f32 %v3497_v11, %v3408_v41  ;;  %v2789_v15 = vadd.f32 %v2712_v0, %v6418_v29  ;;  %v6702_v11 = vld [vmem:[#allocation21_spill] sm:$0xff] }
 0x2a6   : > { %5526 = vst [vmem:[%s6480_s10 + $0x50] sm:$0xff] %v5475_v26   ;;  %v3860_v8 = vunpack.c.l.bf16 %v3796_v58  ;;  %v3587_v13 = vadd.f32 %v3586_v61, %v3498_v45 }
 0x2a8   : > { %v3891_v60 = vadd.f32 %v3890_v25, %v3860_v8  ;;  %v3929_v62 = vmul.f32 %v3860_v8, %v3860_v8  ;;  %v3665_v7 = vadd.f32 %v3587_v13, %v2788_v24  ;;  %v3410_v50 = vpop.f32.mrf.mxu2 }
 0x2a9   : > { %v3591_v47 = vpop.f32.mrf.mxu0  ;;  %v2714_v35 = vpop.f32.mrf.mxu1 }
 0x2aa   : > { %v3960_v2 = vadd.f32 %v3959_v31, %v3929_v62  ;;  %v3765_v37 = vadd.f32 %v6469_v14, %v3665_v7  ;;  %v2715_v23 = vadd.f32 %v2714_v35, %v6699_v48  ;;  %v6701_v31 = vld [vmem:[#allocation22_spill] sm:$0xff] }
 0x2ab   : > { %v3499_v28 = vpop.f32.mrf.mxu3 }
 0x2ac   : > { %v3797_v21 = vpack.c.bf16 %v3765_v37, %v3765_v37  ;;  %v3500_v10 = vadd.f32 %v3499_v28, %v3410_v50  ;;  %v2790_v34 = vadd.f32 %v2715_v23, %v6700_v44 }
 0x2ae   : > { %v3861_v43 = vunpack.c.l.bf16 %v3797_v21  ;;  %v3589_v40 = vadd.f32 %v3588_v55, %v3500_v10 }
 0x2b0   : > { %v3892_v29 = vadd.f32 %v3891_v60, %v3861_v43  ;;  %v3930_v33 = vmul.f32 %v3861_v43, %v3861_v43  ;;  %v3666_v22 = vadd.f32 %v3589_v40, %v2789_v15  ;;  %v3413_v56 = vpop.f32.mrf.mxu2 }
 0x2b1   : > { %v3593_v1 = vpop.f32.mrf.mxu0  ;;  %v2716_v3 = vpop.f32.mrf.mxu1 }
 0x2b2   : > { %v3961_v30 = vadd.f32 %v3960_v2, %v3930_v33  ;;  %v3766_v57 = vadd.f32 %v6469_v14, %v3666_v22  ;;  %v2717_v59 = vadd.f32 %v2716_v3, %v6430_v20 }
 0x2b3   : > { %v3502_v12 = vpop.f32.mrf.mxu3 }
 0x2b4   : > { %v3798_v42 = vpack.c.bf16 %v3766_v57, %v3766_v57  ;;  %v5480_v49 = vpack.c.bf16 %v3766_v57, %v3765_v37  ;;  %v3503_v46 = vadd.f32 %v3502_v12, %v3413_v56  ;;  %v2791_v27 = vadd.f32 %v2717_v59, %v6428_v4 }
 0x2b6   : > { %5527 = vst [vmem:[%s6480_s10 + $0x58] sm:$0xff] %v5480_v49   ;;  %v3862_v38 = vunpack.c.l.bf16 %v3798_v42  ;;  %v3592_v61 = vadd.f32 %v3591_v47, %v3503_v46 }
 0x2b8   : > { %v3893_v17 = vadd.f32 %v3892_v29, %v3862_v38  ;;  %v3931_v63 = vmul.f32 %v3862_v38, %v3862_v38  ;;  %v3667_v19 = vadd.f32 %v3592_v61, %v2790_v34  ;;  %v3415_v18 = vpop.f32.mrf.mxu2  ;;  %v6703_v29 = vld [vmem:[#allocation24_spill] sm:$0xff] }
 0x2b9   : > { %v3596_v24 = vpop.f32.mrf.mxu0  ;;  %v2719_v52 = vpop.f32.mrf.mxu1 }
 0x2ba   : > { %v3962_v32 = vadd.f32 %v3961_v30, %v3931_v63  ;;  %v3767_v54 = vadd.f32 %v6469_v14, %v3667_v19  ;;  %v2720_v51 = vadd.f32 %v2719_v52, %v6701_v31  ;;  %v6574_v14 = vld [vmem:[%s6615_s4] ss:$0 sm:$0xff]  ;;  %v6704_v30 = vld [vmem:[#allocation23_spill] sm:$0xff] }
 0x2bb   : > { %v3504_v5 = vpop.f32.mrf.mxu3 }
 0x2bc   : > { %v3799_v25 = vpack.c.bf16 %v3767_v54, %v3767_v54  ;;  %v3505_v36 = vadd.f32 %v3504_v5, %v3415_v18  ;;  %v2792_v55 = vadd.f32 %v2720_v51, %v6702_v11  ;;  %v6705_v11 = vld [vmem:[#allocation26_spill] sm:$0xff] }
 0x2be   : > { %v3863_v20 = vunpack.c.l.bf16 %v3799_v25  ;;  %v3594_v41 = vadd.f32 %v3593_v1, %v3505_v36 }
 0x2c0   : > { %v3894_v4 = vadd.f32 %v3893_v17, %v3863_v20  ;;  %v3932_v58 = vmul.f32 %v3863_v20, %v3863_v20  ;;  %v3668_v26 = vadd.f32 %v3594_v41, %v2791_v27  ;;  %v3418_v0 = vpop.f32.mrf.mxu2 }
 0x2c1   : > { %v2721_v62 = vpop.f32.mrf.mxu1  ;;  %v3598_v2 = vpop.f32.mrf.mxu0 }
 0x2c2   : > { %v3963_v45 = vadd.f32 %v3962_v32, %v3932_v58  ;;  %v3768_v53 = vadd.f32 %v6574_v14, %v3668_v26  ;;  %v2722_v7 = vadd.f32 %v2721_v62, %v6440_v39  ;;  %v6706_v58 = vld [vmem:[#allocation25_spill] sm:$0xff] }
 0x2c3   : > { %v3507_v8 = vpop.f32.mrf.mxu3 }
 0x2c4   : > { %v3800_v13 = vpack.c.bf16 %v3768_v53, %v3768_v53  ;;  %v5485_v15 = vpack.c.bf16 %v3768_v53, %v3767_v54  ;;  %v3508_v60 = vadd.f32 %v3507_v8, %v3418_v0  ;;  %v2793_v28 = vadd.f32 %v2722_v7, %v6438_v9 }
 0x2c6   : > { %5528 = vst [vmem:[%s6480_s10 + $0x60] sm:$0xff] %v5485_v15   ;;  %v3864_v37 = vunpack.c.l.bf16 %v3800_v13  ;;  %v3597_v50 = vadd.f32 %v3596_v24, %v3508_v60 }
 0x2c8   : > { %v3895_v47 = vadd.f32 %v3894_v4, %v3864_v37  ;;  %v3933_v21 = vmul.f32 %v3864_v37, %v3864_v37  ;;  %v3669_v10 = vadd.f32 %v3597_v50, %v2792_v55  ;;  %v3420_v23 = vpop.f32.mrf.mxu2  ;;  %v6707_v50 = vld [vmem:[#allocation28_spill] sm:$0xff] }
 0x2c9   : > { %v2724_v34 = vpop.f32.mrf.mxu1  ;;  %v3601_v56 = vpop.f32.mrf.mxu0 }
 0x2ca   : > { %v3964_v35 = vadd.f32 %v3963_v45, %v3933_v21  ;;  %v3769_v48 = vadd.f32 %v6574_v14, %v3669_v10  ;;  %v2725_v33 = vadd.f32 %v2724_v34, %v6703_v29  ;;  %v6708_v10 = vld [vmem:[#allocation27_spill] sm:$0xff] }
 0x2cb   : > { %v3509_v43 = vpop.f32.mrf.mxu3 }
 0x2cc   : > { %v3801_v40 = vpack.c.bf16 %v3769_v48, %v3769_v48  ;;  %v3510_v44 = vadd.f32 %v3509_v43, %v3420_v23  ;;  %v2794_v57 = vadd.f32 %v2725_v33, %v6704_v30 }
 0x2ce   : > { %v3865_v39 = vunpack.c.l.bf16 %v3801_v40  ;;  %v3599_v22 = vadd.f32 %v3598_v2, %v3510_v44 }
 0x2d0   : > { %v3896_v9 = vadd.f32 %v3895_v47, %v3865_v39  ;;  %v3934_v12 = vmul.f32 %v3865_v39, %v3865_v39  ;;  %v3670_v1 = vadd.f32 %v3599_v22, %v2793_v28  ;;  %v3423_v46 = vpop.f32.mrf.mxu2 }
 0x2d1   : > { %v2726_v27 = vpop.f32.mrf.mxu1  ;;  %v3603_v24 = vpop.f32.mrf.mxu0 }
 0x2d2   : > { %v3965_v42 = vadd.f32 %v3964_v35, %v3934_v12  ;;  %v3770_v49 = vadd.f32 %v6574_v14, %v3670_v1  ;;  %v2727_v17 = vadd.f32 %v2726_v27, %v6450_v6 }
 0x2d3   : > { %v3512_v3 = vpop.f32.mrf.mxu3 }
 0x2d4   : > { %v3802_v59 = vpack.c.bf16 %v3770_v49, %v3770_v49  ;;  %v5490_v38 = vpack.c.bf16 %v3770_v49, %v3769_v48  ;;  %v3513_v61 = vadd.f32 %v3512_v3, %v3423_v46  ;;  %v2795_v32 = vadd.f32 %v2727_v17, %v6448_v16 }
 0x2d6   : > { %5529 = vst [vmem:[%s6480_s10 + $0x68] sm:$0xff] %v5490_v38   ;;  %v3866_v63 = vunpack.c.l.bf16 %v3802_v59  ;;  %v3602_v19 = vadd.f32 %v3601_v56, %v3513_v61 }
 0x2d8   : > { %v3897_v54 = vadd.f32 %v3896_v9, %v3866_v63  ;;  %v3935_v18 = vmul.f32 %v3866_v63, %v3866_v63  ;;  %v3671_v5 = vadd.f32 %v3602_v19, %v2794_v57  ;;  %v3425_v52 = vpop.f32.mrf.mxu2 }
 0x2d9   : > { %v2729_v41 = vpop.f32.mrf.mxu1  ;;  %v3606_v15 = vpop.f32.mrf.mxu0 }
 0x2da   : > { %v3966_v25 = vadd.f32 %v3965_v42, %v3935_v18  ;;  %v3771_v36 = vadd.f32 %v6574_v14, %v3671_v5  ;;  %v2730_v55 = vadd.f32 %v2729_v41, %v6705_v11 }
 0x2db   : > { %v3514_v31 = vpop.f32.mrf.mxu3 }
 0x2dc   : > { %v3803_v51 = vpack.c.bf16 %v3771_v36, %v3771_v36  ;;  %v3515_v20 = vadd.f32 %v3514_v31, %v3425_v52  ;;  %v2796_v26 = vadd.f32 %v2730_v55, %v6706_v58 }
 0x2de   : > { %v3867_v6 = vunpack.c.l.bf16 %v3803_v51  ;;  %v3604_v4 = vadd.f32 %v3603_v24, %v3515_v20 }
 0x2e0   : > { %v3898_v16 = vadd.f32 %v3897_v54, %v3867_v6  ;;  %v3936_v45 = vmul.f32 %v3867_v6, %v3867_v6  ;;  %v3672_v53 = vadd.f32 %v3604_v4, %v2795_v32  ;;  %v3428_v13 = vpop.f32.mrf.mxu2 }
 0x2e1   : > { %v2731_v37 = vpop.f32.mrf.mxu1  ;;  %v3608_v22 = vpop.f32.mrf.mxu0 }
 0x2e2   : > { %v3967_v0 = vadd.f32 %v3966_v25, %v3936_v45  ;;  %v3772_v8 = vadd.f32 %v6574_v14, %v3672_v53  ;;  %v2732_v28 = vadd.f32 %v2731_v37, %v6707_v50 }
 0x2e3   : > { %v3517_v60 = vpop.f32.mrf.mxu3 }
 0x2e4   : > { %v3804_v62 = vpack.c.bf16 %v3772_v8, %v3772_v8  ;;  %v5495_v7 = vpack.c.bf16 %v3772_v8, %v3771_v36  ;;  %v3518_v2 = vadd.f32 %v3517_v60, %v3428_v13  ;;  %v2797_v35 = vadd.f32 %v2732_v28, %v6708_v10 }
 0x2e6   : > { %5530 = vst [vmem:[%s6480_s10 + $0x70] sm:$0xff] %v5495_v7   ;;  %v3868_v47 = vunpack.c.l.bf16 %v3804_v62  ;;  %v3607_v21 = vadd.f32 %v3606_v15, %v3518_v2 }
 0x2e8   : > { %v3899_v48 = vadd.f32 %v3898_v16, %v3868_v47  ;;  %v3937_v23 = vmul.f32 %v3868_v47, %v3868_v47  ;;  %v3673_v43 = vadd.f32 %v3607_v21, %v2796_v26  ;;  %v3430_v34 = vpop.f32.mrf.mxu2 }
 0x2ea   : > { %v3968_v40 = vadd.f32 %v3967_v0, %v3937_v23  ;;  %v3773_v44 = vadd.f32 %v6574_v14, %v3673_v43 }
 0x2eb   : > { %v3519_v29 = vpop.f32.mrf.mxu3 }
 0x2ec   : > { %v3805_v33 = vpack.c.bf16 %v3773_v44, %v3773_v44  ;;  %v3520_v39 = vadd.f32 %v3519_v29, %v3430_v34 }
 0x2ee   : > { %v3869_v30 = vunpack.c.l.bf16 %v3805_v33  ;;  %v3609_v57 = vadd.f32 %v3608_v22, %v3520_v39 }
 0x2f0   : > { %v3900_v56 = vadd.f32 %v3899_v48, %v3869_v30  ;;  %v3938_v9 = vmul.f32 %v3869_v30, %v3869_v30  ;;  %v3674_v12 = vadd.f32 %v3609_v57, %v2797_v35 }
 0x2f2   : > { %v3969_v1 = vadd.f32 %v3968_v40, %v3938_v9  ;;  %v3774_v42 = vadd.f32 %v6574_v14, %v3674_v12 }
 0x2f4   : > { %v3806_v49 = vpack.c.bf16 %v3774_v42, %v3774_v42  ;;  %v5500_v46 = vpack.c.bf16 %v3774_v42, %v3773_v44 }
 0x2f6   : > { %5531 = vst [vmem:[%s6480_s10 + $0x78] sm:$0xff] %v5500_v46   ;;  %v3870_v3 = vunpack.c.l.bf16 %v3806_v49 }
 0x2f8   : > { %v3901_v59 = vadd.f32 %v3900_v56, %v3870_v3  ;;  %v3939_v38 = vmul.f32 %v3870_v3, %v3870_v3 }
 0x2fa   : > { %v3902_v61 = vrot.slane %v3901_v59, 4  ;;  %v3970_v27 = vadd.f32 %v3969_v1, %v3939_v38 }
 0x2fc   : > { %v3903_v17 = vadd.f32 %v3902_v61, %v3901_v59  ;;  %v3971_v63 = vrot.slane %v3970_v27, 4 }
 0x2fe   : > { %v3904_v19 = vrot.slane %v3903_v17, 2  ;;  %v3972_v32 = vadd.f32 %v3971_v63, %v3970_v27 }
 0x300   : > { %v3905_v54 = vadd.f32 %v3904_v19, %v3903_v17  ;;  %v3973_v18 = vrot.slane %v3972_v32, 2 }
 0x302   : > { %v3906_v5 = vrot.slane %v3905_v54, 1  ;;  %v3974_v24 = vadd.f32 %v3973_v18, %v3972_v32 }
 0x304   : > { %v3975_v25 = vrot.slane %v3974_v24, 1  ;;  %v3907_v14 = vadd.f32 %v3906_v5, %v3905_v54 }
 0x306   : > { %v3976_v36 = vadd.f32 %v3975_v25, %v3974_v24 }
 0x308   : > { %v3978_v52 = vsel %vm722_vm0, %v3907_v14, %v3976_v36 }
 0x309   : > { %v3980_v31 = vsel %vm3979_vm6, %v3978_v52, 0.0 }
 0x30a   : > { %3981 = vst [vmem:[%s438_s15] sm:$0xff] %v3980_v31 }
 0x30b PF: > { %s17_s1 = sadd.s32 1, %s5605_s1   ;;  %s6709_s21 = smov %s5601_s22 }
 0x30c   : > { %p14_p5 = scmp.ge.s32.totalorder %s17_s1, 4   ;;  %s6710_s22 = smov %s6712_s2 }
 0x30e   :  { %16 = sbr.rel (!%p14_p5) target bundleno = 2 (0x2), region = 92 }

// kernel: res_conv_forward.4
= control target key start
LH: loop header
LB: loop body
LE: loop exit
PB: predicated region body
PF: predicated region fallthrough
CT: control target
= control target key end

     0   :  { %s5899_s26 = smov 0   ;;  %s5901_s2 = smov 0   ;;  %s7190_s0 = inlined_call_operand.vmem [shape: bf16[2,16,16,128], index: 0, kind: input, shape index: {}, may-alias: {0,1,2}]   ;;  %s7191_s1 = inlined_call_operand.vmem [shape: bf16[2,16,16,128], index: 1, kind: input, shape index: {}, may-alias: {0,1,2}]   ;;  %s7192_s2 = inlined_call_operand.vmem [shape: bf16[2,16,16,128], index: 2, kind: input, shape index: {}, may-alias: {0,1,2}]   ;;  %s7193_s3 = inlined_call_operand.vmem [shape: f32[1,128], index: 3, kind: input, shape index: {}]   ;;  %s7194_s4 = inlined_call_operand.vmem [shape: f32[1,128], index: 4, kind: input, shape index: {}]   ;;  %s7195_s5 = inlined_call_operand.vmem [shape: bf16[3,384,128], index: 5, kind: input, shape index: {}]   ;;  %s7196_s6 = inlined_call_operand.vmem [shape: f32[1,128], index: 6, kind: input, shape index: {}]   ;;  %s7197_s7 = inlined_call_operand.vmem [shape: bf16[2,16,16,128], index: 7, kind: output, shape index: {0}]   ;;  %s7198_s8 = inlined_call_operand.vmem [shape: f32[2,1,8,128], index: 8, kind: output, shape index: {1}]  }
   0x1   :  { %s5903_s27 = smov 0  }
   0x2 LB: > { %s31_s28 = sadd.s32 1, %s5847_s2  ;;  %p4407_p0 = scmp.ge.s32.totalorder %s5851_s27, 1  ;;  %s5851_s27 = sphi %s5903_s27, %s19_s27   ;;  %s5847_s2 = sphi %s5901_s2, %s7286_s2   ;;  %s5843_s26 = sphi %s5899_s26, %s7285_s26  }
   0x3   : > { %p33_p1 = scmp.ge.s32.totalorder %s31_s28, 2  ;;  %p353_p2 = scmp.lt.s32.totalorder %s5851_s27, 3 }
   0x5   : > { %s7288_s28 = smov (%p33_p1, %s31_s28), 0  ;;  %p354_p3 = pnand %p4407_p0, %p353_p2 }
   0x7   : > { %357 = sbr.rel (%p354_p3) target bundleno = 812 (0x32c), region = 48 }
   0xc   : > { %v5439_v0 = vld [vmem:[%s7195_s5 + $0x38] sm:$0xff]  ;;  %p431_p4 = scmp.lt.s32.totalorder %s5843_s26, 1  ;;  %v5853_v1 = vmov 0   ;;  %v5438_v3 = vld [vmem:[%s7195_s5 + $0x30] sm:$0xff]  ;;  %v5437_v5 = vld [vmem:[%s7195_s5 + $0x28] sm:$0xff]  ;;  %vm964_vm0 = vcmask 1040384  }
   0xd   : > { %v5920_v2 = vunpack.c.l.b16 %v5853_v1  ;;  %1896 = vmatpush.bf16.msra.mxu0 %v5439_v0  ;;  %5774 = vmatpush.bf16.msra.mxu1 %v5439_v0  ;;  %vm965_vm1 = vsmask.f32 256  ;;  %v5947_v8 = vld [vmem:[%s7193_s3] ss:$0 sm:$0xff]  ;;  %v5435_v44 = vld [vmem:[%s7195_s5 + $0x18] sm:$0xff]  ;;  %v5434_v63 = vld [vmem:[%s7195_s5 + $0x10] sm:$0xff] }
   0xe   : > { %s7290_s26 = smov (!%p431_p4, %s5843_s26), 1  ;;  %5775 = vmatpush.bf16.msra.mxu2 %v5439_v0  ;;  %5776 = vmatpush.bf16.msra.mxu3 %v5439_v0  ;;  %v5957_v15 = vld [vmem:[%s7194_s4] ss:$0 sm:$0xff]  ;;  %vm5962_vm2 = vmand %vm964_vm0, %vm965_vm1  ;;  %vm1039_vm3 = vcmask 1047552   ;;  %vm1040_vm4 = vsmask.f32 7424 }
   0xf   : > { %v5929_v4 = vpack.c.b16 %v5920_v2, %v5920_v2  ;;  %s5379_s13 = sshll.u32 %s7290_s26, 7  ;;  %v5436_v27 = vld [vmem:[%s7195_s5 + $0x20] sm:$0xff]  ;;  %vm6498_vm5 = vmand %vm1039_vm3, %vm1040_vm4  ;;  %s4416_s24 = sshll.u32 %s7290_s26, 3  ;;  %vm4221_vm6 = vcmask 1041408  }
  0x10   : > { %s5942_s16 = scalar_lea.vmem %s7190_s0, %s5379_s13  ;;  %s7019_s22 = scalar_lea.vmem %s7197_s7, %s5379_s13 }
  0x11   : > { %v821_v6 = vshrl.u32 %v5929_v4, 16  ;;  %v824_v7 = vshll.u32 %v5929_v4, 16  ;;  %1897 = vmatpush.bf16.msra.mxu0 %v5438_v3  ;;  %5777 = vmatpush.bf16.msra.mxu1 %v5438_v3  ;;  %v5746_v9 = vld [vmem:[%s5942_s16 + $0x18] sm:$0xff]   ;;  %v5601_v17 = vld [vmem:[%s5942_s16] sm:$0xff]  }
  0x12   : > { %v5750_v10 = vld [vmem:[%s5942_s16 + $0x38] sm:$0xff]   ;;  %5778 = vmatpush.bf16.msra.mxu2 %v5438_v3  ;;  %5779 = vmatpush.bf16.msra.mxu3 %v5438_v3  ;;  %v5614_v13 = vunpack.c.l.bf16 %v5746_v9  ;;  %v5615_v14 = vunpack.c.h.bf16 %v5746_v9  ;;  %v5602_v22 = vunpack.c.l.bf16 %v5601_v17  ;;  %v5603_v31 = vunpack.c.h.bf16 %v5601_v17  ;;  %v5747_v57 = vld [vmem:[%s5942_s16 + $0x20] sm:$0xff]  }
  0x13   : > { %v5754_v11 = vld [vmem:[%s5942_s16 + $0x58] sm:$0xff]   ;;  %v823_v12 = vrot.slane %v821_v6, 7  ;;  %v5630_v16 = vunpack.c.l.bf16 %v5750_v10  ;;  %v5631_v19 = vunpack.c.h.bf16 %v5750_v10  ;;  %v6009_v62 = vld [vmem:[%s5942_s16 + $0x40] sm:$0xff]   ;;  %v5618_v10 = vunpack.c.l.bf16 %v5747_v57 }
  0x14   : > { %v5646_v20 = vunpack.c.l.bf16 %v5754_v11  ;;  %v5647_v21 = vunpack.c.h.bf16 %v5754_v11  ;;  %v568_v24 = vmul.f32 %v5947_v8, %v5614_v13  ;;  %v569_v25 = vmul.f32 %v5947_v8, %v5615_v14 }
  0x15   : > { %v826_v23 = vor.u32 %v824_v7, %v823_v12  ;;  %v576_v26 = vmul.f32 %v5947_v8, %v5630_v16  ;;  %1898 = vmatpush.bf16.msra.mxu0 %v5437_v5  ;;  %5780 = vmatpush.bf16.msra.mxu1 %v5437_v5  ;;  %v577_v28 = vmul.f32 %v5947_v8, %v5631_v19  ;;  %v5619_v11 = vunpack.c.h.bf16 %v5747_v57 }
  0x16   : > { %v584_v29 = vmul.f32 %v5947_v8, %v5646_v20  ;;  %v585_v30 = vmul.f32 %v5947_v8, %v5647_v21  ;;  %5781 = vmatpush.bf16.msra.mxu2 %v5437_v5  ;;  %5782 = vmatpush.bf16.msra.mxu3 %v5437_v5  ;;  %v604_v33 = vadd.f32 %v5957_v15, %v568_v24  ;;  %v5634_v16 = vunpack.c.l.bf16 %v6009_v62 }
  0x17   : > { %v967_v32 = vsel %vm5962_vm2, 0, %v826_v23  ;;  %v605_v34 = vadd.f32 %v5957_v15, %v569_v25  ;;  %v612_v35 = vadd.f32 %v5957_v15, %v576_v26  ;;  %v613_v38 = vadd.f32 %v5957_v15, %v577_v28 }
  0x18   : > { %v1096_v36 = vunpack.c.l.b16 %v967_v32  ;;  %v1098_v37 = vunpack.c.h.b16 %v967_v32  ;;  %v620_v39 = vadd.f32 %v5957_v15, %v584_v29  ;;  %v636_v40 = vmax.f32 %v604_v33, 0.0 }
  0x19   : > { %v637_v41 = vmax.f32 %v605_v34, 0.0  ;;  %v644_v42 = vmax.f32 %v612_v35, 0.0  ;;  %v621_v43 = vadd.f32 %v5957_v15, %v585_v30  ;;  %1899 = vmatpush.bf16.msra.mxu0 %v5436_v27  ;;  %5783 = vmatpush.bf16.msra.mxu1 %v5436_v27  ;;  %v645_v47 = vmax.f32 %v613_v38, 0.0 }
  0x1a   : > { %v1168_v45 = vpack.c.b16 %v5920_v2, %v1096_v36  ;;  %v1170_v46 = vpack.c.b16 %v5920_v2, %v1098_v37  ;;  %v652_v48 = vmax.f32 %v620_v39, 0.0  ;;  %5784 = vmatpush.bf16.msra.mxu2 %v5436_v27  ;;  %5785 = vmatpush.bf16.msra.mxu3 %v5436_v27  ;;  %v5990_v49 = vpack.c.bf16 %v636_v40, %v636_v40 }
  0x1b   : > { %v5992_v50 = vpack.c.bf16 %v637_v41, %v637_v41  ;;  %v5994_v51 = vpack.c.bf16 %v644_v42, %v644_v42  ;;  %v653_v52 = vmax.f32 %v621_v43, 0.0  ;;  %v5996_v53 = vpack.c.bf16 %v645_v47, %v645_v47  ;;  %v5432_v41 = vld [vmem:[%s7195_s5] sm:$0xff] }
  0x1c   : > { %1312 = vst [vmem:[#allocation2] sm:$0xff] %v1168_v45  ;;  %v5998_v54 = vpack.c.bf16 %v652_v48, %v652_v48  ;;  %v562_v55 = vmul.f32 %v5947_v8, %v5602_v22  ;;  %v563_v56 = vmul.f32 %v5947_v8, %v5603_v31  ;;  %v774_v58 = vunpack.c.l.b16 %v5990_v49  ;;  %v5433_v22 = vld [vmem:[%s7195_s5 + $0x8] sm:$0xff] }
  0x1d   : > { %1314 = vst [vmem:[#allocation2 + $0xc] sm:$0xff] %v1170_v46  ;;  %v775_v59 = vunpack.c.l.b16 %v5992_v50  ;;  %v782_v60 = vunpack.c.l.b16 %v5994_v51  ;;  %v6006_v61 = vpack.c.bf16 %v653_v52, %v653_v52  ;;  %1900 = vmatpush.bf16.msra.mxu0 %v5435_v44  ;;  %5786 = vmatpush.bf16.msra.mxu1 %v5435_v44  ;;  %v783_v0 = vunpack.c.l.b16 %v5996_v53  ;;  %v5454_v51 = vld [vmem:[%s7195_s5 + $0xb0] sm:$0xff] }
  0x1e   : > { %1380 = vst [vmem:[#allocation2 + $0x198] sm:$0xff] %v1168_v45  ;;  %v790_v1 = vunpack.c.l.b16 %v5998_v54  ;;  %v598_v2 = vadd.f32 %v5957_v15, %v562_v55  ;;  %v599_v3 = vadd.f32 %v5957_v15, %v563_v56  ;;  %5787 = vmatpush.bf16.msra.mxu2 %v5435_v44  ;;  %5788 = vmatpush.bf16.msra.mxu3 %v5435_v44  ;;  %v5635_v45 = vunpack.c.h.bf16 %v6009_v62  ;;  %v5455_v62 = vld [vmem:[%s7195_s5 + $0xb8] sm:$0xff]  ;;  %v5510_v53 = vld [vmem:[%s7195_s5 + $0xf0] sm:$0xff] }
  0x1f   : > { %1382 = vst [vmem:[#allocation2 + $0x1a4] sm:$0xff] %v1170_v46  ;;  %v6022_v5 = vpack.c.b16 %v775_v59, %v774_v58  ;;  %v791_v9 = vunpack.c.l.b16 %v6006_v61  ;;  %v6029_v12 = vpack.c.b16 %v783_v0, %v782_v60  ;;  %v570_v21 = vmul.f32 %v5947_v8, %v5618_v10  ;;  %v5446_v54 = vld [vmem:[%s7195_s5 + $0x70] sm:$0xff] }
  0x20   : > { %v630_v13 = vmax.f32 %v598_v2, 0.0  ;;  %v631_v14 = vmax.f32 %v599_v3, 0.0  ;;  %v571_v31 = vmul.f32 %v5947_v8, %v5619_v11  ;;  %v578_v52 = vmul.f32 %v5947_v8, %v5634_v16 }
  0x21   : > { %v849_v17 = vshrl.u32 %v6022_v5, 16  ;;  %v852_v19 = vshll.u32 %v6022_v5, 16  ;;  %v6038_v20 = vpack.c.b16 %v791_v9, %v790_v1  ;;  %1901 = vmatpush.bf16.msra.mxu0 %v5434_v63  ;;  %5789 = vmatpush.bf16.msra.mxu1 %v5434_v63  ;;  %v877_v23 = vshrl.u32 %v6029_v12, 16 }
  0x22   : > { %v880_v24 = vshll.u32 %v6029_v12, 16  ;;  %v6046_v25 = vpack.c.bf16 %v630_v13, %v630_v13  ;;  %v6048_v26 = vpack.c.bf16 %v631_v14, %v631_v14  ;;  %5790 = vmatpush.bf16.msra.mxu2 %v5434_v63  ;;  %5791 = vmatpush.bf16.msra.mxu3 %v5434_v63  ;;  %v606_v36 = vadd.f32 %v5957_v15, %v570_v21  ;;  %v5511_v63 = vld [vmem:[%s7195_s5 + $0xf8] sm:$0xff] }
  0x23   : > { %v4419_v27 = vld [vmem:[#allocation2] sm:$0xf]  ;;  %v851_v28 = vrot.slane %v849_v17, 7  ;;  %v7201_v29 = vshrl.u32 %v6038_v20, 16  ;;  %v7202_v30 = vshll.u32 %v6038_v20, 16  ;;  %v879_v33 = vrot.slane %v877_v23, 7 }
  0x24   : > { %v5385_v32 = vld [vmem:[#allocation2 + $0x8] sm:$0xf0]  ;;  %v768_v34 = vunpack.c.l.b16 %v6046_v25  ;;  %v769_v35 = vunpack.c.l.b16 %v6048_v26  ;;  %v607_v40 = vadd.f32 %v5957_v15, %v571_v31  ;;  %v638_v44 = vmax.f32 %v606_v36, 0.0  ;;  %v5447_v13 = vld [vmem:[%s7195_s5 + $0x78] sm:$0xff]  ;;  %v5755_v31 = vld [vmem:[%s5942_s16 + $0x60] sm:$0xff]  }
  0x25   : > { %v4420_v37 = vor.u32 %v5385_v32, %v4419_v27  ;;  %v854_v38 = vor.u32 %v852_v19, %v851_v28  ;;  %v907_v39 = vrot.slane %v7201_v29, 7  ;;  %1902 = vmatpush.bf16.msra.mxu0 %v5433_v22  ;;  %5792 = vmatpush.bf16.msra.mxu1 %v5433_v22  ;;  %v882_v42 = vor.u32 %v880_v24, %v879_v33  ;;  %v5519_v28 = vld [vmem:[%s7195_s5 + $0x138] sm:$0xff]  ;;  %v5453_v26 = vld [vmem:[%s7195_s5 + $0xa8] sm:$0xff] }
  0x26   : > { %v6074_v43 = vpack.c.b16 %v769_v35, %v768_v34  ;;  %5793 = vmatpush.bf16.msra.mxu2 %v5433_v22  ;;  %5794 = vmatpush.bf16.msra.mxu3 %v5433_v22  ;;  %v639_v48 = vmax.f32 %v607_v40, 0.0  ;;  %v6111_v50 = vpack.c.bf16 %v638_v44, %v638_v44 }
  0x27   : > { %v971_v46 = vsel %vm5962_vm2, 0, %v854_v38  ;;  %v910_v47 = vor.u32 %v7202_v30, %v907_v39  ;;  %v975_v57 = vsel %vm5962_vm2, 0, %v882_v42  ;;  %v5651_v39 = vunpack.c.h.bf16 %v5755_v31 }
  0x28   : > { %v1112_v55 = vunpack.c.l.b16 %v971_v46  ;;  %v1114_v56 = vunpack.c.h.b16 %v971_v46  ;;  %v828_v2 = vshrl.u32 %v6074_v43, 16  ;;  %v1128_v3 = vunpack.c.l.b16 %v975_v57 }
  0x29   : > { %v1130_v10 = vunpack.c.h.b16 %v975_v57  ;;  %v979_v11 = vsel %vm5962_vm2, 0, %v910_v47  ;;  %v831_v14 = vshll.u32 %v6074_v43, 16  ;;  %1903 = vmatpush.bf16.msra.mxu0 %v5432_v41  ;;  %5795 = vmatpush.bf16.msra.mxu1 %v5432_v41 }
  0x2a   : > { %v1184_v16 = vpack.c.b16 %v774_v58, %v1112_v55  ;;  %v1186_v21 = vpack.c.b16 %v775_v59, %v1114_v56  ;;  %v1144_v22 = vunpack.c.l.b16 %v979_v11  ;;  %v1146_v27 = vunpack.c.h.b16 %v979_v11  ;;  %5796 = vmatpush.bf16.msra.mxu2 %v5432_v41  ;;  %5797 = vmatpush.bf16.msra.mxu3 %v5432_v41  ;;  %v5744_v58 = vld [vmem:[%s5942_s16 + $0x8] sm:$0xff]  }
  0x2b   : > { %v1200_v32 = vpack.c.b16 %v782_v60, %v1128_v3  ;;  %v1202_v33 = vpack.c.b16 %v783_v0, %v1130_v10  ;;  %v830_v49 = vrot.slane %v828_v2, 7  ;;  %v6124_v60 = vpack.c.bf16 %v639_v48, %v639_v48 }
  0x2c   : > { %1328 = vst [vmem:[#allocation2 + $0x60] sm:$0xff] %v1184_v16  ;;  %v1216_v59 = vpack.c.b16 %v790_v1, %v1144_v22  ;;  %v1218_v36 = vpack.c.b16 %v791_v9, %v1146_v27  ;;  %1904 = vmatmul.bf16.vlgmr.msra.gmra.mxu0 %v4420_v37  ;;  %v776_v0 = vunpack.c.l.b16 %v6111_v50  ;;  %v579_v1 = vmul.f32 %v5947_v8, %v5635_v45 }
  0x2d   : > { %1330 = vst [vmem:[#allocation2 + $0x6c] sm:$0xff] %v1186_v21  ;;  %1985 = vmatpush.bf16.msrb.mxu1 %v5447_v13  ;;  %v833_v61 = vor.u32 %v831_v14, %v830_v49  ;;  %v5650_v9 = vunpack.c.l.bf16 %v5755_v31  ;;  %2798 = vmatpush.bf16.msrb.mxu0 %v5519_v28  ;;  %v777_v38 = vunpack.c.l.b16 %v6124_v60  ;;  %v614_v37 = vadd.f32 %v5957_v15, %v578_v52 }
  0x2e   : > { %2074 = vmatpush.bf16.msrb.mxu2 %v5455_v62  ;;  %2709 = vmatpush.bf16.msrb.mxu3 %v5511_v63  ;;  %1344 = vst [vmem:[#allocation2 + $0xc0] sm:$0xff] %v1200_v32  ;;  %v5606_v40 = vunpack.c.l.bf16 %v5744_v58  ;;  %v615_v42 = vadd.f32 %v5957_v15, %v579_v1  ;;  %v5607_v46 = vunpack.c.h.bf16 %v5744_v58  ;;  %v587_v56 = vmul.f32 %v5947_v8, %v5651_v39  ;;  %v6149_v63 = vld [vmem:[%s5942_s16 + $0x28] sm:$0xff]   ;;  %v5508_v39 = vld [vmem:[%s7195_s5 + $0xe0] sm:$0xff] }
  0x2f   : > { %1346 = vst [vmem:[#allocation2 + $0xcc] sm:$0xff] %v1202_v33  ;;  %v968_v41 = vsel %vm5962_vm2, 0, %v833_v61  ;;  %v586_v44 = vmul.f32 %v5947_v8, %v5650_v9  ;;  %v6143_v48 = vpack.c.b16 %v777_v38, %v776_v0  ;;  %v646_v52 = vmax.f32 %v614_v37, 0.0  ;;  %v5452_v37 = vld [vmem:[%s7195_s5 + $0xa0] sm:$0xff] }
  0x30   : > { %1360 = vst [vmem:[#allocation2 + $0x120] sm:$0xff] %v1216_v59  ;;  %v1100_v45 = vunpack.c.l.b16 %v968_v41  ;;  %v1102_v47 = vunpack.c.h.b16 %v968_v41  ;;  %v647_v55 = vmax.f32 %v615_v42, 0.0  ;;  %v564_v62 = vmul.f32 %v5947_v8, %v5606_v40 }
  0x31   : > { %1362 = vst [vmem:[#allocation2 + $0x12c] sm:$0xff] %v1218_v36  ;;  %1986 = vmatpush.bf16.msrb.mxu1 %v5446_v54  ;;  %v622_v57 = vadd.f32 %v5957_v15, %v586_v44  ;;  %v856_v11 = vshrl.u32 %v6143_v48, 16  ;;  %v859_v13 = vshll.u32 %v6143_v48, 16  ;;  %v6157_v21 = vpack.c.bf16 %v646_v52, %v646_v52  ;;  %v5445_v54 = vld [vmem:[%s7195_s5 + $0x68] sm:$0xff] }
  0x32   : > { %2075 = vmatpush.bf16.msrb.mxu2 %v5454_v51  ;;  %2710 = vmatpush.bf16.msrb.mxu3 %v5510_v53  ;;  %v1172_v3 = vpack.c.b16 %v768_v34, %v1100_v45  ;;  %v1174_v10 = vpack.c.b16 %v769_v35, %v1102_v47  ;;  %v6159_v22 = vpack.c.bf16 %v647_v55, %v647_v55  ;;  %v5509_v34 = vld [vmem:[%s7195_s5 + $0xe8] sm:$0xff]  ;;  %v5622_v33 = vunpack.c.l.bf16 %v6149_v63  ;;  %v5518_v53 = vld [vmem:[%s7195_s5 + $0x130] sm:$0xff] }
  0x33   : > { %v4467_v16 = vld [vmem:[#allocation2 + $0x60] sm:$0xf]  ;;  %v623_v27 = vadd.f32 %v5957_v15, %v587_v56  ;;  %v654_v28 = vmax.f32 %v622_v57, 0.0  ;;  %v858_v25 = vrot.slane %v856_v11, 7  ;;  %v565_v35 = vmul.f32 %v5947_v8, %v5607_v46  ;;  %2799 = vmatpush.bf16.msrb.mxu0 %v5518_v53  ;;  %v5517_v47 = vld [vmem:[%s7195_s5 + $0x128] sm:$0xff] }
  0x34   : > { %v5397_v31 = vld [vmem:[#allocation2 + $0x68] sm:$0xf0]  ;;  %1316 = vst [vmem:[#allocation2 + $0x18] sm:$0xff] %v1172_v3  ;;  %v600_v32 = vadd.f32 %v5957_v15, %v564_v62  ;;  %v784_v59 = vunpack.c.l.b16 %v6157_v21  ;;  %v785_v36 = vunpack.c.l.b16 %v6159_v22  ;;  %v5623_v52 = vunpack.c.h.bf16 %v6149_v63  ;;  %v5444_v62 = vld [vmem:[%s7195_s5 + $0x60] sm:$0xff] }
  0x35   : > { %v4468_v49 = vor.u32 %v5397_v31, %v4467_v16  ;;  %v4515_v58 = vld [vmem:[#allocation2 + $0xc0] sm:$0xf]  ;;  %1318 = vst [vmem:[#allocation2 + $0x24] sm:$0xff] %v1174_v10  ;;  %v655_v51 = vmax.f32 %v623_v27, 0.0  ;;  %v861_v1 = vor.u32 %v859_v13, %v858_v25  ;;  %v6183_v9 = vpack.c.bf16 %v654_v28, %v654_v28  ;;  %1987 = vmatpush.bf16.msrb.mxu1 %v5445_v54  ;;  %v5752_v31 = vld [vmem:[%s5942_s16 + $0x48] sm:$0xff]  }
  0x36   : > { %v5409_v61 = vld [vmem:[#allocation2 + $0xc8] sm:$0xf0]  ;;  %2076 = vmatpush.bf16.msrb.mxu2 %v5453_v26  ;;  %2711 = vmatpush.bf16.msrb.mxu3 %v5509_v34  ;;  %v601_v40 = vadd.f32 %v5957_v15, %v565_v35  ;;  %v632_v41 = vmax.f32 %v600_v32, 0.0  ;;  %v6196_v46 = vpack.c.b16 %v785_v36, %v784_v59  ;;  %v572_v53 = vmul.f32 %v5947_v8, %v5622_v33 }
  0x37   : > { %1924 = vmatmul.bf16.vlgmr.msra.gmra.mxu1 %v4468_v49  ;;  %v4516_v42 = vor.u32 %v5409_v61, %v4515_v58  ;;  %v4563_v44 = vld [vmem:[#allocation2 + $0x120] sm:$0xf]  ;;  %v6198_v45 = vpack.c.bf16 %v655_v51, %v655_v51  ;;  %v972_v56 = vsel %vm5962_vm2, 0, %v861_v1  ;;  %v792_v57 = vunpack.c.l.b16 %v6183_v9  ;;  %2800 = vmatpush.bf16.msrb.mxu0 %v5517_v47 }
  0x38   : > { %v5421_v55 = vld [vmem:[#allocation2 + $0x128] sm:$0xf0]  ;;  %v633_v3 = vmax.f32 %v601_v40, 0.0  ;;  %v6210_v10 = vpack.c.bf16 %v632_v41, %v632_v41  ;;  %v1116_v27 = vunpack.c.l.b16 %v972_v56  ;;  %v1118_v28 = vunpack.c.h.b16 %v972_v56 }
  0x39   : > { %1944 = vmatmul.bf16.vlgmr.msra.gmra.mxu2 %v4516_v42  ;;  %v4564_v16 = vor.u32 %v5421_v55, %v4563_v44  ;;  %v7203_v63 = vshrl.u32 %v6196_v46, 16  ;;  %v7204_v25 = vshll.u32 %v6196_v46, 16  ;;  %v793_v26 = vunpack.c.l.b16 %v6198_v45  ;;  %1988 = vmatpush.bf16.msrb.mxu1 %v5444_v62 }
  0x3a   : > { %2077 = vmatpush.bf16.msrb.mxu2 %v5452_v37  ;;  %2712 = vmatpush.bf16.msrb.mxu3 %v5508_v39  ;;  %v6216_v34 = vpack.c.bf16 %v633_v3, %v633_v3  ;;  %v770_v35 = vunpack.c.l.b16 %v6210_v10  ;;  %v1188_v49 = vpack.c.b16 %v776_v0, %v1116_v27  ;;  %v1190_v58 = vpack.c.b16 %v777_v38, %v1118_v28  ;;  %v5451_v10 = vld [vmem:[%s7195_s5 + $0x98] sm:$0xff] }
  0x3b   : > { %1964 = vmatmul.bf16.vlgmr.msra.gmra.mxu3 %v4564_v16  ;;  %v4431_v32 = vld [vmem:[#allocation2 + $0x18] sm:$0xf]  ;;  %v886_v51 = vrot.slane %v7203_v63, 7  ;;  %v6230_v61 = vpack.c.b16 %v793_v26, %v792_v57  ;;  %v573_v0 = vmul.f32 %v5947_v8, %v5623_v52  ;;  %v5638_v60 = vunpack.c.l.bf16 %v5752_v31 }
  0x3c   : > { %v5388_v54 = vld [vmem:[#allocation2 + $0x20] sm:$0xf0]  ;;  %v771_v50 = vunpack.c.l.b16 %v6216_v34  ;;  %1332 = vst [vmem:[#allocation2 + $0x78] sm:$0xff] %v1188_v49  ;;  %v608_v33 = vadd.f32 %v5957_v15, %v572_v53  ;;  %v5639_v37 = vunpack.c.h.bf16 %v5752_v31  ;;  %v5756_v49 = vld [vmem:[%s5942_s16 + $0x68] sm:$0xff]   ;;  %v5507_v34 = vld [vmem:[%s7195_s5 + $0xd8] sm:$0xff] }
  0x3d   : > { %v4432_v38 = vor.u32 %v5388_v54, %v4431_v32  ;;  %v889_v1 = vor.u32 %v7204_v25, %v886_v51  ;;  %1334 = vst [vmem:[#allocation2 + $0x84] sm:$0xff] %v1190_v58  ;;  %v7199_v39 = vshrl.u32 %v6230_v61, 16  ;;  %v7200_v40 = vshll.u32 %v6230_v61, 16 }
  0x3e   : > { %v6243_v41 = vpack.c.b16 %v771_v50, %v770_v35  ;;  %v609_v42 = vadd.f32 %v5957_v15, %v573_v0  ;;  %v640_v47 = vmax.f32 %v608_v33, 0.0  ;;  %v580_v52 = vmul.f32 %v5947_v8, %v5638_v60  ;;  %2078 = vmatpush.bf16.msrb.mxu2 %v5451_v10  ;;  %2713 = vmatpush.bf16.msrb.mxu3 %v5507_v34 }
  0x3f   : > { %1909 = vmatmul.bf16.gmra.mxu0 %v4432_v38  ;;  %v976_v44 = vsel %vm5962_vm2, 0, %v889_v1  ;;  %v581_v55 = vmul.f32 %v5947_v8, %v5639_v37  ;;  %v914_v3 = vrot.slane %v7199_v39, 7 }
  0x40   : > { %v1132_v56 = vunpack.c.l.b16 %v976_v44  ;;  %v1134_v62 = vunpack.c.h.b16 %v976_v44  ;;  %v835_v16 = vshrl.u32 %v6243_v41, 16  ;;  %v838_v27 = vshll.u32 %v6243_v41, 16 }
  0x41   : > { %v641_v28 = vmax.f32 %v609_v42, 0.0  ;;  %v6254_v31 = vpack.c.bf16 %v640_v47, %v640_v47  ;;  %v616_v32 = vadd.f32 %v5957_v15, %v580_v52  ;;  %v917_v53 = vor.u32 %v7200_v40, %v914_v3 }
  0x42   : > { %v1204_v58 = vpack.c.b16 %v784_v59, %v1132_v56  ;;  %v1206_v51 = vpack.c.b16 %v785_v36, %v1134_v62  ;;  %v837_v54 = vrot.slane %v835_v16, 7  ;;  %v617_v38 = vadd.f32 %v5957_v15, %v581_v55 }
  0x43   : > { %v6266_v0 = vpack.c.bf16 %v641_v28, %v641_v28  ;;  %v778_v60 = vunpack.c.l.b16 %v6254_v31  ;;  %v648_v1 = vmax.f32 %v616_v32, 0.0  ;;  %v4479_v33 = vld [vmem:[#allocation2 + $0x78] sm:$0xf]  ;;  %v980_v21 = vsel %vm5962_vm2, 0, %v917_v53  ;;  %v5745_v28 = vld [vmem:[%s5942_s16 + $0x10] sm:$0xff]  }
  0x44   : > { %1348 = vst [vmem:[#allocation2 + $0xd8] sm:$0xff] %v1204_v58  ;;  %v840_v22 = vor.u32 %v838_v27, %v837_v54  ;;  %v5654_v59 = vunpack.c.l.bf16 %v5756_v49  ;;  %v5655_v36 = vunpack.c.h.bf16 %v5756_v49  ;;  %v5400_v37 = vld [vmem:[#allocation2 + $0x80] sm:$0xf0]  ;;  %v1148_v42 = vunpack.c.l.b16 %v980_v21 }
  0x45   : > { %1350 = vst [vmem:[#allocation2 + $0xe4] sm:$0xff] %v1206_v51  ;;  %v1150_v44 = vunpack.c.h.b16 %v980_v21  ;;  %v779_v47 = vunpack.c.l.b16 %v6266_v0  ;;  %v649_v52 = vmax.f32 %v617_v38, 0.0  ;;  %v4480_v55 = vor.u32 %v5400_v37, %v4479_v33  ;;  %v6302_v21 = vld [vmem:[%s5942_s16 + $0x50] sm:$0xff]  }
  0x46   : > { %v969_v56 = vsel %vm5962_vm2, 0, %v840_v22  ;;  %v6277_v62 = vpack.c.bf16 %v648_v1, %v648_v1  ;;  %v588_v3 = vmul.f32 %v5947_v8, %v5654_v59  ;;  %v1220_v32 = vpack.c.b16 %v792_v57, %v1148_v42  ;;  %v5749_v1 = vld [vmem:[%s5942_s16 + $0x30] sm:$0xff]  }
  0x47   : > { %v1222_v49 = vpack.c.b16 %v793_v26, %v1150_v44  ;;  %v1104_v58 = vunpack.c.l.b16 %v969_v56  ;;  %v1106_v51 = vunpack.c.h.b16 %v969_v56  ;;  %1929 = vmatmul.bf16.gmra.mxu1 %v4480_v55  ;;  %v6289_v53 = vpack.c.b16 %v779_v47, %v778_v60  ;;  %v5443_v44 = vld [vmem:[%s7195_s5 + $0x58] sm:$0xff] }
  0x48   : > { %v6291_v54 = vpack.c.bf16 %v649_v52, %v649_v52  ;;  %v786_v38 = vunpack.c.l.b16 %v6277_v62  ;;  %v589_v9 = vmul.f32 %v5947_v8, %v5655_v36  ;;  %1364 = vst [vmem:[#allocation2 + $0x138] sm:$0xff] %v1220_v32  ;;  %v624_v26 = vadd.f32 %v5957_v15, %v588_v3  ;;  %v5450_v52 = vld [vmem:[%s7195_s5 + $0x90] sm:$0xff]  ;;  %1989 = vmatpush.bf16.msrb.mxu1 %v5443_v44 }
  0x49   : > { %v1176_v45 = vpack.c.b16 %v770_v35, %v1104_v58  ;;  %v1178_v57 = vpack.c.b16 %v771_v50, %v1106_v51  ;;  %v5610_v33 = vunpack.c.l.bf16 %v5745_v28  ;;  %1366 = vst [vmem:[#allocation2 + $0x144] sm:$0xff] %v1222_v49  ;;  %v863_v22 = vshrl.u32 %v6289_v53, 16  ;;  %v5516_v35 = vld [vmem:[%s7195_s5 + $0x120] sm:$0xff]  ;;  %2079 = vmatpush.bf16.msrb.mxu2 %v5450_v52 }
  0x4a   : > { %v866_v59 = vshll.u32 %v6289_v53, 16  ;;  %v787_v36 = vunpack.c.l.b16 %v6291_v54  ;;  %v625_v37 = vadd.f32 %v5957_v15, %v589_v9  ;;  %v656_v42 = vmax.f32 %v624_v26, 0.0  ;;  %2801 = vmatpush.bf16.msrb.mxu0 %v5516_v35 }
  0x4b   : > { %v4527_v50 = vld [vmem:[#allocation2 + $0xd8] sm:$0xf]  ;;  %1320 = vst [vmem:[#allocation2 + $0x30] sm:$0xff] %v1176_v45  ;;  %v5611_v55 = vunpack.c.h.bf16 %v5745_v28  ;;  %v566_v56 = vmul.f32 %v5947_v8, %v5610_v33  ;;  %v5626_v3 = vunpack.c.l.bf16 %v5749_v1  ;;  %v865_v49 = vrot.slane %v863_v22, 7  ;;  %v5506_v28 = vld [vmem:[%s7195_s5 + $0xd0] sm:$0xff] }
  0x4c   : > { %v5412_v32 = vld [vmem:[#allocation2 + $0xe0] sm:$0xf0]  ;;  %1322 = vst [vmem:[#allocation2 + $0x3c] sm:$0xff] %v1178_v57  ;;  %v6330_v58 = vpack.c.b16 %v787_v36, %v786_v38  ;;  %v657_v51 = vmax.f32 %v625_v37, 0.0  ;;  %v5627_v9 = vunpack.c.h.bf16 %v5749_v1  ;;  %v6335_v26 = vpack.c.bf16 %v656_v42, %v656_v42  ;;  %v5515_v57 = vld [vmem:[%s7195_s5 + $0x118] sm:$0xff]  ;;  %v5442_v33 = vld [vmem:[%s7195_s5 + $0x50] sm:$0xff]  ;;  %2714 = vmatpush.bf16.msrb.mxu3 %v5506_v28 }
  0x4d   : > { %v4528_v45 = vor.u32 %v5412_v32, %v4527_v50  ;;  %v567_v37 = vmul.f32 %v5947_v8, %v5611_v55  ;;  %v5642_v10 = vunpack.c.l.bf16 %v6302_v21  ;;  %v868_v1 = vor.u32 %v866_v59, %v865_v49  ;;  %1990 = vmatpush.bf16.msrb.mxu1 %v5442_v33 }
  0x4e   : > { %v891_v34 = vshrl.u32 %v6330_v58, 16  ;;  %v894_v35 = vshll.u32 %v6330_v58, 16  ;;  %v6349_v50 = vpack.c.bf16 %v657_v51, %v657_v51  ;;  %v794_v42 = vunpack.c.l.b16 %v6335_v26  ;;  %2802 = vmatpush.bf16.msrb.mxu0 %v5515_v57 }
  0x4f   : > { %1949 = vmatmul.bf16.gmra.mxu2 %v4528_v45  ;;  %v602_v44 = vadd.f32 %v5957_v15, %v566_v56  ;;  %v603_v32 = vadd.f32 %v5957_v15, %v567_v37  ;;  %v574_v55 = vmul.f32 %v5947_v8, %v5626_v3  ;;  %v4575_v39 = vld [vmem:[#allocation2 + $0x138] sm:$0xf]  ;;  %v973_v40 = vsel %vm5962_vm2, 0, %v868_v1 }
  0x50   : > { %v893_v49 = vrot.slane %v891_v34, 7  ;;  %v795_v29 = vunpack.c.l.b16 %v6349_v50  ;;  %v575_v51 = vmul.f32 %v5947_v8, %v5627_v9  ;;  %v5424_v45 = vld [vmem:[#allocation2 + $0x140] sm:$0xf0]  ;;  %v1120_v30 = vunpack.c.l.b16 %v973_v40 }
  0x51   : > { %v1122_v56 = vunpack.c.h.b16 %v973_v40  ;;  %v634_v37 = vmax.f32 %v602_v44, 0.0  ;;  %v635_v3 = vmax.f32 %v603_v32, 0.0  ;;  %v4576_v63 = vor.u32 %v5424_v45, %v4575_v39 }
  0x52   : > { %v4443_v25 = vld [vmem:[#allocation2 + $0x30] sm:$0xf]  ;;  %v896_v1 = vor.u32 %v894_v35, %v893_v49  ;;  %v6367_v52 = vpack.c.b16 %v795_v29, %v794_v42  ;;  %v610_v28 = vadd.f32 %v5957_v15, %v574_v55  ;;  %v1192_v40 = vpack.c.b16 %v778_v60, %v1120_v30 }
  0x53   : > { %v5391_v9 = vld [vmem:[#allocation2 + $0x38] sm:$0xf0]  ;;  %v1194_v57 = vpack.c.b16 %v779_v47, %v1122_v56  ;;  %v6374_v39 = vpack.c.bf16 %v634_v37, %v634_v37  ;;  %v6376_v33 = vpack.c.bf16 %v635_v3, %v635_v3  ;;  %1969 = vmatmul.bf16.gmra.mxu3 %v4576_v63  ;;  %v5643_v45 = vunpack.c.h.bf16 %v6302_v21  ;;  %v5757_v56 = vld [vmem:[%s5942_s16 + $0x70] sm:$0xff]  }
  0x54   : > { %v4444_v44 = vor.u32 %v5391_v9, %v4443_v25  ;;  %v977_v32 = vsel %vm5962_vm2, 0, %v896_v1  ;;  %v7205_v49 = vshrl.u32 %v6367_v52, 16  ;;  %v7208_v55 = vshll.u32 %v6367_v52, 16  ;;  %1336 = vst [vmem:[#allocation2 + $0x90] sm:$0xff] %v1192_v40 }
  0x55   : > { %v1136_v31 = vunpack.c.l.b16 %v977_v32  ;;  %v1138_v30 = vunpack.c.h.b16 %v977_v32  ;;  %v772_v0 = vunpack.c.l.b16 %v6374_v39  ;;  %v773_v60 = vunpack.c.l.b16 %v6376_v33  ;;  %1338 = vst [vmem:[#allocation2 + $0x9c] sm:$0xff] %v1194_v57 }
  0x56   : > { %1914 = vmatmul.bf16.gmra.mxu0 %v4444_v44  ;;  %v921_v63 = vrot.slane %v7205_v49, 7  ;;  %v611_v25 = vadd.f32 %v5957_v15, %v575_v51  ;;  %v642_v47 = vmax.f32 %v610_v28, 0.0  ;;  %v582_v9 = vmul.f32 %v5947_v8, %v5642_v10 }
  0x57   : > { %v1208_v37 = vpack.c.b16 %v786_v38, %v1136_v31  ;;  %v1210_v3 = vpack.c.b16 %v787_v36, %v1138_v30  ;;  %v6397_v1 = vpack.c.b16 %v773_v60, %v772_v0  ;;  %v583_v62 = vmul.f32 %v5947_v8, %v5643_v45 }
  0x58   : > { %v924_v51 = vor.u32 %v7208_v55, %v921_v63  ;;  %v643_v28 = vmax.f32 %v611_v25, 0.0  ;;  %v6402_v21 = vpack.c.bf16 %v642_v47, %v642_v47  ;;  %v618_v36 = vadd.f32 %v5957_v15, %v582_v9 }
  0x59   : > { %1352 = vst [vmem:[#allocation2 + $0xf0] sm:$0xff] %v1208_v37  ;;  %v842_v54 = vshrl.u32 %v6397_v1, 16  ;;  %v845_v38 = vshll.u32 %v6397_v1, 16  ;;  %v5658_v40 = vunpack.c.l.bf16 %v5757_v56  ;;  %v619_v32 = vadd.f32 %v5957_v15, %v583_v62 }
  0x5a   : > { %1354 = vst [vmem:[#allocation2 + $0xfc] sm:$0xff] %v1210_v3  ;;  %v981_v10 = vsel %vm5962_vm2, 0, %v924_v51  ;;  %v6410_v57 = vpack.c.bf16 %v643_v28, %v643_v28  ;;  %v780_v44 = vunpack.c.l.b16 %v6402_v21  ;;  %v650_v25 = vmax.f32 %v618_v36, 0.0 }
  0x5b   : > { %v1152_v31 = vunpack.c.l.b16 %v981_v10  ;;  %v1154_v30 = vunpack.c.h.b16 %v981_v10  ;;  %v844_v63 = vrot.slane %v842_v54, 7  ;;  %v4491_v47 = vld [vmem:[#allocation2 + $0x90] sm:$0xf]  ;;  %v651_v37 = vmax.f32 %v619_v32, 0.0  ;;  %v5471_v53 = vld [vmem:[#allocation2 + $0x94] sm:$0xf] }
  0x5c   : > { %v781_v45 = vunpack.c.l.b16 %v6410_v57  ;;  %v5659_v3 = vunpack.c.h.bf16 %v5757_v56  ;;  %v590_v9 = vmul.f32 %v5947_v8, %v5658_v40  ;;  %v5403_v51 = vld [vmem:[#allocation2 + $0x98] sm:$0xf0]  ;;  %v6424_v49 = vpack.c.bf16 %v650_v25, %v650_v25 }
  0x5d   : > { %v1224_v28 = vpack.c.b16 %v794_v42, %v1152_v31  ;;  %v1226_v62 = vpack.c.b16 %v795_v29, %v1154_v30  ;;  %v847_v10 = vor.u32 %v845_v38, %v844_v63  ;;  %v4492_v36 = vor.u32 %v5403_v51, %v4491_v47 }
  0x5e   : > { %v6430_v56 = vpack.c.b16 %v781_v45, %v780_v44  ;;  %v6432_v40 = vpack.c.bf16 %v651_v37, %v651_v37  ;;  %v591_v26 = vmul.f32 %v5947_v8, %v5659_v3  ;;  %v788_v50 = vunpack.c.l.b16 %v6424_v49  ;;  %v5583_v49 = vld [vmem:[%s7195_s5 + $0x1b8] sm:$0xff] }
  0x5f   : > { %1368 = vst [vmem:[#allocation2 + $0x150] sm:$0xff] %v1224_v28  ;;  %v970_v29 = vsel %vm5962_vm2, 0, %v847_v10  ;;  %v626_v42 = vadd.f32 %v5957_v15, %v590_v9  ;;  %v985_v32 = vrot.slane %v824_v7, 1  ;;  %1934 = vmatmul.bf16.gmra.mxu1 %v4492_v36  ;;  %v5449_v9 = vld [vmem:[%s7195_s5 + $0x88] sm:$0xff] }
  0x60   : > { %v4539_v31 = vld [vmem:[#allocation2 + $0xf0] sm:$0xf]  ;;  %1370 = vst [vmem:[#allocation2 + $0x15c] sm:$0xff] %v1226_v62  ;;  %v1108_v30 = vunpack.c.l.b16 %v970_v29  ;;  %v1110_v63 = vunpack.c.h.b16 %v970_v29  ;;  %v870_v25 = vshrl.u32 %v6430_v56, 16  ;;  %v873_v8 = vshll.u32 %v6430_v56, 16  ;;  %v5505_v7 = vld [vmem:[%s7195_s5 + $0xc8] sm:$0xff]  ;;  %2080 = vmatpush.bf16.msrb.mxu2 %v5449_v9 }
  0x61   : > { %v5415_v47 = vld [vmem:[#allocation2 + $0xf8] sm:$0xf0]  ;;  %v789_v37 = vunpack.c.l.b16 %v6432_v40  ;;  %v627_v3 = vadd.f32 %v5957_v15, %v591_v26  ;;  %v658_v51 = vmax.f32 %v626_v42, 0.0  ;;  %v5514_v15 = vld [vmem:[%s7195_s5 + $0x110] sm:$0xff]  ;;  %v5441_v26 = vld [vmem:[%s7195_s5 + $0x48] sm:$0xff]  ;;  %2715 = vmatpush.bf16.msrb.mxu3 %v5505_v7 }
  0x62   : > { %v4540_v28 = vor.u32 %v5415_v47, %v4539_v31  ;;  %v1180_v62 = vpack.c.b16 %v772_v0, %v1108_v30  ;;  %v1182_v10 = vpack.c.b16 %v773_v60, %v1110_v63  ;;  %v872_v36 = vrot.slane %v870_v25, 7  ;;  %v5448_v60 = vld [vmem:[%s7195_s5 + $0x80] sm:$0xff]  ;;  %2803 = vmatpush.bf16.msrb.mxu0 %v5514_v15  ;;  %v5513_v31 = vld [vmem:[%s7195_s5 + $0x108] sm:$0xff]  ;;  %1991 = vmatpush.bf16.msrb.mxu1 %v5441_v26  ;;  %v5591_v40 = vld [vmem:[%s7195_s5 + $0x1f8] sm:$0xff] }
  0x63   : > { %v6467_v39 = vpack.c.b16 %v789_v37, %v788_v50  ;;  %v659_v0 = vmax.f32 %v627_v3, 0.0  ;;  %v6469_v33 = vpack.c.bf16 %v658_v51, %v658_v51  ;;  %v5504_v29 = vld [vmem:[%s7195_s5 + $0xc0] sm:$0xff]  ;;  %v986_v30 = vor.u32 %v985_v32, %v821_v6 }
  0x64   : > { %1954 = vmatmul.bf16.gmra.mxu2 %v4540_v28  ;;  %1324 = vst [vmem:[#allocation2 + $0x48] sm:$0xff] %v1180_v62  ;;  %v875_v42 = vor.u32 %v873_v8, %v872_v36  ;;  %v5440_v9 = vld [vmem:[%s7195_s5 + $0x40] sm:$0xff] }
  0x65   : > { %1326 = vst [vmem:[#allocation2 + $0x54] sm:$0xff] %v1182_v10  ;;  %v898_v63 = vshrl.u32 %v6467_v39, 16  ;;  %v901_v47 = vshll.u32 %v6467_v39, 16  ;;  %v6486_v3 = vpack.c.bf16 %v659_v0, %v659_v0  ;;  %v796_v51 = vunpack.c.l.b16 %v6469_v33  ;;  %2081 = vmatpush.bf16.msrb.mxu2 %v5448_v60  ;;  %2716 = vmatpush.bf16.msrb.mxu3 %v5504_v29  ;;  %v5512_v26 = vld [vmem:[%s7195_s5 + $0x100] sm:$0xff]  ;;  %v5522_v39 = vld [vmem:[%s7195_s5 + $0x150] sm:$0xff] }
  0x66   : > { %v4587_v7 = vld [vmem:[#allocation2 + $0x150] sm:$0xf]  ;;  %v974_v4 = vsel %vm5962_vm2, 0, %v875_v42  ;;  %2804 = vmatpush.bf16.msrb.mxu0 %v5513_v31  ;;  %v1042_v0 = vsel %vm6498_vm5, %v986_v30, 0  ;;  %1992 = vmatpush.bf16.msrb.mxu1 %v5440_v9  ;;  %v5596_v56 = vld [vmem:[%s7195_s5 + $0x220] sm:$0xff] }
  0x67   : > { %v5427_v6 = vld [vmem:[#allocation2 + $0x158] sm:$0xf0]  ;;  %v1124_v32 = vunpack.c.l.b16 %v974_v4  ;;  %v1126_v28 = vunpack.c.h.b16 %v974_v4  ;;  %v900_v62 = vrot.slane %v898_v63, 7  ;;  %v797_v10 = vunpack.c.l.b16 %v6486_v3 }
  0x68   : > { %v4588_v15 = vor.u32 %v5427_v6, %v4587_v7  ;;  %v1097_v31 = vunpack.c.l.b16 %v1042_v0  ;;  %v1099_v7 = vunpack.c.h.b16 %v1042_v0 }
  0x69   : > { %v1196_v42 = vpack.c.b16 %v780_v44, %v1124_v32  ;;  %v1198_v60 = vpack.c.b16 %v781_v45, %v1126_v28  ;;  %v903_v29 = vor.u32 %v901_v47, %v900_v62  ;;  %v6515_v3 = vpack.c.b16 %v797_v10, %v796_v51  ;;  %3586 = vmatpush.bf16.msra.mxu2 %v5583_v49  ;;  %v4421_v49 = vld [vmem:[#allocation2 + $0xc] sm:$0xf0] }
  0x6a   : > { %1974 = vmatmul.bf16.gmra.mxu3 %v4588_v15  ;;  %2805 = vmatpush.bf16.msrb.mxu0 %v5512_v26  ;;  %v1169_v32 = vpack.c.b16 %v1097_v31, %v1097_v31  ;;  %v1171_v28 = vpack.c.b16 %v1099_v7, %v1099_v7  ;;  %v987_v26 = vrot.slane %v831_v14, 1  ;;  %v5599_v7 = vld [vmem:[%s7195_s5 + $0x238] sm:$0xff] }
  0x6b   : > { %v4455_v4 = vld [vmem:[#allocation2 + $0x48] sm:$0xf]  ;;  %1340 = vst [vmem:[#allocation2 + $0xa8] sm:$0xff] %v1196_v42  ;;  %v978_v21 = vsel %vm5962_vm2, 0, %v903_v29  ;;  %v7206_v44 = vshrl.u32 %v6515_v3, 16  ;;  %v7207_v57 = vshll.u32 %v6515_v3, 16  ;;  %3675 = vmatpush.bf16.msra.mxu3 %v5591_v40 }
  0x6c   : > { %v5394_v45 = vld [vmem:[#allocation2 + $0x50] sm:$0xf0]  ;;  %1342 = vst [vmem:[#allocation2 + $0xb4] sm:$0xff] %v1198_v60  ;;  %v1140_v30 = vunpack.c.l.b16 %v978_v21  ;;  %v1142_v6 = vunpack.c.h.b16 %v978_v21  ;;  %v988_v14 = vor.u32 %v987_v26, %v828_v2  ;;  %v989_v40 = vrot.slane %v838_v27, 1  ;;  %v4755_v27 = vld [vmem:[#allocation2 + $0x18] sm:$0xf] }
  0x6d   : > { %v4456_v9 = vor.u32 %v5394_v45, %v4455_v4  ;;  %v928_v62 = vrot.slane %v7206_v44, 7  ;;  %1313 = vst [vmem:[#allocation2 + $0x8] sm:$0xf] %v1169_v32 }
  0x6e   : > { %v1212_v15 = vpack.c.b16 %v788_v50, %v1140_v30  ;;  %v1214_v0 = vpack.c.b16 %v789_v37, %v1142_v6  ;;  %1315 = vst [vmem:[#allocation2 + $0x14] sm:$0xf] %v1171_v28  ;;  %v5527_v50 = vld [vmem:[%s7195_s5 + $0x178] sm:$0xff]  ;;  %3764 = vmatpush.bf16.msra.mxu0 %v5599_v7  ;;  %v1043_v43 = vsel %vm6498_vm5, %v988_v14, 0 }
  0x6f   : > { %1919 = vmatmul.bf16.gmra.mxu0 %v4456_v9  ;;  %v931_v42 = vor.u32 %v7207_v57, %v928_v62  ;;  %1381 = vst [vmem:[#allocation2 + $0x1a0] sm:$0xf] %v1169_v32  ;;  %2887 = vmatpush.bf16.msra.mxu1 %v5527_v50  ;;  %v1101_v2 = vunpack.c.l.b16 %v1043_v43  ;;  %v1103_v6 = vunpack.c.h.b16 %v1043_v43  ;;  %v990_v50 = vor.u32 %v989_v40, %v835_v16  ;;  %v5459_v43 = vld [vmem:[#allocation2 + $0x34] sm:$0xf] }
  0x70   : > { %1356 = vst [vmem:[#allocation2 + $0x108] sm:$0xff] %v1212_v15  ;;  %v5456_v15 = vld [vmem:[#allocation2 + $0x1c] sm:$0xf] }
  0x71   : > { %1358 = vst [vmem:[#allocation2 + $0x114] sm:$0xff] %v1214_v0  ;;  %v982_v60 = vsel %vm5962_vm2, 0, %v931_v42  ;;  %v1173_v9 = vpack.c.b16 %v1101_v2, %v1101_v2  ;;  %v4757_v0 = vld [vmem:[#allocation2 + $0x24] sm:$0xf0]  ;;  %v4769_v2 = vld [vmem:[#allocation2 + $0x3c] sm:$0xf0] }
  0x72   : > { %v4503_v37 = vld [vmem:[#allocation2 + $0xa8] sm:$0xf]  ;;  %v1156_v29 = vunpack.c.l.b16 %v982_v60  ;;  %v1158_v31 = vunpack.c.h.b16 %v982_v60  ;;  %1383 = vst [vmem:[#allocation2 + $0x1ac] sm:$0xf] %v1171_v28  ;;  %v1175_v28 = vpack.c.b16 %v1103_v6, %v1103_v6  ;;  %v4760_v33 = vor.u32 %v5456_v15, %v4757_v0  ;;  %v5384_v60 = vld [vmem:[#allocation2 + $0x4] sm:$0xf] }
  0x73   : > { %v5406_v4 = vld [vmem:[#allocation2 + $0xb0] sm:$0xf0]  ;;  %1317 = vst [vmem:[#allocation2 + $0x20] sm:$0xf] %v1173_v9  ;;  %v4424_v14 = vor.u32 %v5384_v60, %v4421_v49  ;;  %v5457_v6 = vld [vmem:[#allocation2 + $0x20] sm:$0xf0]  ;;  %v4772_v41 = vor.u32 %v5459_v43, %v4769_v2 }
  0x74   : > { %v4504_v21 = vor.u32 %v5406_v4, %v4503_v37  ;;  %v1228_v45 = vpack.c.b16 %v796_v51, %v1156_v29  ;;  %v1230_v30 = vpack.c.b16 %v797_v10, %v1158_v31  ;;  %1319 = vst [vmem:[#allocation2 + $0x2c] sm:$0xf] %v1175_v28  ;;  %v1044_v37 = vsel %vm6498_vm5, %v990_v50, 0  ;;  %v4427_v29 = vld [vmem:[#allocation2 + $0x8] sm:$0xf]  ;;  %v5582_v15 = vld [vmem:[%s7195_s5 + $0x1b0] sm:$0xff] }
  0x75   : > { %v5386_v31 = vld [vmem:[#allocation2 + $0x10] sm:$0xf0]  ;;  %v1105_v7 = vunpack.c.l.b16 %v1044_v37  ;;  %v1107_v4 = vunpack.c.h.b16 %v1044_v37  ;;  %v4756_v16 = vor.u32 %v5457_v6, %v4755_v27  ;;  %v5387_v9 = vld [vmem:[#allocation2 + $0x1c] sm:$0xf]  ;;  %v4433_v28 = vld [vmem:[#allocation2 + $0x24] sm:$0xf0]  ;;  %3587 = vmatpush.bf16.msra.mxu2 %v5582_v15 }
  0x76   : > { %1939 = vmatmul.bf16.gmra.mxu1 %v4504_v21  ;;  %1372 = vst [vmem:[#allocation2 + $0x168] sm:$0xff] %v1228_v45  ;;  %v5590_v0 = vld [vmem:[%s7195_s5 + $0x1f0] sm:$0xff]  ;;  %v5462_v50 = vld [vmem:[#allocation2 + $0x4c] sm:$0xf] }
  0x77   : > { %v4551_v32 = vld [vmem:[#allocation2 + $0x108] sm:$0xf]  ;;  %1374 = vst [vmem:[#allocation2 + $0x174] sm:$0xff] %v1230_v30  ;;  %v1177_v21 = vpack.c.b16 %v1105_v7, %v1105_v7  ;;  %v1179_v45 = vpack.c.b16 %v1107_v4, %v1107_v4  ;;  %v4428_v30 = vor.u32 %v5386_v31, %v4427_v29  ;;  %3676 = vmatpush.bf16.msra.mxu3 %v5590_v0  ;;  %v4767_v37 = vld [vmem:[#allocation2 + $0x30] sm:$0xf] }
  0x78   : > { %v5418_v62 = vld [vmem:[#allocation2 + $0x110] sm:$0xf0]  ;;  %v5460_v29 = vld [vmem:[#allocation2 + $0x38] sm:$0xf0]  ;;  %v4793_v15 = vld [vmem:[#allocation2 + $0x6c] sm:$0xf0] }
  0x79   : > { %v4552_v42 = vor.u32 %v5418_v62, %v4551_v32  ;;  %1321 = vst [vmem:[#allocation2 + $0x38] sm:$0xf] %v1177_v21  ;;  %v991_v32 = vrot.slane %v845_v38, 1  ;;  %v4436_v38 = vor.u32 %v5387_v9, %v4433_v28  ;;  %v4768_v7 = vor.u32 %v5460_v29, %v4767_v37  ;;  %v5390_v4 = vld [vmem:[#allocation2 + $0x34] sm:$0xf] }
  0x7a   : > { %1323 = vst [vmem:[#allocation2 + $0x44] sm:$0xf] %v1179_v45  ;;  %v4445_v21 = vld [vmem:[#allocation2 + $0x3c] sm:$0xf0]  ;;  %v993_v45 = vrot.slane %v852_v19, 1 }
  0x7b   : > { %1959 = vmatmul.bf16.gmra.mxu2 %v4552_v42  ;;  %v992_v62 = vor.u32 %v991_v32, %v842_v54  ;;  %v5526_v42 = vld [vmem:[%s7195_s5 + $0x170] sm:$0xff]  ;;  %v4448_v43 = vor.u32 %v5390_v4, %v4445_v21  ;;  %v4779_v19 = vld [vmem:[#allocation2 + $0x48] sm:$0xf]  ;;  %v4791_v21 = vld [vmem:[#allocation2 + $0x60] sm:$0xf] }
  0x7c   : > { %2888 = vmatpush.bf16.msra.mxu1 %v5526_v42  ;;  %v5463_v0 = vld [vmem:[#allocation2 + $0x50] sm:$0xf0]  ;;  %v995_v42 = vrot.slane %v859_v13, 1  ;;  %v5525_v13 = vld [vmem:[%s7195_s5 + $0x168] sm:$0xff] }
  0x7d   : > { %v4599_v51 = vld [vmem:[#allocation2 + $0x168] sm:$0xf]  ;;  %v1045_v1 = vsel %vm6498_vm5, %v992_v62, 0  ;;  %v5465_v62 = vld [vmem:[#allocation2 + $0x64] sm:$0xf] }
  0x7e   : > { %v5430_v10 = vld [vmem:[#allocation2 + $0x170] sm:$0xf0]  ;;  %v1109_v54 = vunpack.c.l.b16 %v1045_v1  ;;  %v4796_v5 = vor.u32 %v5465_v62, %v4793_v15  ;;  %v4805_v4 = vld [vmem:[#allocation2 + $0x84] sm:$0xf0] }
  0x7f   : > { %v4600_v26 = vor.u32 %v5430_v10, %v4599_v51  ;;  %2806 = vmatmul.bf16.vlgmr.msrb.gmra.mxu0 %v4760_v33  ;;  %v5598_v33 = vld [vmem:[%s7195_s5 + $0x230] sm:$0xff]  ;;  %v1111_v51 = vunpack.c.h.b16 %v1045_v1  ;;  %v4439_v10 = vld [vmem:[#allocation2 + $0x20] sm:$0xf] }
  0x80   : > { %3765 = vmatpush.bf16.msra.mxu0 %v5598_v33  ;;  %v1181_v60 = vpack.c.b16 %v1109_v54, %v1109_v54  ;;  %v4451_v27 = vld [vmem:[#allocation2 + $0x38] sm:$0xf]  ;;  %v996_v54 = vor.u32 %v995_v42, %v856_v11  ;;  %2889 = vmatpush.bf16.msra.mxu1 %v5525_v13 }
  0x81   : > { %1979 = vmatmul.bf16.gmra.mxu3 %v4600_v26  ;;  %v5389_v26 = vld [vmem:[#allocation2 + $0x28] sm:$0xf0]  ;;  %v1183_v49 = vpack.c.b16 %v1111_v51, %v1111_v51  ;;  %v5392_v6 = vld [vmem:[#allocation2 + $0x40] sm:$0xf0]  ;;  %v4457_v33 = vld [vmem:[#allocation2 + $0x54] sm:$0xf0] }
  0x82   : > { %v4440_v40 = vor.u32 %v5389_v26, %v4439_v10  ;;  %1325 = vst [vmem:[#allocation2 + $0x50] sm:$0xf] %v1181_v60  ;;  %v4452_v28 = vor.u32 %v5392_v6, %v4451_v27  ;;  %v5581_v51 = vld [vmem:[%s7195_s5 + $0x1a8] sm:$0xff]  ;;  %v1047_v48 = vsel %vm6498_vm5, %v996_v54, 0  ;;  %v5396_v27 = vld [vmem:[#allocation2 + $0x64] sm:$0xf] }
  0x83   : > { %1327 = vst [vmem:[#allocation2 + $0x5c] sm:$0xf] %v1183_v49  ;;  %v5589_v10 = vld [vmem:[%s7195_s5 + $0x1e8] sm:$0xff]  ;;  %3588 = vmatpush.bf16.msra.mxu2 %v5581_v51  ;;  %v1117_v11 = vunpack.c.l.b16 %v1047_v48  ;;  %v1119_v49 = vunpack.c.h.b16 %v1047_v48  ;;  %v4469_v6 = vld [vmem:[#allocation2 + $0x6c] sm:$0xf0] }
  0x84   : > { %v5597_v60 = vld [vmem:[%s7195_s5 + $0x228] sm:$0xff]  ;;  %3677 = vmatpush.bf16.msra.mxu3 %v5589_v10  ;;  %v4803_v54 = vld [vmem:[#allocation2 + $0x78] sm:$0xf]  ;;  %v5469_v51 = vld [vmem:[#allocation2 + $0x80] sm:$0xf0] }
  0x85   : > { %3766 = vmatpush.bf16.msra.mxu0 %v5597_v60  ;;  %v1191_v37 = vpack.c.b16 %v1119_v49, %v1119_v49  ;;  %v4804_v60 = vor.u32 %v5469_v51, %v4803_v54  ;;  %v5399_v49 = vld [vmem:[#allocation2 + $0x7c] sm:$0xf]  ;;  %v1001_v54 = vrot.slane %v880_v24, 1 }
  0x86   : > { %1993 = vmatmul.bf16.vlgmr.msrb.gmra.mxu1 %v4424_v14  ;;  %v4781_v14 = vld [vmem:[#allocation2 + $0x54] sm:$0xf0] }
  0x87   : > { %v4784_v31 = vor.u32 %v5462_v50, %v4781_v14  ;;  %v1189_v14 = vpack.c.b16 %v1117_v11, %v1117_v11  ;;  %1335 = vst [vmem:[#allocation2 + $0x8c] sm:$0xf] %v1191_v37  ;;  %v999_v11 = vrot.slane %v873_v8, 1  ;;  %v5588_v37 = vld [vmem:[%s7195_s5 + $0x1e0] sm:$0xff] }
  0x88   : > { %3678 = vmatpush.bf16.msra.mxu3 %v5588_v37 }
  0x89   : > { %1333 = vst [vmem:[#allocation2 + $0x80] sm:$0xf] %v1189_v14  ;;  %v5580_v14 = vld [vmem:[%s7195_s5 + $0x1a0] sm:$0xff]  ;;  %3767 = vmatpush.bf16.msra.mxu0 %v5596_v56 }
  0x8a   : > { %v5395_v50 = vld [vmem:[#allocation2 + $0x58] sm:$0xf0]  ;;  %3589 = vmatpush.bf16.msra.mxu2 %v5580_v14 }
  0x8b   : > { %2082 = vmatmul.bf16.vlgmr.msrb.gmra.mxu2 %v4428_v30  ;;  %v994_v30 = vor.u32 %v993_v45, %v849_v17  ;;  %v4780_v17 = vor.u32 %v5463_v0, %v4779_v19  ;;  %v5466_v45 = vld [vmem:[#allocation2 + $0x68] sm:$0xf0] }
  0x8d   : > { %v1046_v2 = vsel %vm6498_vm5, %v994_v30, 0 }
  0x8f   : > { %2811 = vmatmul.bf16.gmra.mxu0 %v4772_v41  ;;  %v1113_v41 = vunpack.c.l.b16 %v1046_v2 }
  0x91   : > { %2717 = vmatmul.bf16.vlgmr.msrb.gmra.mxu3 %v4756_v16  ;;  %v1115_v16 = vunpack.c.h.b16 %v1046_v2  ;;  %v1185_v32 = vpack.c.b16 %v1113_v41, %v1113_v41  ;;  %v4792_v2 = vor.u32 %v5466_v45, %v4791_v21  ;;  %v997_v41 = vrot.slane %v866_v59, 1  ;;  %v4487_v45 = vld [vmem:[#allocation2 + $0x80] sm:$0xf] }
  0x93   : > { %v1187_v9 = vpack.c.b16 %v1115_v16, %v1115_v16  ;;  %1329 = vst [vmem:[#allocation2 + $0x68] sm:$0xf] %v1185_v32  ;;  %v998_v32 = vor.u32 %v997_v41, %v863_v22  ;;  %v4817_v22 = vld [vmem:[#allocation2 + $0x9c] sm:$0xf0] }
  0x94   : > { %v4820_v13 = vor.u32 %v5471_v53, %v4817_v22  ;;  %v5402_v53 = vld [vmem:[#allocation2 + $0x94] sm:$0xf]  ;;  %v4493_v22 = vld [vmem:[#allocation2 + $0x9c] sm:$0xf0] }
  0x95   : > { %1331 = vst [vmem:[#allocation2 + $0x74] sm:$0xf] %v1187_v9  ;;  %v4472_v9 = vor.u32 %v5396_v27, %v4469_v6  ;;  %v1048_v62 = vsel %vm6498_vm5, %v998_v32, 0 }
  0x96   : > { %1998 = vmatmul.bf16.gmra.mxu1 %v4436_v38  ;;  %v5393_v38 = vld [vmem:[#allocation2 + $0x4c] sm:$0xf] }
  0x97   : > { %v4460_v26 = vor.u32 %v5393_v38, %v4457_v33 }
  0x9a   : > { %v4475_v15 = vld [vmem:[#allocation2 + $0x68] sm:$0xf] }
  0x9b   : > { %2087 = vmatmul.bf16.gmra.mxu2 %v4440_v40  ;;  %v4463_v40 = vld [vmem:[#allocation2 + $0x50] sm:$0xf] }
  0x9c   : > { %v4464_v29 = vor.u32 %v5395_v50, %v4463_v40  ;;  %v5398_v19 = vld [vmem:[#allocation2 + $0x70] sm:$0xf0]  ;;  %v4481_v40 = vld [vmem:[#allocation2 + $0x84] sm:$0xf0]  ;;  %v1000_v50 = vor.u32 %v999_v11, %v870_v25 }
  0x9d   : > { %v4476_v38 = vor.u32 %v5398_v19, %v4475_v15  ;;  %v4829_v15 = vld [vmem:[#allocation2 + $0xb4] sm:$0xf0]  ;;  %v4815_v19 = vld [vmem:[#allocation2 + $0x90] sm:$0xf] }
  0x9e   : > { %v1049_v25 = vsel %vm6498_vm5, %v1000_v50, 0 }
  0x9f   : > { %2816 = vmatmul.bf16.gmra.mxu0 %v4784_v31  ;;  %v1127_v21 = vunpack.c.h.b16 %v1049_v25 }
  0xa1   : > { %2722 = vmatmul.bf16.gmra.mxu3 %v4768_v7  ;;  %v5468_v7 = vld [vmem:[#allocation2 + $0x7c] sm:$0xf]  ;;  %v1199_v6 = vpack.c.b16 %v1127_v21, %v1127_v21  ;;  %v5475_v21 = vld [vmem:[#allocation2 + $0xb0] sm:$0xf0] }
  0xa3   : > { %1343 = vst [vmem:[#allocation2 + $0xbc] sm:$0xf] %v1199_v6 }
  0xa6   : > { %2003 = vmatmul.bf16.gmra.mxu1 %v4448_v43  ;;  %v4808_v43 = vor.u32 %v5468_v7, %v4805_v4  ;;  %v4484_v7 = vor.u32 %v5399_v49, %v4481_v40  ;;  %v1125_v4 = vunpack.c.l.b16 %v1049_v25  ;;  %v5477_v25 = vld [vmem:[#allocation2 + $0xc4] sm:$0xf] }
  0xa8   : > { %v1197_v27 = vpack.c.b16 %v1125_v4, %v1125_v4  ;;  %v4841_v4 = vld [vmem:[#allocation2 + $0xcc] sm:$0xf0] }
  0xa9   : > { %v6583_v1 = vpop.f32.mrf.mxu0 }
  0xaa   : > { %1341 = vst [vmem:[#allocation2 + $0xb0] sm:$0xf] %v1197_v27 }
  0xab   : > { %2092 = vmatmul.bf16.gmra.mxu2 %v4452_v28 }
  0xaf   : > { %2821 = vmatmul.bf16.gmra.mxu0 %v4796_v5  ;;  %v1121_v5 = vunpack.c.l.b16 %v1048_v62 }
  0xb1   : > { %2727 = vmatmul.bf16.gmra.mxu3 %v4780_v17  ;;  %v6603_v30 = vpop.f32.mrf.mxu0  ;;  %v1123_v17 = vunpack.c.h.b16 %v1048_v62  ;;  %v1193_v59 = vpack.c.b16 %v1121_v5, %v1121_v5  ;;  %v5474_v62 = vld [vmem:[#allocation2 + $0xac] sm:$0xf]  ;;  %v5472_v5 = vld [vmem:[#allocation2 + $0x98] sm:$0xf0] }
  0xb3   : > { %v1195_v42 = vpack.c.b16 %v1123_v17, %v1123_v17  ;;  %1337 = vst [vmem:[#allocation2 + $0x98] sm:$0xf] %v1193_v59  ;;  %v4832_v17 = vor.u32 %v5474_v62, %v4829_v15  ;;  %v5405_v15 = vld [vmem:[#allocation2 + $0xac] sm:$0xf] }
  0xb4   : > { %v6601_v31 = vpop.f32.mrf.mxu1 }
  0xb5   : > { %1339 = vst [vmem:[#allocation2 + $0xa4] sm:$0xf] %v1195_v42  ;;  %v4816_v42 = vor.u32 %v5472_v5, %v4815_v19  ;;  %v4505_v19 = vld [vmem:[#allocation2 + $0xb4] sm:$0xf0] }
  0xb6   : > { %2008 = vmatmul.bf16.gmra.mxu1 %v4460_v26 }
  0xba   : > { %v4499_v40 = vld [vmem:[#allocation2 + $0x98] sm:$0xf] }
  0xbb   : > { %2097 = vmatmul.bf16.gmra.mxu2 %v4464_v29  ;;  %v5524_v29 = vld [vmem:[%s7195_s5 + $0x160] sm:$0xff] }
  0xbc   : > { %v6607_v16 = vpop.f32.mrf.mxu1  ;;  %v6611_v28 = vpop.f32.mrf.mxu2  ;;  %2890 = vmatpush.bf16.msra.mxu1 %v5524_v29  ;;  %v5404_v50 = vld [vmem:[#allocation2 + $0xa0] sm:$0xf0] }
  0xbd   : > { %v6615_v0 = vpop.f32.mrf.mxu0  ;;  %v4500_v56 = vor.u32 %v5404_v50, %v4499_v40  ;;  %v4511_v50 = vld [vmem:[#allocation2 + $0xb0] sm:$0xf] }
  0xbe   : > { %v6617_v33 = vpop.f32.mrf.mxu3 }
  0xbf   : > { %2826 = vmatmul.bf16.gmra.mxu0 %v4808_v43  ;;  %v5401_v43 = vld [vmem:[#allocation2 + $0x88] sm:$0xf0] }
  0xc0   : > { %v4488_v32 = vor.u32 %v5401_v43, %v4487_v45  ;;  %v4844_v43 = vor.u32 %v5477_v25, %v4841_v4 }
  0xc1   : > { %2732 = vmatmul.bf16.gmra.mxu3 %v4792_v2 }
  0xc4   : > { %v6619_v10 = vpop.f32.mrf.mxu1  ;;  %v6621_v26 = vpop.f32.mrf.mxu2 }
  0xc5   : > { %v6623_v48 = vpop.f32.mrf.mxu0 }
  0xc6   : > { %2013 = vmatmul.bf16.gmra.mxu1 %v4472_v9  ;;  %v6638_v8 = vpop.f32.mrf.mxu3 }
  0xcb   : > { %2102 = vmatmul.bf16.gmra.mxu2 %v4476_v38 }
  0xcc   : > { %v6645_v2 = vpop.f32.mrf.mxu1 }
  0xcf   : > { %2831 = vmatmul.bf16.gmra.mxu0 %v4820_v13  ;;  %v1002_v13 = vor.u32 %v1001_v54, %v877_v23  ;;  %v4827_v23 = vld [vmem:[#allocation2 + $0xa8] sm:$0xf]  ;;  %v4508_v54 = vor.u32 %v5405_v15, %v4505_v19 }
  0xd0   : > { %v4828_v6 = vor.u32 %v5475_v21, %v4827_v23  ;;  %v5480_v23 = vld [vmem:[#allocation2 + $0xdc] sm:$0xf]  ;;  %v4853_v21 = vld [vmem:[#allocation2 + $0xe4] sm:$0xf0] }
  0xd1   : > { %2737 = vmatmul.bf16.gmra.mxu3 %v4804_v60  ;;  %v4496_v60 = vor.u32 %v5402_v53, %v4493_v22  ;;  %v1050_v49 = vsel %vm6498_vm5, %v1002_v13, 0  ;;  %v5579_v53 = vld [vmem:[%s7195_s5 + $0x198] sm:$0xff]  ;;  %v4856_v15 = vor.u32 %v5480_v23, %v4853_v21 }
  0xd2   : > { %v6647_v41 = vpop.f32.mrf.mxu2  ;;  %v1129_v14 = vunpack.c.l.b16 %v1050_v49  ;;  %v1131_v37 = vunpack.c.h.b16 %v1050_v49  ;;  %v5587_v22 = vld [vmem:[%s7195_s5 + $0x1d8] sm:$0xff]  ;;  %3590 = vmatpush.bf16.msra.mxu2 %v5579_v53  ;;  %v5408_v53 = vld [vmem:[#allocation2 + $0xc4] sm:$0xf] }
  0xd3   : > { %v6649_v9 = vpop.f32.mrf.mxu0  ;;  %3679 = vmatpush.bf16.msra.mxu3 %v5587_v22  ;;  %v4517_v22 = vld [vmem:[#allocation2 + $0xcc] sm:$0xf0] }
  0xd4   : > { %v1201_v24 = vpack.c.b16 %v1129_v14, %v1129_v14  ;;  %v5407_v14 = vld [vmem:[#allocation2 + $0xb8] sm:$0xf0] }
  0xd5   : > { %v4512_v4 = vor.u32 %v5407_v14, %v4511_v50 }
  0xd6   : > { %2018 = vmatmul.bf16.gmra.mxu1 %v4484_v7  ;;  %v6651_v59 = vpop.f32.mrf.mxu3  ;;  %v1203_v7 = vpack.c.b16 %v1131_v37, %v1131_v37  ;;  %1345 = vst [vmem:[#allocation2 + $0xc8] sm:$0xf] %v1201_v24  ;;  %v5523_v24 = vld [vmem:[%s7195_s5 + $0x158] sm:$0xff] }
  0xd7   : > { %2891 = vmatpush.bf16.msra.mxu1 %v5523_v24 }
  0xd8   : > { %1347 = vst [vmem:[#allocation2 + $0xd4] sm:$0xf] %v1203_v7  ;;  %v5595_v7 = vld [vmem:[%s7195_s5 + $0x218] sm:$0xff] }
  0xd9   : > { %3768 = vmatpush.bf16.msra.mxu0 %v5595_v7 }
  0xda   : > { %v6657_v51 = vpop.f32.mrf.mxu2 }
  0xdb   : > { %2107 = vmatmul.bf16.gmra.mxu2 %v4488_v32  ;;  %v6661_v11 = vpop.f32.mrf.mxu0  ;;  %v7215_v32 = vshll.u32 %v6196_v46, 16  ;;  %2892 = vmatpush.bf16.msra.mxu1 %v5522_v39  ;;  %v4541_v39 = vld [vmem:[#allocation2 + $0xfc] sm:$0xf0] }
  0xdc   : > { %v6653_v38 = vpop.f32.mrf.mxu1 }
  0xdd   : > { %v1003_v62 = vrot.slane %v7215_v32, 1  ;;  %v5478_v32 = vld [vmem:[#allocation2 + $0xc8] sm:$0xf0]  ;;  %v4523_v24 = vld [vmem:[#allocation2 + $0xc8] sm:$0xf] }
  0xde   : > { %v6665_v29 = vpop.f32.mrf.mxu3 }
  0xdf   : > { %2836 = vmatmul.bf16.gmra.mxu0 %v4832_v17  ;;  %v7216_v17 = vshrl.u32 %v6196_v46, 16  ;;  %v5410_v7 = vld [vmem:[#allocation2 + $0xd0] sm:$0xf0] }
  0xe0   : > { %v4524_v58 = vor.u32 %v5410_v7, %v4523_v24  ;;  %v5411_v24 = vld [vmem:[#allocation2 + $0xdc] sm:$0xf]  ;;  %v4529_v7 = vld [vmem:[#allocation2 + $0xe4] sm:$0xf0] }
  0xe1   : > { %2742 = vmatmul.bf16.gmra.mxu3 %v4816_v42  ;;  %v1004_v42 = vor.u32 %v1003_v62, %v7216_v17 }
  0xe3   : > { %v1051_v13 = vsel %vm6498_vm5, %v1004_v42, 0 }
  0xe4   : > { %v6667_v12 = vpop.f32.mrf.mxu1  ;;  %v1133_v49 = vunpack.c.l.b16 %v1051_v13  ;;  %v1135_v46 = vunpack.c.h.b16 %v1051_v13 }
  0xe6   : > { %2023 = vmatmul.bf16.gmra.mxu1 %v4496_v60  ;;  %v1207_v25 = vpack.c.b16 %v1135_v46, %v1135_v46 }
  0xe7   : > { %v6669_v45 = vpop.f32.mrf.mxu2 }
  0xe8   : > { %1351 = vst [vmem:[#allocation2 + $0xec] sm:$0xf] %v1207_v25 }
  0xeb   : > { %2112 = vmatmul.bf16.gmra.mxu2 %v4500_v56  ;;  %v1205_v56 = vpack.c.b16 %v1133_v49, %v1133_v49  ;;  %v4520_v49 = vor.u32 %v5408_v53, %v4517_v22 }
  0xec   : > { %v6671_v27 = vpop.f32.mrf.mxu0 }
  0xed   : > { %v6675_v5 = vpop.f32.mrf.mxu3  ;;  %1349 = vst [vmem:[#allocation2 + $0xe0] sm:$0xf] %v1205_v56 }
  0xef   : > { %2841 = vmatmul.bf16.gmra.mxu0 %v4844_v43  ;;  %v6689_v40 = vpop.f32.mrf.mxu2 }
  0xf1   : > { %2747 = vmatmul.bf16.gmra.mxu3 %v4828_v6  ;;  %v4839_v6 = vld [vmem:[#allocation2 + $0xc0] sm:$0xf] }
  0xf2   : > { %v4840_v17 = vor.u32 %v5478_v32, %v4839_v6  ;;  %v4865_v6 = vld [vmem:[#allocation2 + $0xfc] sm:$0xf0]  ;;  %v4851_v32 = vld [vmem:[#allocation2 + $0xd8] sm:$0xf] }
  0xf3   : > { %v6687_v60 = vpop.f32.mrf.mxu1 }
  0xf4   : > { %v6691_v37 = vpop.f32.mrf.mxu0 }
  0xf5   : > { %v6699_v43 = vpop.f32.mrf.mxu3 }
  0xf6   : > { %2028 = vmatmul.bf16.gmra.mxu1 %v4508_v54  ;;  %v1005_v54 = vrot.slane %v894_v35, 1 }
  0xf8   : > { %v1006_v13 = vor.u32 %v1005_v54, %v891_v34  ;;  %v5483_v34 = vld [vmem:[#allocation2 + $0xf4] sm:$0xf] }
  0xf9   : > { %v4868_v53 = vor.u32 %v5483_v34, %v4865_v6  ;;  %v4535_v6 = vld [vmem:[#allocation2 + $0xe0] sm:$0xf] }
  0xfa   : > { %v1052_v50 = vsel %vm6498_vm5, %v1006_v13, 0 }
  0xfb   : > { %2117 = vmatmul.bf16.gmra.mxu2 %v4512_v4  ;;  %v6701_v62 = vpop.f32.mrf.mxu1  ;;  %v1137_v25 = vunpack.c.l.b16 %v1052_v50  ;;  %v1139_v4 = vunpack.c.h.b16 %v1052_v50 }
  0xfc   : > { %v2807_v19 = vpop.f32.mrf.mxu0 }
  0xfd   : > { %v1209_v35 = vpack.c.b16 %v1137_v25, %v1137_v25  ;;  %v1211_v21 = vpack.c.b16 %v1139_v4, %v1139_v4  ;;  %v1007_v4 = vrot.slane %v901_v47, 1 }
  0xfe   : > { %v6703_v42 = vpop.f32.mrf.mxu2 }
  0xff   : > { %2846 = vmatmul.bf16.gmra.mxu0 %v4856_v15  ;;  %1353 = vst [vmem:[#allocation2 + $0xf8] sm:$0xf] %v1209_v35  ;;  %v5481_v15 = vld [vmem:[#allocation2 + $0xe0] sm:$0xf0]  ;;  %v5578_v35 = vld [vmem:[%s7195_s5 + $0x190] sm:$0xff] }
 0x100   : > { %1355 = vst [vmem:[#allocation2 + $0x104] sm:$0xf] %v1211_v21  ;;  %v4852_v50 = vor.u32 %v5481_v15, %v4851_v32  ;;  %v5586_v21 = vld [vmem:[%s7195_s5 + $0x1d0] sm:$0xff]  ;;  %3591 = vmatpush.bf16.msra.mxu2 %v5578_v35  ;;  %v5413_v32 = vld [vmem:[#allocation2 + $0xe8] sm:$0xf0] }
 0x101   : > { %2752 = vmatmul.bf16.gmra.mxu3 %v4840_v17 }
 0x102   : > { %3680 = vmatpush.bf16.msra.mxu3 %v5586_v21  ;;  %v4536_v21 = vor.u32 %v5413_v32, %v4535_v6 }
 0x103   : > { %v1994_v46 = vpop.f32.mrf.mxu1 }
 0x104   : > { %v6711_v14 = vpop.f32.mrf.mxu3  ;;  %v6713_v56 = vpop.f32.mrf.mxu0  ;;  %v1995_v13 = vadd.f32 %v1994_v46, %v6583_v1  ;;  %v1008_v1 = vor.u32 %v1007_v4, %v898_v63  ;;  %v4532_v46 = vor.u32 %v5411_v24, %v4529_v7  ;;  %v5594_v63 = vld [vmem:[%s7195_s5 + $0x210] sm:$0xff] }
 0x105   : > { %3769 = vmatpush.bf16.msra.mxu0 %v5594_v63  ;;  %v7217_v63 = vshll.u32 %v6038_v20, 16 }
 0x106   : > { %v6715_v23 = vpop.f32.mrf.mxu2  ;;  %2033 = vmatmul.bf16.gmra.mxu1 %v4520_v49  ;;  %v1053_v34 = vsel %vm6498_vm5, %v1008_v1, 0  ;;  %v4877_v1 = vld [vmem:[#allocation2 + $0x114] sm:$0xf0] }
 0x10b   : > { %2122 = vmatmul.bf16.gmra.mxu2 %v4524_v58  ;;  %v1996_v17 = vpop.f32.mrf.mxu1 }
 0x10c   : > { %v6717_v22 = vpop.f32.mrf.mxu3  ;;  %v6719_v54 = vpop.f32.mrf.mxu0 }
 0x10e   : > { %v2083_v49 = vpop.f32.mrf.mxu2 }
 0x10f   : > { %v6722_v25 = vadd.f32 %v2083_v49, %v1995_v13  ;;  %2851 = vmatmul.bf16.gmra.mxu0 %v4868_v53  ;;  %v1141_v53 = vunpack.c.l.b16 %v1053_v34  ;;  %v1143_v13 = vunpack.c.h.b16 %v1053_v34  ;;  %v1997_v49 = vadd.f32 %v1996_v17, %v6603_v30  ;;  %v4863_v30 = vld [vmem:[#allocation2 + $0xf0] sm:$0xf]  ;;  %v5484_v17 = vld [vmem:[#allocation2 + $0xf8] sm:$0xf0] }
 0x110   : > { %v4864_v6 = vor.u32 %v5484_v17, %v4863_v30 }
 0x111   : > { %2757 = vmatmul.bf16.gmra.mxu3 %v4852_v50  ;;  %v1213_v7 = vpack.c.b16 %v1141_v53, %v1141_v53  ;;  %v1215_v4 = vpack.c.b16 %v1143_v13, %v1143_v13 }
 0x113   : > { %v1999_v58 = vpop.f32.mrf.mxu1  ;;  %1357 = vst [vmem:[#allocation2 + $0x110] sm:$0xf] %v1213_v7  ;;  %v7218_v7 = vshrl.u32 %v6038_v20, 16 }
 0x114   : > { %v2718_v47 = vpop.f32.mrf.mxu3  ;;  %v6736_v15 = vpop.f32.mrf.mxu0  ;;  %1359 = vst [vmem:[#allocation2 + $0x11c] sm:$0xf] %v1215_v4  ;;  %v2000_v53 = vadd.f32 %v1999_v58, %v6615_v0  ;;  %v5416_v58 = vld [vmem:[#allocation2 + $0x100] sm:$0xf0] }
 0x115   : > { %v6738_v50 = vadd.f32 %v2807_v19, %v2718_v47  ;;  %v5486_v19 = vld [vmem:[#allocation2 + $0x10c] sm:$0xf] }
 0x116   : > { %v2085_v24 = vpop.f32.mrf.mxu2  ;;  %2038 = vmatmul.bf16.gmra.mxu1 %v4532_v46  ;;  %v4880_v47 = vor.u32 %v5486_v19, %v4877_v1 }
 0x117   : > { %v6747_v35 = vadd.f32 %v2085_v24, %v1997_v49  ;;  %v5414_v49 = vld [vmem:[#allocation2 + $0xf4] sm:$0xf]  ;;  %v1009_v24 = vrot.slane %v7217_v63, 1  ;;  %v5489_v63 = vld [vmem:[#allocation2 + $0x124] sm:$0xf] }
 0x119   : > { %v1010_v4 = vor.u32 %v1009_v24, %v7218_v7  ;;  %v4889_v24 = vld [vmem:[#allocation2 + $0x12c] sm:$0xf0]  ;;  %v4875_v7 = vld [vmem:[#allocation2 + $0x108] sm:$0xf] }
 0x11a   : > { %v4892_v55 = vor.u32 %v5489_v63, %v4889_v24 }
 0x11b   : > { %2127 = vmatmul.bf16.gmra.mxu2 %v4536_v21  ;;  %v2001_v34 = vpop.f32.mrf.mxu1  ;;  %v4544_v21 = vor.u32 %v5414_v49, %v4541_v39 }
 0x11c   : > { %v2720_v44 = vpop.f32.mrf.mxu3  ;;  %v6749_v57 = vpop.f32.mrf.mxu0 }
 0x11d   : > { %v6752_v46 = vadd.f32 %v6713_v56, %v2720_v44  ;;  %v1054_v44 = vsel %vm6498_vm5, %v1010_v4, 0  ;;  %v4547_v56 = vld [vmem:[#allocation2 + $0xf8] sm:$0xf]  ;;  %v5487_v4 = vld [vmem:[#allocation2 + $0x110] sm:$0xf0] }
 0x11e   : > { %v2088_v32 = vpop.f32.mrf.mxu2  ;;  %v1145_v30 = vunpack.c.l.b16 %v1054_v44  ;;  %v1147_v17 = vunpack.c.h.b16 %v1054_v44  ;;  %v4548_v39 = vor.u32 %v5416_v58, %v4547_v56  ;;  %v4876_v56 = vor.u32 %v5487_v4, %v4875_v7  ;;  %v4559_v7 = vld [vmem:[#allocation2 + $0x110] sm:$0xf]  ;;  %v5419_v4 = vld [vmem:[#allocation2 + $0x118] sm:$0xf0] }
 0x11f   : > { %v6755_v13 = vadd.f32 %v2088_v32, %v2000_v53  ;;  %2856 = vmatmul.bf16.gmra.mxu0 %v4880_v47  ;;  %v2002_v53 = vadd.f32 %v2001_v34, %v6623_v48 }
 0x120   : > { %v1217_v20 = vpack.c.b16 %v1145_v30, %v1145_v30  ;;  %v1219_v32 = vpack.c.b16 %v1147_v17, %v1147_v17  ;;  %v5417_v17 = vld [vmem:[#allocation2 + $0x10c] sm:$0xf] }
 0x121   : > { %2762 = vmatmul.bf16.gmra.mxu3 %v4864_v6 }
 0x122   : > { %1361 = vst [vmem:[#allocation2 + $0x128] sm:$0xf] %v1217_v20 }
 0x123   : > { %v2004_v19 = vpop.f32.mrf.mxu1  ;;  %1363 = vst [vmem:[#allocation2 + $0x134] sm:$0xf] %v1219_v32 }
 0x124   : > { %v2723_v0 = vpop.f32.mrf.mxu3  ;;  %v6763_v1 = vpop.f32.mrf.mxu0 }
 0x125   : > { %v6766_v47 = vadd.f32 %v6719_v54, %v2723_v0 }
 0x126   : > { %v2090_v6 = vpop.f32.mrf.mxu2  ;;  %2043 = vmatmul.bf16.gmra.mxu1 %v4544_v21  ;;  %v2005_v21 = vadd.f32 %v2004_v19, %v6649_v9  ;;  %v7222_v9 = vshrl.u32 %v6230_v61, 16 }
 0x127   : > { %v6769_v49 = vadd.f32 %v2090_v6, %v2002_v53  ;;  %v4553_v53 = vld [vmem:[#allocation2 + $0x114] sm:$0xf0]  ;;  %v7221_v6 = vshll.u32 %v6230_v61, 16  ;;  %v5521_v61 = vld [vmem:[%s7195_s5 + $0x148] sm:$0xff] }
 0x128   : > { %v4556_v32 = vor.u32 %v5417_v17, %v4553_v53  ;;  %2893 = vmatpush.bf16.msra.mxu1 %v5521_v61  ;;  %v4565_v61 = vld [vmem:[#allocation2 + $0x12c] sm:$0xf0] }
 0x129   : > { %7219 = vst [vmem:[#allocation4_spill] sm:$0xff] %v6769_v49  ;;  %v1011_v20 = vrot.slane %v7221_v6, 1  ;;  %v5493_v49 = vld [vmem:[#allocation2 + $0x140] sm:$0xf0] }
 0x12b   : > { %2132 = vmatmul.bf16.gmra.mxu2 %v4548_v39  ;;  %v2006_v44 = vpop.f32.mrf.mxu1  ;;  %v1012_v19 = vor.u32 %v1011_v20, %v7222_v9  ;;  %v4560_v20 = vor.u32 %v5419_v4, %v4559_v7  ;;  %v5490_v9 = vld [vmem:[#allocation2 + $0x128] sm:$0xf0] }
 0x12c   : > { %v2725_v54 = vpop.f32.mrf.mxu3  ;;  %v2007_v0 = vadd.f32 %v2006_v44, %v6661_v11  ;;  %v6772_v48 = vpop.f32.mrf.mxu0  ;;  %v5577_v11 = vld [vmem:[%s7195_s5 + $0x188] sm:$0xff] }
 0x12d   : > { %v6775_v34 = vadd.f32 %v6736_v15, %v2725_v54  ;;  %v5585_v15 = vld [vmem:[%s7195_s5 + $0x1c8] sm:$0xff]  ;;  %3592 = vmatpush.bf16.msra.mxu2 %v5577_v11  ;;  %v5492_v11 = vld [vmem:[#allocation2 + $0x13c] sm:$0xf] }
 0x12e   : > { %v2093_v58 = vpop.f32.mrf.mxu2  ;;  %3681 = vmatpush.bf16.msra.mxu3 %v5585_v15  ;;  %v4887_v15 = vld [vmem:[#allocation2 + $0x120] sm:$0xf] }
 0x12f   : > { %v6778_v30 = vadd.f32 %v2093_v58, %v2005_v21  ;;  %2861 = vmatmul.bf16.gmra.mxu0 %v4892_v55  ;;  %v1055_v55 = vsel %vm6498_vm5, %v1012_v19, 0  ;;  %v5593_v58 = vld [vmem:[%s7195_s5 + $0x208] sm:$0xff]  ;;  %v4888_v7 = vor.u32 %v5490_v9, %v4887_v15 }
 0x130   : > { %v1149_v54 = vunpack.c.l.b16 %v1055_v55  ;;  %v1151_v21 = vunpack.c.h.b16 %v1055_v55  ;;  %3770 = vmatpush.bf16.msra.mxu0 %v5593_v58  ;;  %v7227_v58 = vshll.u32 %v6367_v52, 16 }
 0x131   : > { %7220 = vst [vmem:[#allocation5_spill] sm:$0xff] %v6778_v30  ;;  %2767 = vmatmul.bf16.gmra.mxu3 %v4876_v56 }
 0x132   : > { %v1223_v53 = vpack.c.b16 %v1151_v21, %v1151_v21  ;;  %v5420_v21 = vld [vmem:[#allocation2 + $0x124] sm:$0xf] }
 0x133   : > { %v2009_v39 = vpop.f32.mrf.mxu1 }
 0x134   : > { %v2728_v63 = vpop.f32.mrf.mxu3  ;;  %v2010_v24 = vadd.f32 %v2009_v39, %v6671_v27  ;;  %v6793_v44 = vpop.f32.mrf.mxu0  ;;  %v1221_v27 = vpack.c.b16 %v1149_v54, %v1149_v54  ;;  %1367 = vst [vmem:[#allocation2 + $0x14c] sm:$0xf] %v1223_v53 }
 0x135   : > { %v6796_v56 = vadd.f32 %v6749_v57, %v2728_v63  ;;  %v4901_v57 = vld [vmem:[#allocation2 + $0x144] sm:$0xf0] }
 0x136   : > { %v2095_v17 = vpop.f32.mrf.mxu2  ;;  %2048 = vmatmul.bf16.gmra.mxu1 %v4556_v32  ;;  %1365 = vst [vmem:[#allocation2 + $0x140] sm:$0xf] %v1221_v27  ;;  %v4904_v39 = vor.u32 %v5492_v11, %v4901_v57  ;;  %v5758_v27 = vld [vmem:[%s5942_s16 + $0x78] sm:$0xff]   ;;  %v4568_v57 = vor.u32 %v5420_v21, %v4565_v61  ;;  %s492_s16 = scalar_lea.vmem %s7198_s8, %s4416_s24 }
 0x137   : > { %7223 = vst [vmem:[#allocation6_spill] sm:$0xff] %v6796_v56  ;;  %v6804_v6 = vadd.f32 %v2095_v17, %v2007_v0  ;;  %v1013_v17 = vrot.slane %v7227_v58, 1  ;;  %v5662_v53 = vunpack.c.l.bf16 %v5758_v27 }
 0x139   : > { %7224 = vst [vmem:[#allocation7_spill] sm:$0xff] %v6804_v6 }
 0x13b   : > { %2137 = vmatmul.bf16.gmra.mxu2 %v4560_v20  ;;  %v2011_v19 = vpop.f32.mrf.mxu1  ;;  %v5663_v20 = vunpack.c.h.bf16 %v5758_v27 }
 0x13c   : > { %v2730_v55 = vpop.f32.mrf.mxu3  ;;  %v2012_v32 = vadd.f32 %v2011_v19, %v6691_v37  ;;  %v6807_v63 = vpop.f32.mrf.mxu0  ;;  %v7228_v37 = vshrl.u32 %v6367_v52, 16  ;;  %v5827_v52 = vld [vmem:[%s7194_s4] ss:$0 sm:$0xff] }
 0x13d   : > { %v6810_v0 = vadd.f32 %v6763_v1, %v2730_v55  ;;  %v5826_v1 = vld [vmem:[%s7193_s3] ss:$0 sm:$0xff]  ;;  %v4571_v55 = vld [vmem:[#allocation2 + $0x128] sm:$0xf] }
 0x13e   : > { %v2098_v4 = vpop.f32.mrf.mxu2  ;;  %v1014_v11 = vor.u32 %v1013_v17, %v7228_v37  ;;  %v593_v15 = vmul.f32 %v5826_v1, %v5663_v20 }
 0x13f   : > { %7225 = vst [vmem:[#allocation8_spill] sm:$0xff] %v6810_v0  ;;  %v6812_v54 = vadd.f32 %v2098_v4, %v2010_v24  ;;  %2866 = vmatmul.bf16.gmra.mxu0 %v4904_v39  ;;  %v592_v24 = vmul.f32 %v5826_v1, %v5662_v53  ;;  %v5422_v4 = vld [vmem:[#allocation2 + $0x130] sm:$0xf0] }
 0x140   : > { %v1056_v19 = vsel %vm6498_vm5, %v1014_v11, 0  ;;  %v629_v17 = vadd.f32 %v5827_v52, %v593_v15  ;;  %v5495_v0 = vld [vmem:[#allocation2 + $0x154] sm:$0xf] }
 0x141   : > { %7226 = vst [vmem:[#allocation9_spill] sm:$0xff] %v6812_v54  ;;  %2772 = vmatmul.bf16.gmra.mxu3 %v4888_v7  ;;  %v1153_v7 = vunpack.c.l.b16 %v1056_v19  ;;  %v1155_v27 = vunpack.c.h.b16 %v1056_v19  ;;  %v628_v21 = vadd.f32 %v5827_v52, %v592_v24  ;;  %v4572_v54 = vor.u32 %v5422_v4, %v4571_v55  ;;  %v4913_v19 = vld [vmem:[#allocation2 + $0x15c] sm:$0xf0]  ;;  %v4899_v24 = vld [vmem:[#allocation2 + $0x138] sm:$0xf] }
 0x142   : > { %v661_v6 = vmax.f32 %v629_v17, 0.0  ;;  %v4900_v4 = vor.u32 %v5493_v49, %v4899_v24  ;;  %v5423_v17 = vld [vmem:[#allocation2 + $0x13c] sm:$0xf]  ;;  %v5584_v49 = vld [vmem:[%s7195_s5 + $0x1c0] sm:$0xff] }
 0x143   : > { %v2014_v9 = vpop.f32.mrf.mxu1  ;;  %v1225_v20 = vpack.c.b16 %v1153_v7, %v1153_v7  ;;  %v1227_v37 = vpack.c.b16 %v1155_v27, %v1155_v27  ;;  %v660_v11 = vmax.f32 %v628_v21, 0.0  ;;  %3682 = vmatpush.bf16.msra.mxu3 %v5584_v49 }
 0x144   : > { %v2733_v39 = vpop.f32.mrf.mxu3  ;;  %v6824_v58 = vpop.f32.mrf.mxu0  ;;  %v693_v56 = vpack.c.bf16 %v661_v6, %v661_v6  ;;  %v2015_v55 = vadd.f32 %v2014_v9, %v6601_v31  ;;  %v5576_v31 = vld [vmem:[%s7195_s5 + $0x180] sm:$0xff] }
 0x145   : > { %v6830_v61 = vadd.f32 %v6772_v48, %v2733_v39  ;;  %1369 = vst [vmem:[#allocation2 + $0x158] sm:$0xf] %v1225_v20  ;;  %v692_v30 = vpack.c.bf16 %v660_v11, %v660_v11  ;;  %v4916_v39 = vor.u32 %v5495_v0, %v4913_v19  ;;  %v7230_v0 = vshll.u32 %v6515_v3, 16  ;;  %3593 = vmatpush.bf16.msra.mxu2 %v5576_v31 }
 0x146   : > { %v2100_v53 = vpop.f32.mrf.mxu2  ;;  %2053 = vmatmul.bf16.gmra.mxu1 %v4568_v57  ;;  %1371 = vst [vmem:[#allocation2 + $0x164] sm:$0xf] %v1227_v37  ;;  %v799_v57 = vunpack.c.l.b16 %v693_v56 }
 0x147   : > { %v6832_v1 = vadd.f32 %v2100_v53, %v2012_v32  ;;  %v798_v48 = vunpack.c.l.b16 %v692_v30  ;;  %v4577_v30 = vld [vmem:[#allocation2 + $0x144] sm:$0xf0]  ;;  %v1015_v56 = vrot.slane %v7230_v0, 1  ;;  %v5520_v0 = vld [vmem:[%s7195_s5 + $0x140] sm:$0xff] }
 0x148   : > { %v4580_v20 = vor.u32 %v5423_v17, %v4577_v30  ;;  %2894 = vmatpush.bf16.msra.mxu1 %v5520_v0 }
 0x149   : > { %v6840_v52 = vpack.c.b16 %v799_v57, %v798_v48 }
 0x14b   : > { %2142 = vmatmul.bf16.gmra.mxu2 %v4572_v54  ;;  %v2016_v15 = vpop.f32.mrf.mxu1  ;;  %v7209_v54 = vshrl.u32 %v6840_v52, 16  ;;  %v7210_v53 = vshll.u32 %v6840_v52, 16 }
 0x14c   : > { %v2735_v7 = vpop.f32.mrf.mxu3  ;;  %v6834_v27 = vpop.f32.mrf.mxu0  ;;  %v2017_v30 = vadd.f32 %v2016_v15, %v6607_v16 }
 0x14d   : > { %v6837_v32 = vadd.f32 %v6793_v44, %v2735_v7  ;;  %v7231_v44 = vshrl.u32 %v6515_v3, 16  ;;  %v935_v37 = vrot.slane %v7209_v54, 7  ;;  %v5425_v7 = vld [vmem:[#allocation2 + $0x148] sm:$0xf0] }
 0x14e   : > { %v2103_v21 = vpop.f32.mrf.mxu2 }
 0x14f   : > { %v6842_v6 = vadd.f32 %v2103_v21, %v2015_v55  ;;  %2871 = vmatmul.bf16.gmra.mxu0 %v4916_v39  ;;  %v1016_v9 = vor.u32 %v1015_v56, %v7231_v44  ;;  %v4583_v39 = vld [vmem:[#allocation2 + $0x140] sm:$0xf]  ;;  %v938_v3 = vor.u32 %v7210_v53, %v935_v37 }
 0x150   : > { %v5592_v56 = vld [vmem:[%s7195_s5 + $0x200] sm:$0xff] }
 0x151   : > { %7229 = vst [vmem:[#allocation10_spill] sm:$0xff] %v6842_v6  ;;  %2777 = vmatmul.bf16.gmra.mxu3 %v4900_v4  ;;  %v1057_v19 = vsel %vm6498_vm5, %v1016_v9, 0  ;;  %v983_v9 = vsel %vm5962_vm2, 0, %v938_v3  ;;  %3771 = vmatpush.bf16.msra.mxu0 %v5592_v56  ;;  %v4911_v6 = vld [vmem:[#allocation2 + $0x150] sm:$0xf] }
 0x152   : > { %v1157_v4 = vunpack.c.l.b16 %v1057_v19  ;;  %v1159_v21 = vunpack.c.h.b16 %v1057_v19  ;;  %v1160_v16 = vunpack.c.l.b16 %v983_v9  ;;  %v1162_v15 = vunpack.c.h.b16 %v983_v9  ;;  %v5498_v19 = vld [vmem:[#allocation2 + $0x16c] sm:$0xf]  ;;  %v5428_v9 = vld [vmem:[#allocation2 + $0x160] sm:$0xf0] }
 0x153   : > { %v2019_v11 = vpop.f32.mrf.mxu1 }
 0x154   : > { %v2738_v24 = vpop.f32.mrf.mxu3  ;;  %v6860_v55 = vpop.f32.mrf.mxu0  ;;  %v1229_v49 = vpack.c.b16 %v1157_v4, %v1157_v4  ;;  %v1231_v44 = vpack.c.b16 %v1159_v21, %v1159_v21  ;;  %v1232_v54 = vpack.c.b16 %v798_v48, %v1160_v16  ;;  %v1234_v53 = vpack.c.b16 %v799_v57, %v1162_v15  ;;  %v5426_v48 = vld [vmem:[#allocation2 + $0x154] sm:$0xf]  ;;  %v4589_v57 = vld [vmem:[#allocation2 + $0x15c] sm:$0xf0] }
 0x155   : > { %v6865_v17 = vadd.f32 %v6807_v63, %v2738_v24  ;;  %v4584_v63 = vor.u32 %v5425_v7, %v4583_v39  ;;  %v4925_v24 = vld [vmem:[#allocation2 + $0x174] sm:$0xf0]  ;;  %v2020_v7 = vadd.f32 %v2019_v11, %v6619_v10 }
 0x156   : > { %v2105_v31 = vpop.f32.mrf.mxu2  ;;  %2058 = vmatmul.bf16.gmra.mxu1 %v4580_v20  ;;  %1373 = vst [vmem:[#allocation2 + $0x170] sm:$0xf] %v1229_v49  ;;  %v5496_v20 = vld [vmem:[#allocation2 + $0x158] sm:$0xf0]  ;;  %v4928_v21 = vor.u32 %v5498_v19, %v4925_v24  ;;  %v4923_v19 = vld [vmem:[#allocation2 + $0x168] sm:$0xf] }
 0x157   : > { %v6876_v37 = vadd.f32 %v2105_v31, %v2017_v30  ;;  %1375 = vst [vmem:[#allocation2 + $0x17c] sm:$0xf] %v1231_v44  ;;  %v4912_v30 = vor.u32 %v5496_v20, %v4911_v6  ;;  %v4592_v31 = vor.u32 %v5426_v48, %v4589_v57  ;;  %v5499_v24 = vld [vmem:[#allocation2 + $0x170] sm:$0xf0]  ;;  %v5429_v48 = vld [vmem:[#allocation2 + $0x16c] sm:$0xf] }
 0x158   : > { %1376 = vst [vmem:[#allocation2 + $0x180] sm:$0xff] %v1232_v54  ;;  %v4595_v54 = vld [vmem:[#allocation2 + $0x158] sm:$0xf] }
 0x159   : > { %1378 = vst [vmem:[#allocation2 + $0x18c] sm:$0xff] %v1234_v53  ;;  %v4596_v11 = vor.u32 %v5428_v9, %v4595_v54  ;;  %v4601_v57 = vld [vmem:[#allocation2 + $0x174] sm:$0xf0] }
 0x15b   : > { %2147 = vmatmul.bf16.gmra.mxu2 %v4584_v63  ;;  %v2021_v4 = vpop.f32.mrf.mxu1 }
 0x15c   : > { %v2740_v18 = vpop.f32.mrf.mxu3  ;;  %v2837_v3 = vpop.f32.mrf.mxu0 }
 0x15d   : > { %v6879_v39 = vadd.f32 %v6824_v58, %v2740_v18  ;;  %v2022_v58 = vadd.f32 %v2021_v4, %v6645_v2  ;;  %v4924_v2 = vor.u32 %v5499_v24, %v4923_v19  ;;  %v4607_v9 = vld [vmem:[#allocation2 + $0x170] sm:$0xf]  ;;  %v5530_v19 = vld [vmem:[#allocation2 + $0x40] sm:$0xf0] }
 0x15e   : > { %v2108_v0 = vpop.f32.mrf.mxu2 }
 0x15f   : > { %v6882_v56 = vadd.f32 %v2108_v0, %v2020_v7  ;;  %2876 = vmatmul.bf16.gmra.mxu0 %v4928_v21  ;;  %v5501_v16 = vld [vmem:[#allocation2 + $0x184] sm:$0xf]  ;;  %v4935_v24 = vld [vmem:[#allocation2 + $0x180] sm:$0xf] }
 0x160   : > { %v4937_v15 = vld [vmem:[#allocation2 + $0x18c] sm:$0xf0] }
 0x161   : > { %2782 = vmatmul.bf16.gmra.mxu3 %v4912_v30  ;;  %v4940_v21 = vor.u32 %v5501_v16, %v4937_v15  ;;  %v5099_v15 = vld [vmem:[#allocation2 + $0x38] sm:$0xf] }
 0x163   : > { %v2024_v49 = vpop.f32.mrf.mxu1 }
 0x164   : > { %v2743_v44 = vpop.f32.mrf.mxu3  ;;  %v2839_v63 = vpop.f32.mrf.mxu0 }
 0x165   : > { %v6885_v53 = vadd.f32 %v6834_v27, %v2743_v44  ;;  %v2025_v27 = vadd.f32 %v2024_v49, %v6653_v38 }
 0x166   : > { %v2110_v10 = vpop.f32.mrf.mxu2  ;;  %2063 = vmatmul.bf16.gmra.mxu1 %v4592_v31  ;;  %v4604_v31 = vor.u32 %v5429_v48, %v4601_v57 }
 0x167   : > { %v6888_v6 = vadd.f32 %v2110_v10, %v2022_v58  ;;  %v5431_v58 = vld [vmem:[#allocation2 + $0x178] sm:$0xf0] }
 0x168   : > { %v4608_v49 = vor.u32 %v5431_v58, %v4607_v9 }
 0x16b   : > { %2152 = vmatmul.bf16.gmra.mxu2 %v4596_v11  ;;  %v2026_v20 = vpop.f32.mrf.mxu1 }
 0x16c   : > { %v2745_v18 = vpop.f32.mrf.mxu3  ;;  %v2842_v7 = vpop.f32.mrf.mxu0 }
 0x16d   : > { %v6891_v30 = vadd.f32 %v6860_v55, %v2745_v18  ;;  %v2027_v55 = vadd.f32 %v2026_v20, %v6667_v12 }
 0x16e   : > { %v2113_v4 = vpop.f32.mrf.mxu2 }
 0x16f   : > { %v6894_v0 = vadd.f32 %v2113_v4, %v2025_v27  ;;  %2881 = vmatmul.bf16.gmra.mxu0 %v4940_v21  ;;  %v5502_v21 = vld [vmem:[#allocation2 + $0x188] sm:$0xf0]  ;;  %v5100_v27 = vor.u32 %v5530_v19, %v5099_v15 }
 0x170   : > { %v4936_v57 = vor.u32 %v5502_v21, %v4935_v24  ;;  %v5111_v24 = vld [vmem:[#allocation2 + $0x50] sm:$0xf]  ;;  %v5533_v21 = vld [vmem:[#allocation2 + $0x58] sm:$0xf0] }
 0x171   : > { %2787 = vmatmul.bf16.gmra.mxu3 %v4924_v2 }
 0x173   : > { %v2029_v44 = vpop.f32.mrf.mxu1 }
 0x174   : > { %v2748_v54 = vpop.f32.mrf.mxu3  ;;  %v2844_v10 = vpop.f32.mrf.mxu0 }
 0x175   : > { %v6896_v11 = vadd.f32 %v2837_v3, %v2748_v54  ;;  %v2030_v3 = vadd.f32 %v2029_v44, %v6687_v60  ;;  %v5458_v54 = vld [vmem:[#allocation2 + $0x28] sm:$0xf0] }
 0x176   : > { %v2115_v16 = vpop.f32.mrf.mxu2  ;;  %2068 = vmatmul.bf16.gmra.mxu1 %v4604_v31  ;;  %v4763_v31 = vld [vmem:[#allocation2 + $0x20] sm:$0xf] }
 0x177   : > { %v6899_v38 = vadd.f32 %v2115_v16, %v2027_v55  ;;  %v4764_v9 = vor.u32 %v5458_v54, %v4763_v31  ;;  %v5091_v16 = vld [vmem:[#allocation2 + $0x30] sm:$0xf] }
 0x17b   : > { %2157 = vmatmul.bf16.gmra.mxu2 %v4608_v49  ;;  %v2031_v18 = vpop.f32.mrf.mxu1  ;;  %v5529_v49 = vld [vmem:[#allocation2 + $0x38] sm:$0xf0] }
 0x17c   : > { %v2750_v2 = vpop.f32.mrf.mxu3  ;;  %v2847_v4 = vpop.f32.mrf.mxu0  ;;  %v5092_v44 = vor.u32 %v5529_v49, %v5091_v16 }
 0x17d   : > { %v6901_v48 = vadd.f32 %v2839_v63, %v2750_v2  ;;  %v2032_v63 = vadd.f32 %v2031_v18, %v6701_v62 }
 0x17e   : > { %v2118_v12 = vpop.f32.mrf.mxu2 }
 0x17f   : > { %v6904_v20 = vadd.f32 %v2118_v12, %v2030_v3  ;;  %3772 = vmatmul.bf16.vlgmr.msra.gmra.mxu0 %v5100_v27  ;;  %v5528_v3 = vld [vmem:[#allocation2 + $0x34] sm:$0xf]  ;;  %v5093_v27 = vld [vmem:[#allocation2 + $0x3c] sm:$0xf0]  ;;  %v5112_v12 = vor.u32 %v5533_v21, %v5111_v24 }
 0x181   : > { %7232 = vst [vmem:[#allocation11_spill] sm:$0xff] %v6904_v20  ;;  %2792 = vmatmul.bf16.gmra.mxu3 %v4936_v57 }
 0x183   : > { %v2034_v58 = vpop.f32.mrf.mxu1 }
 0x184   : > { %v2753_v55 = vpop.f32.mrf.mxu3  ;;  %v2849_v15 = vpop.f32.mrf.mxu0 }
 0x185   : > { %v6906_v19 = vadd.f32 %v2842_v7, %v2753_v55  ;;  %v2035_v7 = vadd.f32 %v2034_v58, %v6611_v28  ;;  %v5096_v55 = vor.u32 %v5528_v3, %v5093_v27  ;;  %v5123_v3 = vld [vmem:[#allocation2 + $0x68] sm:$0xf]  ;;  %v5536_v27 = vld [vmem:[#allocation2 + $0x70] sm:$0xf0] }
 0x186   : > { %v2120_v2 = vpop.f32.mrf.mxu2  ;;  %2895 = vmatmul.bf16.vlgmr.msra.gmra.mxu1 %v4764_v9  ;;  %v4775_v9 = vld [vmem:[#allocation2 + $0x38] sm:$0xf] }
 0x187   : > { %v6909_v60 = vadd.f32 %v2120_v2, %v2032_v63  ;;  %v5461_v63 = vld [vmem:[#allocation2 + $0x40] sm:$0xf0] }
 0x188   : > { %v4776_v16 = vor.u32 %v5461_v63, %v4775_v9 }
 0x189   : > { %7233 = vst [vmem:[#allocation12_spill] sm:$0xff] %v6909_v60  ;;  %v5532_v60 = vld [vmem:[#allocation2 + $0x50] sm:$0xf0] }
 0x18b   : > { %3594 = vmatmul.bf16.vlgmr.msra.gmra.mxu2 %v5092_v44  ;;  %v2036_v57 = vpop.f32.mrf.mxu1  ;;  %v5103_v44 = vld [vmem:[#allocation2 + $0x48] sm:$0xf] }
 0x18c   : > { %v2755_v31 = vpop.f32.mrf.mxu3  ;;  %v2852_v54 = vpop.f32.mrf.mxu0  ;;  %v5104_v58 = vor.u32 %v5532_v60, %v5103_v44 }
 0x18d   : > { %v6911_v20 = vadd.f32 %v2844_v10, %v2755_v31  ;;  %v2037_v10 = vadd.f32 %v2036_v57, %v6621_v26 }
 0x18e   : > { %v2123_v62 = vpop.f32.mrf.mxu2 }
 0x18f   : > { %v6914_v18 = vadd.f32 %v2123_v62, %v2035_v7  ;;  %3777 = vmatmul.bf16.gmra.mxu0 %v5112_v12  ;;  %v5531_v7 = vld [vmem:[#allocation2 + $0x4c] sm:$0xf]  ;;  %v5105_v12 = vld [vmem:[#allocation2 + $0x54] sm:$0xf0]  ;;  %v5124_v62 = vor.u32 %v5536_v27, %v5123_v3 }
 0x191   : > { %7234 = vst [vmem:[#allocation13_spill] sm:$0xff] %v6914_v18  ;;  %3683 = vmatmul.bf16.vlgmr.msra.gmra.mxu3 %v5096_v55 }
 0x193   : > { %v2039_v49 = vpop.f32.mrf.mxu1 }
 0x194   : > { %v2758_v2 = vpop.f32.mrf.mxu3  ;;  %v2854_v24 = vpop.f32.mrf.mxu0 }
 0x195   : > { %v6916_v21 = vadd.f32 %v2847_v4, %v2758_v2  ;;  %v2040_v4 = vadd.f32 %v2039_v49, %v6647_v41  ;;  %v5108_v2 = vor.u32 %v5531_v7, %v5105_v12  ;;  %v5135_v7 = vld [vmem:[#allocation2 + $0x80] sm:$0xf]  ;;  %v5539_v12 = vld [vmem:[#allocation2 + $0x88] sm:$0xf0] }
 0x196   : > { %v2125_v31 = vpop.f32.mrf.mxu2  ;;  %2900 = vmatmul.bf16.gmra.mxu1 %v4776_v16  ;;  %v4787_v16 = vld [vmem:[#allocation2 + $0x50] sm:$0xf] }
 0x197   : > { %v6919_v28 = vadd.f32 %v2125_v31, %v2037_v10  ;;  %v5464_v10 = vld [vmem:[#allocation2 + $0x58] sm:$0xf0] }
 0x198   : > { %v4788_v60 = vor.u32 %v5464_v10, %v4787_v16 }
 0x199   : > { %7235 = vst [vmem:[#allocation14_spill] sm:$0xff] %v6919_v28  ;;  %v5535_v28 = vld [vmem:[#allocation2 + $0x68] sm:$0xf0] }
 0x19b   : > { %3599 = vmatmul.bf16.gmra.mxu2 %v5104_v58  ;;  %v2041_v55 = vpop.f32.mrf.mxu1  ;;  %v5115_v58 = vld [vmem:[#allocation2 + $0x60] sm:$0xf] }
 0x19c   : > { %v2760_v9 = vpop.f32.mrf.mxu3  ;;  %v2857_v63 = vpop.f32.mrf.mxu0  ;;  %v5116_v49 = vor.u32 %v5535_v28, %v5115_v58 }
 0x19d   : > { %v6921_v18 = vadd.f32 %v2849_v15, %v2760_v9  ;;  %v2042_v15 = vadd.f32 %v2041_v55, %v6657_v51 }
 0x19e   : > { %v2128_v26 = vpop.f32.mrf.mxu2 }
 0x19f   : > { %v6924_v57 = vadd.f32 %v2128_v26, %v2040_v4  ;;  %3782 = vmatmul.bf16.gmra.mxu0 %v5124_v62  ;;  %v5534_v4 = vld [vmem:[#allocation2 + $0x64] sm:$0xf]  ;;  %v5117_v62 = vld [vmem:[#allocation2 + $0x6c] sm:$0xf0]  ;;  %v5136_v26 = vor.u32 %v5539_v12, %v5135_v7 }
 0x1a1   : > { %7236 = vst [vmem:[#allocation15_spill] sm:$0xff] %v6924_v57  ;;  %3688 = vmatmul.bf16.gmra.mxu3 %v5108_v2 }
 0x1a3   : > { %v2044_v44 = vpop.f32.mrf.mxu1 }
 0x1a4   : > { %v2763_v31 = vpop.f32.mrf.mxu3  ;;  %v2859_v3 = vpop.f32.mrf.mxu0 }
 0x1a5   : > { %v6926_v27 = vadd.f32 %v2852_v54, %v2763_v31  ;;  %v2045_v54 = vadd.f32 %v2044_v44, %v6669_v45  ;;  %v5120_v31 = vor.u32 %v5534_v4, %v5117_v62  ;;  %v5147_v4 = vld [vmem:[#allocation2 + $0x98] sm:$0xf]  ;;  %v5542_v62 = vld [vmem:[#allocation2 + $0xa0] sm:$0xf0] }
 0x1a6   : > { %v2130_v9 = vpop.f32.mrf.mxu2  ;;  %2905 = vmatmul.bf16.gmra.mxu1 %v4788_v60  ;;  %v4799_v60 = vld [vmem:[#allocation2 + $0x68] sm:$0xf] }
 0x1a7   : > { %v6929_v41 = vadd.f32 %v2130_v9, %v2042_v15  ;;  %v5467_v15 = vld [vmem:[#allocation2 + $0x70] sm:$0xf0] }
 0x1a8   : > { %v4800_v28 = vor.u32 %v5467_v15, %v4799_v60 }
 0x1a9   : > { %7237 = vst [vmem:[#allocation16_spill] sm:$0xff] %v6929_v41  ;;  %v5538_v41 = vld [vmem:[#allocation2 + $0x80] sm:$0xf0] }
 0x1ab   : > { %3604 = vmatmul.bf16.gmra.mxu2 %v5116_v49  ;;  %v2046_v2 = vpop.f32.mrf.mxu1  ;;  %v5127_v49 = vld [vmem:[#allocation2 + $0x78] sm:$0xf] }
 0x1ac   : > { %v2765_v16 = vpop.f32.mrf.mxu3  ;;  %v2862_v10 = vpop.f32.mrf.mxu0  ;;  %v5128_v44 = vor.u32 %v5538_v41, %v5127_v49 }
 0x1ad   : > { %v6931_v57 = vadd.f32 %v2854_v24, %v2765_v16  ;;  %v2047_v24 = vadd.f32 %v2046_v2, %v6689_v40 }
 0x1ae   : > { %v2133_v51 = vpop.f32.mrf.mxu2 }
 0x1af   : > { %v6934_v55 = vadd.f32 %v2133_v51, %v2045_v54  ;;  %3787 = vmatmul.bf16.gmra.mxu0 %v5136_v26  ;;  %v5537_v54 = vld [vmem:[#allocation2 + $0x7c] sm:$0xf]  ;;  %v5129_v26 = vld [vmem:[#allocation2 + $0x84] sm:$0xf0]  ;;  %v5148_v51 = vor.u32 %v5542_v62, %v5147_v4 }
 0x1b1   : > { %7238 = vst [vmem:[#allocation17_spill] sm:$0xff] %v6934_v55  ;;  %3693 = vmatmul.bf16.gmra.mxu3 %v5120_v31 }
 0x1b3   : > { %v2049_v58 = vpop.f32.mrf.mxu1 }
 0x1b4   : > { %v2768_v9 = vpop.f32.mrf.mxu3  ;;  %v2864_v7 = vpop.f32.mrf.mxu0 }
 0x1b5   : > { %v6936_v12 = vadd.f32 %v2857_v63, %v2768_v9  ;;  %v2050_v63 = vadd.f32 %v2049_v58, %v6703_v42  ;;  %v5132_v9 = vor.u32 %v5537_v54, %v5129_v26  ;;  %v5159_v54 = vld [vmem:[#allocation2 + $0xb0] sm:$0xf]  ;;  %v5545_v26 = vld [vmem:[#allocation2 + $0xb8] sm:$0xf0] }
 0x1b6   : > { %v2135_v16 = vpop.f32.mrf.mxu2  ;;  %2910 = vmatmul.bf16.gmra.mxu1 %v4800_v28  ;;  %v4811_v28 = vld [vmem:[#allocation2 + $0x80] sm:$0xf] }
 0x1b7   : > { %v6939_v45 = vadd.f32 %v2135_v16, %v2047_v24  ;;  %v5470_v24 = vld [vmem:[#allocation2 + $0x88] sm:$0xf0] }
 0x1b8   : > { %v4812_v41 = vor.u32 %v5470_v24, %v4811_v28 }
 0x1b9   : > { %7239 = vst [vmem:[#allocation18_spill] sm:$0xff] %v6939_v45  ;;  %v5541_v45 = vld [vmem:[#allocation2 + $0x98] sm:$0xf0] }
 0x1bb   : > { %3609 = vmatmul.bf16.gmra.mxu2 %v5128_v44  ;;  %v2051_v31 = vpop.f32.mrf.mxu1  ;;  %v5139_v44 = vld [vmem:[#allocation2 + $0x90] sm:$0xf] }
 0x1bc   : > { %v2770_v60 = vpop.f32.mrf.mxu3  ;;  %v2867_v15 = vpop.f32.mrf.mxu0  ;;  %v5140_v58 = vor.u32 %v5541_v45, %v5139_v44 }
 0x1bd   : > { %v6941_v55 = vadd.f32 %v2859_v3, %v2770_v60  ;;  %v2052_v3 = vadd.f32 %v2051_v31, %v6715_v23 }
 0x1be   : > { %v2138_v40 = vpop.f32.mrf.mxu2 }
 0x1bf   : > { %v6944_v2 = vadd.f32 %v2138_v40, %v2050_v63  ;;  %3792 = vmatmul.bf16.gmra.mxu0 %v5148_v51  ;;  %v5540_v63 = vld [vmem:[#allocation2 + $0x94] sm:$0xf]  ;;  %v5141_v51 = vld [vmem:[#allocation2 + $0x9c] sm:$0xf0]  ;;  %v5160_v40 = vor.u32 %v5545_v26, %v5159_v54 }
 0x1c1   : > { %7240 = vst [vmem:[#allocation19_spill] sm:$0xff] %v6944_v2  ;;  %3698 = vmatmul.bf16.gmra.mxu3 %v5132_v9 }
 0x1c3   : > { %v2054_v49 = vpop.f32.mrf.mxu1 }
 0x1c4   : > { %v2773_v16 = vpop.f32.mrf.mxu3  ;;  %v2869_v4 = vpop.f32.mrf.mxu0 }
 0x1c5   : > { %v6946_v62 = vadd.f32 %v2862_v10, %v2773_v16  ;;  %v2055_v10 = vadd.f32 %v2054_v49, %v6617_v33  ;;  %v5144_v16 = vor.u32 %v5540_v63, %v5141_v51  ;;  %v5171_v63 = vld [vmem:[#allocation2 + $0xc8] sm:$0xf]  ;;  %v5548_v51 = vld [vmem:[#allocation2 + $0xd0] sm:$0xf0] }
 0x1c6   : > { %v2140_v60 = vpop.f32.mrf.mxu2  ;;  %2915 = vmatmul.bf16.gmra.mxu1 %v4812_v41  ;;  %v4823_v41 = vld [vmem:[#allocation2 + $0x98] sm:$0xf] }
 0x1c7   : > { %v6949_v42 = vadd.f32 %v2140_v60, %v2052_v3  ;;  %v5473_v3 = vld [vmem:[#allocation2 + $0xa0] sm:$0xf0] }
 0x1c8   : > { %v4824_v45 = vor.u32 %v5473_v3, %v4823_v41 }
 0x1c9   : > { %7241 = vst [vmem:[#allocation20_spill] sm:$0xff] %v6949_v42  ;;  %v5544_v42 = vld [vmem:[#allocation2 + $0xb0] sm:$0xf0] }
 0x1cb   : > { %3614 = vmatmul.bf16.gmra.mxu2 %v5140_v58  ;;  %v2056_v9 = vpop.f32.mrf.mxu1  ;;  %v5151_v58 = vld [vmem:[#allocation2 + $0xa8] sm:$0xf] }
 0x1cc   : > { %v2775_v28 = vpop.f32.mrf.mxu3  ;;  %v2872_v24 = vpop.f32.mrf.mxu0  ;;  %v5152_v49 = vor.u32 %v5544_v42, %v5151_v58 }
 0x1cd   : > { %v6951_v2 = vadd.f32 %v2864_v7, %v2775_v28  ;;  %v2057_v7 = vadd.f32 %v2056_v9, %v6638_v8 }
 0x1ce   : > { %v2143_v23 = vpop.f32.mrf.mxu2 }
 0x1cf   : > { %v6954_v31 = vadd.f32 %v2143_v23, %v2055_v10  ;;  %3797 = vmatmul.bf16.gmra.mxu0 %v5160_v40  ;;  %v5543_v10 = vld [vmem:[#allocation2 + $0xac] sm:$0xf]  ;;  %v5153_v40 = vld [vmem:[#allocation2 + $0xb4] sm:$0xf0]  ;;  %v5172_v23 = vor.u32 %v5548_v51, %v5171_v63 }
 0x1d1   : > { %7242 = vst [vmem:[#allocation21_spill] sm:$0xff] %v6954_v31  ;;  %3703 = vmatmul.bf16.gmra.mxu3 %v5144_v16 }
 0x1d3   : > { %v2059_v44 = vpop.f32.mrf.mxu1 }
 0x1d4   : > { %v2778_v60 = vpop.f32.mrf.mxu3  ;;  %v2874_v54 = vpop.f32.mrf.mxu0 }
 0x1d5   : > { %v6956_v26 = vadd.f32 %v2867_v15, %v2778_v60  ;;  %v2060_v15 = vadd.f32 %v2059_v44, %v6651_v59  ;;  %v5156_v60 = vor.u32 %v5543_v10, %v5153_v40  ;;  %v5183_v10 = vld [vmem:[#allocation2 + $0xe0] sm:$0xf]  ;;  %v5551_v40 = vld [vmem:[#allocation2 + $0xe8] sm:$0xf0] }
 0x1d6   : > { %v2145_v28 = vpop.f32.mrf.mxu2  ;;  %2920 = vmatmul.bf16.gmra.mxu1 %v4824_v45  ;;  %v4835_v45 = vld [vmem:[#allocation2 + $0xb0] sm:$0xf] }
 0x1d7   : > { %v6959_v33 = vadd.f32 %v2145_v28, %v2057_v7  ;;  %v5476_v7 = vld [vmem:[#allocation2 + $0xb8] sm:$0xf0] }
 0x1d8   : > { %v4836_v42 = vor.u32 %v5476_v7, %v4835_v45 }
 0x1d9   : > { %7243 = vst [vmem:[#allocation22_spill] sm:$0xff] %v6959_v33  ;;  %v5547_v33 = vld [vmem:[#allocation2 + $0xc8] sm:$0xf0] }
 0x1db   : > { %3619 = vmatmul.bf16.gmra.mxu2 %v5152_v49  ;;  %v2061_v16 = vpop.f32.mrf.mxu1  ;;  %v5163_v49 = vld [vmem:[#allocation2 + $0xc0] sm:$0xf] }
 0x1dc   : > { %v2780_v41 = vpop.f32.mrf.mxu3  ;;  %v2877_v3 = vpop.f32.mrf.mxu0  ;;  %v5164_v44 = vor.u32 %v5547_v33, %v5163_v49 }
 0x1dd   : > { %v6961_v31 = vadd.f32 %v2869_v4, %v2780_v41  ;;  %v2062_v4 = vadd.f32 %v2061_v16, %v6665_v29 }
 0x1de   : > { %v2148_v8 = vpop.f32.mrf.mxu2 }
 0x1df   : > { %v6964_v9 = vadd.f32 %v2148_v8, %v2060_v15  ;;  %3802 = vmatmul.bf16.gmra.mxu0 %v5172_v23  ;;  %v5546_v15 = vld [vmem:[#allocation2 + $0xc4] sm:$0xf]  ;;  %v5165_v23 = vld [vmem:[#allocation2 + $0xcc] sm:$0xf0]  ;;  %v5184_v8 = vor.u32 %v5551_v40, %v5183_v10 }
 0x1e1   : > { %7244 = vst [vmem:[#allocation23_spill] sm:$0xff] %v6964_v9  ;;  %3708 = vmatmul.bf16.gmra.mxu3 %v5156_v60 }
 0x1e3   : > { %v2064_v58 = vpop.f32.mrf.mxu1 }
 0x1e4   : > { %v2783_v28 = vpop.f32.mrf.mxu3  ;;  %v2879_v63 = vpop.f32.mrf.mxu0 }
 0x1e5   : > { %v6966_v51 = vadd.f32 %v2872_v24, %v2783_v28  ;;  %v2065_v24 = vadd.f32 %v2064_v58, %v6675_v5  ;;  %v5168_v28 = vor.u32 %v5546_v15, %v5165_v23  ;;  %v5195_v15 = vld [vmem:[#allocation2 + $0xf8] sm:$0xf]  ;;  %v5554_v23 = vld [vmem:[#allocation2 + $0x100] sm:$0xf0] }
 0x1e6   : > { %v2150_v41 = vpop.f32.mrf.mxu2  ;;  %2925 = vmatmul.bf16.gmra.mxu1 %v4836_v42  ;;  %v4847_v42 = vld [vmem:[#allocation2 + $0xc8] sm:$0xf] }
 0x1e7   : > { %v6969_v59 = vadd.f32 %v2150_v41, %v2062_v4  ;;  %v5479_v4 = vld [vmem:[#allocation2 + $0xd0] sm:$0xf0] }
 0x1e8   : > { %v4848_v33 = vor.u32 %v5479_v4, %v4847_v42 }
 0x1e9   : > { %7245 = vst [vmem:[#allocation24_spill] sm:$0xff] %v6969_v59  ;;  %v5550_v59 = vld [vmem:[#allocation2 + $0xe0] sm:$0xf0] }
 0x1eb   : > { %3624 = vmatmul.bf16.gmra.mxu2 %v5164_v44  ;;  %v2066_v60 = vpop.f32.mrf.mxu1  ;;  %v5175_v44 = vld [vmem:[#allocation2 + $0xd8] sm:$0xf] }
 0x1ec   : > { %v2785_v45 = vpop.f32.mrf.mxu3  ;;  %v2882_v7 = vpop.f32.mrf.mxu0  ;;  %v5176_v58 = vor.u32 %v5550_v59, %v5175_v44 }
 0x1ed   : > { %v6971_v9 = vadd.f32 %v2874_v54, %v2785_v45  ;;  %v2067_v54 = vadd.f32 %v2066_v60, %v6699_v43 }
 0x1ee   : > { %v2153_v29 = vpop.f32.mrf.mxu2 }
 0x1ef   : > { %v6974_v16 = vadd.f32 %v2153_v29, %v2065_v24  ;;  %3807 = vmatmul.bf16.gmra.mxu0 %v5184_v8  ;;  %v5549_v24 = vld [vmem:[#allocation2 + $0xdc] sm:$0xf]  ;;  %v5177_v8 = vld [vmem:[#allocation2 + $0xe4] sm:$0xf0]  ;;  %v5196_v29 = vor.u32 %v5554_v23, %v5195_v15  ;;  %v5187_v15 = vld [vmem:[#allocation2 + $0xf0] sm:$0xf] }
 0x1f0   : > { %v5553_v23 = vld [vmem:[#allocation2 + $0xf8] sm:$0xf0] }
 0x1f1   : > { %7246 = vst [vmem:[#allocation25_spill] sm:$0xff] %v6974_v16  ;;  %3713 = vmatmul.bf16.gmra.mxu3 %v5168_v28 }
 0x1f3   : > { %v2069_v49 = vpop.f32.mrf.mxu1 }
 0x1f4   : > { %v2788_v41 = vpop.f32.mrf.mxu3  ;;  %v2884_v10 = vpop.f32.mrf.mxu0 }
 0x1f5   : > { %v6976_v40 = vadd.f32 %v2877_v3, %v2788_v41  ;;  %v2070_v3 = vadd.f32 %v2069_v49, %v6711_v14  ;;  %v5180_v41 = vor.u32 %v5549_v24, %v5177_v8 }
 0x1f6   : > { %v2155_v45 = vpop.f32.mrf.mxu2  ;;  %2930 = vmatmul.bf16.gmra.mxu1 %v4848_v33  ;;  %v4859_v33 = vld [vmem:[#allocation2 + $0xe0] sm:$0xf] }
 0x1f7   : > { %7247 = vst [vmem:[#allocation26_spill] sm:$0xff] %v6976_v40  ;;  %v6979_v5 = vadd.f32 %v2155_v45, %v2067_v54  ;;  %v5482_v54 = vld [vmem:[#allocation2 + $0xe8] sm:$0xf0] }
 0x1f8   : > { %v4860_v59 = vor.u32 %v5482_v54, %v4859_v33 }
 0x1f9   : > { %7248 = vst [vmem:[#allocation27_spill] sm:$0xff] %v6979_v5 }
 0x1fb   : > { %3629 = vmatmul.bf16.gmra.mxu2 %v5176_v58  ;;  %v2071_v28 = vpop.f32.mrf.mxu1 }
 0x1fc   : > { %v2790_v42 = vpop.f32.mrf.mxu3  ;;  %v3773_v4 = vpop.f32.mrf.mxu0  ;;  %v2072_v14 = vadd.f32 %v2071_v28, %v6717_v22 }
 0x1fd   : > { %v6981_v16 = vadd.f32 %v2879_v63, %v2790_v42  ;;  %v5207_v42 = vld [vmem:[#allocation2 + $0x110] sm:$0xf] }
 0x1fe   : > { %v2158_v43 = vpop.f32.mrf.mxu2 }
 0x1ff   : > { %7249 = vst [vmem:[#allocation28_spill] sm:$0xff] %v6981_v16  ;;  %v6984_v60 = vadd.f32 %v2158_v43, %v2070_v3  ;;  %3812 = vmatmul.bf16.gmra.mxu0 %v5196_v29  ;;  %v5188_v29 = vor.u32 %v5553_v23, %v5187_v15  ;;  %v5557_v3 = vld [vmem:[#allocation2 + $0x118] sm:$0xf0]  ;;  %v5189_v43 = vld [vmem:[#allocation2 + $0xfc] sm:$0xf0] }
 0x200   : > { %v5208_v33 = vor.u32 %v5557_v3, %v5207_v42  ;;  %v5556_v42 = vld [vmem:[#allocation2 + $0x110] sm:$0xf0]  ;;  %v5558_v16 = vld [vmem:[#allocation2 + $0x124] sm:$0xf] }
 0x201   : > { %7250 = vst [vmem:[#allocation29_spill] sm:$0xff] %v6984_v60  ;;  %3718 = vmatmul.bf16.gmra.mxu3 %v5180_v41  ;;  %v5552_v41 = vld [vmem:[#allocation2 + $0xf4] sm:$0xf] }
 0x202   : > { %v5192_v28 = vor.u32 %v5552_v41, %v5189_v43 }
 0x203   : > { %v2896_v44 = vpop.f32.mrf.mxu1 }
 0x204   : > { %v2793_v45 = vpop.f32.mrf.mxu3  ;;  %v2897_v58 = vadd.f32 %v2896_v44, %v6738_v50  ;;  %v3775_v5 = vpop.f32.mrf.mxu0 }
 0x205   : > { %v6987_v63 = vadd.f32 %v2882_v7, %v2793_v45  ;;  %v4871_v45 = vld [vmem:[#allocation2 + $0xf8] sm:$0xf] }
 0x206   : > { %v2160_v49 = vpop.f32.mrf.mxu2  ;;  %v3008_v24 = vadd.f32 %v2897_v58, %v6722_v25  ;;  %2935 = vmatmul.bf16.gmra.mxu1 %v4860_v59  ;;  %v5485_v58 = vld [vmem:[#allocation2 + $0x100] sm:$0xf0] }
 0x207   : > { %7251 = vst [vmem:[#allocation30_spill] sm:$0xff] %v6987_v63  ;;  %v6991_v8 = vadd.f32 %v2160_v49, %v2072_v14  ;;  %v4872_v15 = vor.u32 %v5485_v58, %v4871_v45 }
 0x209   : > { %7252 = vst [vmem:[#allocation31_spill] sm:$0xff] %v6991_v8 }
 0x20b   : > { %3634 = vmatmul.bf16.gmra.mxu2 %v5188_v29  ;;  %v2898_v50 = vpop.f32.mrf.mxu1  ;;  %v5199_v29 = vld [vmem:[#allocation2 + $0x108] sm:$0xf] }
 0x20c   : > { %v2795_v54 = vpop.f32.mrf.mxu3  ;;  %v2899_v7 = vadd.f32 %v2898_v50, %v6752_v46  ;;  %v6994_v44 = vpop.f32.mrf.mxu0  ;;  %v5219_v50 = vld [vmem:[#allocation2 + $0x128] sm:$0xf] }
 0x20d   : > { %v6996_v22 = vadd.f32 %v2884_v10, %v2795_v54  ;;  %v5560_v54 = vld [vmem:[#allocation2 + $0x130] sm:$0xf0] }
 0x20e   : > { %v3595_v25 = vpop.f32.mrf.mxu2  ;;  %v3009_v59 = vadd.f32 %v2899_v7, %v6747_v35  ;;  %v5200_v35 = vor.u32 %v5556_v42, %v5199_v29  ;;  %v7006_v7 = vld [vmem:[%s7196_s6] ss:$0 sm:$0xff]  ;;  %v5220_v58 = vor.u32 %v5560_v54, %v5219_v50 }
 0x20f   : > { %7253 = vst [vmem:[#allocation32_spill] sm:$0xff] %v6996_v22  ;;  %3817 = vmatmul.bf16.gmra.mxu0 %v5208_v33  ;;  %v5563_v22 = vld [vmem:[#allocation2 + $0x148] sm:$0xf0] }
 0x211   : > { %3723 = vmatmul.bf16.gmra.mxu3 %v5192_v28  ;;  %v5201_v28 = vld [vmem:[#allocation2 + $0x114] sm:$0xf0] }
 0x213   : > { %v2901_v23 = vpop.f32.mrf.mxu1 }
 0x214   : > { %v3684_v14 = vpop.f32.mrf.mxu3  ;;  %v2902_v49 = vadd.f32 %v2901_v23, %v6766_v47  ;;  %v7000_v46 = vpop.f32.mrf.mxu0  ;;  %v5555_v47 = vld [vmem:[#allocation2 + $0x10c] sm:$0xf] }
 0x215   : > { %v3685_v3 = vadd.f32 %v3684_v14, %v3595_v25 }
 0x216   : > { %v3597_v10 = vpop.f32.mrf.mxu2  ;;  %v3010_v41 = vadd.f32 %v2902_v49, %v6755_v13  ;;  %2940 = vmatmul.bf16.gmra.mxu1 %v4872_v15  ;;  %v7254_v49 = vld [vmem:[#allocation4_spill] sm:$0xff] }
 0x217   : > { %v3774_v43 = vadd.f32 %v3773_v4, %v3685_v3  ;;  %v4883_v3 = vld [vmem:[#allocation2 + $0x110] sm:$0xf] }
 0x219   : > { %v3885_v33 = vadd.f32 %v3774_v43, %v3008_v24  ;;  %v5204_v24 = vor.u32 %v5555_v47, %v5201_v28  ;;  %v5488_v43 = vld [vmem:[#allocation2 + $0x118] sm:$0xf0]  ;;  %v5211_v47 = vld [vmem:[#allocation2 + $0x120] sm:$0xf]  ;;  %v5559_v28 = vld [vmem:[#allocation2 + $0x128] sm:$0xf0] }
 0x21a   : > { %v4884_v50 = vor.u32 %v5488_v43, %v4883_v3  ;;  %v5212_v3 = vor.u32 %v5559_v28, %v5211_v47  ;;  %v5231_v43 = vld [vmem:[#allocation2 + $0x140] sm:$0xf] }
 0x21b   : > { %3639 = vmatmul.bf16.gmra.mxu2 %v5200_v35  ;;  %v2903_v45 = vpop.f32.mrf.mxu1  ;;  %v3985_v4 = vadd.f32 %v7006_v7, %v3885_v33  ;;  %v7255_v33 = vld [vmem:[#allocation6_spill] sm:$0xff] }
 0x21c   : > { %v3686_v25 = vpop.f32.mrf.mxu3  ;;  %v2904_v23 = vadd.f32 %v2903_v45, %v6775_v34  ;;  %v7009_v13 = vpop.f32.mrf.mxu0 }
 0x21d   : > { %v3687_v15 = vadd.f32 %v3686_v25, %v3597_v10  ;;  %v4017_v35 = vpack.c.bf16 %v3985_v4, %v3985_v4 }
 0x21e   : > { %v3600_v14 = vpop.f32.mrf.mxu2  ;;  %v3011_v29 = vadd.f32 %v2904_v23, %v7254_v49 }
 0x21f   : > { %v3776_v42 = vadd.f32 %v3775_v5, %v3687_v15  ;;  %3822 = vmatmul.bf16.gmra.mxu0 %v5220_v58  ;;  %v7256_v15 = vld [vmem:[#allocation5_spill] sm:$0xff] }
 0x221   : > { %v3886_v8 = vadd.f32 %v3776_v42, %v3009_v59  ;;  %3728 = vmatmul.bf16.gmra.mxu3 %v5204_v24  ;;  %v4081_v59 = vunpack.c.l.bf16 %v4017_v35  ;;  %v5213_v35 = vld [vmem:[#allocation2 + $0x12c] sm:$0xf0] }
 0x222   : > { %v5216_v28 = vor.u32 %v5558_v16, %v5213_v35 }
 0x223   : > { %v3986_v34 = vadd.f32 %v7006_v7, %v3886_v8  ;;  %v2906_v54 = vpop.f32.mrf.mxu1 }
 0x224   : > { %v3689_v10 = vpop.f32.mrf.mxu3  ;;  %v2907_v5 = vadd.f32 %v2906_v54, %v7255_v33  ;;  %v7022_v45 = vpop.f32.mrf.mxu0  ;;  %v4150_v54 = vmul.f32 %v4081_v59, %v4081_v59 }
 0x225   : > { %v4018_v58 = vpack.c.bf16 %v3986_v34, %v3986_v34  ;;  %v5667_v25 = vpack.c.bf16 %v3986_v34, %v3985_v4  ;;  %v3690_v23 = vadd.f32 %v3689_v10, %v3600_v14  ;;  %v5232_v34 = vor.u32 %v5563_v22, %v5231_v43  ;;  %v7257_v10 = vld [vmem:[#allocation8_spill] sm:$0xff] }
 0x226   : > { %v3602_v8 = vpop.f32.mrf.mxu2  ;;  %v3012_v24 = vadd.f32 %v2907_v5, %v7256_v15  ;;  %2945 = vmatmul.bf16.gmra.mxu1 %v4884_v50 }
 0x227   : > { %5668 = vst [vmem:[%s7019_s22] sm:$0xff] %v5667_v25   ;;  %v4082_v49 = vunpack.c.l.bf16 %v4018_v58  ;;  %v3779_v42 = vadd.f32 %v6994_v44, %v3690_v23 }
 0x229   : > { %v4113_v33 = vadd.f32 %v4082_v49, %v4081_v59  ;;  %v4151_v60 = vmul.f32 %v4082_v49, %v4082_v49  ;;  %v3887_v63 = vadd.f32 %v3779_v42, %v3010_v41  ;;  %v7258_v59 = vld [vmem:[#allocation7_spill] sm:$0xff]  ;;  %v5491_v49 = vld [vmem:[#allocation2 + $0x130] sm:$0xf0] }
 0x22b   : > { %v4182_v40 = vadd.f32 %v4151_v60, %v4150_v54  ;;  %v3987_v4 = vadd.f32 %v7006_v7, %v3887_v63  ;;  %3644 = vmatmul.bf16.gmra.mxu2 %v5212_v3  ;;  %v2908_v14 = vpop.f32.mrf.mxu1  ;;  %v4895_v60 = vld [vmem:[#allocation2 + $0x128] sm:$0xf] }
 0x22c   : > { %v3691_v50 = vpop.f32.mrf.mxu3  ;;  %v2909_v5 = vadd.f32 %v2908_v14, %v7257_v10  ;;  %v7029_v58 = vpop.f32.mrf.mxu0  ;;  %v4896_v3 = vor.u32 %v5491_v49, %v4895_v60  ;;  %v5223_v14 = vld [vmem:[#allocation2 + $0x138] sm:$0xf]  ;;  %v5561_v49 = vld [vmem:[#allocation2 + $0x13c] sm:$0xf] }
 0x22d   : > { %v4019_v44 = vpack.c.bf16 %v3987_v4, %v3987_v4  ;;  %v3692_v47 = vadd.f32 %v3691_v50, %v3602_v8  ;;  %v5562_v50 = vld [vmem:[#allocation2 + $0x140] sm:$0xf0] }
 0x22e   : > { %v3605_v25 = vpop.f32.mrf.mxu2  ;;  %v3013_v23 = vadd.f32 %v2909_v5, %v7258_v59  ;;  %v5243_v59 = vld [vmem:[#allocation2 + $0x158] sm:$0xf] }
 0x22f   : > { %v4083_v41 = vunpack.c.l.bf16 %v4019_v44  ;;  %v3781_v15 = vadd.f32 %v7000_v46, %v3692_v47  ;;  %3827 = vmatmul.bf16.gmra.mxu0 %v5232_v34  ;;  %v7259_v44 = vld [vmem:[#allocation9_spill] sm:$0xff] }
 0x231   : > { %v4114_v63 = vadd.f32 %v4113_v33, %v4083_v41  ;;  %v4152_v42 = vmul.f32 %v4083_v41, %v4083_v41  ;;  %v3888_v22 = vadd.f32 %v3781_v15, %v3011_v29  ;;  %3733 = vmatmul.bf16.gmra.mxu3 %v5216_v28  ;;  %v5224_v28 = vor.u32 %v5562_v50, %v5223_v14  ;;  %v5566_v41 = vld [vmem:[#allocation2 + $0x160] sm:$0xf0] }
 0x233   : > { %v4183_v43 = vadd.f32 %v4182_v40, %v4152_v42  ;;  %v3988_v54 = vadd.f32 %v7006_v7, %v3888_v22  ;;  %v2911_v8 = vpop.f32.mrf.mxu1  ;;  %v5225_v42 = vld [vmem:[#allocation2 + $0x144] sm:$0xf0] }
 0x234   : > { %v3694_v16 = vpop.f32.mrf.mxu3  ;;  %v2912_v35 = vadd.f32 %v2911_v8, %v6830_v61  ;;  %v7035_v10 = vpop.f32.mrf.mxu0  ;;  %v5228_v14 = vor.u32 %v5561_v49, %v5225_v42  ;;  %v5235_v49 = vld [vmem:[#allocation2 + $0x150] sm:$0xf]  ;;  %v5565_v42 = vld [vmem:[#allocation2 + $0x158] sm:$0xf0] }
 0x235   : > { %v4020_v46 = vpack.c.bf16 %v3988_v54, %v3988_v54  ;;  %v5672_v5 = vpack.c.bf16 %v3988_v54, %v3987_v4  ;;  %v3695_v34 = vadd.f32 %v3694_v16, %v3605_v25  ;;  %v5244_v54 = vor.u32 %v5566_v41, %v5243_v59 }
 0x236   : > { %v3607_v33 = vpop.f32.mrf.mxu2  ;;  %v7038_v29 = vadd.f32 %v2912_v35, %v7259_v44  ;;  %2950 = vmatmul.bf16.gmra.mxu1 %v4896_v3 }
 0x237   : > { %5759 = vst [vmem:[%s7019_s22 + $0x8] sm:$0xff] %v5672_v5   ;;  %v4084_v40 = vunpack.c.l.bf16 %v4020_v46  ;;  %v3784_v47 = vadd.f32 %v7009_v13, %v3695_v34  ;;  %v4907_v46 = vld [vmem:[#allocation2 + $0x140] sm:$0xf]  ;;  %v5494_v5 = vld [vmem:[#allocation2 + $0x148] sm:$0xf0]  ;;  %v7260_v34 = vshll.u32 %v6840_v52, 16 }
 0x239   : > { %v4115_v61 = vadd.f32 %v4114_v63, %v4084_v40  ;;  %v4153_v15 = vmul.f32 %v4084_v40, %v4084_v40  ;;  %v3889_v60 = vadd.f32 %v3784_v47, %v3012_v24  ;;  %v1017_v44 = vrot.slane %v7260_v34, 1 }
 0x23b   : > { %v4184_v22 = vadd.f32 %v4183_v43, %v4153_v15  ;;  %v3989_v4 = vadd.f32 %v7006_v7, %v3889_v60  ;;  %3649 = vmatmul.bf16.gmra.mxu2 %v5224_v28  ;;  %v2913_v25 = vpop.f32.mrf.mxu1  ;;  %v4908_v28 = vor.u32 %v5494_v5, %v4907_v46  ;;  %v5255_v46 = vld [vmem:[#allocation2 + $0x170] sm:$0xf]  ;;  %v5569_v5 = vld [vmem:[#allocation2 + $0x178] sm:$0xf0] }
 0x23c   : > { %v3696_v8 = vpop.f32.mrf.mxu3  ;;  %v2914_v3 = vadd.f32 %v2913_v25, %v6837_v32  ;;  %v7044_v16 = vpop.f32.mrf.mxu0 }
 0x23d   : > { %v4021_v13 = vpack.c.bf16 %v3989_v4, %v3989_v4  ;;  %v3697_v35 = vadd.f32 %v3696_v8, %v3607_v33  ;;  %v7261_v33 = vshrl.u32 %v6840_v52, 16 }
 0x23e   : > { %v3610_v50 = vpop.f32.mrf.mxu2  ;;  %v7047_v63 = vadd.f32 %v2914_v3, %v6832_v1 }
 0x23f   : > { %v4085_v24 = vunpack.c.l.bf16 %v4021_v13  ;;  %v3786_v43 = vadd.f32 %v7022_v45, %v3697_v35  ;;  %3832 = vmatmul.bf16.gmra.mxu0 %v5244_v54  ;;  %v1018_v59 = vor.u32 %v1017_v44, %v7261_v33 }
 0x241   : > { %v4116_v40 = vadd.f32 %v4115_v61, %v4085_v24  ;;  %v4154_v32 = vmul.f32 %v4085_v24, %v4085_v24  ;;  %v3890_v47 = vadd.f32 %v3786_v43, %v3013_v23  ;;  %3738 = vmatmul.bf16.gmra.mxu3 %v5228_v14  ;;  %v1058_v23 = vsel %vm6498_vm5, %v1018_v59, 0 }
 0x242   : > { %v1161_v52 = vunpack.c.l.b16 %v1058_v23  ;;  %v1163_v35 = vunpack.c.h.b16 %v1058_v23  ;;  %v5236_v24 = vor.u32 %v5565_v42, %v5235_v49  ;;  %v5256_v59 = vor.u32 %v5569_v5, %v5255_v46 }
 0x243   : > { %v4185_v41 = vadd.f32 %v4184_v22, %v4154_v32  ;;  %v3990_v1 = vadd.f32 %v7006_v7, %v3890_v47  ;;  %v2916_v15 = vpop.f32.mrf.mxu1  ;;  %v7262_v22 = vld [vmem:[#allocation10_spill] sm:$0xff] }
 0x244   : > { %v3699_v45 = vpop.f32.mrf.mxu3  ;;  %v2917_v60 = vadd.f32 %v2916_v15, %v6865_v17  ;;  %v7056_v25 = vpop.f32.mrf.mxu0  ;;  %v1233_v43 = vpack.c.b16 %v1161_v52, %v1161_v52  ;;  %v1235_v36 = vpack.c.b16 %v1163_v35, %v1163_v35  ;;  %v5237_v32 = vld [vmem:[#allocation2 + $0x15c] sm:$0xf0] }
 0x245   : > { %v4022_v61 = vpack.c.bf16 %v3990_v1, %v3990_v1  ;;  %v5677_v54 = vpack.c.bf16 %v3990_v1, %v3989_v4  ;;  %v3700_v8 = vadd.f32 %v3699_v45, %v3610_v50  ;;  %v5564_v50 = vld [vmem:[#allocation2 + $0x154] sm:$0xf] }
 0x246   : > { %v3612_v3 = vpop.f32.mrf.mxu2  ;;  %v7061_v13 = vadd.f32 %v2917_v60, %v7262_v22  ;;  %2955 = vmatmul.bf16.gmra.mxu1 %v4908_v28  ;;  %1377 = vst [vmem:[#allocation2 + $0x188] sm:$0xf] %v1233_v43  ;;  %v5240_v60 = vor.u32 %v5564_v50, %v5237_v32 }
 0x247   : > { %5760 = vst [vmem:[%s7019_s22 + $0x10] sm:$0xff] %v5677_v54   ;;  %v4086_v14 = vunpack.c.l.bf16 %v4022_v61  ;;  %v3789_v17 = vadd.f32 %v7029_v58, %v3700_v8  ;;  %v5497_v61 = vld [vmem:[#allocation2 + $0x160] sm:$0xf0] }
 0x248   : > { %1379 = vst [vmem:[#allocation2 + $0x194] sm:$0xf] %v1235_v36 }
 0x249   : > { %v4117_v34 = vadd.f32 %v4116_v40, %v4086_v14  ;;  %v4155_v44 = vmul.f32 %v4086_v14, %v4086_v14  ;;  %v3891_v4 = vadd.f32 %v3789_v17, %v7038_v29  ;;  %v5247_v17 = vld [vmem:[#allocation2 + $0x168] sm:$0xf] }
 0x24b   : > { %v4186_v47 = vadd.f32 %v4185_v41, %v4155_v44  ;;  %v3991_v28 = vadd.f32 %v7006_v7, %v3891_v4  ;;  %3654 = vmatmul.bf16.gmra.mxu2 %v5236_v24  ;;  %v2918_v33 = vpop.f32.mrf.mxu1  ;;  %v4919_v41 = vld [vmem:[#allocation2 + $0x158] sm:$0xf]  ;;  %v5568_v24 = vld [vmem:[#allocation2 + $0x170] sm:$0xf0] }
 0x24c   : > { %v3701_v58 = vpop.f32.mrf.mxu3  ;;  %v2919_v1 = vadd.f32 %v2918_v33, %v6879_v39  ;;  %v7068_v15 = vpop.f32.mrf.mxu0  ;;  %v4920_v39 = vor.u32 %v5497_v61, %v4919_v41  ;;  %v5248_v4 = vor.u32 %v5568_v24, %v5247_v17 }
 0x24d   : > { %v4023_v45 = vpack.c.bf16 %v3991_v28, %v3991_v28  ;;  %v3702_v40 = vadd.f32 %v3701_v58, %v3612_v3  ;;  %v5267_v50 = vld [vmem:[#allocation2 + $0x188] sm:$0xf]  ;;  %v5249_v58 = vld [vmem:[#allocation2 + $0x174] sm:$0xf0] }
 0x24e   : > { %v3615_v49 = vpop.f32.mrf.mxu2  ;;  %v3017_v29 = vadd.f32 %v2919_v1, %v6876_v37 }
 0x24f   : > { %v4087_v42 = vunpack.c.l.bf16 %v4023_v45  ;;  %v3791_v23 = vadd.f32 %v7035_v10, %v3702_v40  ;;  %3837 = vmatmul.bf16.gmra.mxu0 %v5256_v59  ;;  %v5572_v32 = vld [vmem:[#allocation2 + $0x190] sm:$0xf0]  ;;  %v5567_v59 = vld [vmem:[#allocation2 + $0x16c] sm:$0xf] }
 0x251   : > { %v4118_v54 = vadd.f32 %v4117_v34, %v4087_v42  ;;  %v4156_v8 = vmul.f32 %v4087_v42, %v4087_v42  ;;  %v3892_v52 = vadd.f32 %v3791_v23, %v7047_v63  ;;  %3743 = vmatmul.bf16.gmra.mxu3 %v5240_v60  ;;  %v5252_v23 = vor.u32 %v5567_v59, %v5249_v58  ;;  %v5570_v59 = vld [vmem:[#allocation2 + $0x184] sm:$0xf]  ;;  %v5261_v58 = vld [vmem:[#allocation2 + $0x18c] sm:$0xf0] }
 0x253   : > { %v4187_v22 = vadd.f32 %v4186_v47, %v4156_v8  ;;  %v3992_v3 = vadd.f32 %v7006_v7, %v3892_v52  ;;  %v2921_v35 = vpop.f32.mrf.mxu1  ;;  %v4931_v8 = vld [vmem:[#allocation2 + $0x170] sm:$0xf]  ;;  %v5500_v52 = vld [vmem:[#allocation2 + $0x178] sm:$0xf0] }
 0x254   : > { %v3704_v14 = vpop.f32.mrf.mxu3  ;;  %v2922_v37 = vadd.f32 %v2921_v35, %v6885_v53  ;;  %v7075_v10 = vpop.f32.mrf.mxu0 }
 0x255   : > { %v4024_v43 = vpack.c.bf16 %v3992_v3, %v3992_v3  ;;  %v5682_v46 = vpack.c.bf16 %v3992_v3, %v3991_v28  ;;  %v3705_v5 = vadd.f32 %v3704_v14, %v3615_v49 }
 0x256   : > { %v3617_v36 = vpop.f32.mrf.mxu2  ;;  %v3018_v63 = vadd.f32 %v2922_v37, %v6882_v56  ;;  %2960 = vmatmul.bf16.gmra.mxu1 %v4920_v39  ;;  %v5268_v56 = vor.u32 %v5572_v32, %v5267_v50  ;;  %v5279_v32 = vld [vmem:[#allocation2 + $0x1a0] sm:$0xf] }
 0x257   : > { %5761 = vst [vmem:[%s7019_s22 + $0x18] sm:$0xff] %v5682_v46   ;;  %v4088_v34 = vunpack.c.l.bf16 %v4024_v43  ;;  %v3794_v44 = vadd.f32 %v7044_v16, %v3705_v5  ;;  %v5571_v43 = vld [vmem:[#allocation2 + $0x188] sm:$0xf0] }
 0x259   : > { %v4119_v47 = vadd.f32 %v4118_v54, %v4088_v34  ;;  %v4157_v53 = vmul.f32 %v4088_v34, %v4088_v34  ;;  %v3893_v33 = vadd.f32 %v3794_v44, %v7061_v13 }
 0x25b   : > { %v4188_v1 = vadd.f32 %v4187_v22, %v4157_v53  ;;  %v3993_v28 = vadd.f32 %v7006_v7, %v3893_v33  ;;  %3659 = vmatmul.bf16.gmra.mxu2 %v5248_v4  ;;  %v2923_v45 = vpop.f32.mrf.mxu1 }
 0x25c   : > { %v3706_v40 = vpop.f32.mrf.mxu3  ;;  %v2924_v60 = vadd.f32 %v2923_v45, %v6891_v30  ;;  %v7083_v49 = vpop.f32.mrf.mxu0  ;;  %v4932_v30 = vor.u32 %v5500_v52, %v4931_v8  ;;  %v5503_v8 = vld [vmem:[#allocation2 + $0x190] sm:$0xf0] }
 0x25d   : > { %v4025_v16 = vpack.c.bf16 %v3993_v28, %v3993_v28  ;;  %v3707_v42 = vadd.f32 %v3706_v40, %v3617_v36 }
 0x25e   : > { %v3620_v41 = vpop.f32.mrf.mxu2  ;;  %v3019_v61 = vadd.f32 %v2924_v60, %v6888_v6  ;;  %v5259_v6 = vld [vmem:[#allocation2 + $0x180] sm:$0xf] }
 0x25f   : > { %v4089_v13 = vunpack.c.l.bf16 %v4025_v16  ;;  %v3796_v54 = vadd.f32 %v7056_v25, %v3707_v42  ;;  %3842 = vmatmul.bf16.gmra.mxu0 %v5268_v56  ;;  %v5260_v50 = vor.u32 %v5571_v43, %v5259_v6  ;;  %v5264_v42 = vor.u32 %v5570_v59, %v5261_v58 }
 0x261   : > { %v4120_v39 = vadd.f32 %v4119_v47, %v4089_v13  ;;  %v4158_v22 = vmul.f32 %v4089_v13, %v4089_v13  ;;  %v3894_v3 = vadd.f32 %v3796_v54, %v3017_v29  ;;  %3748 = vmatmul.bf16.gmra.mxu3 %v5252_v23  ;;  %v5575_v47 = vld [vmem:[#allocation2 + $0x1a8] sm:$0xf0]  ;;  %v4943_v54 = vld [vmem:[#allocation2 + $0x188] sm:$0xf] }
 0x262   : > { %v5280_v56 = vor.u32 %v5575_v47, %v5279_v32  ;;  %v5573_v47 = vld [vmem:[#allocation2 + $0x19c] sm:$0xf] }
 0x263   : > { %v4189_v35 = vadd.f32 %v4188_v1, %v4158_v22  ;;  %v3994_v14 = vadd.f32 %v7006_v7, %v3894_v3  ;;  %v2926_v37 = vpop.f32.mrf.mxu1 }
 0x264   : > { %v3709_v17 = vpop.f32.mrf.mxu3  ;;  %v2927_v24 = vadd.f32 %v2926_v37, %v6896_v11  ;;  %v7089_v46 = vpop.f32.mrf.mxu0 }
 0x265   : > { %v4026_v25 = vpack.c.bf16 %v3994_v14, %v3994_v14  ;;  %v5687_v5 = vpack.c.bf16 %v3994_v14, %v3993_v28  ;;  %v3710_v36 = vadd.f32 %v3709_v17, %v3620_v41  ;;  %v5574_v17 = vld [vmem:[#allocation2 + $0x1a0] sm:$0xf0] }
 0x266   : > { %v3622_v34 = vpop.f32.mrf.mxu2  ;;  %v3020_v29 = vadd.f32 %v2927_v24, %v6894_v0  ;;  %2965 = vmatmul.bf16.gmra.mxu1 %v4932_v30 }
 0x267   : > { %5762 = vst [vmem:[%s7019_s22 + $0x20] sm:$0xff] %v5687_v5   ;;  %v4090_v44 = vunpack.c.l.bf16 %v4026_v25  ;;  %v3799_v4 = vadd.f32 %v7068_v15, %v3710_v36  ;;  %v7263_v5 = vld [vmem:[#allocation11_spill] sm:$0xff] }
 0x269   : > { %v4121_v53 = vadd.f32 %v4120_v39, %v4090_v44  ;;  %v4159_v11 = vmul.f32 %v4090_v44, %v4090_v44  ;;  %v3895_v33 = vadd.f32 %v3799_v4, %v3018_v63 }
 0x26b   : > { %v4190_v1 = vadd.f32 %v4189_v35, %v4159_v11  ;;  %v3995_v28 = vadd.f32 %v7006_v7, %v3895_v33  ;;  %3664 = vmatmul.bf16.gmra.mxu2 %v5260_v50  ;;  %v2928_v45 = vpop.f32.mrf.mxu1 }
 0x26c   : > { %v3711_v0 = vpop.f32.mrf.mxu3  ;;  %v2929_v40 = vadd.f32 %v2928_v45, %v6901_v48  ;;  %v7096_v60 = vpop.f32.mrf.mxu0  ;;  %v4944_v48 = vor.u32 %v5503_v8, %v4943_v54 }
 0x26d   : > { %v4027_v15 = vpack.c.bf16 %v3995_v28, %v3995_v28  ;;  %v3712_v16 = vadd.f32 %v3711_v0, %v3622_v34 }
 0x26e   : > { %v3625_v23 = vpop.f32.mrf.mxu2  ;;  %v3021_v41 = vadd.f32 %v2929_v40, %v6899_v38  ;;  %v5271_v38 = vld [vmem:[#allocation2 + $0x198] sm:$0xf] }
 0x26f   : > { %v4091_v63 = vunpack.c.l.bf16 %v4027_v15  ;;  %v3801_v13 = vadd.f32 %v7075_v10, %v3712_v16  ;;  %3847 = vmatmul.bf16.gmra.mxu0 %v5280_v56  ;;  %v5272_v44 = vor.u32 %v5574_v17, %v5271_v38 }
 0x271   : > { %v4122_v52 = vadd.f32 %v4121_v53, %v4091_v63  ;;  %v4160_v39 = vmul.f32 %v4091_v63, %v4091_v63  ;;  %v3896_v22 = vadd.f32 %v3801_v13, %v3019_v61  ;;  %3753 = vmatmul.bf16.gmra.mxu3 %v5264_v42 }
 0x273   : > { %v4191_v3 = vadd.f32 %v4190_v1, %v4160_v39  ;;  %v3996_v30 = vadd.f32 %v7006_v7, %v3896_v22  ;;  %v2931_v35 = vpop.f32.mrf.mxu1 }
 0x274   : > { %v3714_v14 = vpop.f32.mrf.mxu3  ;;  %v2932_v37 = vadd.f32 %v2931_v35, %v6906_v19  ;;  %v3810_v24 = vpop.f32.mrf.mxu0  ;;  %v5273_v19 = vld [vmem:[#allocation2 + $0x1a4] sm:$0xf0] }
 0x275   : > { %v4028_v10 = vpack.c.bf16 %v3996_v30, %v3996_v30  ;;  %v5692_v6 = vpack.c.bf16 %v3996_v30, %v3995_v28  ;;  %v3715_v43 = vadd.f32 %v3714_v14, %v3625_v23  ;;  %v5276_v56 = vor.u32 %v5573_v47, %v5273_v19  ;;  %v7265_v30 = vld [vmem:[#allocation13_spill] sm:$0xff] }
 0x276   : > { %v3627_v25 = vpop.f32.mrf.mxu2  ;;  %v3022_v36 = vadd.f32 %v2932_v37, %v7263_v5  ;;  %2970 = vmatmul.bf16.gmra.mxu1 %v4944_v48 }
 0x277   : > { %5763 = vst [vmem:[%s7019_s22 + $0x28] sm:$0xff] %v5692_v6   ;;  %v4092_v61 = vunpack.c.l.bf16 %v4028_v10  ;;  %v3804_v34 = vadd.f32 %v7083_v49, %v3715_v43  ;;  %v7264_v49 = vld [vmem:[#allocation12_spill] sm:$0xff] }
 0x279   : > { %v4123_v4 = vadd.f32 %v4122_v52, %v4092_v61  ;;  %v4161_v50 = vmul.f32 %v4092_v61, %v4092_v61  ;;  %v3897_v32 = vadd.f32 %v3804_v34, %v3020_v29 }
 0x27b   : > { %v4192_v53 = vadd.f32 %v4191_v3, %v4161_v50  ;;  %v3997_v11 = vadd.f32 %v7006_v7, %v3897_v32  ;;  %3669 = vmatmul.bf16.gmra.mxu2 %v5272_v44  ;;  %v2933_v33 = vpop.f32.mrf.mxu1  ;;  %v7266_v44 = vld [vmem:[#allocation14_spill] sm:$0xff] }
 0x27c   : > { %v3716_v59 = vpop.f32.mrf.mxu3  ;;  %v2934_v58 = vadd.f32 %v2933_v33, %v6911_v20  ;;  %v3813_v1 = vpop.f32.mrf.mxu0 }
 0x27d   : > { %v4029_v28 = vpack.c.bf16 %v3997_v11, %v3997_v11  ;;  %v3717_v45 = vadd.f32 %v3716_v59, %v3627_v25 }
 0x27e   : > { %v3630_v0 = vpop.f32.mrf.mxu2  ;;  %v3023_v40 = vadd.f32 %v2934_v58, %v7264_v49 }
 0x27f   : > { %v4093_v15 = vunpack.c.l.bf16 %v4029_v28  ;;  %v3806_v29 = vadd.f32 %v7089_v46, %v3717_v45 }
 0x281   : > { %v4124_v16 = vadd.f32 %v4123_v4, %v4093_v15  ;;  %v4162_v42 = vmul.f32 %v4093_v15, %v4093_v15  ;;  %v3898_v23 = vadd.f32 %v3806_v29, %v3021_v41  ;;  %3758 = vmatmul.bf16.gmra.mxu3 %v5276_v56  ;;  %v7267_v56 = vld [vmem:[#allocation15_spill] sm:$0xff] }
 0x283   : > { %v4193_v63 = vadd.f32 %v4192_v53, %v4162_v42  ;;  %v3998_v13 = vadd.f32 %v7006_v7, %v3898_v23  ;;  %v2936_v54 = vpop.f32.mrf.mxu1 }
 0x284   : > { %v3719_v20 = vpop.f32.mrf.mxu3  ;;  %v2937_v8 = vadd.f32 %v2936_v54, %v6916_v21  ;;  %v3815_v52 = vpop.f32.mrf.mxu0 }
 0x285   : > { %v4030_v39 = vpack.c.bf16 %v3998_v13, %v3998_v13  ;;  %v5697_v22 = vpack.c.bf16 %v3998_v13, %v3997_v11  ;;  %v3720_v48 = vadd.f32 %v3719_v20, %v3630_v0 }
 0x286   : > { %v3632_v3 = vpop.f32.mrf.mxu2  ;;  %v3024_v35 = vadd.f32 %v2937_v8, %v7265_v30 }
 0x287   : > { %5764 = vst [vmem:[%s7019_s22 + $0x30] sm:$0xff] %v5697_v22   ;;  %v4094_v46 = vunpack.c.l.bf16 %v4030_v39  ;;  %v3809_v14 = vadd.f32 %v7096_v60, %v3720_v48  ;;  %v7268_v39 = vld [vmem:[#allocation16_spill] sm:$0xff] }
 0x289   : > { %v4125_v41 = vadd.f32 %v4124_v16, %v4094_v46  ;;  %v4163_v37 = vmul.f32 %v4094_v46, %v4094_v46  ;;  %v3899_v38 = vadd.f32 %v3809_v14, %v3022_v36 }
 0x28b   : > { %v4194_v17 = vadd.f32 %v4193_v63, %v4163_v37  ;;  %v3999_v10 = vadd.f32 %v7006_v7, %v3899_v38  ;;  %v2938_v6 = vpop.f32.mrf.mxu1 }
 0x28c   : > { %v3721_v43 = vpop.f32.mrf.mxu3  ;;  %v2939_v21 = vadd.f32 %v2938_v6, %v6921_v18  ;;  %v3818_v25 = vpop.f32.mrf.mxu0 }
 0x28d   : > { %v4031_v5 = vpack.c.bf16 %v3999_v10, %v3999_v10  ;;  %v3722_v61 = vadd.f32 %v3721_v43, %v3632_v3 }
 0x28e   : > { %v3635_v34 = vpop.f32.mrf.mxu2  ;;  %v3025_v4 = vadd.f32 %v2939_v21, %v7266_v44  ;;  %v7269_v21 = vld [vmem:[#allocation17_spill] sm:$0xff] }
 0x28f   : > { %v4095_v50 = vunpack.c.l.bf16 %v4031_v5  ;;  %v3811_v32 = vadd.f32 %v3810_v24, %v3722_v61 }
 0x291   : > { %v4126_v60 = vadd.f32 %v4125_v41, %v4095_v50  ;;  %v4164_v47 = vmul.f32 %v4095_v50, %v4095_v50  ;;  %v3900_v19 = vadd.f32 %v3811_v32, %v3023_v40 }
 0x293   : > { %v4195_v36 = vadd.f32 %v4194_v17, %v4164_v47  ;;  %v4000_v53 = vadd.f32 %v7006_v7, %v3900_v19  ;;  %v2941_v11 = vpop.f32.mrf.mxu1 }
 0x294   : > { %v3724_v33 = vpop.f32.mrf.mxu3  ;;  %v2942_v59 = vadd.f32 %v2941_v11, %v6926_v27  ;;  %v3820_v49 = vpop.f32.mrf.mxu0 }
 0x295   : > { %v4032_v18 = vpack.c.bf16 %v4000_v53, %v4000_v53  ;;  %v5702_v58 = vpack.c.bf16 %v4000_v53, %v3999_v10  ;;  %v3725_v28 = vadd.f32 %v3724_v33, %v3635_v34  ;;  %v7270_v33 = vld [vmem:[#allocation18_spill] sm:$0xff] }
 0x296   : > { %v3637_v45 = vpop.f32.mrf.mxu2  ;;  %v3026_v0 = vadd.f32 %v2942_v59, %v7267_v56 }
 0x297   : > { %5765 = vst [vmem:[%s7019_s22 + $0x38] sm:$0xff] %v5702_v58   ;;  %v4096_v15 = vunpack.c.l.bf16 %v4032_v18  ;;  %v3814_v24 = vadd.f32 %v3813_v1, %v3725_v28 }
 0x299   : > { %v4127_v29 = vadd.f32 %v4126_v60, %v4096_v15  ;;  %v4165_v16 = vmul.f32 %v4096_v15, %v4096_v15  ;;  %v3901_v40 = vadd.f32 %v3814_v24, %v3024_v35 }
 0x29b   : > { %v4196_v42 = vadd.f32 %v4195_v36, %v4165_v16  ;;  %v4001_v23 = vadd.f32 %v7006_v7, %v3901_v40  ;;  %v2943_v63 = vpop.f32.mrf.mxu1 }
 0x29c   : > { %v3726_v13 = vpop.f32.mrf.mxu3  ;;  %v2944_v27 = vadd.f32 %v2943_v63, %v6931_v57  ;;  %v3823_v30 = vpop.f32.mrf.mxu0  ;;  %v7271_v63 = vld [vmem:[#allocation19_spill] sm:$0xff] }
 0x29d   : > { %v4033_v54 = vpack.c.bf16 %v4001_v23, %v4001_v23  ;;  %v3727_v20 = vadd.f32 %v3726_v13, %v3637_v45 }
 0x29e   : > { %v3640_v8 = vpop.f32.mrf.mxu2  ;;  %v3027_v22 = vadd.f32 %v2944_v27, %v7268_v39 }
 0x29f   : > { %v4097_v48 = vunpack.c.l.bf16 %v4033_v54  ;;  %v3816_v3 = vadd.f32 %v3815_v52, %v3727_v20 }
 0x2a1   : > { %v4128_v1 = vadd.f32 %v4127_v29, %v4097_v48  ;;  %v4166_v46 = vmul.f32 %v4097_v48, %v4097_v48  ;;  %v3902_v14 = vadd.f32 %v3816_v3, %v3025_v4 }
 0x2a3   : > { %v4197_v35 = vadd.f32 %v4196_v42, %v4166_v46  ;;  %v4002_v41 = vadd.f32 %v7006_v7, %v3902_v14  ;;  %v2946_v37 = vpop.f32.mrf.mxu1 }
 0x2a4   : > { %v3729_v38 = vpop.f32.mrf.mxu3  ;;  %v2947_v17 = vadd.f32 %v2946_v37, %v6936_v12  ;;  %v3825_v4 = vpop.f32.mrf.mxu0 }
 0x2a5   : > { %v4034_v57 = vpack.c.bf16 %v4002_v41, %v4002_v41  ;;  %v5707_v10 = vpack.c.bf16 %v4002_v41, %v4001_v23  ;;  %v3730_v6 = vadd.f32 %v3729_v38, %v3640_v8 }
 0x2a6   : > { %v3642_v43 = vpop.f32.mrf.mxu2  ;;  %v3028_v5 = vadd.f32 %v2947_v17, %v7269_v21 }
 0x2a7   : > { %5766 = vst [vmem:[%s7019_s22 + $0x40] sm:$0xff] %v5707_v10   ;;  %v4098_v61 = vunpack.c.l.bf16 %v4034_v57  ;;  %v3819_v52 = vadd.f32 %v3818_v25, %v3730_v6 }
 0x2a9   : > { %v4129_v34 = vadd.f32 %v4128_v1, %v4098_v61  ;;  %v4167_v44 = vmul.f32 %v4098_v61, %v4098_v61  ;;  %v3903_v50 = vadd.f32 %v3819_v52, %v3026_v0 }
 0x2ab   : > { %v4198_v32 = vadd.f32 %v4197_v35, %v4167_v44  ;;  %v4003_v60 = vadd.f32 %v7006_v7, %v3903_v50  ;;  %v2948_v47 = vpop.f32.mrf.mxu1  ;;  %v7272_v35 = vld [vmem:[#allocation20_spill] sm:$0xff]  ;;  %v7273_v50 = vld [vmem:[#allocation21_spill] sm:$0xff] }
 0x2ac   : > { %v3731_v19 = vpop.f32.mrf.mxu3  ;;  %v2949_v12 = vadd.f32 %v2948_v47, %v6941_v55  ;;  %v3828_v16 = vpop.f32.mrf.mxu0 }
 0x2ad   : > { %v4035_v36 = vpack.c.bf16 %v4003_v60, %v4003_v60  ;;  %v3732_v53 = vadd.f32 %v3731_v19, %v3642_v43 }
 0x2ae   : > { %v3645_v11 = vpop.f32.mrf.mxu2  ;;  %v3029_v59 = vadd.f32 %v2949_v12, %v7270_v33 }
 0x2af   : > { %v4099_v18 = vunpack.c.l.bf16 %v4035_v36  ;;  %v3821_v58 = vadd.f32 %v3820_v49, %v3732_v53 }
 0x2b1   : > { %v4130_v25 = vadd.f32 %v4129_v34, %v4099_v18  ;;  %v4168_v28 = vmul.f32 %v4099_v18, %v4099_v18  ;;  %v3904_v45 = vadd.f32 %v3821_v58, %v3027_v22 }
 0x2b3   : > { %v4199_v56 = vadd.f32 %v4198_v32, %v4168_v28  ;;  %v4004_v0 = vadd.f32 %v7006_v7, %v3904_v45  ;;  %v2951_v15 = vpop.f32.mrf.mxu1  ;;  %v7274_v28 = vld [vmem:[#allocation22_spill] sm:$0xff] }
 0x2b4   : > { %v3734_v24 = vpop.f32.mrf.mxu3  ;;  %v2952_v29 = vadd.f32 %v2951_v15, %v6946_v62  ;;  %v3830_v37 = vpop.f32.mrf.mxu0 }
 0x2b5   : > { %v4036_v55 = vpack.c.bf16 %v4004_v0, %v4004_v0  ;;  %v5712_v40 = vpack.c.bf16 %v4004_v0, %v4003_v60  ;;  %v3735_v42 = vadd.f32 %v3734_v24, %v3645_v11 }
 0x2b6   : > { %v3647_v23 = vpop.f32.mrf.mxu2  ;;  %v3030_v13 = vadd.f32 %v2952_v29, %v7271_v63 }
 0x2b7   : > { %5767 = vst [vmem:[%s7019_s22 + $0x48] sm:$0xff] %v5712_v40   ;;  %v4100_v27 = vunpack.c.l.bf16 %v4036_v55  ;;  %v3824_v49 = vadd.f32 %v3823_v30, %v3735_v42 }
 0x2b9   : > { %v4131_v54 = vadd.f32 %v4130_v25, %v4100_v27  ;;  %v4169_v20 = vmul.f32 %v4100_v27, %v4100_v27  ;;  %v3905_v8 = vadd.f32 %v3824_v49, %v3028_v5 }
 0x2bb   : > { %v4200_v39 = vadd.f32 %v4199_v56, %v4169_v20  ;;  %v4005_v22 = vadd.f32 %v7006_v7, %v3905_v8  ;;  %v2953_v48 = vpop.f32.mrf.mxu1 }
 0x2bc   : > { %v3736_v3 = vpop.f32.mrf.mxu3  ;;  %v2954_v62 = vadd.f32 %v2953_v48, %v6951_v2 }
 0x2bd   : > { %v4037_v1 = vpack.c.bf16 %v4005_v22, %v4005_v22  ;;  %v3737_v46 = vadd.f32 %v3736_v3, %v3647_v23 }
 0x2be   : > { %v3650_v14 = vpop.f32.mrf.mxu2  ;;  %v3031_v41 = vadd.f32 %v2954_v62, %v7272_v35 }
 0x2bf   : > { %v4101_v38 = vunpack.c.l.bf16 %v4037_v1  ;;  %v3826_v17 = vadd.f32 %v3825_v4, %v3737_v46  ;;  %v3833_v4 = vpop.f32.mrf.mxu0 }
 0x2c1   : > { %v4132_v30 = vadd.f32 %v4131_v54, %v4101_v38  ;;  %v4170_v57 = vmul.f32 %v4101_v38, %v4101_v38  ;;  %v3906_v10 = vadd.f32 %v3826_v17, %v3029_v59  ;;  %v7275_v54 = vld [vmem:[#allocation23_spill] sm:$0xff]  ;;  %v7276_v17 = vld [vmem:[#allocation24_spill] sm:$0xff] }
 0x2c3   : > { %v4201_v6 = vadd.f32 %v4200_v39, %v4170_v57  ;;  %v4006_v43 = vadd.f32 %v7006_v7, %v3906_v10  ;;  %v2956_v21 = vpop.f32.mrf.mxu1 }
 0x2c4   : > { %v3739_v5 = vpop.f32.mrf.mxu3  ;;  %v2957_v61 = vadd.f32 %v2956_v21, %v6956_v26 }
 0x2c5   : > { %v4038_v2 = vpack.c.bf16 %v4006_v43, %v4006_v43  ;;  %v5717_v52 = vpack.c.bf16 %v4006_v43, %v4005_v22  ;;  %v3740_v34 = vadd.f32 %v3739_v5, %v3650_v14 }
 0x2c6   : > { %v3652_v44 = vpop.f32.mrf.mxu2  ;;  %v3032_v32 = vadd.f32 %v2957_v61, %v7273_v50 }
 0x2c7   : > { %5768 = vst [vmem:[%s7019_s22 + $0x50] sm:$0xff] %v5717_v52   ;;  %v4102_v60 = vunpack.c.l.bf16 %v4038_v2  ;;  %v3829_v47 = vadd.f32 %v3828_v16, %v3740_v34  ;;  %v3835_v16 = vpop.f32.mrf.mxu0  ;;  %v7277_v34 = vld [vmem:[#allocation26_spill] sm:$0xff] }
 0x2c9   : > { %v4133_v19 = vadd.f32 %v4132_v30, %v4102_v60  ;;  %v4171_v12 = vmul.f32 %v4102_v60, %v4102_v60  ;;  %v3907_v36 = vadd.f32 %v3829_v47, %v3030_v13 }
 0x2cb   : > { %v4202_v53 = vadd.f32 %v4201_v6, %v4171_v12  ;;  %v4007_v11 = vadd.f32 %v7006_v7, %v3907_v36  ;;  %v2958_v33 = vpop.f32.mrf.mxu1 }
 0x2cc   : > { %v3741_v59 = vpop.f32.mrf.mxu3  ;;  %v2959_v26 = vadd.f32 %v2958_v33, %v6961_v31 }
 0x2cd   : > { %v4039_v18 = vpack.c.bf16 %v4007_v11, %v4007_v11  ;;  %v3742_v58 = vadd.f32 %v3741_v59, %v3652_v44 }
 0x2ce   : > { %v3655_v25 = vpop.f32.mrf.mxu2  ;;  %v3033_v45 = vadd.f32 %v2959_v26, %v7274_v28 }
 0x2cf   : > { %v4103_v56 = vunpack.c.l.bf16 %v4039_v18  ;;  %v3831_v0 = vadd.f32 %v3830_v37, %v3742_v58  ;;  %v3838_v35 = vpop.f32.mrf.mxu0 }
 0x2d1   : > { %v4134_v15 = vadd.f32 %v4133_v19, %v4103_v56  ;;  %v4172_v24 = vmul.f32 %v4103_v56, %v4103_v56  ;;  %v3908_v29 = vadd.f32 %v3831_v0, %v3031_v41 }
 0x2d3   : > { %v4203_v55 = vadd.f32 %v4202_v53, %v4172_v24  ;;  %v4008_v40 = vadd.f32 %v7006_v7, %v3908_v29  ;;  %v2961_v42 = vpop.f32.mrf.mxu1 }
 0x2d4   : > { %v3744_v23 = vpop.f32.mrf.mxu3  ;;  %v2962_v63 = vadd.f32 %v2961_v42, %v6966_v51 }
 0x2d5   : > { %v4040_v31 = vpack.c.bf16 %v4008_v40, %v4008_v40  ;;  %v5722_v13 = vpack.c.bf16 %v4008_v40, %v4007_v11  ;;  %v3745_v27 = vadd.f32 %v3744_v23, %v3655_v25  ;;  %v7279_v25 = vld [vmem:[#allocation28_spill] sm:$0xff] }
 0x2d6   : > { %v3657_v49 = vpop.f32.mrf.mxu2  ;;  %v3034_v20 = vadd.f32 %v2962_v63, %v7275_v54 }
 0x2d7   : > { %5769 = vst [vmem:[%s7019_s22 + $0x58] sm:$0xff] %v5722_v13   ;;  %v4104_v8 = vunpack.c.l.bf16 %v4040_v31  ;;  %v3834_v39 = vadd.f32 %v3833_v4, %v3745_v27  ;;  %v3840_v60 = vpop.f32.mrf.mxu0  ;;  %v7278_v4 = vld [vmem:[#allocation25_spill] sm:$0xff] }
 0x2d9   : > { %v4135_v22 = vadd.f32 %v4134_v15, %v4104_v8  ;;  %v4173_v48 = vmul.f32 %v4104_v8, %v4104_v8  ;;  %v3909_v3 = vadd.f32 %v3834_v39, %v3032_v32  ;;  %v7280_v15 = vld [vmem:[#allocation27_spill] sm:$0xff] }
 0x2db   : > { %v4204_v62 = vadd.f32 %v4203_v55, %v4173_v48  ;;  %v4009_v1 = vadd.f32 %v7006_v7, %v3909_v3  ;;  %v2963_v46 = vpop.f32.mrf.mxu1  ;;  %v7282_v48 = vld [vmem:[#allocation29_spill] sm:$0xff] }
 0x2dc   : > { %v3746_v14 = vpop.f32.mrf.mxu3  ;;  %v2964_v51 = vadd.f32 %v2963_v46, %v6971_v9 }
 0x2dd   : > { %v4041_v41 = vpack.c.bf16 %v4009_v1, %v4009_v1  ;;  %v3747_v37 = vadd.f32 %v3746_v14, %v3657_v49  ;;  %v7281_v49 = vld [vmem:[#allocation30_spill] sm:$0xff] }
 0x2de   : > { %v3660_v38 = vpop.f32.mrf.mxu2  ;;  %v3035_v30 = vadd.f32 %v2964_v51, %v7276_v17 }
 0x2df   : > { %v4105_v57 = vunpack.c.l.bf16 %v4041_v41  ;;  %v3836_v10 = vadd.f32 %v3835_v16, %v3747_v37  ;;  %v3843_v55 = vpop.f32.mrf.mxu0 }
 0x2e1   : > { %v4136_v6 = vadd.f32 %v4135_v22, %v4105_v57  ;;  %v4174_v43 = vmul.f32 %v4105_v57, %v4105_v57  ;;  %v3910_v21 = vadd.f32 %v3836_v10, %v3033_v45 }
 0x2e3   : > { %v4205_v5 = vadd.f32 %v4204_v62, %v4174_v43  ;;  %v4010_v61 = vadd.f32 %v7006_v7, %v3910_v21  ;;  %v2966_v2 = vpop.f32.mrf.mxu1  ;;  %v7159_v7 = vld [vmem:[%s7196_s6] ss:$0 sm:$0xff]  ;;  %v7284_v43 = vld [vmem:[#allocation31_spill] sm:$0xff] }
 0x2e4   : > { %v3749_v52 = vpop.f32.mrf.mxu3  ;;  %v2967_v44 = vadd.f32 %v2966_v2, %v7277_v34 }
 0x2e5   : > { %v4042_v50 = vpack.c.bf16 %v4010_v61, %v4010_v61  ;;  %v5727_v9 = vpack.c.bf16 %v4010_v61, %v4009_v1  ;;  %v3750_v32 = vadd.f32 %v3749_v52, %v3660_v38 }
 0x2e6   : > { %v3662_v47 = vpop.f32.mrf.mxu2  ;;  %v3036_v19 = vadd.f32 %v2967_v44, %v7278_v4 }
 0x2e7   : > { %5770 = vst [vmem:[%s7019_s22 + $0x60] sm:$0xff] %v5727_v9   ;;  %v4106_v12 = vunpack.c.l.bf16 %v4042_v50  ;;  %v3839_v36 = vadd.f32 %v3838_v35, %v3750_v32  ;;  %v3845_v51 = vpop.f32.mrf.mxu0 }
 0x2e9   : > { %v4137_v53 = vadd.f32 %v4136_v6, %v4106_v12  ;;  %v4175_v11 = vmul.f32 %v4106_v12, %v4106_v12  ;;  %v3911_v33 = vadd.f32 %v3839_v36, %v3034_v20 }
 0x2eb   : > { %v4206_v59 = vadd.f32 %v4205_v5, %v4175_v11  ;;  %v4011_v26 = vadd.f32 %v7159_v7, %v3911_v33  ;;  %v2968_v18 = vpop.f32.mrf.mxu1 }
 0x2ec   : > { %v3751_v58 = vpop.f32.mrf.mxu3  ;;  %v2969_v28 = vadd.f32 %v2968_v18, %v7279_v25 }
 0x2ed   : > { %v4043_v45 = vpack.c.bf16 %v4011_v26, %v4011_v26  ;;  %v3752_v56 = vadd.f32 %v3751_v58, %v3662_v47 }
 0x2ee   : > { %v3665_v0 = vpop.f32.mrf.mxu2  ;;  %v3037_v24 = vadd.f32 %v2969_v28, %v7280_v15 }
 0x2ef   : > { %v4107_v29 = vunpack.c.l.bf16 %v4043_v45  ;;  %v3841_v16 = vadd.f32 %v3840_v60, %v3752_v56  ;;  %v3848_v32 = vpop.f32.mrf.mxu0 }
 0x2f1   : > { %v4138_v40 = vadd.f32 %v4137_v53, %v4107_v29  ;;  %v4176_v42 = vmul.f32 %v4107_v29, %v4107_v29  ;;  %v3912_v23 = vadd.f32 %v3841_v16, %v3035_v30  ;;  %v7283_v30 = vld [vmem:[#allocation32_spill] sm:$0xff] }
 0x2f3   : > { %v4207_v63 = vadd.f32 %v4206_v59, %v4176_v42  ;;  %v4012_v31 = vadd.f32 %v7159_v7, %v3912_v23  ;;  %v2971_v13 = vpop.f32.mrf.mxu1 }
 0x2f4   : > { %v3754_v27 = vpop.f32.mrf.mxu3  ;;  %v2972_v54 = vadd.f32 %v2971_v13, %v7281_v49 }
 0x2f5   : > { %v4044_v20 = vpack.c.bf16 %v4012_v31, %v4012_v31  ;;  %v5732_v8 = vpack.c.bf16 %v4012_v31, %v4011_v26  ;;  %v3755_v39 = vadd.f32 %v3754_v27, %v3665_v0 }
 0x2f6   : > { %v3667_v22 = vpop.f32.mrf.mxu2  ;;  %v3038_v3 = vadd.f32 %v2972_v54, %v7282_v48 }
 0x2f7   : > { %5771 = vst [vmem:[%s7019_s22 + $0x68] sm:$0xff] %v5732_v8   ;;  %v4108_v62 = vunpack.c.l.bf16 %v4044_v20  ;;  %v3844_v1 = vadd.f32 %v3843_v55, %v3755_v39  ;;  %v3850_v45 = vpop.f32.mrf.mxu0 }
 0x2f9   : > { %v4139_v46 = vadd.f32 %v4138_v40, %v4108_v62  ;;  %v4177_v14 = vmul.f32 %v4108_v62, %v4108_v62  ;;  %v3913_v35 = vadd.f32 %v3844_v1, %v3036_v19 }
 0x2fb   : > { %v4208_v41 = vadd.f32 %v4207_v63, %v4177_v14  ;;  %v4013_v37 = vadd.f32 %v7159_v7, %v3913_v35  ;;  %v2973_v38 = vpop.f32.mrf.mxu1 }
 0x2fc   : > { %v3756_v17 = vpop.f32.mrf.mxu3  ;;  %v2974_v57 = vadd.f32 %v2973_v38, %v7283_v30 }
 0x2fd   : > { %v4045_v10 = vpack.c.bf16 %v4013_v37, %v4013_v37  ;;  %v3757_v6 = vadd.f32 %v3756_v17, %v3667_v22 }
 0x2fe   : > { %v3039_v21 = vadd.f32 %v2974_v57, %v7284_v43  ;;  %v3670_v2 = vpop.f32.mrf.mxu2 }
 0x2ff   : > { %v4109_v5 = vunpack.c.l.bf16 %v4045_v10  ;;  %v3846_v61 = vadd.f32 %v3845_v51, %v3757_v6 }
 0x301   : > { %v4140_v52 = vadd.f32 %v4139_v46, %v4109_v5  ;;  %v4178_v34 = vmul.f32 %v4109_v5, %v4109_v5  ;;  %v3914_v44 = vadd.f32 %v3846_v61, %v3037_v24 }
 0x303   : > { %v4209_v50 = vadd.f32 %v4208_v41, %v4178_v34  ;;  %v4014_v9 = vadd.f32 %v7159_v7, %v3914_v44 }
 0x304   : > { %v3759_v60 = vpop.f32.mrf.mxu3 }
 0x305   : > { %v4046_v47 = vpack.c.bf16 %v4014_v9, %v4014_v9  ;;  %v5737_v4 = vpack.c.bf16 %v4014_v9, %v4013_v37  ;;  %v3760_v19 = vadd.f32 %v3759_v60, %v3670_v2 }
 0x306   : > { %v3672_v59 = vpop.f32.mrf.mxu2 }
 0x307   : > { %5772 = vst [vmem:[%s7019_s22 + $0x70] sm:$0xff] %v5737_v4   ;;  %v4110_v12 = vunpack.c.l.bf16 %v4046_v47  ;;  %v3849_v36 = vadd.f32 %v3848_v32, %v3760_v19 }
 0x309   : > { %v4141_v53 = vadd.f32 %v4140_v52, %v4110_v12  ;;  %v4179_v11 = vmul.f32 %v4110_v12, %v4110_v12  ;;  %v3915_v33 = vadd.f32 %v3849_v36, %v3038_v3 }
 0x30b   : > { %v4210_v26 = vadd.f32 %v4209_v50, %v4179_v11  ;;  %v4015_v18 = vadd.f32 %v7159_v7, %v3915_v33 }
 0x30c   : > { %v3761_v58 = vpop.f32.mrf.mxu3 }
 0x30d   : > { %v4047_v25 = vpack.c.bf16 %v4015_v18, %v4015_v18  ;;  %v3762_v28 = vadd.f32 %v3761_v58, %v3672_v59 }
 0x30f   : > { %v4111_v56 = vunpack.c.l.bf16 %v4047_v25  ;;  %v3851_v0 = vadd.f32 %v3850_v45, %v3762_v28 }
 0x311   : > { %v4142_v15 = vadd.f32 %v4141_v53, %v4111_v56  ;;  %v4180_v24 = vmul.f32 %v4111_v56, %v4111_v56  ;;  %v3916_v29 = vadd.f32 %v3851_v0, %v3039_v21 }
 0x313   : > { %v4211_v16 = vadd.f32 %v4210_v26, %v4180_v24  ;;  %v4016_v55 = vadd.f32 %v7159_v7, %v3916_v29 }
 0x315   : > { %v4048_v40 = vpack.c.bf16 %v4016_v55, %v4016_v55  ;;  %v5742_v42 = vpack.c.bf16 %v4016_v55, %v4015_v18 }
 0x317   : > { %5773 = vst [vmem:[%s7019_s22 + $0x78] sm:$0xff] %v5742_v42   ;;  %v4112_v23 = vunpack.c.l.bf16 %v4048_v40 }
 0x319   : > { %v4143_v63 = vadd.f32 %v4142_v15, %v4112_v23  ;;  %v4181_v31 = vmul.f32 %v4112_v23, %v4112_v23 }
 0x31b   : > { %v4144_v13 = vrot.slane %v4143_v63, 4  ;;  %v4212_v27 = vadd.f32 %v4211_v16, %v4181_v31 }
 0x31d   : > { %v4145_v49 = vadd.f32 %v4144_v13, %v4143_v63  ;;  %v4213_v54 = vrot.slane %v4212_v27, 4 }
 0x31f   : > { %v4146_v20 = vrot.slane %v4145_v49, 2  ;;  %v4214_v8 = vadd.f32 %v4213_v54, %v4212_v27 }
 0x321   : > { %v4147_v39 = vadd.f32 %v4146_v20, %v4145_v49  ;;  %v4215_v22 = vrot.slane %v4214_v8, 2 }
 0x323   : > { %v4148_v48 = vrot.slane %v4147_v39, 1  ;;  %v4216_v3 = vadd.f32 %v4215_v22, %v4214_v8 }
 0x325   : > { %v4217_v62 = vrot.slane %v4216_v3, 1  ;;  %v4149_v7 = vadd.f32 %v4148_v48, %v4147_v39 }
 0x327   : > { %v4218_v1 = vadd.f32 %v4217_v62, %v4216_v3 }
 0x329   : > { %v4220_v46 = vsel %vm964_vm0, %v4149_v7, %v4218_v1 }
 0x32a   : > { %v4222_v14 = vsel %vm4221_vm6, %v4220_v46, 0.0 }
 0x32b   : > { %4223 = vst [vmem:[%s492_s16] sm:$0xff] %v4222_v14 }
 0x32c PF: > { %s19_s27 = sadd.s32 1, %s5851_s27   ;;  %s7285_s26 = smov %s5847_s2 }
 0x32d   : > { %p16_p5 = scmp.ge.s32.totalorder %s19_s27, 4   ;;  %s7286_s2 = smov %s7288_s28 }
 0x32f   :  { %18 = sbr.rel (!%p16_p5) target bundleno = 2 (0x2), region = 100 }

</bundles_post_ra>
